<compile_context>
chip_gen: v5e
topology: v5e:2x2
jax: 0.10.0
libtpu: 0.0.40
codegen_flags: <defaults>
</compile_context>

<pallas_src>
import jax
import jax.numpy as jnp
import numpy as np
from jax.experimental import pallas as pl
from jax.experimental.pallas import tpu as pltpu


LANE = 128          # feature (lane) padding granularity
TM_TARGET = 512     # output-row tile (keeps n_pad/tm >= 2 for megacore on multi-tile graphs)
TK_TARGET = 1024    # reduction tile (>= 0.5 MiB of int8 A per grid step)


def _round_up(x, m):
    return (x + m - 1) // m * m


def _pad_and_tiles(n):
    """Pick padded node count and (tm, tk) tiles; small graphs collapse to one tile."""
    if n <= TM_TARGET:
        n_pad = _round_up(n, 256)
        return n_pad, n_pad, n_pad
    n_pad = _round_up(n, TK_TARGET)
    return n_pad, TM_TARGET, TK_TARGET


def _vmem_limit_bytes():
    cap = 64 * 1024 * 1024                     # conservative fallback == v7x physical VMEM
    try:
        cap = int(pltpu.get_tpu_info().vmem_capacity_bytes)
    except Exception:
        pass
    # leave ~25% headroom: ~48 MiB on v7x, ~96 MiB on v5e/v6e.
    return min(cap * 3 // 4, 100 * 1024 * 1024)


# ----------------------------- Pallas kernel ------------------------------ #
def graph_conv_kernel(amap_ref, a_ref, x_ref, wcat_ref, b_ref, o_ref,
                      acc_ref, cat_ref):
    """One (i, k) grid step of: out = (A @ X) @ W_rel + X @ W_root + b.

    amap_ref : SMEM int32 [gi, gk]; amap[i,k] == k iff A tile (i,k) has edges,
               otherwise it points at the most recent non-empty tile in the row
               (so the A DMA for runs of empty tiles is skipped entirely).
    x_ref    : VMEM-resident full feature matrix (bf16).
    """
    i = pl.program_id(0)
    k = pl.program_id(1)
    tm, tk = a_ref.shape
    f_in = x_ref.shape[1]

    @pl.when(k == 0)
    def _init():
        acc_ref[...] = jnp.zeros_like(acc_ref)

    # Neighborhood aggregation, only for tiles that actually contain edges.
    @pl.when(amap_ref[i, k] == k)
    def _aggregate():
        a_bf16 = a_ref[...].astype(jnp.bfloat16)     # int8 -> bf16 (exact small counts)
        row0 = pl.multiple_of(k * tk, tk)
        xk = x_ref[pl.ds(row0, tk), :]               # neighbor slice of resident X
        acc_ref[...] += jnp.dot(a_bf16, xk, preferred_element_type=jnp.float32)

    @pl.when(k == pl.num_programs(1) - 1)
    def _finalize():
        row0 = pl.multiple_of(i * tm, tm)
        xi = x_ref[pl.ds(row0, tm), :]               # root/self slice of resident X
        # Fused epilogue: [agg | x_i] @ [W_rel ; W_root]  -> single K = 2*f_in matmul.
        cat_ref[:, 0:f_in] = acc_ref[...].astype(jnp.bfloat16)
        cat_ref[:, f_in:2 * f_in] = xi
        out = jnp.dot(cat_ref[...], wcat_ref[...], preferred_element_type=jnp.float32)
        out = out + b_ref[...]                       # f32 epilogue on the VPU
        o_ref[...] = out.astype(o_ref.dtype)         # cast only at the final store


def graph_conv_pallas(a_pad, amap, x_pad, w_cat_pad, b_pad, *, tm, tk,
                      out_dtype, vmem_limit):
    """One GraphConv layer on padded operands (A: int8, X/W: bf16, bias: f32)."""
    n_pad = a_pad.shape[0]
    f_in_pad = x_pad.shape[1]
    f_out_pad = w_cat_pad.shape[1]
    assert n_pad % tm == 0 and n_pad % tk == 0
    assert f_in_pad % LANE == 0 and f_out_pad % LANE == 0
    assert w_cat_pad.shape[0] == 2 * f_in_pad
    gi, gk = n_pad // tm, n_pad // tk

    # Resident-X path: full feature matrix (double-buffered bf16) must fit the VMEM budget.
    # TODO(synk): k-tiled X fallback + block-sparse CSR A for graphs where it does not.
    assert 2 * x_pad.size * x_pad.dtype.itemsize < vmem_limit // 2, \
        "feature matrix too large for the resident-X kernel"

    cost = pl.CostEstimate(
        flops=2 * n_pad * n_pad * f_in_pad                 # aggregation matmul
        + 2 * n_pad * (2 * f_in_pad) * f_out_pad,          # fused rel+root transform
        transcendentals=0,
        bytes_accessed=(a_pad.size * a_pad.dtype.itemsize          # A streamed once
                        + x_pad.size * x_pad.dtype.itemsize        # X resident: one DMA
                        + w_cat_pad.size * w_cat_pad.dtype.itemsize
                        + b_pad.size * b_pad.dtype.itemsize
                        + n_pad * f_out_pad * jnp.dtype(out_dtype).itemsize),
    )

    return pl.pallas_call(
        graph_conv_kernel,
        out_shape=jax.ShapeDtypeStruct((n_pad, f_out_pad), out_dtype),
        grid_spec=pltpu.PrefetchScalarGridSpec(
            num_scalar_prefetch=1,          # amap -> SMEM; drives index_map + tile skipping
            grid=(gi, gk),                  # reduction (k) axis last
            in_specs=[
                # A tile; empty tiles re-point at the last non-empty block -> DMA skipped.
                # (sweep pipeline_mode=pl.Buffered(3) here only if xprof shows exposed DMA)
                pl.BlockSpec((tm, tk), lambda i, k, amap: (i, amap[i, k])),
                # X fully VMEM-resident: constant block index -> single DMA for the run.
                pl.BlockSpec((n_pad, f_in_pad), lambda i, k, amap: (0, 0)),
                pl.BlockSpec((2 * f_in_pad, f_out_pad), lambda i, k, amap: (0, 0)),
                pl.BlockSpec((1, f_out_pad), lambda i, k, amap: (0, 0)),
            ],
            out_specs=pl.BlockSpec((tm, f_out_pad), lambda i, k, amap: (i, 0)),
            scratch_shapes=[
                pltpu.VMEM((tm, f_in_pad), jnp.float32),        # f32 accumulator
                pltpu.VMEM((tm, 2 * f_in_pad), jnp.bfloat16),   # fused-epilogue concat buf
            ],
        ),
        compiler_params=pltpu.CompilerParams(
            dimension_semantics=("parallel", "arbitrary"),
            vmem_limit_bytes=vmem_limit,
        ),
        cost_estimate=cost,
    )(amap, a_pad, x_pad, w_cat_pad, b_pad)


# ------------------------------ JAX glue ----------------------------------- #
def dense_adjacency_int8(edge_index, n_pad):
    """A[dst, src] += 1 per directed edge src->dst, built ONCE at padded size in int8.

    Assumes per-(dst,src) edge multiplicity <= 127 (exact in int8 and in bf16 upcast).
    """
    src = edge_index[0].astype(jnp.int32)
    dst = edge_index[1].astype(jnp.int32)
    a = jnp.zeros((n_pad, n_pad), jnp.int8)
    return a.at[dst, src].add(jnp.ones(src.shape, jnp.int8))


def _tile_map(a_pad, tm, tk):
    """Per-(i,k) tile remap: k if the A tile is non-empty, else last non-empty k' <= k."""
    n_pad = a_pad.shape[0]
    gi, gk = n_pad // tm, n_pad // tk
    occ = jnp.any(a_pad.reshape(gi, tm, gk, tk) != 0, axis=(1, 3))
    ks = jnp.arange(gk, dtype=jnp.int32)[None, :]
    last = jax.lax.cummax(jnp.where(occ, ks, jnp.int32(-1)), axis=1)
    return jnp.maximum(last, 0).astype(jnp.int32)


def _pad2d(x, rows, cols, dtype):
    out = jnp.zeros((rows, cols), dtype)
    return out.at[: x.shape[0], : x.shape[1]].set(x.astype(dtype))


def glorot(key, shape):
    fan_in, fan_out = shape
    limit = np.sqrt(6.0 / (fan_in + fan_out))
    return jax.random.uniform(key, shape, jnp.float32, -limit, limit)


class GraphConvEncoderPallas:
    """Deterministically-initialized equivalent of the PyTorch GraphConv_Encoder."""

    def __init__(self, in_channels, out_channels, key):
        k1, k2, k3, k4, k5, k6 = jax.random.split(key, 6)
        # conv1: in -> out
        self.w1_rel = glorot(k1, (in_channels, out_channels))
        self.w1_root = glorot(k2, (in_channels, out_channels))
        self.b1 = jax.random.uniform(k3, (out_channels,), jnp.float32, -0.1, 0.1)
        # conv2: out -> out
        self.w2_rel = glorot(k4, (out_channels, out_channels))
        self.w2_root = glorot(k5, (out_channels, out_channels))
        self.b2 = jax.random.uniform(k6, (out_channels,), jnp.float32, -0.1, 0.1)
        self.in_channels = in_channels
        self.out_channels = out_channels

    def __call__(self, x, edge_index):
        n, f_in = x.shape
        f_out = self.out_channels
        n_pad, tm, tk = _pad_and_tiles(n)
        f_in_pad = _round_up(f_in, LANE)
        f_out_pad = _round_up(f_out, LANE)
        vmem_limit = _vmem_limit_bytes()

        # int8 adjacency + block-occupancy table (built once, shared by both layers).
        a_pad = dense_adjacency_int8(edge_index, n_pad)
        amap = _tile_map(a_pad, tm, tk)

        x_pad = _pad2d(x, n_pad, f_in_pad, jnp.bfloat16)

        # Pre-concatenated [W_rel ; W_root] for the fused K=2*f_in epilogue matmul.
        w1cat = jnp.concatenate(
            [_pad2d(self.w1_rel, f_in_pad, f_out_pad, jnp.bfloat16),
             _pad2d(self.w1_root, f_in_pad, f_out_pad, jnp.bfloat16)], axis=0)
        b1p = _pad2d(self.b1.reshape(1, -1), 1, f_out_pad, jnp.float32)
        w2cat = jnp.concatenate(
            [_pad2d(self.w2_rel, f_out_pad, f_out_pad, jnp.bfloat16),
             _pad2d(self.w2_root, f_out_pad, f_out_pad, jnp.bfloat16)], axis=0)
        b2p = _pad2d(self.b2.reshape(1, -1), 1, f_out_pad, jnp.float32)

        # Layer 1 -> bf16 intermediate (halves the h round trip), layer 2 -> f32.
        h_pad = graph_conv_pallas(a_pad, amap, x_pad, w1cat, b1p, tm=tm, tk=tk,
                                  out_dtype=jnp.bfloat16, vmem_limit=vmem_limit)
        o_pad = graph_conv_pallas(a_pad, amap, h_pad, w2cat, b2p, tm=tm, tk=tk,
                                  out_dtype=jnp.float32, vmem_limit=vmem_limit)
        return o_pad[:n, :f_out]


def reference_forward(x, edge_index, model):
    """Pure-JAX f32 reference for correctness checking."""
    n = x.shape[0]
    src = edge_index[0]
    dst = edge_index[1]
    a = jnp.zeros((n, n), jnp.float32).at[dst, src].add(1.0)
    h = (a @ x) @ model.w1_rel + x @ model.w1_root + model.b1
    return (a @ h) @ model.w2_rel + h @ model.w2_root + model.b2


# --------------------------------- main ------------------------------------ #
if __name__ == "__main__":
    key = jax.random.PRNGKey(0)
    k_x, k_param = jax.random.split(key)

    # 1300 nodes pad to 2048 -> grid (4, 2): exercises the multi-tile i axis, the
    # empty-tile skip path and the amap DMA remapping (ring+skip graph is band-sparse).
    num_nodes = 1300
    in_channels = 8
    out_channels = 4

    # deterministic node features
    x = jax.random.normal(k_x, (num_nodes, in_channels), jnp.float32)

    # deterministic directed ring + skip edges, shape [2, E] (src; dst)
    src = np.concatenate([np.arange(num_nodes), np.arange(0, num_nodes, 3)])
    dst = np.concatenate([(np.arange(num_nodes) + 1) % num_nodes,
                          (np.arange(0, num_nodes, 3) + 7) % num_nodes])
    edge_index = jnp.asarray(np.stack([src, dst]), dtype=jnp.int32)

    model = GraphConvEncoderPallas(in_channels, out_channels, k_param)

    out = jax.block_until_ready(model(x, edge_index))

    ref = reference_forward(x, edge_index, model)
    assert out.shape == (num_nodes, out_channels)
    err = float(np.max(np.abs(np.asarray(out) - np.asarray(ref))))
    # bf16 X / weights / intermediate h -> relaxed tolerance vs the f32 reference
    assert np.allclose(np.asarray(out), np.asarray(ref), atol=5e-2, rtol=5e-2), err

    print("KERNEL_OK")
</pallas_src>

<mosaic_0001>
module attributes {stable_mosaic.version = 11 : i64} {
  func.func @graph_conv_kernel(%arg0: i32, %arg1: i32, %arg2: memref<4x2xi32, #tpu.memory_space<smem>>, %arg3: memref<512x1024xi8, #tpu.memory_space<vmem>>, %arg4: memref<2048x128xbf16, #tpu.memory_space<vmem>>, %arg5: memref<256x128xbf16, #tpu.memory_space<vmem>>, %arg6: memref<1x128xf32, #tpu.memory_space<vmem>>, %arg7: memref<512x128xbf16, #tpu.memory_space<vmem>>, %arg8: memref<512x128xf32, #tpu.memory_space<vmem>>, %arg9: memref<512x256xbf16, #tpu.memory_space<vmem>>) attributes {dimension_semantics = [#tpu.dimension_semantics<parallel>, #tpu.dimension_semantics<arbitrary>], iteration_bounds = array<i64: 4, 2>, scalar_prefetch = 1 : i64, scratch_operands = 2 : i64, tpu.core_type = #tpu.core_type<tc>, window_params = [{transform_indices = @transform_0, window_bounds = array<i64: 512, 1024>}, {pipeline_mode = #tpu.pipeline_mode<synchronous>, transform_indices = @transform_1, window_bounds = array<i64: 2048, 128>}, {pipeline_mode = #tpu.pipeline_mode<synchronous>, transform_indices = @transform_2, window_bounds = array<i64: 256, 128>}, {pipeline_mode = #tpu.pipeline_mode<synchronous>, transform_indices = @transform_3, window_bounds = array<i64: 1, 128>}, {transform_indices = @transform_4, window_bounds = array<i64: 512, 128>}]} {
    %c0_i32 = arith.constant 0 : i32
    %0 = arith.cmpi eq, %arg1, %c0_i32 : i32
    %1 = arith.extui %0 : i1 to i32
    %c0_i32_0 = arith.constant 0 : i32
    %2 = arith.cmpi ne, %1, %c0_i32_0 : i32
    scf.if %2 {
      %cst = arith.constant 0.000000e+00 : f32
      %12 = vector.broadcast %cst : f32 to vector<512x128xf32>
      %c0 = arith.constant 0 : index
      %c0_3 = arith.constant 0 : index
      %13 = vector.load %arg8[%c0, %c0_3] : memref<512x128xf32, #tpu.memory_space<vmem>>, vector<512x128xf32>
      tpu.vector_store %arg8[%c0, %c0_3], %12 {strides = array<i32>} : memref<512x128xf32, #tpu.memory_space<vmem>>, vector<512x128xf32>,
    } else {
    }
    %3 = arith.index_cast %arg0 : i32 to index
    %4 = arith.index_cast %arg1 : i32 to index
    %5 = memref.load %arg2[%3, %4] : memref<4x2xi32, #tpu.memory_space<smem>>
    %6 = arith.cmpi eq, %5, %arg1 : i32
    %7 = arith.extui %6 : i1 to i32
    %c0_i32_1 = arith.constant 0 : i32
    %8 = arith.cmpi ne, %7, %c0_i32_1 : i32
    scf.if %8 {
      %c0 = arith.constant 0 : index
      %c0_3 = arith.constant 0 : index
      %12 = vector.load %arg3[%c0, %c0_3] : memref<512x1024xi8, #tpu.memory_space<vmem>>, vector<512x1024xi8>
      %13 = arith.sitofp %12 : vector<512x1024xi8> to vector<512x1024xbf16>
      %c1024_i32 = arith.constant 1024 : i32
      %14 = arith.muli %arg1, %c1024_i32 : i32
      %15 = tpu.assume_multiple %14, 1024 : i32
      %16 = arith.index_cast %15 : i32 to index
      %c0_4 = arith.constant 0 : index
      %17 = vector.load %arg4[%16, %c0_4] : memref<2048x128xbf16, #tpu.memory_space<vmem>>, vector<1024x128xbf16>
      %c0_5 = arith.constant 0 : index
      %c0_6 = arith.constant 0 : index
      %18 = vector.load %arg8[%c0_5, %c0_6] : memref<512x128xf32, #tpu.memory_space<vmem>>, vector<512x128xf32>
      %cst = arith.constant dense<0.000000e+00> : vector<512x128xf32>
      %19 = tpu.matmul %13, %17, %cst {dimension_numbers = #tpu.dot_dimension_numbers<[1], [0], [0], [1], [0, 0, 1, 1], [], []>} : vector<512x1024xbf16>, vector<1024x128xbf16>, vector<512x128xf32> -> vector<512x128xf32>
      %20 = arith.addf %18, %19 : vector<512x128xf32>
      %c0_7 = arith.constant 0 : index
      %c0_8 = arith.constant 0 : index
      %21 = vector.load %arg8[%c0_7, %c0_8] : memref<512x128xf32, #tpu.memory_space<vmem>>, vector<512x128xf32>
      tpu.vector_store %arg8[%c0_7, %c0_8], %20 {strides = array<i32>} : memref<512x128xf32, #tpu.memory_space<vmem>>, vector<512x128xf32>,
    } else {
    }
    %c1_i32 = arith.constant 1 : i32
    %9 = arith.cmpi eq, %arg1, %c1_i32 : i32
    %10 = arith.extui %9 : i1 to i32
    %c0_i32_2 = arith.constant 0 : i32
    %11 = arith.cmpi ne, %10, %c0_i32_2 : i32
    scf.if %11 {
      %c512_i32 = arith.constant 512 : i32
      %12 = arith.muli %arg0, %c512_i32 : i32
      %13 = tpu.assume_multiple %12, 512 : i32
      %14 = arith.index_cast %13 : i32 to index
      %c0 = arith.constant 0 : index
      %15 = vector.load %arg4[%14, %c0] : memref<2048x128xbf16, #tpu.memory_space<vmem>>, vector<512x128xbf16>
      %c0_3 = arith.constant 0 : index
      %c0_4 = arith.constant 0 : index
      %16 = vector.load %arg8[%c0_3, %c0_4] : memref<512x128xf32, #tpu.memory_space<vmem>>, vector<512x128xf32>
      %17 = arith.truncf %16 : vector<512x128xf32> to vector<512x128xbf16>
      %c0_5 = arith.constant 0 : index
      %c0_6 = arith.constant 0 : index
      %18 = vector.load %arg9[%c0_5, %c0_6] : memref<512x256xbf16, #tpu.memory_space<vmem>>, vector<512x128xbf16>
      tpu.vector_store %arg9[%c0_5, %c0_6], %17 {strides = array<i32>} : memref<512x256xbf16, #tpu.memory_space<vmem>>, vector<512x128xbf16>,
      %c0_7 = arith.constant 0 : index
      %c128 = arith.constant 128 : index
      %19 = vector.load %arg9[%c0_7, %c128] : memref<512x256xbf16, #tpu.memory_space<vmem>>, vector<512x128xbf16>
      tpu.vector_store %arg9[%c0_7, %c128], %15 {strides = array<i32>} : memref<512x256xbf16, #tpu.memory_space<vmem>>, vector<512x128xbf16>,
      %c0_8 = arith.constant 0 : index
      %c0_9 = arith.constant 0 : index
      %20 = vector.load %arg9[%c0_8, %c0_9] : memref<512x256xbf16, #tpu.memory_space<vmem>>, vector<512x256xbf16>
      %c0_10 = arith.constant 0 : index
      %c0_11 = arith.constant 0 : index
      %21 = vector.load %arg5[%c0_10, %c0_11] : memref<256x128xbf16, #tpu.memory_space<vmem>>, vector<256x128xbf16>
      %cst = arith.constant dense<0.000000e+00> : vector<512x128xf32>
      %22 = tpu.matmul %20, %21, %cst {dimension_numbers = #tpu.dot_dimension_numbers<[1], [0], [0], [1], [0, 0, 1, 1], [], []>} : vector<512x256xbf16>, vector<256x128xbf16>, vector<512x128xf32> -> vector<512x128xf32>
      %c0_12 = arith.constant 0 : index
      %c0_13 = arith.constant 0 : index
      %23 = vector.load %arg6[%c0_12, %c0_13] : memref<1x128xf32, #tpu.memory_space<vmem>>, vector<1x128xf32>
      %24 = vector.broadcast %23 : vector<1x128xf32> to vector<512x128xf32>
      %25 = arith.addf %22, %24 : vector<512x128xf32>
      %26 = arith.truncf %25 : vector<512x128xf32> to vector<512x128xbf16>
      %c0_14 = arith.constant 0 : index
      %c0_15 = arith.constant 0 : index
      %27 = vector.load %arg7[%c0_14, %c0_15] : memref<512x128xbf16, #tpu.memory_space<vmem>>, vector<512x128xbf16>
      tpu.vector_store %arg7[%c0_14, %c0_15], %26 {strides = array<i32>} : memref<512x128xbf16, #tpu.memory_space<vmem>>, vector<512x128xbf16>,
    } else {
    }
    return
  }
  func.func @transform_0(%arg0: i32, %arg1: i32, %arg2: memref<4x2xi32, #tpu.memory_space<smem>>) -> (i32, i32) {
    %0 = arith.index_cast %arg0 : i32 to index
    %1 = arith.index_cast %arg1 : i32 to index
    %2 = memref.load %arg2[%0, %1] : memref<4x2xi32, #tpu.memory_space<smem>>
    %c0_i32 = arith.constant 0 : i32
    return %arg0, %2 : i32, i32
  }
  func.func @transform_1(%arg0: i32, %arg1: i32, %arg2: memref<4x2xi32, #tpu.memory_space<smem>>) -> (i32, i32) {
    %c0_i32 = arith.constant 0 : i32
    %c0_i32_0 = arith.constant 0 : i32
    %c0_i32_1 = arith.constant 0 : i32
    return %c0_i32, %c0_i32_0 : i32, i32
  }
  func.func @transform_2(%arg0: i32, %arg1: i32, %arg2: memref<4x2xi32, #tpu.memory_space<smem>>) -> (i32, i32) {
    %c0_i32 = arith.constant 0 : i32
    %c0_i32_0 = arith.constant 0 : i32
    %c0_i32_1 = arith.constant 0 : i32
    return %c0_i32, %c0_i32_0 : i32, i32
  }
  func.func @transform_3(%arg0: i32, %arg1: i32, %arg2: memref<4x2xi32, #tpu.memory_space<smem>>) -> (i32, i32) {
    %c0_i32 = arith.constant 0 : i32
    %c0_i32_0 = arith.constant 0 : i32
    %c0_i32_1 = arith.constant 0 : i32
    return %c0_i32, %c0_i32_0 : i32, i32
  }
  func.func @transform_4(%arg0: i32, %arg1: i32, %arg2: memref<4x2xi32, #tpu.memory_space<smem>>) -> (i32, i32) {
    %c0_i32 = arith.constant 0 : i32
    %c0_i32_0 = arith.constant 0 : i32
    return %arg0, %c0_i32 : i32, i32
  }
}

</mosaic_0001>

<bundles_post_ra>
// kernel: tpu_custom_call.1
= control target key start
LH: loop header
LB: loop body
LE: loop exit
PB: predicated region body
PF: predicated region fallthrough
CT: control target
= control target key end

     0   :  { %s6699_s21 = smov [#allocation5]   ;;  %s8030_s0 = inlined_call_operand.vmem [shape: s32[4,2], index: 0, kind: input, shape index: {}]   ;;  %s8031_s1 = inlined_call_operand.hbm [shape: s8[2048,2048], index: 1, kind: input, shape index: {}]   ;;  %s8032_s2 = inlined_call_operand.hbm [shape: bf16[2048,128], index: 2, kind: input, shape index: {}]   ;;  %s8033_s3 = inlined_call_operand.hbm [shape: bf16[256,128], index: 3, kind: input, shape index: {}]   ;;  %s8034_s4 = inlined_call_operand.hbm [shape: f32[1,128], index: 4, kind: input, shape index: {}]   ;;  %s8035_s5 = inlined_call_operand.hbm [shape: bf16[2048,128], index: 5, kind: output, shape index: {}]  }
   0x1   :  { %8043 = sst [smem:[#allocation63_spill]] %s8032_s2  ;;  %s11_s20 = sshll.u32 %s8030_s0, 4  ;;  %s12_s20 = int_to_ptr.vmem [resolvable:$true] %s11_s20 }
   0x2   :  { %8044 = sst [smem:[#allocation64_spill]] %s8033_s3 }
   0x3   :  { %8045 = sst [smem:[#allocation65_spill]] %s8034_s4 }
   0x4   :  { %14 = dma.vmem_to_smem %s12_s20, 64, %s6699_s21, [#allocation4] }
   0x5   :  { %6637 = dma.done.wait [#allocation4], 64 }
   0x6   :  { %6638 = vsyncadd [#allocation4], 4294967232 }
   0x7   :  { %17 = sfence }
   0x8   :  { %18 = vsyncpa [#allocation7], 0 }
   0x9   :  { %20 = vsyncpa [#allocation7 + $0x1], 0 }
   0xa   :  { %21 = vsyncpa [#allocation10], 0 }
   0xb   :  { %22 = vsyncpa [#allocation13], 0 }
   0xc   :  { %23 = vsyncpa [#allocation8], 0 }
   0xd   :  { %25 = vsyncpa [#allocation8 + $0x1], 0  ;;  %s6743_s22 = smov 0   ;;  %s6745_s23 = smov 0  }
   0xe   :  { %s6747_s24 = smov 0   ;;  %s6749_s25 = smov 0  }
   0xf   :  { %s6751_s0 = smov 0   ;;  %s6753_s26 = smov 0  }
  0x10   :  { %s6755_s27 = smov 0   ;;  %s6757_s28 = smov 0  }
  0x11   :  { %s6759_s29 = smov 0   ;;  %s6761_s30 = smov 0  }
  0x12   :  { %s6763_s6 = smov 0  }
  0x13 LB: > { %8046 = sst [smem:[#allocation22_spill]] %s6665_s24  ;;  %s5323_s7 = sadd.s32 4294967295, %s6697_s6   ;;  %s6697_s6 = sphi %s6763_s6, %s31_s6   ;;  %s6693_s30 = sphi %s6761_s30, %s8146_s30   ;;  %s6689_s29 = sphi %s6759_s29, %s8139_s29   ;;  %s6685_s28 = sphi %s6757_s28, %s8145_s28   ;;  %s6681_s27 = sphi %s6755_s27, %s8138_s27   ;;  %s6677_s26 = sphi %s6753_s26, %s8137_s26   ;;  %s6673_s0 = sphi %s6751_s0, %s8144_s0   ;;  %s6669_s25 = sphi %s6749_s25, %s8143_s25   ;;  %s6665_s24 = sphi %s6747_s24, %s8135_s24   ;;  %s6661_s23 = sphi %s6745_s23, %s8142_s23   ;;  %s6657_s22 = sphi %s6743_s22, %s8141_s22  }
  0x14   : > { %8047 = sst [smem:[#allocation23_spill]] %s6677_s26  ;;  %s5324_s8 = sadd.s32 4294967294, %s6697_s6  }
  0x15   : > { %8048 = sst [smem:[#allocation24_spill]] %s6689_s29  ;;  %p81_p0 = scmp.ne.s32.totalorder %s6673_s0, %s6669_s25 }
  0x16   : > { %p6799_p1 = scmp.eq.s32.totalorder %s5323_s7, 0  ;;  %p167_p2 = scmp.ne.s32.totalorder %s6665_s24, %s6661_s23 }
  0x17   : > { %p168_p4 = scmp.eq.s32.totalorder %s5323_s7, 7  ;;  %p173_p5 = scmp.ne.s32.totalorder %s6661_s23, %s6657_s22 }
  0x18   : > { %p6807_p3 = por %p6799_p1, %p81_p0  ;;  %p174_p6 = scmp.eq.s32.totalorder %s5324_s8, 7 }
  0x19   : > { %p6813_p7 = por %p168_p4, %p167_p2  ;;  %p5327_p8 = scmp.ge.s32.totalorder %s6697_s6, 1 }
  0x1a   : > { %p6818_p9 = por %p174_p6, %p173_p5  ;;  %p181_p10 = scmp.lt.s32.totalorder %s6697_s6, 9 }
  0x1b   : > { %s8054_s2 = sld [smem:[#allocation63_spill]]  ;;  %s6700_s17 = smov [#allocation9]  }
  0x1c   : > { %s8052_s12 = scalar_select %p6818_p9, 1, 0 }
  0x1d   : > { %p6826_p11 = pnand %p5327_p8, %p181_p10  ;;  %s194_s18 = sshll.u32 %s6700_s17, 4  ;;  %s195_s18 = int_to_ptr.vmem [resolvable:$true] %s194_s18 }
  0x1e   : > { %8053 = sst [smem:[#allocation25_spill]] %s8052_s12  ;;  %s8037_s7 = smov 64  }
  0x1f   : > { %p6304_p12 = pneg %p6826_p11  ;;  %s8057_s3 = sld [smem:[#allocation64_spill]] }
  0x20   : > { %s6702_s8 = smov 4   ;;  %s6703_s13 = smov [#allocation11]  }
  0x21   : > { %s192_s15 = sshll.u32 %s8054_s2, 4  ;;  %p6834_p13 = pnand %p6304_p12, %p6799_p1  ;;  %s193_s15 = int_to_ptr.hbm [resolvable:$true] %s192_s15 }
  0x22   : > { %s208_s14 = sshll.u32 %s6703_s13, 4  ;;  %s8058_s4 = sld [smem:[#allocation65_spill]]  ;;  %s209_s14 = int_to_ptr.vmem [resolvable:$true] %s208_s14 }
  0x23   : > { %6307 = dma.hbm_to_vmem [thread:$0]  (!%p6834_p13), %s193_s15, 16384, %s195_s18, [#allocation10], %s8037_s7, %s8037_s7, %s6702_s8  }
  0x24   : > { %s40_s15 = sadd.s32 1, %s6689_s29  ;;  %s43_s18 = sadd.s32 1, %s6693_s30 }
  0x25   : > { %s206_s25 = sshll.u32 %s8057_s3, 4  ;;  %s6704_s3 = smov [#allocation12]   ;;  %s207_s25 = int_to_ptr.hbm [resolvable:$true] %s206_s25 }
  0x26   : > { %6310 = dma.hbm_to_vmem [thread:$0]  (!%p6834_p13), %s207_s25, 2048, %s209_s14, [#allocation10], %s8037_s7, %s8037_s7, %s6702_s8  }
  0x27   : > { %s223_s12 = sshll.u32 %s6704_s3, 4  ;;  %p41_p0 = scmp.ge.s32.totalorder %s40_s15, 2  ;;  %s224_s12 = int_to_ptr.vmem [resolvable:$true] %s223_s12 }
  0x28   : > { %s221_s20 = sshll.u32 %s8058_s4, 4  ;;  %s47_s2 = sshra.s32 %s6689_s29, 7  ;;  %s222_s20 = int_to_ptr.hbm [resolvable:$true] %s221_s20 }
  0x29   : > { %6313 = dma.hbm_to_vmem [thread:$0]  (!%p6834_p13), %s222_s20, 16, %s224_s12, [#allocation13]  }
  0x2a   : > { %s52_s13 = sand.u32 127, %s6689_s29  ;;  %s8148_s15 = smov (%p41_p0, %s40_s15), 0 }
  0x2b   : > { %8059 = sst [smem:[#allocation26_spill]] %s8148_s15  ;;  %s8150_s18 = smov (!%p41_p0, %s43_s18), %s6693_s30 }
  0x2c   : > { %s49_s25 = sadd.s32 %s6693_s30, %s47_s2  ;;  %p45_p2 = scmp.ge.s32.totalorder %s8150_s18, 4 }
  0x2d   : > { %s5325_s3 = sshll.u32 %s49_s25, 7  ;;  %s55_s19 = sshra.s32 %s8148_s15, 7 }
  0x2e   : > { %s53_s12 = sadd.s32 %s5325_s3, %s52_s13  ;;  %s8152_s18 = smov (%p45_p2, %s8150_s18), 0 }
  0x2f   : > { %8060 = sst [smem:[#allocation27_spill]] %s8152_s18  ;;  %s60_s14 = sand.u32 127, %s8148_s15 }
  0x30   : > { %s54_s8 = sld [smem:[#allocation5 + %s53_s12]]  ;;  %s57_s17 = sadd.s32 %s55_s19, %s8152_s18 }
  0x31   : > { %s63_s20 = ssub.s32 %s6693_s30, %s8152_s18  ;;  %s5326_s7 = sshll.u32 %s57_s17, 7 }
  0x32   : > { %p75_p4 = scmp.ne.s32.totalorder %s6677_s26, %s6673_s0  ;;  %s61_s2 = sadd.s32 %s5326_s7, %s60_s14 }
  0x33   : > { %p76_p5 = scmp.eq.s32.totalorder %s6697_s6, 0  ;;  %s62_s21 = sld [smem:[#allocation5 + %s61_s2]] }
  0x34   : > { %p155_p6 = scmp.eq.s32.totalorder %s63_s20, 0  ;;  %s8061_s25 = sadd.s32 1, %s6665_s24 }
  0x35   : > { %p6878_p8 = por %p76_p5, %p75_p4  ;;  %p6327_p10 = scmp.lt.s32.totalorder %s6697_s6, 8 }
  0x36   : > { %s6876_s13 = scalar_select %p155_p6, %s6665_s24, %s8061_s25  }
  0x37   : > { %s234_s19 = sand.u32 1, %s6677_s26   ;;  %p6886_p12 = pnand %p6327_p10, %p6878_p8 }
  0x38   : > { %8062 = sst [smem:[#allocation28_spill]] %s6876_s13  ;;  %s68_s14 = sadd.s32 1, %s6677_s26 }
  0x39   : > { %s64_s7 = ssub.s32 %s54_s8, %s62_s21  ;;  %s5332_s25 = sshll.u32 %s234_s19, 10 }
  0x3a   : > { %s65_s2 = sor.u32 %s64_s7, %s63_s20  ;;  %s8154_s12 = smov (!%p6878_p8, %s53_s12), 0 }
  0x3b   : > { %p66_p13 = scmp.eq.s32.totalorder %s65_s2, 0  ;;  %s8158_s12 = smov (!%p6327_p10, %s8154_s12), 0 }
  0x3c   : > { %s6292_s4 = scalar_select %p6878_p8, [#allocation5], [#allocation15] }
  0x3d   : > { %s6894_s18 = scalar_select %p66_p13, %s6677_s26, %s68_s14  }
  0x3e   : > { %s8156_s4 = smov (!%p6327_p10, %s6292_s4), [#allocation16]  ;;  %s5933_s29 = sshll.u32 %s6693_s30, 8 }
  0x3f   : > { %8065 = sst [smem:[#allocation29_spill]] %s6894_s18  ;;  %s238_s13 = scalar_lea.vmem [#allocation6], %s5332_s25 }
  0x40   : > { %s246_s15 = sld [smem:[%s8156_s4 + %s8158_s12]]  ;;  %s6899_s24 = sshll.u32 %s238_s13, 4  ;;  %s258_s24 = int_to_ptr.vmem [resolvable:$true] %s6899_s24 }
  0x41   : > { %s235_s3 = scalar_lea.sflag [#allocation7], %s234_s19  ;;  %p6539_p2 = pneg %p6886_p12 }
  0x46   : > { %s5335_s21 = sshll.u32 %s246_s15, 3 }
  0x47   : > { %s252_s8 = sadd.s32 %s5933_s29, %s5335_s21  ;;  %s6542_s29 = scalar_lea.hbm %s8031_s1, 8192 }
  0x48   : > { %s5337_s20 = sshll.u32 %s252_s8, 3 }
  0x49   : > { %s254_s14 = scalar_lea.hbm %s8031_s1, %s5337_s20 }
  0x4a   : > { %s255_s18 = sshll.u32 %s254_s14, 4  ;;  %s256_s18 = int_to_ptr.hbm [resolvable:$true] %s255_s18 }
  0x4b   : > { %s6535_s26 = sshra.s32 %s256_s18, 4  ;;  %s6536_s26 = int_to_ptr.hbm [resolvable:$true] %s6535_s26 }
  0x4c   : > { %s6537_s4 = scalar_lea.hbm %s6536_s26, 1024  ;;  %p6543_p6 = scmp.lt.s32.totalorder %s6536_s26, %s8031_s1 }
  0x4d   : > { %p6538_p0 = scmp.ne.s32.totalorder %s6536_s26, %s6537_s4  ;;  %p6544_p8 = scmp.lt.s32.totalorder %s6542_s29, %s6537_s4 }
  0x4f   : > { %p6540_p4 = pnand %p6539_p2, %p6538_p0  ;;  %p6545_p10 = por %p6544_p8, %p6543_p6 }
  0x51   : > { %p6541_p5 = pneg %p6540_p4 }
  0x53   : > { %p6546_p13 = pnand %p6545_p10, %p6541_p5 }
  0x55   : > { %6549 = shalt.err (!%p6546_p13)
}
  0x56   : > { %s6705_s19 = smov 2048   ;;  %s6706_s21 = smov 1024  }
  0x57   : > { %s8066_s8 = smov 64   ;;  %269 = sbr.rel (%p6826_p11) target bundleno = 1821 (0x71d), region = 36 }
  0x58   : > { %6319 = dma.hbm_to_vmem [thread:$0]  (!%p6886_p12), %s256_s18, 16384, %s258_s24, %s235_s3, %s6705_s19, %s6706_s21, %s8066_s8  }
  0x59   : > { %s271_s20 = sand.u32 (!%p6826_p11), 1, %s6673_s0  }
  0x5a   : > { %s5339_s7 = sshll.u32 (!%p6826_p11), %s271_s20, 10  ;;  %s272_s2 = scalar_lea.sflag (!%p6826_p11), [#allocation7], %s271_s20 }
  0x5b   : > { %s6919_s14 = scalar_lea.vmem (!%p6826_p11), [#allocation6], %s5339_s7 }
  0x5c   : > { %6640 = dma.done.wait (%p6807_p3), %s272_s2, 16384  }
  0x5d   : > { %6642 = vsyncadd (%p6807_p3), %s272_s2, 4294950912 }
  0x5e   : > { %6644 = dma.done.wait (%p6799_p1), [#allocation10], 18432  }
  0x5f   : > { %6646 = vsyncadd (%p6799_p1), [#allocation10], 4294948864 }
  0x60   : > { %6648 = dma.done.wait (%p6799_p1), [#allocation13], 16  }
  0x61   : > { %6650 = vsyncadd (%p6799_p1), [#allocation13], 4294967280  ;;  %s313_s24 = sand.u32 1, %s6661_s23   ;;  %p5344_p3 = scmp.ne.s32.totalorder %s6681_s27, 0 }
  0x62   : > { %s5343_s26 = sshll.u32 %s313_s24, 8 }
  0x63   : > { %s6936_s16 = scalar_lea.vmem [#allocation14], %s5343_s26  ;;  %330 = sbr.rel (%p5344_p3) target bundleno = 169 (0xa9), region = 56 }
  0x68   : > { %v6707_v0 = vmov 0.0  }
  0x69   : > { %331 = vst [vmem:[#allocation2 + $0xb0] sm:$0xff] %v6707_v0 }
  0x6a   : > { %332 = vst [vmem:[#allocation2 + $0x1b0] sm:$0xff] %v6707_v0 }
  0x6b   : > { %333 = vst [vmem:[#allocation2 + $0xd8] sm:$0xff] %v6707_v0 }
  0x6c   : > { %334 = vst [vmem:[#allocation2 + $0x18] sm:$0xff] %v6707_v0 }
  0x6d   : > { %335 = vst [vmem:[#allocation2 + $0x50] sm:$0xff] %v6707_v0 }
  0x6e   : > { %336 = vst [vmem:[#allocation2 + $0x168] sm:$0xff] %v6707_v0 }
  0x6f   : > { %337 = vst [vmem:[#allocation2 + $0x130] sm:$0xff] %v6707_v0 }
  0x70   : > { %338 = vst [vmem:[#allocation2 + $0x48] sm:$0xff] %v6707_v0 }
  0x71   : > { %339 = vst [vmem:[#allocation2 + $0x180] sm:$0xff] %v6707_v0 }
  0x72   : > { %340 = vst [vmem:[#allocation2 + $0x110] sm:$0xff] %v6707_v0 }
  0x73   : > { %341 = vst [vmem:[#allocation2 + $0x118] sm:$0xff] %v6707_v0 }
  0x74   : > { %342 = vst [vmem:[#allocation2 + $0x98] sm:$0xff] %v6707_v0 }
  0x75   : > { %343 = vst [vmem:[#allocation2 + $0x120] sm:$0xff] %v6707_v0 }
  0x76   : > { %344 = vst [vmem:[#allocation2 + $0x150] sm:$0xff] %v6707_v0 }
  0x77   : > { %345 = vst [vmem:[#allocation2 + $0x108] sm:$0xff] %v6707_v0 }
  0x78   : > { %346 = vst [vmem:[#allocation2 + $0x60] sm:$0xff] %v6707_v0 }
  0x79   : > { %347 = vst [vmem:[#allocation2 + $0xe0] sm:$0xff] %v6707_v0 }
  0x7a   : > { %348 = vst [vmem:[#allocation2 + $0x188] sm:$0xff] %v6707_v0 }
  0x7b   : > { %349 = vst [vmem:[#allocation2 + $0x138] sm:$0xff] %v6707_v0 }
  0x7c   : > { %350 = vst [vmem:[#allocation2 + $0x140] sm:$0xff] %v6707_v0 }
  0x7d   : > { %351 = vst [vmem:[#allocation2 + $0x80] sm:$0xff] %v6707_v0 }
  0x7e   : > { %352 = vst [vmem:[#allocation2 + $0x1a8] sm:$0xff] %v6707_v0 }
  0x7f   : > { %353 = vst [vmem:[#allocation2 + $0x1b8] sm:$0xff] %v6707_v0 }
  0x80   : > { %354 = vst [vmem:[#allocation2 + $0x28] sm:$0xff] %v6707_v0 }
  0x81   : > { %355 = vst [vmem:[#allocation2 + $0x1e8] sm:$0xff] %v6707_v0 }
  0x82   : > { %356 = vst [vmem:[#allocation2 + $0xf8] sm:$0xff] %v6707_v0 }
  0x83   : > { %357 = vst [vmem:[#allocation2 + $0x160] sm:$0xff] %v6707_v0 }
  0x84   : > { %358 = vst [vmem:[#allocation2 + $0x30] sm:$0xff] %v6707_v0 }
  0x85   : > { %359 = vst [vmem:[#allocation2 + $0x1e0] sm:$0xff] %v6707_v0 }
  0x86   : > { %360 = vst [vmem:[#allocation2] sm:$0xff] %v6707_v0 }
  0x87   : > { %361 = vst [vmem:[#allocation2 + $0xf0] sm:$0xff] %v6707_v0 }
  0x88   : > { %362 = vst [vmem:[#allocation2 + $0x8] sm:$0xff] %v6707_v0 }
  0x89   : > { %363 = vst [vmem:[#allocation2 + $0x148] sm:$0xff] %v6707_v0 }
  0x8a   : > { %364 = vst [vmem:[#allocation2 + $0x1d0] sm:$0xff] %v6707_v0 }
  0x8b   : > { %365 = vst [vmem:[#allocation2 + $0x100] sm:$0xff] %v6707_v0 }
  0x8c   : > { %366 = vst [vmem:[#allocation2 + $0xc8] sm:$0xff] %v6707_v0 }
  0x8d   : > { %367 = vst [vmem:[#allocation2 + $0x40] sm:$0xff] %v6707_v0 }
  0x8e   : > { %368 = vst [vmem:[#allocation2 + $0x1f8] sm:$0xff] %v6707_v0 }
  0x8f   : > { %369 = vst [vmem:[#allocation2 + $0x20] sm:$0xff] %v6707_v0 }
  0x90   : > { %370 = vst [vmem:[#allocation2 + $0x128] sm:$0xff] %v6707_v0 }
  0x91   : > { %371 = vst [vmem:[#allocation2 + $0x1a0] sm:$0xff] %v6707_v0 }
  0x92   : > { %372 = vst [vmem:[#allocation2 + $0x1f0] sm:$0xff] %v6707_v0 }
  0x93   : > { %373 = vst [vmem:[#allocation2 + $0xe8] sm:$0xff] %v6707_v0 }
  0x94   : > { %374 = vst [vmem:[#allocation2 + $0x78] sm:$0xff] %v6707_v0 }
  0x95   : > { %375 = vst [vmem:[#allocation2 + $0x70] sm:$0xff] %v6707_v0 }
  0x96   : > { %376 = vst [vmem:[#allocation2 + $0x90] sm:$0xff] %v6707_v0 }
  0x97   : > { %377 = vst [vmem:[#allocation2 + $0x1d8] sm:$0xff] %v6707_v0 }
  0x98   : > { %378 = vst [vmem:[#allocation2 + $0xd0] sm:$0xff] %v6707_v0 }
  0x99   : > { %379 = vst [vmem:[#allocation2 + $0xb8] sm:$0xff] %v6707_v0 }
  0x9a   : > { %380 = vst [vmem:[#allocation2 + $0x88] sm:$0xff] %v6707_v0 }
  0x9b   : > { %381 = vst [vmem:[#allocation2 + $0xa8] sm:$0xff] %v6707_v0 }
  0x9c   : > { %382 = vst [vmem:[#allocation2 + $0x1c8] sm:$0xff] %v6707_v0 }
  0x9d   : > { %383 = vst [vmem:[#allocation2 + $0x170] sm:$0xff] %v6707_v0 }
  0x9e   : > { %384 = vst [vmem:[#allocation2 + $0x178] sm:$0xff] %v6707_v0 }
  0x9f   : > { %385 = vst [vmem:[#allocation2 + $0x68] sm:$0xff] %v6707_v0 }
  0xa0   : > { %386 = vst [vmem:[#allocation2 + $0x190] sm:$0xff] %v6707_v0 }
  0xa1   : > { %387 = vst [vmem:[#allocation2 + $0x198] sm:$0xff] %v6707_v0 }
  0xa2   : > { %388 = vst [vmem:[#allocation2 + $0x38] sm:$0xff] %v6707_v0 }
  0xa3   : > { %389 = vst [vmem:[#allocation2 + $0xc0] sm:$0xff] %v6707_v0 }
  0xa4   : > { %390 = vst [vmem:[#allocation2 + $0x1c0] sm:$0xff] %v6707_v0 }
  0xa5   : > { %391 = vst [vmem:[#allocation2 + $0x158] sm:$0xff] %v6707_v0 }
  0xa6   : > { %392 = vst [vmem:[#allocation2 + $0x10] sm:$0xff] %v6707_v0 }
  0xa7   : > { %393 = vst [vmem:[#allocation2 + $0x58] sm:$0xff] %v6707_v0 }
  0xa8   : > { %394 = vst [vmem:[#allocation2 + $0xa0] sm:$0xff] %v6707_v0 }
  0xa9 PF: > { %s395_s9 = sshra.s32 %s6681_s27, 7  ;;  %s400_s10 = sand.u32 127, %s6681_s27 }
  0xaa   : > { %s397_s18 = sadd.s32 %s6685_s28, %s395_s9 }
  0xab   : > { %s5345_s17 = sshll.u32 %s397_s18, 7 }
  0xac   : > { %s401_s3 = sadd.s32 %s5345_s17, %s400_s10 }
  0xad   : > { %s402_s4 = sld [smem:[#allocation5 + %s401_s3]] }
  0xb3   : > { %p5346_p1 = scmp.ne.s32.totalorder %s402_s4, %s6681_s27 }
  0xb5   : > { %406 = sbr.rel (%p5346_p1) target bundleno = 1379 (0x563), region = 60 }
  0xba   : > { %s5347_s12 = sshll.u32 %s6681_s27, 10  ;;  %v7031_v21 = vld [vmem:[%s6919_s14] sm:$0xff]  ;;  %v7034_v22 = vld [vmem:[%s6919_s14 + $0x8] sm:$0xff]  ;;  %v7039_v25 = vld [vmem:[%s6919_s14 + $0x10] sm:$0xff] }
  0xbb   : > { %s1816_s15 = sshra.s32 %s5347_s12, 3  ;;  %v7044_v28 = vld [vmem:[%s6919_s14 + $0x18] sm:$0xff]  ;;  %v535_v29 = vunpack.c.0.s8 %v7031_v21  ;;  %v543_v30 = vunpack.c.1.s8 %v7031_v21  ;;  %v536_v31 = vunpack.c.0.s8 %v7034_v22  ;;  %v544_v32 = vunpack.c.1.s8 %v7034_v22 }
  0xbc   : > { %s5348_s29 = sshll.u32 %s1816_s15, 2  ;;  %v537_v35 = vunpack.c.0.s8 %v7039_v25  ;;  %v545_v36 = vunpack.c.1.s8 %v7039_v25  ;;  %v538_v37 = vunpack.c.0.s8 %v7044_v28  ;;  %v546_v38 = vunpack.c.1.s8 %v7044_v28 }
  0xbd   : > { %s7008_s13 = scalar_lea.vmem [#allocation9], %s5348_s29  ;;  %v1047_v41 = vcvt.s32.f32 %v535_v29  ;;  %v1055_v42 = vcvt.s32.f32 %v543_v30  ;;  %v1048_v43 = vcvt.s32.f32 %v536_v31  ;;  %v1056_v44 = vcvt.s32.f32 %v544_v32 }
  0xbe   : > { %v5941_v1 = vld [vmem:[%s7008_s13 + $0x38] sm:$0xff]  ;;  %v5940_v5 = vld [vmem:[%s7008_s13 + $0x30] sm:$0xff]  ;;  %v5939_v9 = vld [vmem:[%s7008_s13 + $0x28] sm:$0xff]  ;;  %v1049_v47 = vcvt.s32.f32 %v537_v35  ;;  %v1057_v48 = vcvt.s32.f32 %v545_v36  ;;  %v1050_v49 = vcvt.s32.f32 %v538_v37  ;;  %v1058_v50 = vcvt.s32.f32 %v546_v38 }
  0xbf   : > { %v5949_v2 = vld [vmem:[%s7008_s13 + $0x78] sm:$0xff]  ;;  %2396 = vmatpush.bf16.msra.mxu0 %v5941_v1  ;;  %v5948_v6 = vld [vmem:[%s7008_s13 + $0x70] sm:$0xff]  ;;  %v5947_v10 = vld [vmem:[%s7008_s13 + $0x68] sm:$0xff]  ;;  %v1559_v55 = vpack.c.bf16 %v1055_v42, %v1047_v41  ;;  %v1560_v56 = vpack.c.bf16 %v1056_v44, %v1048_v43  ;;  %v551_v61 = vunpack.c.2.s8 %v7031_v21  ;;  %v559_v62 = vunpack.c.3.s8 %v7031_v21 }
  0xc0   : > { %v5957_v3 = vld [vmem:[%s7008_s13 + $0xb8] sm:$0xff]  ;;  %2565 = vmatpush.bf16.msra.mxu1 %v5949_v2  ;;  %v5956_v7 = vld [vmem:[%s7008_s13 + $0xb0] sm:$0xff]  ;;  %v5955_v11 = vld [vmem:[%s7008_s13 + $0xa8] sm:$0xff]  ;;  %v1561_v57 = vpack.c.bf16 %v1057_v48, %v1049_v47  ;;  %v1562_v58 = vpack.c.bf16 %v1058_v50, %v1050_v49  ;;  %v552_v63 = vunpack.c.2.s8 %v7034_v22  ;;  %v560_v0 = vunpack.c.3.s8 %v7034_v22 }
  0xc1   : > { %v5965_v4 = vld [vmem:[%s7008_s13 + $0xf8] sm:$0xff]  ;;  %2734 = vmatpush.bf16.msra.mxu2 %v5957_v3  ;;  %v5964_v8 = vld [vmem:[%s7008_s13 + $0xf0] sm:$0xff]  ;;  %v5963_v12 = vld [vmem:[%s7008_s13 + $0xe8] sm:$0xff]  ;;  %v553_v1 = vunpack.c.2.s8 %v7039_v25  ;;  %v561_v2 = vunpack.c.3.s8 %v7039_v25  ;;  %v554_v3 = vunpack.c.2.s8 %v7044_v28 }
  0xc2   : > { %2903 = vmatpush.bf16.msra.mxu3 %v5965_v4  ;;  %v5938_v13 = vld [vmem:[%s7008_s13 + $0x20] sm:$0xff]  ;;  %v5937_v17 = vld [vmem:[%s7008_s13 + $0x18] sm:$0xff]  ;;  %v5936_v23 = vld [vmem:[%s7008_s13 + $0x10] sm:$0xff]  ;;  %v562_v4 = vunpack.c.3.s8 %v7044_v28 }
  0xc3   : > { %2397 = vmatpush.bf16.msra.mxu0 %v5940_v5  ;;  %v5946_v14 = vld [vmem:[%s7008_s13 + $0x60] sm:$0xff]  ;;  %v5945_v18 = vld [vmem:[%s7008_s13 + $0x58] sm:$0xff]  ;;  %v5944_v24 = vld [vmem:[%s7008_s13 + $0x50] sm:$0xff]  ;;  %v1063_v5 = vcvt.s32.f32 %v551_v61 }
  0xc4   : > { %2566 = vmatpush.bf16.msra.mxu1 %v5948_v6  ;;  %v5954_v15 = vld [vmem:[%s7008_s13 + $0xa0] sm:$0xff]  ;;  %v5953_v19 = vld [vmem:[%s7008_s13 + $0x98] sm:$0xff]  ;;  %v5952_v26 = vld [vmem:[%s7008_s13 + $0x90] sm:$0xff]  ;;  %v1071_v6 = vcvt.s32.f32 %v559_v62 }
  0xc5   : > { %2735 = vmatpush.bf16.msra.mxu2 %v5956_v7  ;;  %v5962_v16 = vld [vmem:[%s7008_s13 + $0xe0] sm:$0xff]  ;;  %v5961_v20 = vld [vmem:[%s7008_s13 + $0xd8] sm:$0xff]  ;;  %v5960_v27 = vld [vmem:[%s7008_s13 + $0xd0] sm:$0xff]  ;;  %v1064_v7 = vcvt.s32.f32 %v552_v63 }
  0xc6   : > { %2904 = vmatpush.bf16.msra.mxu3 %v5964_v8  ;;  %v5935_v33 = vld [vmem:[%s7008_s13 + $0x8] sm:$0xff]  ;;  %v5934_v45 = vld [vmem:[%s7008_s13] sm:$0xff]  ;;  %v5989_v53 = vld [vmem:[%s7008_s13 + $0x1b8] sm:$0xff]  ;;  %v1072_v8 = vcvt.s32.f32 %v560_v0 }
  0xc7   : > { %2398 = vmatpush.bf16.msra.mxu0 %v5939_v9  ;;  %v5943_v34 = vld [vmem:[%s7008_s13 + $0x48] sm:$0xff]  ;;  %v5942_v46 = vld [vmem:[%s7008_s13 + $0x40] sm:$0xff]  ;;  %v5973_v54 = vld [vmem:[%s7008_s13 + $0x138] sm:$0xff]  ;;  %v1065_v9 = vcvt.s32.f32 %v553_v1 }
  0xc8   : > { %2567 = vmatpush.bf16.msra.mxu1 %v5947_v10  ;;  %v5951_v39 = vld [vmem:[%s7008_s13 + $0x88] sm:$0xff]  ;;  %v5950_v51 = vld [vmem:[%s7008_s13 + $0x80] sm:$0xff]  ;;  %v5997_v59 = vld [vmem:[%s7008_s13 + $0x1f8] sm:$0xff]  ;;  %v1073_v10 = vcvt.s32.f32 %v561_v2 }
  0xc9   : > { %2736 = vmatpush.bf16.msra.mxu2 %v5955_v11  ;;  %v5959_v40 = vld [vmem:[%s7008_s13 + $0xc8] sm:$0xff]  ;;  %v5958_v52 = vld [vmem:[%s7008_s13 + $0xc0] sm:$0xff]  ;;  %v5981_v60 = vld [vmem:[%s7008_s13 + $0x178] sm:$0xff]  ;;  %v1066_v11 = vcvt.s32.f32 %v554_v3 }
  0xca   : > { %2905 = vmatpush.bf16.msra.mxu3 %v5963_v12  ;;  %v1074_v12 = vcvt.s32.f32 %v562_v4  ;;  %v5988_v41 = vld [vmem:[%s7008_s13 + $0x1b0] sm:$0xff]  ;;  %v423_v1 = vld [vmem:[%s6919_s14 + $0x80] sm:$0xff]  ;;  %v424_v2 = vld [vmem:[%s6919_s14 + $0x88] sm:$0xff] }
  0xcb   : > { %2399 = vmatpush.bf16.msra.mxu0 %v5938_v13  ;;  %v1567_v13 = vpack.c.bf16 %v1071_v6, %v1063_v5  ;;  %v5972_v42 = vld [vmem:[%s7008_s13 + $0x130] sm:$0xff]  ;;  %v426_v4 = vld [vmem:[%s6919_s14 + $0x98] sm:$0xff]  ;;  %v599_v5 = vunpack.c.0.s8 %v423_v1  ;;  %v607_v6 = vunpack.c.1.s8 %v423_v1 }
  0xcc   : > { %2568 = vmatpush.bf16.msra.mxu1 %v5946_v14  ;;  %v1568_v14 = vpack.c.bf16 %v1072_v8, %v1064_v7  ;;  %v5996_v43 = vld [vmem:[%s7008_s13 + $0x1f0] sm:$0xff]  ;;  %v600_v7 = vunpack.c.0.s8 %v424_v2  ;;  %v608_v8 = vunpack.c.1.s8 %v424_v2 }
  0xcd   : > { %2737 = vmatpush.bf16.msra.mxu2 %v5954_v15  ;;  %v1569_v15 = vpack.c.bf16 %v1073_v10, %v1065_v9  ;;  %v5980_v44 = vld [vmem:[%s7008_s13 + $0x170] sm:$0xff] }
  0xce   : > { %2906 = vmatpush.bf16.msra.mxu3 %v5962_v16  ;;  %v1570_v16 = vpack.c.bf16 %v1074_v12, %v1066_v11  ;;  %v425_v3 = vld [vmem:[%s6919_s14 + $0x90] sm:$0xff]  ;;  %v602_v11 = vunpack.c.0.s8 %v426_v4  ;;  %v610_v12 = vunpack.c.1.s8 %v426_v4 }
  0xcf   : > { %2400 = vmatpush.bf16.msra.mxu0 %v5937_v17  ;;  %v415_v17 = vld [vmem:[%s6919_s14 + $0x40] sm:$0xff]  ;;  %v601_v9 = vunpack.c.0.s8 %v425_v3  ;;  %v609_v10 = vunpack.c.1.s8 %v425_v3 }
  0xd0   : > { %2569 = vmatpush.bf16.msra.mxu1 %v5945_v18  ;;  %v416_v18 = vld [vmem:[%s6919_s14 + $0x48] sm:$0xff]  ;;  %v567_v21 = vunpack.c.0.s8 %v415_v17  ;;  %v575_v22 = vunpack.c.1.s8 %v415_v17 }
  0xd1   : > { %2738 = vmatpush.bf16.msra.mxu2 %v5953_v19  ;;  %v417_v19 = vld [vmem:[%s6919_s14 + $0x50] sm:$0xff]  ;;  %v584_v47 = vunpack.c.2.s8 %v416_v18  ;;  %v592_v48 = vunpack.c.3.s8 %v416_v18 }
  0xd2   : > { %2907 = vmatpush.bf16.msra.mxu3 %v5961_v20  ;;  %v418_v20 = vld [vmem:[%s6919_s14 + $0x58] sm:$0xff]  ;;  %v569_v25 = vunpack.c.0.s8 %v417_v19  ;;  %v1079_v29 = vcvt.s32.f32 %v567_v21  ;;  %v1087_v30 = vcvt.s32.f32 %v575_v22  ;;  %v585_v49 = vunpack.c.2.s8 %v417_v19 }
  0xd3   : > { %2401 = vmatpush.bf16.msra.mxu0 %v5936_v23  ;;  %v568_v23 = vunpack.c.0.s8 %v416_v18  ;;  %v578_v28 = vunpack.c.1.s8 %v418_v20  ;;  %v593_v50 = vunpack.c.3.s8 %v417_v19 }
  0xd4   : > { %2570 = vmatpush.bf16.msra.mxu1 %v5944_v24  ;;  %v576_v24 = vunpack.c.1.s8 %v416_v18  ;;  %v1575_v37 = vpack.c.bf16 %v1087_v30, %v1079_v29  ;;  %v1121_v18 = vcvt.s32.f32 %v609_v10  ;;  %v617_v29 = vunpack.c.2.s8 %v425_v3 }
  0xd5   : > { %2739 = vmatpush.bf16.msra.mxu2 %v5952_v26  ;;  %v577_v26 = vunpack.c.1.s8 %v417_v19  ;;  %v1080_v31 = vcvt.s32.f32 %v568_v23  ;;  %v1090_v36 = vcvt.s32.f32 %v578_v28  ;;  %v1114_v19 = vcvt.s32.f32 %v602_v11 }
  0xd6   : > { %2908 = vmatpush.bf16.msra.mxu3 %v5960_v27  ;;  %v570_v27 = vunpack.c.0.s8 %v418_v20  ;;  %v1088_v32 = vcvt.s32.f32 %v576_v24  ;;  %v624_v28 = vunpack.c.3.s8 %v424_v2  ;;  %v625_v30 = vunpack.c.3.s8 %v425_v3 }
  0xd7   : > { %2402 = vmatpush.bf16.msra.mxu0 %v5935_v33  ;;  %v1081_v33 = vcvt.s32.f32 %v569_v25  ;;  %v615_v25 = vunpack.c.2.s8 %v423_v1 }
  0xd8   : > { %2571 = vmatpush.bf16.msra.mxu1 %v5943_v34  ;;  %v1089_v34 = vcvt.s32.f32 %v577_v26  ;;  %v1082_v35 = vcvt.s32.f32 %v570_v27  ;;  %v1576_v38 = vpack.c.bf16 %v1088_v32, %v1080_v31  ;;  %v623_v26 = vunpack.c.3.s8 %v423_v1 }
  0xd9   : > { %2740 = vmatpush.bf16.msra.mxu2 %v5951_v39  ;;  %v616_v27 = vunpack.c.2.s8 %v424_v2  ;;  %v618_v31 = vunpack.c.2.s8 %v426_v4  ;;  %v626_v32 = vunpack.c.3.s8 %v426_v4 }
  0xda   : > { %2909 = vmatpush.bf16.msra.mxu3 %v5959_v40  ;;  %v1577_v39 = vpack.c.bf16 %v1089_v34, %v1081_v33  ;;  %v1578_v40 = vpack.c.bf16 %v1090_v36, %v1082_v35  ;;  %v1127_v33 = vcvt.s32.f32 %v615_v25  ;;  %v1135_v34 = vcvt.s32.f32 %v623_v26 }
  0xdb   : > { %2403 = vmatpush.bf16.msra.mxu0 %v5934_v45  ;;  %v583_v45 = vunpack.c.2.s8 %v415_v17  ;;  %v1128_v35 = vcvt.s32.f32 %v616_v27  ;;  %v1136_v36 = vcvt.s32.f32 %v624_v28 }
  0xdc   : > { %2572 = vmatpush.bf16.msra.mxu1 %v5942_v46  ;;  %v591_v46 = vunpack.c.3.s8 %v415_v17  ;;  %v1113_v17 = vcvt.s32.f32 %v601_v9 }
  0xdd   : > { %2741 = vmatpush.bf16.msra.mxu2 %v5950_v51  ;;  %v586_v51 = vunpack.c.2.s8 %v418_v20 }
  0xde   : > { %2910 = vmatpush.bf16.msra.mxu3 %v5958_v52  ;;  %2404 = vmatmul.bf16.vlgmr.msra.gmra.mxu0 %v1559_v55  ;;  %v594_v52 = vunpack.c.3.s8 %v418_v20  ;;  %v1096_v55 = vcvt.s32.f32 %v584_v47  ;;  %v1122_v20 = vcvt.s32.f32 %v610_v12  ;;  %v1593_v23 = vpack.c.bf16 %v1121_v18, %v1113_v17  ;;  %v433_v47 = vld [vmem:[%s6919_s14 + $0xd0] sm:$0xff] }
  0xdf   : > { %3072 = vmatpush.bf16.msrb.mxu0 %v5973_v54  ;;  %2573 = vmatmul.bf16.vlgmr.msra.gmra.mxu1 %v1560_v56  ;;  %v1103_v54 = vcvt.s32.f32 %v591_v46  ;;  %v1104_v56 = vcvt.s32.f32 %v592_v48  ;;  %v432_v46 = vld [vmem:[%s6919_s14 + $0xc8] sm:$0xff]  ;;  %v434_v48 = vld [vmem:[%s6919_s14 + $0xd8] sm:$0xff]  ;;  %v649_v12 = vunpack.c.2.s8 %v433_v47 }
  0xe0   : > { %2742 = vmatmul.bf16.vlgmr.msra.gmra.mxu2 %v1561_v57  ;;  %3241 = vmatpush.bf16.msrb.mxu1 %v5981_v60  ;;  %v1097_v57 = vcvt.s32.f32 %v585_v49  ;;  %v1106_v60 = vcvt.s32.f32 %v594_v52  ;;  %v1594_v24 = vpack.c.bf16 %v1122_v20, %v1114_v19  ;;  %v640_v52 = vunpack.c.1.s8 %v432_v46 }
  0xe1   : > { %3410 = vmatpush.bf16.msrb.mxu2 %v5989_v53  ;;  %2911 = vmatmul.bf16.vlgmr.msra.gmra.mxu3 %v1562_v58  ;;  %v1095_v53 = vcvt.s32.f32 %v583_v45  ;;  %v1105_v58 = vcvt.s32.f32 %v593_v50  ;;  %v1584_v62 = vpack.c.bf16 %v1104_v56, %v1096_v55  ;;  %v431_v45 = vld [vmem:[%s6919_s14 + $0xc0] sm:$0xff]  ;;  %v634_v55 = vunpack.c.0.s8 %v434_v48 }
  0xe2   : > { %3579 = vmatpush.bf16.msrb.mxu3 %v5997_v59  ;;  %v1098_v59 = vcvt.s32.f32 %v586_v51  ;;  %v631_v49 = vunpack.c.0.s8 %v431_v45  ;;  %v639_v50 = vunpack.c.1.s8 %v431_v45  ;;  %v632_v51 = vunpack.c.0.s8 %v432_v46 }
  0xe3   : > { %3073 = vmatpush.bf16.msrb.mxu0 %v5972_v42  ;;  %v1583_v61 = vpack.c.bf16 %v1103_v54, %v1095_v53  ;;  %v1585_v63 = vpack.c.bf16 %v1105_v58, %v1097_v57  ;;  %v1600_v42 = vpack.c.bf16 %v1136_v36, %v1128_v35  ;;  %v633_v53 = vunpack.c.0.s8 %v433_v47 }
  0xe4   : > { %3242 = vmatpush.bf16.msrb.mxu1 %v5980_v44  ;;  %v1586_v0 = vpack.c.bf16 %v1106_v60, %v1098_v59  ;;  %v641_v54 = vunpack.c.1.s8 %v433_v47  ;;  %v642_v56 = vunpack.c.1.s8 %v434_v48  ;;  %v1143_v57 = vcvt.s32.f32 %v631_v49 }
  0xe5   : > { %3411 = vmatpush.bf16.msrb.mxu2 %v5988_v41  ;;  %v1599_v41 = vpack.c.bf16 %v1135_v34, %v1127_v33  ;;  %v1151_v58 = vcvt.s32.f32 %v639_v50  ;;  %v1144_v59 = vcvt.s32.f32 %v632_v51  ;;  %v1152_v60 = vcvt.s32.f32 %v640_v52 }
  0xe6   : > { %3580 = vmatpush.bf16.msrb.mxu3 %v5996_v43  ;;  %v655_v9 = vunpack.c.3.s8 %v431_v45  ;;  %v648_v10 = vunpack.c.2.s8 %v432_v46  ;;  %v656_v11 = vunpack.c.3.s8 %v432_v46 }
  0xe7   : > { %v1607_v1 = vpack.c.bf16 %v1151_v58, %v1143_v57  ;;  %v1608_v2 = vpack.c.bf16 %v1152_v60, %v1144_v59 }
  0xe8   : > { %v1167_v18 = vcvt.s32.f32 %v655_v9  ;;  %v1160_v19 = vcvt.s32.f32 %v648_v10  ;;  %v1168_v20 = vcvt.s32.f32 %v656_v11 }
  0xea   : > { %v1616_v26 = vpack.c.bf16 %v1168_v20, %v1160_v19 }
  0xee   : > { %2409 = vmatmul.bf16.gmra.mxu0 %v1567_v13  ;;  %v1111_v13 = vcvt.s32.f32 %v599_v5  ;;  %v5987_v5 = vld [vmem:[%s7008_s13 + $0x1a8] sm:$0xff] }
  0xef   : > { %2578 = vmatmul.bf16.gmra.mxu1 %v1568_v14  ;;  %v1119_v14 = vcvt.s32.f32 %v607_v6  ;;  %v5971_v6 = vld [vmem:[%s7008_s13 + $0x128] sm:$0xff]  ;;  %3412 = vmatpush.bf16.msrb.mxu2 %v5987_v5 }
  0xf0   : > { %2747 = vmatmul.bf16.gmra.mxu2 %v1569_v15  ;;  %v1112_v15 = vcvt.s32.f32 %v600_v7  ;;  %v5995_v7 = vld [vmem:[%s7008_s13 + $0x1e8] sm:$0xff]  ;;  %3074 = vmatpush.bf16.msrb.mxu0 %v5971_v6 }
  0xf1   : > { %2916 = vmatmul.bf16.gmra.mxu3 %v1570_v16  ;;  %v1120_v16 = vcvt.s32.f32 %v608_v8  ;;  %v1591_v21 = vpack.c.bf16 %v1119_v14, %v1111_v13  ;;  %v647_v8 = vunpack.c.2.s8 %v431_v45  ;;  %v657_v13 = vunpack.c.3.s8 %v433_v47 }
  0xf2   : > { %3581 = vmatpush.bf16.msrb.mxu3 %v5995_v7  ;;  %v650_v14 = vunpack.c.2.s8 %v434_v48 }
  0xf3   : > { %v1592_v22 = vpack.c.bf16 %v1120_v16, %v1112_v15  ;;  %v658_v15 = vunpack.c.3.s8 %v434_v48  ;;  %v5979_v16 = vld [vmem:[%s7008_s13 + $0x168] sm:$0xff]  ;;  %v1159_v17 = vcvt.s32.f32 %v647_v8 }
  0xf4   : > { %3243 = vmatpush.bf16.msrb.mxu1 %v5979_v16 }
  0xf5   : > { %v1615_v25 = vpack.c.bf16 %v1167_v18, %v1159_v17 }
  0xfe   : > { %2414 = vmatmul.bf16.gmra.mxu0 %v1575_v37  ;;  %v1129_v37 = vcvt.s32.f32 %v617_v29  ;;  %v439_v29 = vld [vmem:[%s6919_s14 + $0x100] sm:$0xff] }
  0xff   : > { %2583 = vmatmul.bf16.gmra.mxu1 %v1576_v38  ;;  %v1137_v38 = vcvt.s32.f32 %v625_v30  ;;  %v440_v30 = vld [vmem:[%s6919_s14 + $0x108] sm:$0xff]  ;;  %v663_v33 = vunpack.c.0.s8 %v439_v29  ;;  %v671_v34 = vunpack.c.1.s8 %v439_v29  ;;  %v687_v59 = vunpack.c.3.s8 %v439_v29 }
 0x100   : > { %2752 = vmatmul.bf16.gmra.mxu2 %v1577_v39  ;;  %v1130_v39 = vcvt.s32.f32 %v618_v31  ;;  %v441_v31 = vld [vmem:[%s6919_s14 + $0x110] sm:$0xff]  ;;  %v664_v35 = vunpack.c.0.s8 %v440_v30  ;;  %v672_v36 = vunpack.c.1.s8 %v440_v30  ;;  %v680_v60 = vunpack.c.2.s8 %v440_v30 }
 0x101   : > { %2921 = vmatmul.bf16.gmra.mxu3 %v1578_v40  ;;  %v1138_v40 = vcvt.s32.f32 %v626_v32  ;;  %v1601_v43 = vpack.c.bf16 %v1137_v38, %v1129_v37  ;;  %v442_v32 = vld [vmem:[%s6919_s14 + $0x118] sm:$0xff]  ;;  %v665_v37 = vunpack.c.0.s8 %v441_v31  ;;  %v673_v38 = vunpack.c.1.s8 %v441_v31 }
 0x102   : > { %v1199_v8 = vcvt.s32.f32 %v687_v59  ;;  %v1192_v9 = vcvt.s32.f32 %v680_v60 }
 0x103   : > { %v1602_v44 = vpack.c.bf16 %v1138_v40, %v1130_v39  ;;  %v666_v39 = vunpack.c.0.s8 %v442_v32  ;;  %v674_v40 = vunpack.c.1.s8 %v442_v32  ;;  %v1177_v45 = vcvt.s32.f32 %v665_v37 }
 0x104   : > { %v1185_v46 = vcvt.s32.f32 %v673_v38 }
 0x105   : > { %v1178_v47 = vcvt.s32.f32 %v666_v39  ;;  %v1186_v48 = vcvt.s32.f32 %v674_v40 }
 0x10e   : > { %2419 = vmatmul.bf16.gmra.mxu0 %v1583_v61  ;;  %v1145_v61 = vcvt.s32.f32 %v633_v53  ;;  %v1625_v53 = vpack.c.bf16 %v1185_v46, %v1177_v45 }
 0x10f   : > { %2588 = vmatmul.bf16.gmra.mxu1 %v1584_v62  ;;  %v1153_v62 = vcvt.s32.f32 %v641_v54  ;;  %v1626_v54 = vpack.c.bf16 %v1186_v48, %v1178_v47 }
 0x110   : > { %2757 = vmatmul.bf16.gmra.mxu2 %v1585_v63  ;;  %v1146_v63 = vcvt.s32.f32 %v634_v55 }
 0x111   : > { %2926 = vmatmul.bf16.gmra.mxu3 %v1586_v0  ;;  %v1154_v0 = vcvt.s32.f32 %v642_v56  ;;  %v1609_v3 = vpack.c.bf16 %v1153_v62, %v1145_v61  ;;  %v679_v56 = vunpack.c.2.s8 %v439_v29  ;;  %v688_v61 = vunpack.c.3.s8 %v440_v30  ;;  %v7112_v29 = vld [vmem:[%s6919_s14 + $0x158] sm:$0xff] }
 0x112   : > { %v681_v62 = vunpack.c.2.s8 %v441_v31 }
 0x113   : > { %v1610_v4 = vpack.c.bf16 %v1154_v0, %v1146_v63  ;;  %v1191_v7 = vcvt.s32.f32 %v679_v56  ;;  %v1200_v10 = vcvt.s32.f32 %v688_v61 }
 0x114   : > { %v1193_v11 = vcvt.s32.f32 %v681_v62 }
 0x115   : > { %v1631_v17 = vpack.c.bf16 %v1199_v8, %v1191_v7  ;;  %v1632_v18 = vpack.c.bf16 %v1200_v10, %v1192_v9 }
 0x11e   : > { %2424 = vmatmul.bf16.gmra.mxu0 %v1591_v21  ;;  %v1161_v21 = vcvt.s32.f32 %v649_v12 }
 0x11f   : > { %2593 = vmatmul.bf16.gmra.mxu1 %v1592_v22  ;;  %v1169_v22 = vcvt.s32.f32 %v657_v13 }
 0x120   : > { %2762 = vmatmul.bf16.gmra.mxu2 %v1593_v23  ;;  %v1162_v23 = vcvt.s32.f32 %v650_v14 }
 0x121   : > { %2931 = vmatmul.bf16.gmra.mxu3 %v1594_v24  ;;  %v1170_v24 = vcvt.s32.f32 %v658_v15  ;;  %v1617_v27 = vpack.c.bf16 %v1169_v22, %v1161_v21 }
 0x123   : > { %v1618_v28 = vpack.c.bf16 %v1170_v24, %v1162_v23 }
 0x12e   : > { %2429 = vmatmul.bf16.gmra.mxu0 %v1599_v41  ;;  %v1175_v41 = vcvt.s32.f32 %v663_v33 }
 0x12f   : > { %2598 = vmatmul.bf16.gmra.mxu1 %v1600_v42  ;;  %v1183_v42 = vcvt.s32.f32 %v671_v34 }
 0x130   : > { %2767 = vmatmul.bf16.gmra.mxu2 %v1601_v43  ;;  %v1176_v43 = vcvt.s32.f32 %v664_v35 }
 0x131   : > { %2936 = vmatmul.bf16.gmra.mxu3 %v1602_v44  ;;  %v1184_v44 = vcvt.s32.f32 %v672_v36  ;;  %v1623_v49 = vpack.c.bf16 %v1183_v42, %v1175_v41  ;;  %v698_v41 = vunpack.c.0.s8 %v7112_v29  ;;  %v706_v42 = vunpack.c.1.s8 %v7112_v29 }
 0x133   : > { %v1624_v50 = vpack.c.bf16 %v1184_v44, %v1176_v43 }
 0x13e   : > { %2434 = vmatmul.bf16.gmra.mxu0 %v1607_v1 }
 0x13f   : > { %2603 = vmatmul.bf16.gmra.mxu1 %v1608_v2  ;;  %v689_v2 = vunpack.c.3.s8 %v441_v31 }
 0x140   : > { %2772 = vmatmul.bf16.gmra.mxu2 %v1609_v3  ;;  %v682_v3 = vunpack.c.2.s8 %v442_v32 }
 0x141   : > { %2941 = vmatmul.bf16.gmra.mxu3 %v1610_v4  ;;  %v690_v4 = vunpack.c.3.s8 %v442_v32  ;;  %v1201_v12 = vcvt.s32.f32 %v689_v2  ;;  %v5994_v2 = vld [vmem:[%s7008_s13 + $0x1e0] sm:$0xff] }
 0x142   : > { %v1194_v13 = vcvt.s32.f32 %v682_v3  ;;  %3582 = vmatpush.bf16.msrb.mxu3 %v5994_v2 }
 0x143   : > { %v1202_v14 = vcvt.s32.f32 %v690_v4  ;;  %v1633_v22 = vpack.c.bf16 %v1201_v12, %v1193_v11 }
 0x145   : > { %v1634_v23 = vpack.c.bf16 %v1202_v14, %v1194_v13 }
 0x14e   : > { %2439 = vmatmul.bf16.gmra.mxu0 %v1615_v25 }
 0x14f   : > { %2608 = vmatmul.bf16.gmra.mxu1 %v1616_v26  ;;  %v7103_v26 = vld [vmem:[%s6919_s14 + $0x140] sm:$0xff] }
 0x150   : > { %2777 = vmatmul.bf16.gmra.mxu2 %v1617_v27  ;;  %v7106_v27 = vld [vmem:[%s6919_s14 + $0x148] sm:$0xff]  ;;  %v695_v30 = vunpack.c.0.s8 %v7103_v26  ;;  %v703_v33 = vunpack.c.1.s8 %v7103_v26  ;;  %v711_v3 = vunpack.c.2.s8 %v7103_v26  ;;  %v719_v7 = vunpack.c.3.s8 %v7103_v26 }
 0x151   : > { %2946 = vmatmul.bf16.gmra.mxu3 %v1618_v28  ;;  %v7109_v28 = vld [vmem:[%s6919_s14 + $0x150] sm:$0xff]  ;;  %v696_v34 = vunpack.c.0.s8 %v7106_v27  ;;  %v704_v35 = vunpack.c.1.s8 %v7106_v27  ;;  %v712_v8 = vunpack.c.2.s8 %v7106_v27  ;;  %v720_v9 = vunpack.c.3.s8 %v7106_v27 }
 0x152   : > { %v697_v36 = vunpack.c.0.s8 %v7109_v28  ;;  %v705_v40 = vunpack.c.1.s8 %v7109_v28  ;;  %v1207_v45 = vcvt.s32.f32 %v695_v30  ;;  %v1215_v46 = vcvt.s32.f32 %v703_v33 }
 0x153   : > { %v1208_v47 = vcvt.s32.f32 %v696_v34  ;;  %v1216_v48 = vcvt.s32.f32 %v704_v35  ;;  %v713_v10 = vunpack.c.2.s8 %v7109_v28  ;;  %v721_v14 = vunpack.c.3.s8 %v7109_v28 }
 0x155   : > { %v1640_v56 = vpack.c.bf16 %v1216_v48, %v1208_v47  ;;  %v1233_v26 = vcvt.s32.f32 %v721_v14 }
 0x15b   : > { %v2405_v51 = vpop.f32.mrf.mxu0 }
 0x15c   : > { %v2574_v52 = vpop.f32.mrf.mxu1 }
 0x15d   : > { %v2575_v55 = vadd.f32 %v2574_v52, %v2405_v51  ;;  %v1210_v51 = vcvt.s32.f32 %v698_v41  ;;  %v1218_v52 = vcvt.s32.f32 %v706_v42  ;;  %v456_v41 = vld [vmem:[%s6919_s14 + $0x188] sm:$0xff]  ;;  %v457_v42 = vld [vmem:[%s6919_s14 + $0x190] sm:$0xff] }
 0x15e   : > { %2444 = vmatmul.bf16.gmra.mxu0 %v1623_v49  ;;  %v1209_v49 = vcvt.s32.f32 %v697_v36 }
 0x15f   : > { %2613 = vmatmul.bf16.gmra.mxu1 %v1624_v50  ;;  %v1217_v50 = vcvt.s32.f32 %v705_v40  ;;  %v1642_v61 = vpack.c.bf16 %v1218_v52, %v1210_v51  ;;  %v455_v40 = vld [vmem:[%s6919_s14 + $0x180] sm:$0xff]  ;;  %v729_v51 = vunpack.c.0.s8 %v457_v42 }
 0x160   : > { %2782 = vmatmul.bf16.gmra.mxu2 %v1625_v53  ;;  %v735_v48 = vunpack.c.1.s8 %v455_v40 }
 0x161   : > { %2951 = vmatmul.bf16.gmra.mxu3 %v1626_v54  ;;  %v1641_v60 = vpack.c.bf16 %v1217_v50, %v1209_v49  ;;  %v728_v49 = vunpack.c.0.s8 %v456_v41  ;;  %v736_v50 = vunpack.c.1.s8 %v456_v41 }
 0x163   : > { %v2743_v57 = vpop.f32.mrf.mxu2  ;;  %v2407_v0 = vpop.f32.mrf.mxu0 }
 0x164   : > { %v2912_v58 = vpop.f32.mrf.mxu3  ;;  %v2744_v63 = vadd.f32 %v2743_v57, %v2575_v55  ;;  %v2576_v1 = vpop.f32.mrf.mxu1  ;;  %v1639_v55 = vpack.c.bf16 %v1215_v46, %v1207_v45  ;;  %v727_v45 = vunpack.c.0.s8 %v455_v40 }
 0x165   : > { %v2577_v5 = vadd.f32 %v2576_v1, %v2407_v0  ;;  %v5986_v0 = vld [vmem:[%s7008_s13 + $0x1a0] sm:$0xff] }
 0x166   : > { %v7098_v6 = vadd.f32 %v2912_v58, %v2744_v63  ;;  %v5970_v1 = vld [vmem:[%s7008_s13 + $0x120] sm:$0xff]  ;;  %3413 = vmatpush.bf16.msrb.mxu2 %v5986_v0  ;;  %v1248_v0 = vcvt.s32.f32 %v736_v50 }
 0x167   : > { %3075 = vmatpush.bf16.msrb.mxu0 %v5970_v1  ;;  %v1241_v1 = vcvt.s32.f32 %v729_v51 }
 0x16b   : > { %v2745_v15 = vpop.f32.mrf.mxu2  ;;  %v2410_v20 = vpop.f32.mrf.mxu0 }
 0x16c   : > { %v2914_v16 = vpop.f32.mrf.mxu3  ;;  %v2746_v19 = vadd.f32 %v2745_v15, %v2577_v5  ;;  %v2579_v21 = vpop.f32.mrf.mxu1  ;;  %v714_v15 = vunpack.c.2.s8 %v7112_v29 }
 0x16d   : > { %v2580_v24 = vadd.f32 %v2579_v21, %v2410_v20  ;;  %v1223_v20 = vcvt.s32.f32 %v711_v3  ;;  %v1231_v21 = vcvt.s32.f32 %v719_v7 }
 0x16e   : > { %v7100_v25 = vadd.f32 %v2914_v16, %v2746_v19  ;;  %2449 = vmatmul.bf16.gmra.mxu0 %v1631_v17  ;;  %v722_v16 = vunpack.c.3.s8 %v7112_v29  ;;  %v5978_v19 = vld [vmem:[%s7008_s13 + $0x160] sm:$0xff]  ;;  %v1226_v27 = vcvt.s32.f32 %v714_v15 }
 0x16f   : > { %2618 = vmatmul.bf16.gmra.mxu1 %v1632_v18 }
 0x170   : > { %2787 = vmatmul.bf16.gmra.mxu2 %v1633_v22  ;;  %v1224_v22 = vcvt.s32.f32 %v712_v8  ;;  %v1234_v30 = vcvt.s32.f32 %v722_v16  ;;  %3244 = vmatpush.bf16.msrb.mxu1 %v5978_v19 }
 0x171   : > { %2956 = vmatmul.bf16.gmra.mxu3 %v1634_v23  ;;  %v1232_v23 = vcvt.s32.f32 %v720_v9 }
 0x173   : > { %v2748_v31 = vpop.f32.mrf.mxu2  ;;  %v2412_v38 = vpop.f32.mrf.mxu0  ;;  %v1648_v29 = vpack.c.bf16 %v1232_v23, %v1224_v22  ;;  %v744_v22 = vunpack.c.2.s8 %v456_v41  ;;  %v752_v23 = vunpack.c.3.s8 %v456_v41 }
 0x174   : > { %v2917_v32 = vpop.f32.mrf.mxu3  ;;  %v2749_v37 = vadd.f32 %v2748_v31, %v2580_v24  ;;  %v2581_v39 = vpop.f32.mrf.mxu1  ;;  %v1225_v24 = vcvt.s32.f32 %v713_v10 }
 0x175   : > { %v2582_v43 = vadd.f32 %v2581_v39, %v2412_v38 }
 0x176   : > { %v7122_v44 = vadd.f32 %v2917_v32, %v2749_v37  ;;  %v1647_v32 = vpack.c.bf16 %v1231_v21, %v1223_v20  ;;  %v1649_v36 = vpack.c.bf16 %v1233_v26, %v1225_v24  ;;  %v1650_v37 = vpack.c.bf16 %v1234_v30, %v1226_v27 }
 0x177   : > { %v751_v21 = vunpack.c.3.s8 %v455_v40  ;;  %v745_v24 = vunpack.c.2.s8 %v457_v42 }
 0x17b   : > { %v2750_v53 = vpop.f32.mrf.mxu2  ;;  %v2415_v58 = vpop.f32.mrf.mxu0 }
 0x17c   : > { %v2919_v54 = vpop.f32.mrf.mxu3  ;;  %v2751_v57 = vadd.f32 %v2750_v53, %v2582_v43  ;;  %v2584_v59 = vpop.f32.mrf.mxu1  ;;  %v458_v43 = vld [vmem:[%s6919_s14 + $0x198] sm:$0xff] }
 0x17d   : > { %v2585_v62 = vadd.f32 %v2584_v59, %v2415_v58 }
 0x17e   : > { %v7124_v63 = vadd.f32 %v2919_v54, %v2751_v57  ;;  %2454 = vmatmul.bf16.gmra.mxu0 %v1639_v55  ;;  %v737_v55 = vunpack.c.1.s8 %v457_v42  ;;  %v738_v57 = vunpack.c.1.s8 %v458_v43 }
 0x17f   : > { %2623 = vmatmul.bf16.gmra.mxu1 %v1640_v56  ;;  %v730_v56 = vunpack.c.0.s8 %v458_v43 }
 0x180   : > { %2792 = vmatmul.bf16.gmra.mxu2 %v1641_v60  ;;  %v1239_v60 = vcvt.s32.f32 %v727_v45  ;;  %v1249_v2 = vcvt.s32.f32 %v737_v55  ;;  %v7155_v55 = vld [vmem:[%s6919_s14 + $0x1c0] sm:$0xff] }
 0x181   : > { %2961 = vmatmul.bf16.gmra.mxu3 %v1642_v61  ;;  %v1247_v61 = vcvt.s32.f32 %v735_v48  ;;  %v1242_v3 = vcvt.s32.f32 %v730_v56  ;;  %v7158_v56 = vld [vmem:[%s6919_s14 + $0x1c8] sm:$0xff] }
 0x183   : > { %v2753_v4 = vpop.f32.mrf.mxu2  ;;  %v2417_v12 = vpop.f32.mrf.mxu0  ;;  %v1655_v8 = vpack.c.bf16 %v1247_v61, %v1239_v60  ;;  %v759_v60 = vunpack.c.0.s8 %v7155_v55 }
 0x184   : > { %v2922_v5 = vpop.f32.mrf.mxu3  ;;  %v2754_v11 = vadd.f32 %v2753_v4, %v2585_v62  ;;  %v2586_v13 = vpop.f32.mrf.mxu1  ;;  %v1240_v62 = vcvt.s32.f32 %v728_v49  ;;  %v1250_v4 = vcvt.s32.f32 %v738_v57  ;;  %v7161_v57 = vld [vmem:[%s6919_s14 + $0x1d0] sm:$0xff] }
 0x185   : > { %v2587_v17 = vadd.f32 %v2586_v13, %v2417_v12  ;;  %v1657_v13 = vpack.c.bf16 %v1249_v2, %v1241_v1  ;;  %v760_v1 = vunpack.c.0.s8 %v7158_v56  ;;  %v768_v2 = vunpack.c.1.s8 %v7158_v56 }
 0x186   : > { %v7137_v18 = vadd.f32 %v2922_v5, %v2754_v11  ;;  %v1656_v9 = vpack.c.bf16 %v1248_v0, %v1240_v62  ;;  %v1658_v14 = vpack.c.bf16 %v1250_v4, %v1242_v3  ;;  %v767_v0 = vunpack.c.1.s8 %v7155_v55 }
 0x187   : > { %v761_v3 = vunpack.c.0.s8 %v7161_v57 }
 0x18b   : > { %v2755_v31 = vpop.f32.mrf.mxu2  ;;  %v2420_v34 = vpop.f32.mrf.mxu0 }
 0x18c   : > { %v2924_v28 = vpop.f32.mrf.mxu3  ;;  %v2756_v33 = vadd.f32 %v2755_v31, %v2587_v17  ;;  %v2589_v35 = vpop.f32.mrf.mxu1  ;;  %v743_v17 = vunpack.c.2.s8 %v455_v40  ;;  %v753_v31 = vunpack.c.3.s8 %v457_v42 }
 0x18d   : > { %v2590_v38 = vadd.f32 %v2589_v35, %v2420_v34  ;;  %v1263_v35 = vcvt.s32.f32 %v751_v21 }
 0x18e   : > { %v7140_v39 = vadd.f32 %v2924_v28, %v2756_v33  ;;  %2459 = vmatmul.bf16.gmra.mxu0 %v1647_v32  ;;  %v746_v28 = vunpack.c.2.s8 %v458_v43  ;;  %v754_v32 = vunpack.c.3.s8 %v458_v43  ;;  %v1255_v34 = vcvt.s32.f32 %v743_v17 }
 0x18f   : > { %2628 = vmatmul.bf16.gmra.mxu1 %v1648_v29  ;;  %v1265_v45 = vcvt.s32.f32 %v753_v31  ;;  %v1280_v17 = vcvt.s32.f32 %v768_v2 }
 0x190   : > { %2797 = vmatmul.bf16.gmra.mxu2 %v1649_v36  ;;  %v1256_v36 = vcvt.s32.f32 %v744_v22  ;;  %v1258_v40 = vcvt.s32.f32 %v746_v28  ;;  %v1663_v48 = vpack.c.bf16 %v1263_v35, %v1255_v34 }
 0x191   : > { %2966 = vmatmul.bf16.gmra.mxu3 %v1650_v37  ;;  %v1264_v37 = vcvt.s32.f32 %v752_v23 }
 0x193   : > { %v2758_v46 = vpop.f32.mrf.mxu2  ;;  %v2422_v53 = vpop.f32.mrf.mxu0  ;;  %v1664_v42 = vpack.c.bf16 %v1264_v37, %v1256_v36  ;;  %v5985_v36 = vld [vmem:[%s7008_s13 + $0x198] sm:$0xff] }
 0x194   : > { %v2927_v47 = vpop.f32.mrf.mxu3  ;;  %v2759_v52 = vadd.f32 %v2758_v46, %v2590_v38  ;;  %v2591_v54 = vpop.f32.mrf.mxu1  ;;  %v1257_v38 = vcvt.s32.f32 %v745_v24  ;;  %v1266_v46 = vcvt.s32.f32 %v754_v32  ;;  %v5969_v37 = vld [vmem:[%s7008_s13 + $0x118] sm:$0xff]  ;;  %3414 = vmatpush.bf16.msrb.mxu2 %v5985_v36 }
 0x195   : > { %v2592_v58 = vadd.f32 %v2591_v54, %v2422_v53  ;;  %3076 = vmatpush.bf16.msrb.mxu0 %v5969_v37 }
 0x196   : > { %v7146_v59 = vadd.f32 %v2927_v47, %v2759_v52  ;;  %v1665_v51 = vpack.c.bf16 %v1265_v45, %v1257_v38  ;;  %v1666_v52 = vpack.c.bf16 %v1266_v46, %v1258_v40  ;;  %v5993_v38 = vld [vmem:[%s7008_s13 + $0x1d8] sm:$0xff]  ;;  %v775_v45 = vunpack.c.2.s8 %v7155_v55 }
 0x197   : > { %3583 = vmatpush.bf16.msrb.mxu3 %v5993_v38 }
 0x19b   : > { %v2760_v5 = vpop.f32.mrf.mxu2  ;;  %v2425_v11 = vpop.f32.mrf.mxu0 }
 0x19c   : > { %v2929_v7 = vpop.f32.mrf.mxu3  ;;  %v2761_v10 = vadd.f32 %v2760_v5, %v2592_v58  ;;  %v2594_v12 = vpop.f32.mrf.mxu1  ;;  %v7164_v58 = vld [vmem:[%s6919_s14 + $0x1d8] sm:$0xff] }
 0x19d   : > { %v2595_v15 = vadd.f32 %v2594_v12, %v2425_v11 }
 0x19e   : > { %v7148_v16 = vadd.f32 %v2929_v7, %v2761_v10  ;;  %2464 = vmatmul.bf16.gmra.mxu0 %v1655_v8  ;;  %v769_v8 = vunpack.c.1.s8 %v7161_v57  ;;  %v770_v10 = vunpack.c.1.s8 %v7164_v58 }
 0x19f   : > { %2633 = vmatmul.bf16.gmra.mxu1 %v1656_v9  ;;  %v762_v9 = vunpack.c.0.s8 %v7164_v58 }
 0x1a0   : > { %2802 = vmatmul.bf16.gmra.mxu2 %v1657_v13  ;;  %v1271_v13 = vcvt.s32.f32 %v759_v60  ;;  %v1282_v22 = vcvt.s32.f32 %v770_v10 }
 0x1a1   : > { %2971 = vmatmul.bf16.gmra.mxu3 %v1658_v14  ;;  %v1279_v14 = vcvt.s32.f32 %v767_v0  ;;  %v1274_v21 = vcvt.s32.f32 %v762_v9 }
 0x1a3   : > { %v2763_v19 = vpop.f32.mrf.mxu2  ;;  %v2427_v27 = vpop.f32.mrf.mxu0 }
 0x1a4   : > { %v2932_v20 = vpop.f32.mrf.mxu3  ;;  %v2764_v26 = vadd.f32 %v2763_v19, %v2595_v15  ;;  %v2596_v30 = vpop.f32.mrf.mxu1  ;;  %v1272_v15 = vcvt.s32.f32 %v760_v1  ;;  %v1273_v19 = vcvt.s32.f32 %v761_v3 }
 0x1a5   : > { %v2597_v29 = vadd.f32 %v2596_v30, %v2427_v27 }
 0x1a6   : > { %v7150_v33 = vadd.f32 %v2932_v20, %v2764_v26  ;;  %v1281_v20 = vcvt.s32.f32 %v769_v8  ;;  %v1671_v26 = vpack.c.bf16 %v1279_v14, %v1271_v13  ;;  %v1672_v27 = vpack.c.bf16 %v1280_v17, %v1272_v15 }
 0x1a8   : > { %v1673_v32 = vpack.c.bf16 %v1281_v20, %v1273_v19  ;;  %v471_v19 = vld [vmem:[%s6919_s14 + $0x200] sm:$0xff]  ;;  %v472_v20 = vld [vmem:[%s6919_s14 + $0x208] sm:$0xff] }
 0x1ab   : > { %v2765_v41 = vpop.f32.mrf.mxu2  ;;  %v2430_v49 = vpop.f32.mrf.mxu0 }
 0x1ac   : > { %v2934_v47 = vpop.f32.mrf.mxu3  ;;  %v2766_v43 = vadd.f32 %v2765_v41, %v2597_v29  ;;  %v2599_v50 = vpop.f32.mrf.mxu1  ;;  %v1674_v29 = vpack.c.bf16 %v1282_v22, %v1274_v21  ;;  %v783_v41 = vunpack.c.3.s8 %v7155_v55  ;;  %v5977_v55 = vld [vmem:[%s7008_s13 + $0x158] sm:$0xff]  ;;  %v473_v21 = vld [vmem:[%s6919_s14 + $0x210] sm:$0xff] }
 0x1ad   : > { %v2600_v53 = vadd.f32 %v2599_v50, %v2430_v49  ;;  %3245 = vmatpush.bf16.msrb.mxu1 %v5977_v55  ;;  %v474_v22 = vld [vmem:[%s6919_s14 + $0x218] sm:$0xff]  ;;  %v801_v36 = vunpack.c.1.s8 %v473_v21 }
 0x1ae   : > { %v7152_v54 = vadd.f32 %v2934_v47, %v2766_v43  ;;  %2469 = vmatmul.bf16.gmra.mxu0 %v1663_v48  ;;  %v776_v47 = vunpack.c.2.s8 %v7158_v56  ;;  %v784_v48 = vunpack.c.3.s8 %v7158_v56  ;;  %v1295_v0 = vcvt.s32.f32 %v783_v41 }
 0x1af   : > { %2638 = vmatmul.bf16.gmra.mxu1 %v1664_v42  ;;  %v777_v42 = vunpack.c.2.s8 %v7161_v57  ;;  %v794_v37 = vunpack.c.0.s8 %v474_v22  ;;  %v802_v38 = vunpack.c.1.s8 %v474_v22 }
 0x1b0   : > { %2807 = vmatmul.bf16.gmra.mxu2 %v1665_v51  ;;  %v785_v51 = vunpack.c.3.s8 %v7161_v57  ;;  %v1288_v1 = vcvt.s32.f32 %v776_v47  ;;  %v1296_v56 = vcvt.s32.f32 %v784_v48 }
 0x1b1   : > { %2976 = vmatmul.bf16.gmra.mxu3 %v1666_v52  ;;  %v778_v52 = vunpack.c.2.s8 %v7164_v58  ;;  %v1289_v2 = vcvt.s32.f32 %v777_v42 }
 0x1b2   : > { %v1297_v3 = vcvt.s32.f32 %v785_v51 }
 0x1b3   : > { %v2768_v61 = vpop.f32.mrf.mxu2  ;;  %v2432_v5 = vpop.f32.mrf.mxu0 }
 0x1b4   : > { %v2937_v62 = vpop.f32.mrf.mxu3  ;;  %v2769_v4 = vadd.f32 %v2768_v61, %v2600_v53  ;;  %v2601_v7 = vpop.f32.mrf.mxu1  ;;  %v786_v53 = vunpack.c.3.s8 %v7164_v58  ;;  %v1680_v58 = vpack.c.bf16 %v1296_v56, %v1288_v1  ;;  %v1681_v13 = vpack.c.bf16 %v1297_v3, %v1289_v2 }
 0x1b5   : > { %v2602_v11 = vadd.f32 %v2601_v7, %v2432_v5 }
 0x1b6   : > { %v7174_v12 = vadd.f32 %v2937_v62, %v2769_v4  ;;  %v1287_v62 = vcvt.s32.f32 %v775_v45  ;;  %v1290_v4 = vcvt.s32.f32 %v778_v52  ;;  %v1298_v5 = vcvt.s32.f32 %v786_v53 }
 0x1b8   : > { %v1679_v8 = vpack.c.bf16 %v1295_v0, %v1287_v62  ;;  %v1682_v14 = vpack.c.bf16 %v1298_v5, %v1290_v4  ;;  %v807_v4 = vunpack.c.2.s8 %v471_v19 }
 0x1bb   : > { %v2770_v23 = vpop.f32.mrf.mxu2  ;;  %v2435_v31 = vpop.f32.mrf.mxu0 }
 0x1bc   : > { %v2939_v24 = vpop.f32.mrf.mxu3  ;;  %v2771_v30 = vadd.f32 %v2770_v23, %v2602_v11  ;;  %v2604_v28 = vpop.f32.mrf.mxu1  ;;  %v791_v23 = vunpack.c.0.s8 %v471_v19 }
 0x1bd   : > { %v2605_v34 = vadd.f32 %v2604_v28, %v2435_v31  ;;  %v800_v31 = vunpack.c.1.s8 %v472_v20  ;;  %v793_v28 = vunpack.c.0.s8 %v473_v21 }
 0x1be   : > { %v7176_v35 = vadd.f32 %v2939_v24, %v2771_v30  ;;  %2474 = vmatmul.bf16.gmra.mxu0 %v1671_v26  ;;  %v792_v30 = vunpack.c.0.s8 %v472_v20 }
 0x1bf   : > { %2643 = vmatmul.bf16.gmra.mxu1 %v1672_v27  ;;  %v799_v27 = vunpack.c.1.s8 %v471_v19  ;;  %v1312_v48 = vcvt.s32.f32 %v800_v31  ;;  %v1305_v42 = vcvt.s32.f32 %v793_v28 }
 0x1c0   : > { %2812 = vmatmul.bf16.gmra.mxu2 %v1673_v32  ;;  %v1304_v47 = vcvt.s32.f32 %v792_v30 }
 0x1c1   : > { %2981 = vmatmul.bf16.gmra.mxu3 %v1674_v29  ;;  %v1311_v41 = vcvt.s32.f32 %v799_v27  ;;  %v1319_v27 = vcvt.s32.f32 %v807_v4 }
 0x1c3   : > { %v2773_v40 = vpop.f32.mrf.mxu2  ;;  %v2437_v49 = vpop.f32.mrf.mxu0 }
 0x1c4   : > { %v2942_v46 = vpop.f32.mrf.mxu3  ;;  %v2774_v43 = vadd.f32 %v2773_v40, %v2605_v34  ;;  %v2606_v50 = vpop.f32.mrf.mxu1 }
 0x1c5   : > { %v2607_v60 = vadd.f32 %v2606_v50, %v2437_v49  ;;  %v1306_v49 = vcvt.s32.f32 %v794_v37  ;;  %v1314_v50 = vcvt.s32.f32 %v802_v38 }
 0x1c6   : > { %v7189_v61 = vadd.f32 %v2942_v46, %v2774_v43  ;;  %v1303_v46 = vcvt.s32.f32 %v791_v23  ;;  %v1313_v43 = vcvt.s32.f32 %v801_v36  ;;  %v818_v23 = vunpack.c.3.s8 %v474_v22 }
 0x1c7   : > { %v1690_v56 = vpack.c.bf16 %v1314_v50, %v1306_v49  ;;  %v7213_v49 = vld [vmem:[%s6919_s14 + $0x250] sm:$0xff]  ;;  %v7216_v50 = vld [vmem:[%s6919_s14 + $0x258] sm:$0xff] }
 0x1c8   : > { %v1687_v53 = vpack.c.bf16 %v1311_v41, %v1303_v46  ;;  %v1689_v1 = vpack.c.bf16 %v1313_v43, %v1305_v42  ;;  %v7207_v42 = vld [vmem:[%s6919_s14 + $0x240] sm:$0xff]  ;;  %v7210_v43 = vld [vmem:[%s6919_s14 + $0x248] sm:$0xff]  ;;  %v833_v4 = vunpack.c.1.s8 %v7213_v49 }
 0x1cb   : > { %v2775_v7 = vpop.f32.mrf.mxu2  ;;  %v2440_v10 = vpop.f32.mrf.mxu0 }
 0x1cc   : > { %v2944_v57 = vpop.f32.mrf.mxu3  ;;  %v2776_v9 = vadd.f32 %v2775_v7, %v2607_v60  ;;  %v2609_v11 = vpop.f32.mrf.mxu1  ;;  %v1688_v60 = vpack.c.bf16 %v1312_v48, %v1304_v47 }
 0x1cd   : > { %v2610_v15 = vadd.f32 %v2609_v11, %v2440_v10 }
 0x1ce   : > { %v7192_v17 = vadd.f32 %v2944_v57, %v2776_v9  ;;  %2479 = vmatmul.bf16.gmra.mxu0 %v1679_v8  ;;  %v815_v57 = vunpack.c.3.s8 %v471_v19  ;;  %v808_v8 = vunpack.c.2.s8 %v472_v20  ;;  %v809_v9 = vunpack.c.2.s8 %v473_v21 }
 0x1cf   : > { %2648 = vmatmul.bf16.gmra.mxu1 %v1680_v58  ;;  %v816_v58 = vunpack.c.3.s8 %v472_v20 }
 0x1d0   : > { %2817 = vmatmul.bf16.gmra.mxu2 %v1681_v13  ;;  %v1327_v30 = vcvt.s32.f32 %v815_v57  ;;  %v1320_v31 = vcvt.s32.f32 %v808_v8 }
 0x1d1   : > { %2986 = vmatmul.bf16.gmra.mxu3 %v1682_v14  ;;  %v817_v14 = vunpack.c.3.s8 %v473_v21  ;;  %v1328_v28 = vcvt.s32.f32 %v816_v58 }
 0x1d2   : > { %v1695_v37 = vpack.c.bf16 %v1327_v30, %v1319_v27 }
 0x1d3   : > { %v2778_v24 = vpop.f32.mrf.mxu2  ;;  %v2442_v29 = vpop.f32.mrf.mxu0  ;;  %v1696_v21 = vpack.c.bf16 %v1328_v28, %v1320_v31 }
 0x1d4   : > { %v2947_v26 = vpop.f32.mrf.mxu3  ;;  %v2779_v32 = vadd.f32 %v2778_v24, %v2610_v15  ;;  %v2611_v34 = vpop.f32.mrf.mxu1  ;;  %v810_v15 = vunpack.c.2.s8 %v474_v22 }
 0x1d5   : > { %v2612_v45 = vadd.f32 %v2611_v34, %v2442_v29  ;;  %v1329_v29 = vcvt.s32.f32 %v817_v14  ;;  %v1330_v34 = vcvt.s32.f32 %v818_v23  ;;  %v1345_v14 = vcvt.s32.f32 %v833_v4 }
 0x1d6   : > { %v7198_v40 = vadd.f32 %v2947_v26, %v2779_v32  ;;  %v1321_v32 = vcvt.s32.f32 %v809_v9  ;;  %v1322_v19 = vcvt.s32.f32 %v810_v15 }
 0x1d8   : > { %v1697_v46 = vpack.c.bf16 %v1329_v29, %v1321_v32  ;;  %v1698_v41 = vpack.c.bf16 %v1330_v34, %v1322_v19 }
 0x1db   : > { %v2780_v51 = vpop.f32.mrf.mxu2  ;;  %v2445_v62 = vpop.f32.mrf.mxu0 }
 0x1dc   : > { %v2949_v52 = vpop.f32.mrf.mxu3  ;;  %v2781_v55 = vadd.f32 %v2780_v51, %v2612_v45  ;;  %v2614_v0 = vpop.f32.mrf.mxu1  ;;  %v823_v51 = vunpack.c.0.s8 %v7207_v42 }
 0x1dd   : > { %v2615_v2 = vadd.f32 %v2614_v0, %v2445_v62  ;;  %v832_v62 = vunpack.c.1.s8 %v7210_v43  ;;  %v825_v0 = vunpack.c.0.s8 %v7213_v49 }
 0x1de   : > { %v7200_v3 = vadd.f32 %v2949_v52, %v2781_v55  ;;  %2484 = vmatmul.bf16.gmra.mxu0 %v1687_v53  ;;  %v824_v55 = vunpack.c.0.s8 %v7210_v43  ;;  %v1335_v58 = vcvt.s32.f32 %v823_v51  ;;  %v848_v51 = vunpack.c.3.s8 %v7210_v43 }
 0x1df   : > { %2653 = vmatmul.bf16.gmra.mxu1 %v1688_v60  ;;  %v831_v60 = vunpack.c.1.s8 %v7207_v42 }
 0x1e0   : > { %2822 = vmatmul.bf16.gmra.mxu2 %v1689_v1 }
 0x1e1   : > { %2991 = vmatmul.bf16.gmra.mxu3 %v1690_v56  ;;  %v1343_v9 = vcvt.s32.f32 %v831_v60 }
 0x1e3   : > { %v2783_v5 = vpop.f32.mrf.mxu2  ;;  %v2447_v11 = vpop.f32.mrf.mxu0  ;;  %v1703_v30 = vpack.c.bf16 %v1343_v9, %v1335_v58 }
 0x1e4   : > { %v2952_v7 = vpop.f32.mrf.mxu3  ;;  %v2784_v10 = vadd.f32 %v2783_v5, %v2615_v2  ;;  %v2616_v13 = vpop.f32.mrf.mxu1  ;;  %v826_v5 = vunpack.c.0.s8 %v7216_v50 }
 0x1e5   : > { %v2617_v24 = vadd.f32 %v2616_v13, %v2447_v11  ;;  %v1344_v11 = vcvt.s32.f32 %v832_v62  ;;  %v1337_v13 = vcvt.s32.f32 %v825_v0  ;;  %v849_v62 = vunpack.c.3.s8 %v7213_v49 }
 0x1e6   : > { %v7202_v26 = vadd.f32 %v2952_v7, %v2784_v10  ;;  %v834_v7 = vunpack.c.1.s8 %v7216_v50  ;;  %v1336_v10 = vcvt.s32.f32 %v824_v55  ;;  %v1338_v15 = vcvt.s32.f32 %v826_v5 }
 0x1e7   : > { %v1705_v19 = vpack.c.bf16 %v1345_v14, %v1337_v13  ;;  %v842_v0 = vunpack.c.2.s8 %v7216_v50  ;;  %v1361_v58 = vcvt.s32.f32 %v849_v62 }
 0x1e8   : > { %v1346_v23 = vcvt.s32.f32 %v834_v7  ;;  %v1704_v31 = vpack.c.bf16 %v1344_v11, %v1336_v10 }
 0x1e9   : > { %v1354_v9 = vcvt.s32.f32 %v842_v0 }
 0x1ea   : > { %v1706_v34 = vpack.c.bf16 %v1346_v23, %v1338_v15 }
 0x1eb   : > { %v2785_v20 = vpop.f32.mrf.mxu2  ;;  %v2450_v38 = vpop.f32.mrf.mxu0 }
 0x1ec   : > { %v2954_v36 = vpop.f32.mrf.mxu3  ;;  %v2786_v22 = vadd.f32 %v2785_v20, %v2617_v24  ;;  %v2619_v45 = vpop.f32.mrf.mxu1 }
 0x1ed   : > { %v2620_v47 = vadd.f32 %v2619_v45, %v2450_v38  ;;  %v839_v38 = vunpack.c.2.s8 %v7207_v42 }
 0x1ee   : > { %v7204_v48 = vadd.f32 %v2954_v36, %v2786_v22  ;;  %2489 = vmatmul.bf16.gmra.mxu0 %v1695_v37  ;;  %v5984_v37 = vld [vmem:[%s7008_s13 + $0x190] sm:$0xff] }
 0x1ef   : > { %2658 = vmatmul.bf16.gmra.mxu1 %v1696_v21  ;;  %v5968_v21 = vld [vmem:[%s7008_s13 + $0x110] sm:$0xff]  ;;  %3415 = vmatpush.bf16.msrb.mxu2 %v5984_v37  ;;  %v1351_v4 = vcvt.s32.f32 %v839_v38 }
 0x1f0   : > { %2827 = vmatmul.bf16.gmra.mxu2 %v1697_v46  ;;  %v5992_v22 = vld [vmem:[%s7008_s13 + $0x1d0] sm:$0xff]  ;;  %3077 = vmatpush.bf16.msrb.mxu0 %v5968_v21 }
 0x1f1   : > { %2996 = vmatmul.bf16.gmra.mxu3 %v1698_v41  ;;  %v847_v41 = vunpack.c.3.s8 %v7207_v42  ;;  %v5976_v42 = vld [vmem:[%s7008_s13 + $0x150] sm:$0xff] }
 0x1f2   : > { %3584 = vmatpush.bf16.msrb.mxu3 %v5992_v22  ;;  %3246 = vmatpush.bf16.msrb.mxu1 %v5976_v42 }
 0x1f3   : > { %v2788_v52 = vpop.f32.mrf.mxu2  ;;  %v2452_v56 = vpop.f32.mrf.mxu0  ;;  %v1359_v5 = vcvt.s32.f32 %v847_v41 }
 0x1f4   : > { %v2957_v53 = vpop.f32.mrf.mxu3  ;;  %v2789_v1 = vadd.f32 %v2788_v52, %v2620_v47  ;;  %v2621_v2 = vpop.f32.mrf.mxu1  ;;  %v840_v47 = vunpack.c.2.s8 %v7210_v43  ;;  %v841_v52 = vunpack.c.2.s8 %v7213_v49  ;;  %v1360_v43 = vcvt.s32.f32 %v848_v51 }
 0x1f5   : > { %v2622_v57 = vadd.f32 %v2621_v2, %v2452_v56  ;;  %v1711_v13 = vpack.c.bf16 %v1359_v5, %v1351_v4 }
 0x1f6   : > { %v7226_v8 = vadd.f32 %v2957_v53, %v2789_v1  ;;  %v850_v1 = vunpack.c.3.s8 %v7216_v50  ;;  %v1352_v7 = vcvt.s32.f32 %v840_v47 }
 0x1f8   : > { %v1362_v10 = vcvt.s32.f32 %v850_v1  ;;  %v1712_v50 = vpack.c.bf16 %v1360_v43, %v1352_v7 }
 0x1fb   : > { %v2790_v24 = vpop.f32.mrf.mxu2  ;;  %v2455_v32 = vpop.f32.mrf.mxu0 }
 0x1fc   : > { %v2959_v27 = vpop.f32.mrf.mxu3  ;;  %v2791_v28 = vadd.f32 %v2790_v24, %v2622_v57  ;;  %v2624_v29 = vpop.f32.mrf.mxu1  ;;  %v1353_v57 = vcvt.s32.f32 %v841_v52 }
 0x1fd   : > { %v2625_v20 = vadd.f32 %v2624_v29, %v2455_v32  ;;  %v488_v32 = vld [vmem:[%s6919_s14 + $0x288] sm:$0xff]  ;;  %v489_v29 = vld [vmem:[%s6919_s14 + $0x290] sm:$0xff] }
 0x1fe   : > { %v7228_v36 = vadd.f32 %v2959_v27, %v2791_v28  ;;  %2494 = vmatmul.bf16.gmra.mxu0 %v1703_v30  ;;  %v1713_v24 = vpack.c.bf16 %v1361_v58, %v1353_v57  ;;  %v1714_v27 = vpack.c.bf16 %v1362_v10, %v1354_v9  ;;  %v487_v28 = vld [vmem:[%s6919_s14 + $0x280] sm:$0xff]  ;;  %v856_v22 = vunpack.c.0.s8 %v488_v32 }
 0x1ff   : > { %2663 = vmatmul.bf16.gmra.mxu1 %v1704_v31  ;;  %v863_v21 = vunpack.c.1.s8 %v487_v28  ;;  %v864_v38 = vunpack.c.1.s8 %v488_v32  ;;  %v865_v51 = vunpack.c.1.s8 %v489_v29 }
 0x200   : > { %2832 = vmatmul.bf16.gmra.mxu2 %v1705_v19  ;;  %v490_v19 = vld [vmem:[%s6919_s14 + $0x298] sm:$0xff]  ;;  %v1368_v1 = vcvt.s32.f32 %v856_v22 }
 0x201   : > { %3001 = vmatmul.bf16.gmra.mxu3 %v1706_v34  ;;  %v855_v34 = vunpack.c.0.s8 %v487_v28  ;;  %v858_v52 = vunpack.c.0.s8 %v490_v19  ;;  %v1375_v0 = vcvt.s32.f32 %v863_v21  ;;  %v1377_v4 = vcvt.s32.f32 %v865_v51 }
 0x203   : > { %v2793_v45 = vpop.f32.mrf.mxu2  ;;  %v2457_v60 = vpop.f32.mrf.mxu0  ;;  %v1367_v62 = vcvt.s32.f32 %v855_v34  ;;  %v1370_v5 = vcvt.s32.f32 %v858_v52  ;;  %v872_v34 = vunpack.c.2.s8 %v488_v32 }
 0x204   : > { %v2962_v46 = vpop.f32.mrf.mxu3  ;;  %v2794_v53 = vadd.f32 %v2793_v45, %v2625_v20  ;;  %v2626_v55 = vpop.f32.mrf.mxu1  ;;  %v857_v45 = vunpack.c.0.s8 %v489_v29 }
 0x205   : > { %v2627_v56 = vadd.f32 %v2626_v55, %v2457_v60  ;;  %v1719_v58 = vpack.c.bf16 %v1375_v0, %v1367_v62 }
 0x206   : > { %v7241_v2 = vadd.f32 %v2962_v46, %v2794_v53  ;;  %v866_v53 = vunpack.c.1.s8 %v490_v19  ;;  %v1369_v42 = vcvt.s32.f32 %v857_v45  ;;  %v881_v45 = vunpack.c.3.s8 %v489_v29 }
 0x208   : > { %v1378_v7 = vcvt.s32.f32 %v866_v53 }
 0x20b   : > { %v2795_v11 = vpop.f32.mrf.mxu2  ;;  %v2460_v15 = vpop.f32.mrf.mxu0 }
 0x20c   : > { %v2964_v49 = vpop.f32.mrf.mxu3  ;;  %v2796_v14 = vadd.f32 %v2795_v11, %v2627_v56  ;;  %v2629_v23 = vpop.f32.mrf.mxu1  ;;  %v1376_v56 = vcvt.s32.f32 %v864_v38 }
 0x20d   : > { %v2630_v30 = vadd.f32 %v2629_v23, %v2460_v15  ;;  %v871_v23 = vunpack.c.2.s8 %v487_v28 }
 0x20e   : > { %v7244_v31 = vadd.f32 %v2964_v49, %v2796_v14  ;;  %2499 = vmatmul.bf16.gmra.mxu0 %v1711_v13  ;;  %v1720_v9 = vpack.c.bf16 %v1376_v56, %v1368_v1  ;;  %v1721_v13 = vpack.c.bf16 %v1377_v4, %v1369_v42  ;;  %v1393_v1 = vcvt.s32.f32 %v881_v45 }
 0x20f   : > { %2668 = vmatmul.bf16.gmra.mxu1 %v1712_v50  ;;  %v1722_v50 = vpack.c.bf16 %v1378_v7, %v1370_v5  ;;  %v1383_v52 = vcvt.s32.f32 %v871_v23 }
 0x210   : > { %2837 = vmatmul.bf16.gmra.mxu2 %v1713_v24 }
 0x211   : > { %3006 = vmatmul.bf16.gmra.mxu3 %v1714_v27 }
 0x213   : > { %v2798_v20 = vpop.f32.mrf.mxu2  ;;  %v2462_v41 = vpop.f32.mrf.mxu0 }
 0x214   : > { %v2967_v37 = vpop.f32.mrf.mxu3  ;;  %v2799_v46 = vadd.f32 %v2798_v20, %v2630_v30  ;;  %v2631_v47 = vpop.f32.mrf.mxu1  ;;  %v879_v30 = vunpack.c.3.s8 %v487_v28  ;;  %v880_v20 = vunpack.c.3.s8 %v488_v32 }
 0x215   : > { %v2632_v60 = vadd.f32 %v2631_v47, %v2462_v41  ;;  %v882_v41 = vunpack.c.3.s8 %v490_v19 }
 0x216   : > { %v7250_v55 = vadd.f32 %v2967_v37, %v2799_v46  ;;  %v873_v37 = vunpack.c.2.s8 %v489_v29  ;;  %v874_v46 = vunpack.c.2.s8 %v490_v19  ;;  %v1391_v53 = vcvt.s32.f32 %v879_v30 }
 0x217   : > { %v1392_v62 = vcvt.s32.f32 %v880_v20  ;;  %v1394_v56 = vcvt.s32.f32 %v882_v41 }
 0x218   : > { %v1385_v0 = vcvt.s32.f32 %v873_v37  ;;  %v1386_v28 = vcvt.s32.f32 %v874_v46  ;;  %v1727_v4 = vpack.c.bf16 %v1391_v53, %v1383_v52 }
 0x21b   : > { %v2800_v43 = vpop.f32.mrf.mxu2  ;;  %v2465_v11 = vpop.f32.mrf.mxu0 }
 0x21c   : > { %v2969_v57 = vpop.f32.mrf.mxu3  ;;  %v2801_v10 = vadd.f32 %v2800_v43, %v2632_v60  ;;  %v2634_v49 = vpop.f32.mrf.mxu1  ;;  %v1384_v60 = vcvt.s32.f32 %v872_v34  ;;  %v1729_v43 = vpack.c.bf16 %v1393_v1, %v1385_v0 }
 0x21d   : > { %v2635_v14 = vadd.f32 %v2634_v49, %v2465_v11  ;;  %v7262_v11 = vld [vmem:[%s6919_s14 + $0x2c8] sm:$0xff]  ;;  %v7265_v49 = vld [vmem:[%s6919_s14 + $0x2d0] sm:$0xff] }
 0x21e   : > { %v7252_v15 = vadd.f32 %v2969_v57, %v2801_v10  ;;  %2504 = vmatmul.bf16.gmra.mxu0 %v1719_v58  ;;  %v1728_v29 = vpack.c.bf16 %v1392_v62, %v1384_v60  ;;  %v1730_v57 = vpack.c.bf16 %v1394_v56, %v1386_v28  ;;  %v7259_v10 = vld [vmem:[%s6919_s14 + $0x2c0] sm:$0xff]  ;;  %v896_v30 = vunpack.c.1.s8 %v7262_v11 }
 0x21f   : > { %2673 = vmatmul.bf16.gmra.mxu1 %v1720_v9  ;;  %v889_v34 = vunpack.c.0.s8 %v7265_v49 }
 0x220   : > { %2842 = vmatmul.bf16.gmra.mxu2 %v1721_v13  ;;  %v7268_v13 = vld [vmem:[%s6919_s14 + $0x2d8] sm:$0xff]  ;;  %v1408_v60 = vcvt.s32.f32 %v896_v30 }
 0x221   : > { %3011 = vmatmul.bf16.gmra.mxu3 %v1722_v50  ;;  %v887_v50 = vunpack.c.0.s8 %v7259_v10  ;;  %v898_v45 = vunpack.c.1.s8 %v7268_v13  ;;  %v1401_v62 = vcvt.s32.f32 %v889_v34  ;;  %v911_v34 = vunpack.c.3.s8 %v7259_v10 }
 0x223   : > { %v2803_v24 = vpop.f32.mrf.mxu2  ;;  %v2467_v22 = vpop.f32.mrf.mxu0  ;;  %v1410_v28 = vcvt.s32.f32 %v898_v45 }
 0x224   : > { %v2972_v27 = vpop.f32.mrf.mxu3  ;;  %v2804_v21 = vadd.f32 %v2803_v24, %v2635_v14  ;;  %v2636_v38 = vpop.f32.mrf.mxu1  ;;  %v895_v24 = vunpack.c.1.s8 %v7259_v10 }
 0x225   : > { %v2637_v47 = vadd.f32 %v2636_v38, %v2467_v22  ;;  %v897_v22 = vunpack.c.1.s8 %v7265_v49  ;;  %v890_v38 = vunpack.c.0.s8 %v7268_v13 }
 0x226   : > { %v7254_v51 = vadd.f32 %v2972_v27, %v2804_v21  ;;  %v888_v27 = vunpack.c.0.s8 %v7262_v11  ;;  %v1407_v52 = vcvt.s32.f32 %v895_v24  ;;  %v903_v24 = vunpack.c.2.s8 %v7259_v10  ;;  %v5975_v10 = vld [vmem:[%s7008_s13 + $0x148] sm:$0xff] }
 0x227   : > { %v1409_v0 = vcvt.s32.f32 %v897_v22  ;;  %v1402_v1 = vcvt.s32.f32 %v890_v38  ;;  %3247 = vmatpush.bf16.msrb.mxu1 %v5975_v10 }
 0x228   : > { %v1400_v53 = vcvt.s32.f32 %v888_v27 }
 0x22b   : > { %v2805_v32 = vpop.f32.mrf.mxu2  ;;  %v2470_v5 = vpop.f32.mrf.mxu0 }
 0x22c   : > { %v2974_v42 = vpop.f32.mrf.mxu3  ;;  %v2806_v19 = vadd.f32 %v2805_v32, %v2637_v47  ;;  %v2639_v7 = vpop.f32.mrf.mxu1  ;;  %v1399_v47 = vcvt.s32.f32 %v887_v50  ;;  %v5983_v50 = vld [vmem:[%s7008_s13 + $0x188] sm:$0xff] }
 0x22d   : > { %v2640_v58 = vadd.f32 %v2639_v7, %v2470_v5  ;;  %v1737_v7 = vpack.c.bf16 %v1409_v0, %v1401_v62  ;;  %3416 = vmatpush.bf16.msrb.mxu2 %v5983_v50  ;;  %v1415_v62 = vcvt.s32.f32 %v903_v24  ;;  %v1423_v0 = vcvt.s32.f32 %v911_v34  ;;  %v504_v24 = vld [vmem:[%s6919_s14 + $0x308] sm:$0xff] }
 0x22e   : > { %v7256_v9 = vadd.f32 %v2974_v42, %v2806_v19  ;;  %2509 = vmatmul.bf16.gmra.mxu0 %v1727_v4  ;;  %v1735_v42 = vpack.c.bf16 %v1407_v52, %v1399_v47  ;;  %v1736_v4 = vpack.c.bf16 %v1408_v60, %v1400_v53  ;;  %v906_v47 = vunpack.c.2.s8 %v7268_v13 }
 0x22f   : > { %2678 = vmatmul.bf16.gmra.mxu1 %v1728_v29  ;;  %v914_v52 = vunpack.c.3.s8 %v7268_v13 }
 0x230   : > { %2847 = vmatmul.bf16.gmra.mxu2 %v1729_v43  ;;  %v1738_v43 = vpack.c.bf16 %v1410_v28, %v1402_v1 }
 0x231   : > { %3016 = vmatmul.bf16.gmra.mxu3 %v1730_v57 }
 0x233   : > { %v2808_v14 = vpop.f32.mrf.mxu2  ;;  %v2472_v37 = vpop.f32.mrf.mxu0 }
 0x234   : > { %v2977_v23 = vpop.f32.mrf.mxu3  ;;  %v2809_v20 = vadd.f32 %v2808_v14, %v2640_v58  ;;  %v2641_v21 = vpop.f32.mrf.mxu1  ;;  %v5967_v14 = vld [vmem:[%s7008_s13 + $0x108] sm:$0xff] }
 0x235   : > { %v2642_v46 = vadd.f32 %v2641_v21, %v2472_v37  ;;  %3078 = vmatpush.bf16.msrb.mxu0 %v5967_v14  ;;  %v912_v37 = vunpack.c.3.s8 %v7262_v11  ;;  %v905_v21 = vunpack.c.2.s8 %v7265_v49 }
 0x236   : > { %v7278_v41 = vadd.f32 %v2977_v23, %v2809_v20  ;;  %v5991_v23 = vld [vmem:[%s7008_s13 + $0x1c8] sm:$0xff]  ;;  %v904_v20 = vunpack.c.2.s8 %v7262_v11 }
 0x237   : > { %3585 = vmatpush.bf16.msrb.mxu3 %v5991_v23  ;;  %v1424_v11 = vcvt.s32.f32 %v912_v37  ;;  %v1417_v28 = vcvt.s32.f32 %v905_v21  ;;  %v503_v23 = vld [vmem:[%s6919_s14 + $0x300] sm:$0xff] }
 0x238   : > { %v1416_v1 = vcvt.s32.f32 %v904_v20  ;;  %v919_v34 = vunpack.c.0.s8 %v503_v23  ;;  %v927_v21 = vunpack.c.1.s8 %v503_v23 }
 0x23a   : > { %v1744_v13 = vpack.c.bf16 %v1424_v11, %v1416_v1  ;;  %v1431_v11 = vcvt.s32.f32 %v919_v34  ;;  %v935_v34 = vunpack.c.2.s8 %v503_v23 }
 0x23b   : > { %v2810_v56 = vpop.f32.mrf.mxu2  ;;  %v2475_v19 = vpop.f32.mrf.mxu0 }
 0x23c   : > { %v2979_v32 = vpop.f32.mrf.mxu3  ;;  %v2811_v29 = vadd.f32 %v2810_v56, %v2642_v46  ;;  %v2644_v5 = vpop.f32.mrf.mxu1  ;;  %v913_v46 = vunpack.c.3.s8 %v7265_v49 }
 0x23d   : > { %v2645_v57 = vadd.f32 %v2644_v5, %v2475_v19 }
 0x23e   : > { %v7280_v58 = vadd.f32 %v2979_v32, %v2811_v29  ;;  %2514 = vmatmul.bf16.gmra.mxu0 %v1735_v42  ;;  %v1425_v56 = vcvt.s32.f32 %v913_v46  ;;  %v1418_v32 = vcvt.s32.f32 %v906_v47  ;;  %v1426_v42 = vcvt.s32.f32 %v914_v52 }
 0x23f   : > { %2683 = vmatmul.bf16.gmra.mxu1 %v1736_v4  ;;  %v1743_v29 = vpack.c.bf16 %v1423_v0, %v1415_v62 }
 0x240   : > { %2852 = vmatmul.bf16.gmra.mxu2 %v1737_v7 }
 0x241   : > { %3021 = vmatmul.bf16.gmra.mxu3 %v1738_v43  ;;  %v1745_v43 = vpack.c.bf16 %v1425_v56, %v1417_v28  ;;  %v1439_v28 = vcvt.s32.f32 %v927_v21 }
 0x243   : > { %v2813_v27 = vpop.f32.mrf.mxu2  ;;  %v2477_v38 = vpop.f32.mrf.mxu0 }
 0x244   : > { %v2982_v30 = vpop.f32.mrf.mxu3  ;;  %v2814_v22 = vadd.f32 %v2813_v27, %v2645_v57  ;;  %v2646_v45 = vpop.f32.mrf.mxu1  ;;  %v1746_v57 = vpack.c.bf16 %v1426_v42, %v1418_v32  ;;  %v505_v27 = vld [vmem:[%s6919_s14 + $0x310] sm:$0xff] }
 0x245   : > { %v2647_v53 = vadd.f32 %v2646_v45, %v2477_v38  ;;  %v928_v38 = vunpack.c.1.s8 %v504_v24  ;;  %v921_v45 = vunpack.c.0.s8 %v505_v27 }
 0x246   : > { %v7293_v60 = vadd.f32 %v2982_v30, %v2814_v22  ;;  %v506_v30 = vld [vmem:[%s6919_s14 + $0x318] sm:$0xff]  ;;  %v920_v22 = vunpack.c.0.s8 %v504_v24 }
 0x247   : > { %v922_v10 = vunpack.c.0.s8 %v506_v30  ;;  %v930_v62 = vunpack.c.1.s8 %v506_v30  ;;  %v1440_v32 = vcvt.s32.f32 %v928_v38  ;;  %v1433_v42 = vcvt.s32.f32 %v921_v45 }
 0x248   : > { %v1432_v56 = vcvt.s32.f32 %v920_v22  ;;  %v943_v38 = vunpack.c.3.s8 %v503_v23  ;;  %v936_v45 = vunpack.c.2.s8 %v504_v24 }
 0x24b   : > { %v2815_v4 = vpop.f32.mrf.mxu2  ;;  %v2480_v5 = vpop.f32.mrf.mxu0 }
 0x24c   : > { %v2984_v49 = vpop.f32.mrf.mxu3  ;;  %v2816_v19 = vadd.f32 %v2815_v4, %v2647_v53  ;;  %v2649_v7 = vpop.f32.mrf.mxu1  ;;  %v929_v53 = vunpack.c.1.s8 %v505_v27 }
 0x24d   : > { %v2650_v50 = vadd.f32 %v2649_v7, %v2480_v5  ;;  %v1751_v5 = vpack.c.bf16 %v1439_v28, %v1431_v11  ;;  %v1752_v7 = vpack.c.bf16 %v1440_v32, %v1432_v56  ;;  %v938_v11 = vunpack.c.2.s8 %v506_v30 }
 0x24e   : > { %v7296_v14 = vadd.f32 %v2984_v49, %v2816_v19  ;;  %2519 = vmatmul.bf16.gmra.mxu0 %v1743_v29  ;;  %v1441_v4 = vcvt.s32.f32 %v929_v53  ;;  %v1434_v49 = vcvt.s32.f32 %v922_v10  ;;  %v1442_v29 = vcvt.s32.f32 %v930_v62 }
 0x24f   : > { %2688 = vmatmul.bf16.gmra.mxu1 %v1744_v13  ;;  %v946_v28 = vunpack.c.3.s8 %v506_v30  ;;  %v1450_v23 = vcvt.s32.f32 %v938_v11 }
 0x250   : > { %8067 = vst [vmem:[#allocation30_spill] sm:$0xff] %v7296_v14  ;;  %2857 = vmatmul.bf16.gmra.mxu2 %v1745_v43  ;;  %v1754_v14 = vpack.c.bf16 %v1442_v29, %v1434_v49  ;;  %v1448_v49 = vcvt.s32.f32 %v936_v45  ;;  %v7320_v45 = vld [vmem:[%s6919_s14 + $0x358] sm:$0xff] }
 0x251   : > { %3026 = vmatmul.bf16.gmra.mxu3 %v1746_v57 }
 0x253   : > { %v2818_v20 = vpop.f32.mrf.mxu2  ;;  %v2482_v47 = vpop.f32.mrf.mxu0 }
 0x254   : > { %v2987_v37 = vpop.f32.mrf.mxu3  ;;  %v2819_v46 = vadd.f32 %v2818_v20, %v2650_v50  ;;  %v2651_v52 = vpop.f32.mrf.mxu1  ;;  %v1753_v20 = vpack.c.bf16 %v1441_v4, %v1433_v42  ;;  %v1447_v42 = vcvt.s32.f32 %v935_v34  ;;  %v1455_v4 = vcvt.s32.f32 %v943_v38  ;;  %v7317_v38 = vld [vmem:[%s6919_s14 + $0x350] sm:$0xff] }
 0x255   : > { %v2652_v0 = vadd.f32 %v2651_v52, %v2482_v47  ;;  %v937_v52 = vunpack.c.2.s8 %v505_v27  ;;  %v953_v11 = vunpack.c.0.s8 %v7317_v38 }
 0x256   : > { %v7302_v1 = vadd.f32 %v2987_v37, %v2819_v46  ;;  %v944_v46 = vunpack.c.3.s8 %v504_v24 }
 0x257   : > { %v1449_v29 = vcvt.s32.f32 %v937_v52 }
 0x258   : > { %8068 = vst [vmem:[#allocation31_spill] sm:$0xff] %v7302_v1 }
 0x25b   : > { %v2820_v13 = vpop.f32.mrf.mxu2  ;;  %v2485_v57 = vpop.f32.mrf.mxu0 }
 0x25c   : > { %v2989_v19 = vpop.f32.mrf.mxu3  ;;  %v2821_v43 = vadd.f32 %v2820_v13, %v2652_v0  ;;  %v2654_v50 = vpop.f32.mrf.mxu1  ;;  %v945_v0 = vunpack.c.3.s8 %v505_v27 }
 0x25d   : > { %v2655_v47 = vadd.f32 %v2654_v50, %v2485_v57 }
 0x25e   : > { %v7304_v37 = vadd.f32 %v2989_v19, %v2821_v43  ;;  %2524 = vmatmul.bf16.gmra.mxu0 %v1751_v5  ;;  %v1457_v13 = vcvt.s32.f32 %v945_v0  ;;  %v1458_v19 = vcvt.s32.f32 %v946_v28 }
 0x25f   : > { %2693 = vmatmul.bf16.gmra.mxu1 %v1752_v7  ;;  %v1759_v7 = vpack.c.bf16 %v1455_v4, %v1447_v42  ;;  %v961_v4 = vunpack.c.1.s8 %v7317_v38 }
 0x260   : > { %8069 = vst [vmem:[#allocation32_spill] sm:$0xff] %v7304_v37  ;;  %2862 = vmatmul.bf16.gmra.mxu2 %v1753_v20  ;;  %v1761_v50 = vpack.c.bf16 %v1457_v13, %v1449_v29  ;;  %v1762_v20 = vpack.c.bf16 %v1458_v19, %v1450_v23 }
 0x261   : > { %3031 = vmatmul.bf16.gmra.mxu3 %v1754_v14  ;;  %v1456_v14 = vcvt.s32.f32 %v944_v46 }
 0x263   : > { %v2823_v21 = vpop.f32.mrf.mxu2  ;;  %v2487_v10 = vpop.f32.mrf.mxu0  ;;  %v1760_v27 = vpack.c.bf16 %v1456_v14, %v1448_v49  ;;  %v954_v49 = vunpack.c.0.s8 %v7320_v45  ;;  %v962_v14 = vunpack.c.1.s8 %v7320_v45 }
 0x264   : > { %v2992_v22 = vpop.f32.mrf.mxu3  ;;  %v2824_v53 = vadd.f32 %v2823_v21, %v2655_v47  ;;  %v2656_v62 = vpop.f32.mrf.mxu1  ;;  %v7311_v21 = vld [vmem:[%s6919_s14 + $0x340] sm:$0xff] }
 0x265   : > { %v2657_v56 = vadd.f32 %v2656_v62, %v2487_v10  ;;  %v951_v46 = vunpack.c.0.s8 %v7311_v21  ;;  %v959_v10 = vunpack.c.1.s8 %v7311_v21 }
 0x266   : > { %v7306_v32 = vadd.f32 %v2992_v22, %v2824_v53  ;;  %v7314_v22 = vld [vmem:[%s6919_s14 + $0x348] sm:$0xff] }
 0x267   : > { %v952_v62 = vunpack.c.0.s8 %v7314_v22  ;;  %v960_v0 = vunpack.c.1.s8 %v7314_v22  ;;  %v1463_v23 = vcvt.s32.f32 %v951_v46  ;;  %v1471_v19 = vcvt.s32.f32 %v959_v10 }
 0x268   : > { %8070 = vst [vmem:[#allocation33_spill] sm:$0xff] %v7306_v32 }
 0x26b   : > { %v2825_v24 = vpop.f32.mrf.mxu2  ;;  %v2490_v43 = vpop.f32.mrf.mxu0 }
 0x26c   : > { %v2994_v5 = vpop.f32.mrf.mxu3  ;;  %v2826_v30 = vadd.f32 %v2825_v24, %v2657_v56  ;;  %v2659_v57 = vpop.f32.mrf.mxu1  ;;  %v1464_v24 = vcvt.s32.f32 %v952_v62  ;;  %v5982_v62 = vld [vmem:[%s7008_s13 + $0x180] sm:$0xff] }
 0x26d   : > { %v2660_v47 = vadd.f32 %v2659_v57, %v2490_v43  ;;  %v1474_v43 = vcvt.s32.f32 %v962_v14  ;;  %3417 = vmatpush.bf16.msrb.mxu2 %v5982_v62  ;;  %v975_v14 = vunpack.c.3.s8 %v7311_v21 }
 0x26e   : > { %v7308_v34 = vadd.f32 %v2994_v5, %v2826_v30  ;;  %2529 = vmatmul.bf16.gmra.mxu0 %v1759_v7  ;;  %v1472_v5 = vcvt.s32.f32 %v960_v0  ;;  %v1465_v7 = vcvt.s32.f32 %v953_v11  ;;  %v1466_v30 = vcvt.s32.f32 %v954_v49  ;;  %v5966_v0 = vld [vmem:[%s7008_s13 + $0x100] sm:$0xff] }
 0x26f   : > { %2698 = vmatmul.bf16.gmra.mxu1 %v1760_v27  ;;  %v1473_v27 = vcvt.s32.f32 %v961_v4  ;;  %v5990_v11 = vld [vmem:[%s7008_s13 + $0x1c0] sm:$0xff]  ;;  %3079 = vmatpush.bf16.msrb.mxu0 %v5966_v0 }
 0x270   : > { %8071 = vst [vmem:[#allocation34_spill] sm:$0xff] %v7308_v34  ;;  %2867 = vmatmul.bf16.gmra.mxu2 %v1761_v50  ;;  %3586 = vmatpush.bf16.msrb.mxu3 %v5990_v11 }
 0x271   : > { %3036 = vmatmul.bf16.gmra.mxu3 %v1762_v20  ;;  %v1767_v20 = vpack.c.bf16 %v1471_v19, %v1463_v23  ;;  %v969_v23 = vunpack.c.2.s8 %v7317_v38 }
 0x273   : > { %v2828_v52 = vpop.f32.mrf.mxu2  ;;  %v2492_v56 = vpop.f32.mrf.mxu0 }
 0x274   : > { %v2997_v53 = vpop.f32.mrf.mxu3  ;;  %v2829_v28 = vadd.f32 %v2828_v52, %v2660_v47  ;;  %v2661_v42 = vpop.f32.mrf.mxu1  ;;  %v1768_v47 = vpack.c.bf16 %v1472_v5, %v1464_v24 }
 0x275   : > { %v2662_v29 = vadd.f32 %v2661_v42, %v2492_v56  ;;  %v967_v42 = vunpack.c.2.s8 %v7311_v21  ;;  %v5974_v21 = vld [vmem:[%s7008_s13 + $0x140] sm:$0xff] }
 0x276   : > { %v7330_v13 = vadd.f32 %v2997_v53, %v2829_v28  ;;  %v1769_v53 = vpack.c.bf16 %v1473_v27, %v1465_v7  ;;  %v1770_v28 = vpack.c.bf16 %v1474_v43, %v1466_v30  ;;  %v977_v7 = vunpack.c.3.s8 %v7317_v38  ;;  %3248 = vmatpush.bf16.msrb.mxu1 %v5974_v21 }
 0x277   : > { %v970_v27 = vunpack.c.2.s8 %v7320_v45  ;;  %v978_v30 = vunpack.c.3.s8 %v7320_v45 }
 0x278   : > { %8072 = vst [vmem:[#allocation35_spill] sm:$0xff] %v7330_v13 }
 0x27b   : > { %v2830_v57 = vpop.f32.mrf.mxu2  ;;  %v2495_v34 = vpop.f32.mrf.mxu0 }
 0x27c   : > { %v2999_v50 = vpop.f32.mrf.mxu3  ;;  %v2831_v52 = vadd.f32 %v2830_v57, %v2662_v29  ;;  %v2664_v56 = vpop.f32.mrf.mxu1  ;;  %v976_v29 = vunpack.c.3.s8 %v7314_v22 }
 0x27d   : > { %v2665_v46 = vadd.f32 %v2664_v56, %v2495_v34  ;;  %v968_v34 = vunpack.c.2.s8 %v7314_v22  ;;  %v1489_v56 = vcvt.s32.f32 %v977_v7 }
 0x27e   : > { %v7332_v10 = vadd.f32 %v2999_v50, %v2831_v52  ;;  %2534 = vmatmul.bf16.gmra.mxu0 %v1767_v20  ;;  %v1479_v50 = vcvt.s32.f32 %v967_v42  ;;  %v1487_v20 = vcvt.s32.f32 %v975_v14  ;;  %v1488_v22 = vcvt.s32.f32 %v976_v29  ;;  %v519_v29 = vld [vmem:[%s6919_s14 + $0x380] sm:$0xff] }
 0x27f   : > { %2703 = vmatmul.bf16.gmra.mxu1 %v1768_v47  ;;  %v1480_v47 = vcvt.s32.f32 %v968_v34  ;;  %v1481_v52 = vcvt.s32.f32 %v969_v23  ;;  %v520_v23 = vld [vmem:[%s6919_s14 + $0x388] sm:$0xff] }
 0x280   : > { %8073 = vst [vmem:[#allocation36_spill] sm:$0xff] %v7332_v10  ;;  %2872 = vmatmul.bf16.gmra.mxu2 %v1769_v53  ;;  %v1482_v53 = vcvt.s32.f32 %v970_v27  ;;  %v1775_v62 = vpack.c.bf16 %v1487_v20, %v1479_v50  ;;  %v992_v21 = vunpack.c.1.s8 %v520_v23 }
 0x281   : > { %3041 = vmatmul.bf16.gmra.mxu3 %v1770_v28  ;;  %v1490_v28 = vcvt.s32.f32 %v978_v30  ;;  %v1776_v45 = vpack.c.bf16 %v1488_v22, %v1480_v47  ;;  %v1777_v42 = vpack.c.bf16 %v1489_v56, %v1481_v52  ;;  %v991_v30 = vunpack.c.1.s8 %v519_v29 }
 0x283   : > { %v2833_v4 = vpop.f32.mrf.mxu2  ;;  %v2497_v24 = vpop.f32.mrf.mxu0 }
 0x284   : > { %v3002_v49 = vpop.f32.mrf.mxu3  ;;  %v2834_v19 = vadd.f32 %v2833_v4, %v2665_v46  ;;  %v2666_v5 = vpop.f32.mrf.mxu1 }
 0x285   : > { %v2667_v43 = vadd.f32 %v2666_v5, %v2497_v24  ;;  %v522_v24 = vld [vmem:[%s6919_s14 + $0x398] sm:$0xff]  ;;  %v983_v5 = vunpack.c.0.s8 %v519_v29 }
 0x286   : > { %v7345_v57 = vadd.f32 %v3002_v49, %v2834_v19  ;;  %v1778_v49 = vpack.c.bf16 %v1490_v28, %v1482_v53  ;;  %v521_v19 = vld [vmem:[%s6919_s14 + $0x390] sm:$0xff]  ;;  %v986_v56 = vunpack.c.0.s8 %v522_v24  ;;  %v994_v53 = vunpack.c.1.s8 %v522_v24 }
 0x287   : > { %v985_v50 = vunpack.c.0.s8 %v521_v19  ;;  %v993_v52 = vunpack.c.1.s8 %v521_v19 }
 0x288   : > { %8074 = vst [vmem:[#allocation37_spill] sm:$0xff] %v7345_v57 }
 0x28b   : > { %v2835_v46 = vpop.f32.mrf.mxu2  ;;  %v2500_v11 = vpop.f32.mrf.mxu0 }
 0x28c   : > { %v3004_v38 = vpop.f32.mrf.mxu3  ;;  %v2836_v0 = vadd.f32 %v2835_v46, %v2667_v43  ;;  %v2669_v4 = vpop.f32.mrf.mxu1  ;;  %v984_v43 = vunpack.c.0.s8 %v520_v23 }
 0x28d   : > { %v2670_v14 = vadd.f32 %v2669_v4, %v2500_v11  ;;  %v1497_v11 = vcvt.s32.f32 %v985_v50  ;;  %v1505_v4 = vcvt.s32.f32 %v993_v52  ;;  %v1000_v50 = vunpack.c.2.s8 %v520_v23 }
 0x28e   : > { %v7348_v34 = vadd.f32 %v3004_v38, %v2836_v0  ;;  %2539 = vmatmul.bf16.gmra.mxu0 %v1775_v62  ;;  %v1495_v38 = vcvt.s32.f32 %v983_v5  ;;  %v1503_v62 = vcvt.s32.f32 %v991_v30  ;;  %v1504_v0 = vcvt.s32.f32 %v992_v21 }
 0x28f   : > { %2708 = vmatmul.bf16.gmra.mxu1 %v1776_v45  ;;  %v1496_v45 = vcvt.s32.f32 %v984_v43  ;;  %v1785_v37 = vpack.c.bf16 %v1505_v4, %v1497_v11  ;;  %v999_v5 = vunpack.c.2.s8 %v519_v29  ;;  %v1007_v21 = vunpack.c.3.s8 %v519_v29 }
 0x290   : > { %8075 = vst [vmem:[#allocation38_spill] sm:$0xff] %v7348_v34  ;;  %2877 = vmatmul.bf16.gmra.mxu2 %v1777_v42  ;;  %v1498_v42 = vcvt.s32.f32 %v986_v56  ;;  %v1783_v10 = vpack.c.bf16 %v1503_v62, %v1495_v38  ;;  %v1010_v38 = vunpack.c.3.s8 %v522_v24 }
 0x291   : > { %3046 = vmatmul.bf16.gmra.mxu3 %v1778_v49  ;;  %v1506_v49 = vcvt.s32.f32 %v994_v53  ;;  %v1009_v53 = vunpack.c.3.s8 %v521_v19 }
 0x293   : > { %v2838_v7 = vpop.f32.mrf.mxu2  ;;  %v2502_v47 = vpop.f32.mrf.mxu0  ;;  %v1786_v1 = vpack.c.bf16 %v1506_v49, %v1498_v42 }
 0x294   : > { %v3007_v27 = vpop.f32.mrf.mxu3  ;;  %v2839_v20 = vadd.f32 %v2838_v7, %v2670_v14  ;;  %v2671_v22 = vpop.f32.mrf.mxu1  ;;  %v1784_v14 = vpack.c.bf16 %v1504_v0, %v1496_v45  ;;  %v1521_v45 = vcvt.s32.f32 %v1009_v53  ;;  %v1522_v0 = vcvt.s32.f32 %v1010_v38 }
 0x295   : > { %v2672_v28 = vadd.f32 %v2671_v22, %v2502_v47  ;;  %v1001_v22 = vunpack.c.2.s8 %v521_v19 }
 0x296   : > { %v7354_v46 = vadd.f32 %v3007_v27, %v2839_v20  ;;  %v1008_v20 = vunpack.c.3.s8 %v520_v23 }
 0x297   : > { %v1513_v62 = vcvt.s32.f32 %v1001_v22 }
 0x298   : > { %8076 = vst [vmem:[#allocation39_spill] sm:$0xff] %v7354_v46 }
 0x29b   : > { %v2840_v34 = vpop.f32.mrf.mxu2  ;;  %v2505_v13 = vpop.f32.mrf.mxu0 }
 0x29c   : > { %v3009_v57 = vpop.f32.mrf.mxu3  ;;  %v2841_v7 = vadd.f32 %v2840_v34, %v2672_v28  ;;  %v2674_v32 = vpop.f32.mrf.mxu1  ;;  %v1002_v28 = vunpack.c.2.s8 %v522_v24 }
 0x29d   : > { %v2675_v47 = vadd.f32 %v2674_v32, %v2505_v13 }
 0x29e   : > { %v7356_v27 = vadd.f32 %v3009_v57, %v2841_v7  ;;  %2544 = vmatmul.bf16.gmra.mxu0 %v1783_v10  ;;  %v1511_v10 = vcvt.s32.f32 %v999_v5  ;;  %v1519_v57 = vcvt.s32.f32 %v1007_v21  ;;  %v1514_v29 = vcvt.s32.f32 %v1002_v28  ;;  %v529_v21 = vld [vmem:[%s6919_s14 + $0x3d0] sm:$0xff] }
 0x29f   : > { %2713 = vmatmul.bf16.gmra.mxu1 %v1784_v14  ;;  %v1793_v14 = vpack.c.bf16 %v1521_v45, %v1513_v62  ;;  %v1017_v28 = vunpack.c.0.s8 %v529_v21 }
 0x2a0   : > { %8077 = vst [vmem:[#allocation40_spill] sm:$0xff] %v7356_v27  ;;  %2882 = vmatmul.bf16.gmra.mxu2 %v1785_v37  ;;  %v1512_v37 = vcvt.s32.f32 %v1000_v50  ;;  %v1791_v4 = vpack.c.bf16 %v1519_v57, %v1511_v10  ;;  %v1794_v7 = vpack.c.bf16 %v1522_v0, %v1514_v29  ;;  %v530_v50 = vld [vmem:[%s6919_s14 + $0x3d8] sm:$0xff]  ;;  %v1025_v57 = vunpack.c.1.s8 %v529_v21 }
 0x2a1   : > { %3051 = vmatmul.bf16.gmra.mxu3 %v1786_v1  ;;  %v1520_v1 = vcvt.s32.f32 %v1008_v20 }
 0x2a3   : > { %v2843_v30 = vpop.f32.mrf.mxu2  ;;  %v2507_v34 = vpop.f32.mrf.mxu0  ;;  %v1792_v19 = vpack.c.bf16 %v1520_v1, %v1512_v37  ;;  %v1018_v37 = vunpack.c.0.s8 %v530_v50  ;;  %v1026_v1 = vunpack.c.1.s8 %v530_v50 }
 0x2a4   : > { %v3012_v43 = vpop.f32.mrf.mxu3  ;;  %v2844_v52 = vadd.f32 %v2843_v30, %v2675_v47  ;;  %v2676_v56 = vpop.f32.mrf.mxu1  ;;  %v527_v30 = vld [vmem:[%s6919_s14 + $0x3c0] sm:$0xff] }
 0x2a5   : > { %v2677_v32 = vadd.f32 %v2676_v56, %v2507_v34  ;;  %v1015_v20 = vunpack.c.0.s8 %v527_v30  ;;  %v1023_v34 = vunpack.c.1.s8 %v527_v30 }
 0x2a6   : > { %v7358_v13 = vadd.f32 %v3012_v43, %v2844_v52  ;;  %v528_v43 = vld [vmem:[%s6919_s14 + $0x3c8] sm:$0xff] }
 0x2a7   : > { %v1016_v56 = vunpack.c.0.s8 %v528_v43  ;;  %v1024_v53 = vunpack.c.1.s8 %v528_v43  ;;  %v1527_v29 = vcvt.s32.f32 %v1015_v20  ;;  %v1535_v0 = vcvt.s32.f32 %v1023_v34 }
 0x2a8   : > { %8078 = vst [vmem:[#allocation41_spill] sm:$0xff] %v7358_v13  ;;  %v1031_v20 = vunpack.c.2.s8 %v527_v30 }
 0x2ab   : > { %v2845_v23 = vpop.f32.mrf.mxu2  ;;  %v2510_v42 = vpop.f32.mrf.mxu0 }
 0x2ac   : > { %v3014_v11 = vpop.f32.mrf.mxu3  ;;  %v2846_v24 = vadd.f32 %v2845_v23, %v2677_v32  ;;  %v2679_v49 = vpop.f32.mrf.mxu1  ;;  %v1528_v23 = vcvt.s32.f32 %v1016_v56 }
 0x2ad   : > { %v2680_v47 = vadd.f32 %v2679_v49, %v2510_v42  ;;  %v1538_v42 = vcvt.s32.f32 %v1026_v1 }
 0x2ae   : > { %v7360_v5 = vadd.f32 %v3014_v11, %v2846_v24  ;;  %2549 = vmatmul.bf16.gmra.mxu0 %v1791_v4  ;;  %v1536_v11 = vcvt.s32.f32 %v1024_v53  ;;  %v1529_v4 = vcvt.s32.f32 %v1017_v28  ;;  %v1530_v24 = vcvt.s32.f32 %v1018_v37 }
 0x2af   : > { %2718 = vmatmul.bf16.gmra.mxu1 %v1792_v19  ;;  %v1537_v19 = vcvt.s32.f32 %v1025_v57  ;;  %v1039_v53 = vunpack.c.3.s8 %v527_v30  ;;  %v1032_v28 = vunpack.c.2.s8 %v528_v43 }
 0x2b0   : > { %8079 = vst [vmem:[#allocation42_spill] sm:$0xff] %v7360_v5  ;;  %2887 = vmatmul.bf16.gmra.mxu2 %v1793_v14  ;;  %v1802_v46 = vpack.c.bf16 %v1538_v42, %v1530_v24 }
 0x2b1   : > { %3056 = vmatmul.bf16.gmra.mxu3 %v1794_v7  ;;  %v1799_v7 = vpack.c.bf16 %v1535_v0, %v1527_v29  ;;  %v1801_v27 = vpack.c.bf16 %v1537_v19, %v1529_v4  ;;  %v1034_v29 = vunpack.c.2.s8 %v530_v50  ;;  %v1042_v0 = vunpack.c.3.s8 %v530_v50 }
 0x2b3   : > { %v2848_v22 = vpop.f32.mrf.mxu2  ;;  %v2512_v32 = vpop.f32.mrf.mxu0  ;;  %v1546_v30 = vcvt.s32.f32 %v1034_v29  ;;  %v1554_v24 = vcvt.s32.f32 %v1042_v0 }
 0x2b4   : > { %v3017_v52 = vpop.f32.mrf.mxu3  ;;  %v2849_v38 = vadd.f32 %v2848_v22, %v2680_v47  ;;  %v2681_v10 = vpop.f32.mrf.mxu1  ;;  %v1800_v47 = vpack.c.bf16 %v1536_v11, %v1528_v23  ;;  %v1543_v23 = vcvt.s32.f32 %v1031_v20  ;;  %v1551_v11 = vcvt.s32.f32 %v1039_v53  ;;  %v413_v53 = vld [vmem:[%s6919_s14 + $0x30] sm:$0xff] }
 0x2b5   : > { %v2682_v62 = vadd.f32 %v2681_v10, %v2512_v32  ;;  %v1033_v10 = vunpack.c.2.s8 %v529_v21  ;;  %v541_v29 = vunpack.c.0.s8 %v413_v53 }
 0x2b6   : > { %v7366_v45 = vadd.f32 %v3017_v52, %v2849_v38  ;;  %v1040_v38 = vunpack.c.3.s8 %v528_v43 }
 0x2b7   : > { %v1545_v4 = vcvt.s32.f32 %v1033_v10 }
 0x2b8   : > { %8080 = vst [vmem:[#allocation43_spill] sm:$0xff] %v7366_v45 }
 0x2bb   : > { %v2850_v49 = vpop.f32.mrf.mxu2  ;;  %v2515_v5 = vpop.f32.mrf.mxu0 }
 0x2bc   : > { %v3019_v14 = vpop.f32.mrf.mxu3  ;;  %v2851_v22 = vadd.f32 %v2850_v49, %v2682_v62  ;;  %v2684_v13 = vpop.f32.mrf.mxu1  ;;  %v1041_v62 = vunpack.c.3.s8 %v529_v21  ;;  %v1807_v49 = vpack.c.bf16 %v1551_v11, %v1543_v23  ;;  %v549_v11 = vunpack.c.1.s8 %v413_v53 }
 0x2bd   : > { %v2685_v32 = vadd.f32 %v2684_v13, %v2515_v5 }
 0x2be   : > { %v7368_v52 = vadd.f32 %v3019_v14, %v2851_v22  ;;  %2554 = vmatmul.bf16.gmra.mxu0 %v1799_v7  ;;  %v1553_v19 = vcvt.s32.f32 %v1041_v62  ;;  %v1810_v22 = vpack.c.bf16 %v1554_v24, %v1546_v30 }
 0x2bf   : > { %2723 = vmatmul.bf16.gmra.mxu1 %v1800_v47 }
 0x2c0   : > { %8081 = vst [vmem:[#allocation44_spill] sm:$0xff] %v7368_v52  ;;  %2892 = vmatmul.bf16.gmra.mxu2 %v1801_v27  ;;  %v1544_v27 = vcvt.s32.f32 %v1032_v28  ;;  %v1809_v47 = vpack.c.bf16 %v1553_v19, %v1545_v4  ;;  %v414_v28 = vld [vmem:[%s6919_s14 + $0x38] sm:$0xff] }
 0x2c1   : > { %3061 = vmatmul.bf16.gmra.mxu3 %v1802_v46  ;;  %v1552_v46 = vcvt.s32.f32 %v1040_v38 }
 0x2c3   : > { %v2853_v34 = vpop.f32.mrf.mxu2  ;;  %v2517_v37 = vpop.f32.mrf.mxu0  ;;  %v1808_v21 = vpack.c.bf16 %v1552_v46, %v1544_v27  ;;  %v542_v27 = vunpack.c.0.s8 %v414_v28  ;;  %v550_v46 = vunpack.c.1.s8 %v414_v28 }
 0x2c4   : > { %v3022_v56 = vpop.f32.mrf.mxu3  ;;  %v2854_v57 = vadd.f32 %v2853_v34, %v2685_v32  ;;  %v2686_v1 = vpop.f32.mrf.mxu1  ;;  %v411_v34 = vld [vmem:[%s6919_s14 + $0x20] sm:$0xff] }
 0x2c5   : > { %v2687_v13 = vadd.f32 %v2686_v1, %v2517_v37  ;;  %v539_v38 = vunpack.c.0.s8 %v411_v34  ;;  %v547_v37 = vunpack.c.1.s8 %v411_v34 }
 0x2c6   : > { %v7370_v5 = vadd.f32 %v3022_v56, %v2854_v57  ;;  %v412_v56 = vld [vmem:[%s6919_s14 + $0x28] sm:$0xff] }
 0x2c7   : > { %v540_v1 = vunpack.c.0.s8 %v412_v56  ;;  %v548_v62 = vunpack.c.1.s8 %v412_v56  ;;  %v1051_v30 = vcvt.s32.f32 %v539_v38  ;;  %v1059_v24 = vcvt.s32.f32 %v547_v37 }
 0x2c8   : > { %8082 = vst [vmem:[#allocation45_spill] sm:$0xff] %v7370_v5  ;;  %v555_v38 = vunpack.c.2.s8 %v411_v34 }
 0x2cb   : > { %v2855_v43 = vpop.f32.mrf.mxu2  ;;  %v2520_v14 = vpop.f32.mrf.mxu0 }
 0x2cc   : > { %v3024_v42 = vpop.f32.mrf.mxu3  ;;  %v2856_v50 = vadd.f32 %v2855_v43, %v2687_v13  ;;  %v2689_v7 = vpop.f32.mrf.mxu1  ;;  %v1052_v43 = vcvt.s32.f32 %v540_v1 }
 0x2cd   : > { %v2690_v32 = vadd.f32 %v2689_v7, %v2520_v14  ;;  %v1062_v14 = vcvt.s32.f32 %v550_v46 }
 0x2ce   : > { %v7372_v20 = vadd.f32 %v3024_v42, %v2856_v50  ;;  %2559 = vmatmul.bf16.gmra.mxu0 %v1807_v49  ;;  %v1060_v42 = vcvt.s32.f32 %v548_v62  ;;  %v1053_v49 = vcvt.s32.f32 %v541_v29  ;;  %v1054_v50 = vcvt.s32.f32 %v542_v27 }
 0x2cf   : > { %2728 = vmatmul.bf16.gmra.mxu1 %v1808_v21  ;;  %v1061_v21 = vcvt.s32.f32 %v549_v11  ;;  %v563_v62 = vunpack.c.3.s8 %v411_v34  ;;  %v556_v29 = vunpack.c.2.s8 %v412_v56 }
 0x2d0   : > { %8083 = vst [vmem:[#allocation46_spill] sm:$0xff] %v7372_v20  ;;  %2897 = vmatmul.bf16.gmra.mxu2 %v1809_v47  ;;  %v1566_v45 = vpack.c.bf16 %v1062_v14, %v1054_v50 }
 0x2d1   : > { %3066 = vmatmul.bf16.gmra.mxu3 %v1810_v22  ;;  %v1563_v22 = vpack.c.bf16 %v1059_v24, %v1051_v30  ;;  %v1565_v52 = vpack.c.bf16 %v1061_v21, %v1053_v49  ;;  %v558_v30 = vunpack.c.2.s8 %v414_v28  ;;  %v566_v24 = vunpack.c.3.s8 %v414_v28 }
 0x2d3   : > { %v2858_v10 = vpop.f32.mrf.mxu2  ;;  %v2522_v13 = vpop.f32.mrf.mxu0  ;;  %v1070_v34 = vcvt.s32.f32 %v558_v30  ;;  %v1078_v50 = vcvt.s32.f32 %v566_v24 }
 0x2d4   : > { %v3027_v57 = vpop.f32.mrf.mxu3  ;;  %v2859_v0 = vadd.f32 %v2858_v10, %v2690_v32  ;;  %v2691_v23 = vpop.f32.mrf.mxu1  ;;  %v1564_v32 = vpack.c.bf16 %v1060_v42, %v1052_v43  ;;  %v1067_v43 = vcvt.s32.f32 %v555_v38  ;;  %v1075_v42 = vcvt.s32.f32 %v563_v62  ;;  %v421_v62 = vld [vmem:[%s6919_s14 + $0x70] sm:$0xff] }
 0x2d5   : > { %v2692_v4 = vadd.f32 %v2691_v23, %v2522_v13  ;;  %v557_v23 = vunpack.c.2.s8 %v413_v53  ;;  %v573_v30 = vunpack.c.0.s8 %v421_v62 }
 0x2d6   : > { %v7378_v19 = vadd.f32 %v3027_v57, %v2859_v0  ;;  %v564_v0 = vunpack.c.3.s8 %v412_v56 }
 0x2d7   : > { %v1069_v49 = vcvt.s32.f32 %v557_v23 }
 0x2d8   : > { %8084 = vst [vmem:[#allocation47_spill] sm:$0xff] %v7378_v19 }
 0x2db   : > { %v2860_v7 = vpop.f32.mrf.mxu2  ;;  %v2525_v20 = vpop.f32.mrf.mxu0 }
 0x2dc   : > { %v3029_v47 = vpop.f32.mrf.mxu3  ;;  %v2861_v10 = vadd.f32 %v2860_v7, %v2692_v4  ;;  %v2694_v5 = vpop.f32.mrf.mxu1  ;;  %v565_v4 = vunpack.c.3.s8 %v413_v53  ;;  %v1571_v7 = vpack.c.bf16 %v1075_v42, %v1067_v43  ;;  %v581_v42 = vunpack.c.1.s8 %v421_v62 }
 0x2dd   : > { %v2695_v13 = vadd.f32 %v2694_v5, %v2525_v20 }
 0x2de   : > { %v7380_v57 = vadd.f32 %v3029_v47, %v2861_v10  ;;  %3080 = vmatmul.bf16.vlgmr.msrb.gmra.mxu0 %v1563_v22  ;;  %v1077_v21 = vcvt.s32.f32 %v565_v4  ;;  %v1574_v10 = vpack.c.bf16 %v1078_v50, %v1070_v34 }
 0x2df   : > { %3249 = vmatmul.bf16.vlgmr.msrb.gmra.mxu1 %v1564_v32 }
 0x2e0   : > { %8085 = vst [vmem:[#allocation48_spill] sm:$0xff] %v7380_v57  ;;  %3418 = vmatmul.bf16.vlgmr.msrb.gmra.mxu2 %v1565_v52  ;;  %v1068_v52 = vcvt.s32.f32 %v556_v29  ;;  %v1573_v32 = vpack.c.bf16 %v1077_v21, %v1069_v49  ;;  %v422_v29 = vld [vmem:[%s6919_s14 + $0x78] sm:$0xff] }
 0x2e1   : > { %3587 = vmatmul.bf16.vlgmr.msrb.gmra.mxu3 %v1566_v45  ;;  %v1076_v45 = vcvt.s32.f32 %v564_v0 }
 0x2e3   : > { %v2863_v37 = vpop.f32.mrf.mxu2  ;;  %v2527_v27 = vpop.f32.mrf.mxu0  ;;  %v1572_v53 = vpack.c.bf16 %v1076_v45, %v1068_v52  ;;  %v574_v52 = vunpack.c.0.s8 %v422_v29  ;;  %v582_v45 = vunpack.c.1.s8 %v422_v29 }
 0x2e4   : > { %v3032_v1 = vpop.f32.mrf.mxu3  ;;  %v2864_v11 = vadd.f32 %v2863_v37, %v2695_v13  ;;  %v2696_v46 = vpop.f32.mrf.mxu1  ;;  %v419_v37 = vld [vmem:[%s6919_s14 + $0x60] sm:$0xff] }
 0x2e5   : > { %v2697_v5 = vadd.f32 %v2696_v46, %v2527_v27  ;;  %v571_v0 = vunpack.c.0.s8 %v419_v37  ;;  %v579_v27 = vunpack.c.1.s8 %v419_v37 }
 0x2e6   : > { %v7382_v20 = vadd.f32 %v3032_v1, %v2864_v11  ;;  %v420_v1 = vld [vmem:[%s6919_s14 + $0x68] sm:$0xff] }
 0x2e7   : > { %v572_v46 = vunpack.c.0.s8 %v420_v1  ;;  %v580_v4 = vunpack.c.1.s8 %v420_v1  ;;  %v1083_v34 = vcvt.s32.f32 %v571_v0  ;;  %v1091_v50 = vcvt.s32.f32 %v579_v27 }
 0x2e8   : > { %8086 = vst [vmem:[#allocation49_spill] sm:$0xff] %v7382_v20  ;;  %v587_v0 = vunpack.c.2.s8 %v419_v37 }
 0x2eb   : > { %v2865_v56 = vpop.f32.mrf.mxu2  ;;  %v2530_v47 = vpop.f32.mrf.mxu0 }
 0x2ec   : > { %v3034_v14 = vpop.f32.mrf.mxu3  ;;  %v2866_v28 = vadd.f32 %v2865_v56, %v2697_v5  ;;  %v2699_v22 = vpop.f32.mrf.mxu1  ;;  %v1084_v56 = vcvt.s32.f32 %v572_v46 }
 0x2ed   : > { %v2700_v13 = vadd.f32 %v2699_v22, %v2530_v47  ;;  %v1094_v47 = vcvt.s32.f32 %v582_v45 }
 0x2ee   : > { %v7384_v38 = vadd.f32 %v3034_v14, %v2866_v28  ;;  %3085 = vmatmul.bf16.gmra.mxu0 %v1571_v7  ;;  %v1092_v14 = vcvt.s32.f32 %v580_v4  ;;  %v1085_v7 = vcvt.s32.f32 %v573_v30  ;;  %v1086_v28 = vcvt.s32.f32 %v574_v52 }
 0x2ef   : > { %3254 = vmatmul.bf16.gmra.mxu1 %v1572_v53  ;;  %v1093_v53 = vcvt.s32.f32 %v581_v42  ;;  %v595_v4 = vunpack.c.3.s8 %v419_v37  ;;  %v588_v30 = vunpack.c.2.s8 %v420_v1 }
 0x2f0   : > { %8087 = vst [vmem:[#allocation50_spill] sm:$0xff] %v7384_v38  ;;  %3423 = vmatmul.bf16.gmra.mxu2 %v1573_v32  ;;  %v1582_v19 = vpack.c.bf16 %v1094_v47, %v1086_v28 }
 0x2f1   : > { %3592 = vmatmul.bf16.gmra.mxu3 %v1574_v10  ;;  %v1579_v10 = vpack.c.bf16 %v1091_v50, %v1083_v34  ;;  %v1581_v57 = vpack.c.bf16 %v1093_v53, %v1085_v7  ;;  %v590_v34 = vunpack.c.2.s8 %v422_v29  ;;  %v598_v50 = vunpack.c.3.s8 %v422_v29 }
 0x2f3   : > { %v2868_v23 = vpop.f32.mrf.mxu2  ;;  %v2532_v5 = vpop.f32.mrf.mxu0  ;;  %v1102_v37 = vcvt.s32.f32 %v590_v34  ;;  %v1110_v28 = vcvt.s32.f32 %v598_v50 }
 0x2f4   : > { %v3037_v11 = vpop.f32.mrf.mxu3  ;;  %v2869_v24 = vadd.f32 %v2868_v23, %v2700_v13  ;;  %v2701_v43 = vpop.f32.mrf.mxu1  ;;  %v1580_v13 = vpack.c.bf16 %v1092_v14, %v1084_v56  ;;  %v1099_v56 = vcvt.s32.f32 %v587_v0  ;;  %v1107_v14 = vcvt.s32.f32 %v595_v4  ;;  %v429_v4 = vld [vmem:[%s6919_s14 + $0xb0] sm:$0xff] }
 0x2f5   : > { %v2702_v49 = vadd.f32 %v2701_v43, %v2532_v5  ;;  %v589_v43 = vunpack.c.2.s8 %v421_v62  ;;  %v605_v34 = vunpack.c.0.s8 %v429_v4 }
 0x2f6   : > { %v7390_v21 = vadd.f32 %v3037_v11, %v2869_v24  ;;  %v596_v24 = vunpack.c.3.s8 %v420_v1 }
 0x2f7   : > { %v1101_v7 = vcvt.s32.f32 %v589_v43 }
 0x2f8   : > { %8088 = vst [vmem:[#allocation51_spill] sm:$0xff] %v7390_v21 }
 0x2fb   : > { %v2870_v22 = vpop.f32.mrf.mxu2  ;;  %v2535_v38 = vpop.f32.mrf.mxu0 }
 0x2fc   : > { %v3039_v32 = vpop.f32.mrf.mxu3  ;;  %v2871_v23 = vadd.f32 %v2870_v22, %v2702_v49  ;;  %v2704_v20 = vpop.f32.mrf.mxu1  ;;  %v597_v49 = vunpack.c.3.s8 %v421_v62  ;;  %v1587_v22 = vpack.c.bf16 %v1107_v14, %v1099_v56  ;;  %v613_v14 = vunpack.c.1.s8 %v429_v4 }
 0x2fd   : > { %v2705_v5 = vadd.f32 %v2704_v20, %v2535_v38 }
 0x2fe   : > { %v7392_v11 = vadd.f32 %v3039_v32, %v2871_v23  ;;  %3090 = vmatmul.bf16.gmra.mxu0 %v1579_v10  ;;  %v1109_v53 = vcvt.s32.f32 %v597_v49  ;;  %v1590_v23 = vpack.c.bf16 %v1110_v28, %v1102_v37 }
 0x2ff   : > { %3259 = vmatmul.bf16.gmra.mxu1 %v1580_v13 }
 0x300   : > { %8089 = vst [vmem:[#allocation52_spill] sm:$0xff] %v7392_v11  ;;  %3428 = vmatmul.bf16.gmra.mxu2 %v1581_v57  ;;  %v1100_v57 = vcvt.s32.f32 %v588_v30  ;;  %v1589_v13 = vpack.c.bf16 %v1109_v53, %v1101_v7  ;;  %v430_v30 = vld [vmem:[%s6919_s14 + $0xb8] sm:$0xff] }
 0x301   : > { %3597 = vmatmul.bf16.gmra.mxu3 %v1582_v19  ;;  %v1108_v19 = vcvt.s32.f32 %v596_v24 }
 0x303   : > { %v2873_v27 = vpop.f32.mrf.mxu2  ;;  %v2537_v52 = vpop.f32.mrf.mxu0  ;;  %v1588_v62 = vpack.c.bf16 %v1108_v19, %v1100_v57  ;;  %v606_v57 = vunpack.c.0.s8 %v430_v30  ;;  %v614_v19 = vunpack.c.1.s8 %v430_v30 }
 0x304   : > { %v3042_v46 = vpop.f32.mrf.mxu3  ;;  %v2874_v42 = vadd.f32 %v2873_v27, %v2705_v5  ;;  %v2706_v45 = vpop.f32.mrf.mxu1  ;;  %v427_v27 = vld [vmem:[%s6919_s14 + $0xa0] sm:$0xff] }
 0x305   : > { %v2707_v20 = vadd.f32 %v2706_v45, %v2537_v52  ;;  %v603_v24 = vunpack.c.0.s8 %v427_v27  ;;  %v611_v52 = vunpack.c.1.s8 %v427_v27 }
 0x306   : > { %v7394_v38 = vadd.f32 %v3042_v46, %v2874_v42  ;;  %v428_v46 = vld [vmem:[%s6919_s14 + $0xa8] sm:$0xff] }
 0x307   : > { %v604_v45 = vunpack.c.0.s8 %v428_v46  ;;  %v612_v49 = vunpack.c.1.s8 %v428_v46  ;;  %v1115_v37 = vcvt.s32.f32 %v603_v24  ;;  %v1123_v28 = vcvt.s32.f32 %v611_v52 }
 0x308   : > { %8090 = vst [vmem:[#allocation53_spill] sm:$0xff] %v7394_v38  ;;  %v619_v24 = vunpack.c.2.s8 %v427_v27 }
 0x30b   : > { %v2875_v1 = vpop.f32.mrf.mxu2  ;;  %v2540_v32 = vpop.f32.mrf.mxu0 }
 0x30c   : > { %v3044_v47 = vpop.f32.mrf.mxu3  ;;  %v2876_v29 = vadd.f32 %v2875_v1, %v2707_v20  ;;  %v2709_v10 = vpop.f32.mrf.mxu1  ;;  %v1116_v1 = vcvt.s32.f32 %v604_v45 }
 0x30d   : > { %v2710_v5 = vadd.f32 %v2709_v10, %v2540_v32  ;;  %v1126_v32 = vcvt.s32.f32 %v614_v19 }
 0x30e   : > { %v7396_v0 = vadd.f32 %v3044_v47, %v2876_v29  ;;  %3095 = vmatmul.bf16.gmra.mxu0 %v1587_v22  ;;  %v1124_v47 = vcvt.s32.f32 %v612_v49  ;;  %v1117_v22 = vcvt.s32.f32 %v605_v34  ;;  %v1118_v29 = vcvt.s32.f32 %v606_v57 }
 0x30f   : > { %3264 = vmatmul.bf16.gmra.mxu1 %v1588_v62  ;;  %v1125_v62 = vcvt.s32.f32 %v613_v14  ;;  %v627_v49 = vunpack.c.3.s8 %v427_v27  ;;  %v620_v34 = vunpack.c.2.s8 %v428_v46 }
 0x310   : > { %8091 = vst [vmem:[#allocation54_spill] sm:$0xff] %v7396_v0  ;;  %3433 = vmatmul.bf16.gmra.mxu2 %v1589_v13  ;;  %v1598_v21 = vpack.c.bf16 %v1126_v32, %v1118_v29 }
 0x311   : > { %3602 = vmatmul.bf16.gmra.mxu3 %v1590_v23  ;;  %v1595_v23 = vpack.c.bf16 %v1123_v28, %v1115_v37  ;;  %v1597_v11 = vpack.c.bf16 %v1125_v62, %v1117_v22  ;;  %v622_v37 = vunpack.c.2.s8 %v430_v30  ;;  %v630_v28 = vunpack.c.3.s8 %v430_v30 }
 0x313   : > { %v2878_v43 = vpop.f32.mrf.mxu2  ;;  %v2542_v20 = vpop.f32.mrf.mxu0  ;;  %v1134_v27 = vcvt.s32.f32 %v622_v37  ;;  %v1142_v29 = vcvt.s32.f32 %v630_v28 }
 0x314   : > { %v3047_v42 = vpop.f32.mrf.mxu3  ;;  %v2879_v50 = vadd.f32 %v2878_v43, %v2710_v5  ;;  %v2711_v56 = vpop.f32.mrf.mxu1  ;;  %v1596_v5 = vpack.c.bf16 %v1124_v47, %v1116_v1  ;;  %v1131_v1 = vcvt.s32.f32 %v619_v24  ;;  %v1139_v47 = vcvt.s32.f32 %v627_v49  ;;  %v437_v49 = vld [vmem:[%s6919_s14 + $0xf0] sm:$0xff] }
 0x315   : > { %v2712_v7 = vadd.f32 %v2711_v56, %v2542_v20  ;;  %v621_v56 = vunpack.c.2.s8 %v429_v4  ;;  %v637_v37 = vunpack.c.0.s8 %v437_v49 }
 0x316   : > { %v7402_v53 = vadd.f32 %v3047_v42, %v2879_v50  ;;  %v628_v50 = vunpack.c.3.s8 %v428_v46 }
 0x317   : > { %v1133_v22 = vcvt.s32.f32 %v621_v56 }
 0x318   : > { %8092 = vst [vmem:[#allocation55_spill] sm:$0xff] %v7402_v53 }
 0x31b   : > { %v2880_v10 = vpop.f32.mrf.mxu2  ;;  %v2545_v0 = vpop.f32.mrf.mxu0 }
 0x31c   : > { %v3049_v13 = vpop.f32.mrf.mxu3  ;;  %v2881_v43 = vadd.f32 %v2880_v10, %v2712_v7  ;;  %v2714_v38 = vpop.f32.mrf.mxu1  ;;  %v629_v7 = vunpack.c.3.s8 %v429_v4  ;;  %v1603_v10 = vpack.c.bf16 %v1139_v47, %v1131_v1  ;;  %v645_v47 = vunpack.c.1.s8 %v437_v49 }
 0x31d   : > { %v2715_v20 = vadd.f32 %v2714_v38, %v2545_v0 }
 0x31e   : > { %v7404_v42 = vadd.f32 %v3049_v13, %v2881_v43  ;;  %3100 = vmatmul.bf16.gmra.mxu0 %v1595_v23  ;;  %v1141_v62 = vcvt.s32.f32 %v629_v7  ;;  %v1606_v43 = vpack.c.bf16 %v1142_v29, %v1134_v27 }
 0x31f   : > { %3269 = vmatmul.bf16.gmra.mxu1 %v1596_v5 }
 0x320   : > { %8093 = vst [vmem:[#allocation56_spill] sm:$0xff] %v7404_v42  ;;  %3438 = vmatmul.bf16.gmra.mxu2 %v1597_v11  ;;  %v1132_v11 = vcvt.s32.f32 %v620_v34  ;;  %v1605_v5 = vpack.c.bf16 %v1141_v62, %v1133_v22  ;;  %v438_v34 = vld [vmem:[%s6919_s14 + $0xf8] sm:$0xff] }
 0x321   : > { %3607 = vmatmul.bf16.gmra.mxu3 %v1598_v21  ;;  %v1140_v21 = vcvt.s32.f32 %v628_v50 }
 0x323   : > { %v2883_v52 = vpop.f32.mrf.mxu2  ;;  %v2547_v57 = vpop.f32.mrf.mxu0  ;;  %v1604_v4 = vpack.c.bf16 %v1140_v21, %v1132_v11  ;;  %v638_v11 = vunpack.c.0.s8 %v438_v34  ;;  %v646_v21 = vunpack.c.1.s8 %v438_v34 }
 0x324   : > { %v3052_v45 = vpop.f32.mrf.mxu3  ;;  %v2884_v14 = vadd.f32 %v2883_v52, %v2715_v20  ;;  %v2716_v19 = vpop.f32.mrf.mxu1  ;;  %v435_v52 = vld [vmem:[%s6919_s14 + $0xe0] sm:$0xff] }
 0x325   : > { %v2717_v38 = vadd.f32 %v2716_v19, %v2547_v57  ;;  %v635_v50 = vunpack.c.0.s8 %v435_v52  ;;  %v643_v57 = vunpack.c.1.s8 %v435_v52 }
 0x326   : > { %v7406_v0 = vadd.f32 %v3052_v45, %v2884_v14  ;;  %v436_v45 = vld [vmem:[%s6919_s14 + $0xe8] sm:$0xff] }
 0x327   : > { %v636_v19 = vunpack.c.0.s8 %v436_v45  ;;  %v644_v7 = vunpack.c.1.s8 %v436_v45  ;;  %v1147_v27 = vcvt.s32.f32 %v635_v50  ;;  %v1155_v29 = vcvt.s32.f32 %v643_v57 }
 0x328   : > { %8094 = vst [vmem:[#allocation57_spill] sm:$0xff] %v7406_v0  ;;  %v651_v50 = vunpack.c.2.s8 %v435_v52 }
 0x32b   : > { %v2885_v46 = vpop.f32.mrf.mxu2  ;;  %v2550_v13 = vpop.f32.mrf.mxu0 }
 0x32c   : > { %v3054_v32 = vpop.f32.mrf.mxu3  ;;  %v2886_v30 = vadd.f32 %v2885_v46, %v2717_v38  ;;  %v2719_v23 = vpop.f32.mrf.mxu1  ;;  %v1148_v46 = vcvt.s32.f32 %v636_v19 }
 0x32d   : > { %v2720_v20 = vadd.f32 %v2719_v23, %v2550_v13  ;;  %v1158_v13 = vcvt.s32.f32 %v646_v21 }
 0x32e   : > { %v7408_v24 = vadd.f32 %v3054_v32, %v2886_v30  ;;  %3105 = vmatmul.bf16.gmra.mxu0 %v1603_v10  ;;  %v1156_v32 = vcvt.s32.f32 %v644_v7  ;;  %v1149_v10 = vcvt.s32.f32 %v637_v37  ;;  %v1150_v30 = vcvt.s32.f32 %v638_v11 }
 0x32f   : > { %3274 = vmatmul.bf16.gmra.mxu1 %v1604_v4  ;;  %v1157_v4 = vcvt.s32.f32 %v645_v47  ;;  %v659_v7 = vunpack.c.3.s8 %v435_v52  ;;  %v652_v37 = vunpack.c.2.s8 %v436_v45 }
 0x330   : > { %8095 = vst [vmem:[#allocation58_spill] sm:$0xff] %v7408_v24  ;;  %3443 = vmatmul.bf16.gmra.mxu2 %v1605_v5  ;;  %v1614_v53 = vpack.c.bf16 %v1158_v13, %v1150_v30 }
 0x331   : > { %3612 = vmatmul.bf16.gmra.mxu3 %v1606_v43  ;;  %v1611_v43 = vpack.c.bf16 %v1155_v29, %v1147_v27  ;;  %v1613_v42 = vpack.c.bf16 %v1157_v4, %v1149_v10  ;;  %v654_v27 = vunpack.c.2.s8 %v438_v34  ;;  %v662_v29 = vunpack.c.3.s8 %v438_v34 }
 0x333   : > { %v2888_v56 = vpop.f32.mrf.mxu2  ;;  %v2552_v38 = vpop.f32.mrf.mxu0  ;;  %v1166_v52 = vcvt.s32.f32 %v654_v27  ;;  %v1174_v30 = vcvt.s32.f32 %v662_v29 }
 0x334   : > { %v3057_v14 = vpop.f32.mrf.mxu3  ;;  %v2889_v28 = vadd.f32 %v2888_v56, %v2720_v20  ;;  %v2721_v1 = vpop.f32.mrf.mxu1  ;;  %v1612_v20 = vpack.c.bf16 %v1156_v32, %v1148_v46  ;;  %v1163_v46 = vcvt.s32.f32 %v651_v50  ;;  %v1171_v32 = vcvt.s32.f32 %v659_v7  ;;  %v7425_v7 = vld [vmem:[%s6919_s14 + $0x130] sm:$0xff] }
 0x335   : > { %v2722_v22 = vadd.f32 %v2721_v1, %v2552_v38  ;;  %v653_v1 = vunpack.c.2.s8 %v437_v49  ;;  %v669_v27 = vunpack.c.0.s8 %v7425_v7 }
 0x336   : > { %v7414_v62 = vadd.f32 %v3057_v14, %v2889_v28  ;;  %v660_v28 = vunpack.c.3.s8 %v436_v45 }
 0x337   : > { %v1165_v10 = vcvt.s32.f32 %v653_v1 }
 0x338   : > { %8096 = vst [vmem:[#allocation59_spill] sm:$0xff] %v7414_v62 }
 0x33b   : > { %v2890_v23 = vpop.f32.mrf.mxu2  ;;  %v2555_v24 = vpop.f32.mrf.mxu0 }
 0x33c   : > { %v3059_v5 = vpop.f32.mrf.mxu3  ;;  %v2891_v56 = vadd.f32 %v2890_v23, %v2722_v22  ;;  %v2724_v0 = vpop.f32.mrf.mxu1  ;;  %v661_v22 = vunpack.c.3.s8 %v437_v49  ;;  %v1619_v23 = vpack.c.bf16 %v1171_v32, %v1163_v46  ;;  %v677_v32 = vunpack.c.1.s8 %v7425_v7 }
 0x33d   : > { %v2725_v38 = vadd.f32 %v2724_v0, %v2555_v24 }
 0x33e   : > { %v7416_v14 = vadd.f32 %v3059_v5, %v2891_v56  ;;  %3110 = vmatmul.bf16.gmra.mxu0 %v1611_v43  ;;  %v1173_v4 = vcvt.s32.f32 %v661_v22  ;;  %v1622_v56 = vpack.c.bf16 %v1174_v30, %v1166_v52 }
 0x33f   : > { %3279 = vmatmul.bf16.gmra.mxu1 %v1612_v20 }
 0x340   : > { %8097 = vst [vmem:[#allocation60_spill] sm:$0xff] %v7416_v14  ;;  %3448 = vmatmul.bf16.gmra.mxu2 %v1613_v42  ;;  %v1164_v42 = vcvt.s32.f32 %v652_v37  ;;  %v1621_v20 = vpack.c.bf16 %v1173_v4, %v1165_v10  ;;  %v7428_v37 = vld [vmem:[%s6919_s14 + $0x138] sm:$0xff] }
 0x341   : > { %3617 = vmatmul.bf16.gmra.mxu3 %v1614_v53  ;;  %v1172_v53 = vcvt.s32.f32 %v660_v28 }
 0x343   : > { %v2893_v57 = vpop.f32.mrf.mxu2  ;;  %v2557_v11 = vpop.f32.mrf.mxu0  ;;  %v1620_v49 = vpack.c.bf16 %v1172_v53, %v1164_v42  ;;  %v670_v42 = vunpack.c.0.s8 %v7428_v37  ;;  %v678_v53 = vunpack.c.1.s8 %v7428_v37 }
 0x344   : > { %v3062_v19 = vpop.f32.mrf.mxu3  ;;  %v2894_v47 = vadd.f32 %v2893_v57, %v2725_v38  ;;  %v2726_v21 = vpop.f32.mrf.mxu1  ;;  %v443_v57 = vld [vmem:[%s6919_s14 + $0x120] sm:$0xff] }
 0x345   : > { %v2727_v0 = vadd.f32 %v2726_v21, %v2557_v11  ;;  %v667_v28 = vunpack.c.0.s8 %v443_v57  ;;  %v675_v11 = vunpack.c.1.s8 %v443_v57 }
 0x346   : > { %v7418_v24 = vadd.f32 %v3062_v19, %v2894_v47  ;;  %v444_v19 = vld [vmem:[%s6919_s14 + $0x128] sm:$0xff] }
 0x347   : > { %v668_v21 = vunpack.c.0.s8 %v444_v19  ;;  %v676_v22 = vunpack.c.1.s8 %v444_v19  ;;  %v1179_v52 = vcvt.s32.f32 %v667_v28  ;;  %v1187_v30 = vcvt.s32.f32 %v675_v11 }
 0x348   : > { %8098 = vst [vmem:[#allocation61_spill] sm:$0xff] %v7418_v24  ;;  %v683_v11 = vunpack.c.2.s8 %v443_v57 }
 0x34b   : > { %v2895_v45 = vpop.f32.mrf.mxu2  ;;  %v2560_v5 = vpop.f32.mrf.mxu0 }
 0x34c   : > { %v3064_v13 = vpop.f32.mrf.mxu3  ;;  %v2896_v34 = vadd.f32 %v2895_v45, %v2727_v0  ;;  %v2729_v43 = vpop.f32.mrf.mxu1  ;;  %v1180_v45 = vcvt.s32.f32 %v668_v21 }
 0x34d   : > { %v2730_v38 = vadd.f32 %v2729_v43, %v2560_v5  ;;  %v1190_v5 = vcvt.s32.f32 %v678_v53 }
 0x34e   : > { %v7420_v50 = vadd.f32 %v3064_v13, %v2896_v34  ;;  %3115 = vmatmul.bf16.gmra.mxu0 %v1619_v23  ;;  %v1188_v13 = vcvt.s32.f32 %v676_v22  ;;  %v1181_v23 = vcvt.s32.f32 %v669_v27  ;;  %v1182_v34 = vcvt.s32.f32 %v670_v42 }
 0x34f   : > { %3284 = vmatmul.bf16.gmra.mxu1 %v1620_v49  ;;  %v1189_v49 = vcvt.s32.f32 %v677_v32  ;;  %v691_v27 = vunpack.c.3.s8 %v443_v57  ;;  %v685_v32 = vunpack.c.2.s8 %v7425_v7 }
 0x350   : > { %8099 = vst [vmem:[#allocation62_spill] sm:$0xff] %v7420_v50  ;;  %3453 = vmatmul.bf16.gmra.mxu2 %v1621_v20  ;;  %v1630_v62 = vpack.c.bf16 %v1190_v5, %v1182_v34 }
 0x351   : > { %3622 = vmatmul.bf16.gmra.mxu3 %v1622_v56  ;;  %v1627_v56 = vpack.c.bf16 %v1187_v30, %v1179_v52  ;;  %v1629_v14 = vpack.c.bf16 %v1189_v49, %v1181_v23  ;;  %v693_v52 = vunpack.c.3.s8 %v7425_v7  ;;  %v1195_v30 = vcvt.s32.f32 %v683_v11  ;;  %v1949_v11 = vld [vmem:[#allocation2 + $0x1b0] sm:$0xff] }
 0x353   : > { %v2898_v1 = vpop.f32.mrf.mxu2  ;;  %v2562_v0 = vpop.f32.mrf.mxu0  ;;  %v1205_v49 = vcvt.s32.f32 %v693_v52 }
 0x354   : > { %v3067_v47 = vpop.f32.mrf.mxu3  ;;  %v2899_v29 = vadd.f32 %v2898_v1, %v2730_v38  ;;  %v2731_v46 = vpop.f32.mrf.mxu1  ;;  %v1628_v38 = vpack.c.bf16 %v1188_v13, %v1180_v45  ;;  %v1203_v45 = vcvt.s32.f32 %v691_v27  ;;  %v7446_v27 = vld [vmem:[%s6919_s14 + $0x160] sm:$0xff] }
 0x355   : > { %v2732_v10 = vadd.f32 %v2731_v46, %v2562_v0  ;;  %v692_v46 = vunpack.c.3.s8 %v444_v19 }
 0x356   : > { %v7434_v4 = vadd.f32 %v3067_v47, %v2899_v29  ;;  %v684_v29 = vunpack.c.2.s8 %v444_v19  ;;  %v1197_v19 = vcvt.s32.f32 %v685_v32  ;;  %v7452_v32 = vld [vmem:[%s6919_s14 + $0x170] sm:$0xff] }
 0x357   : > { %v1204_v13 = vcvt.s32.f32 %v692_v46  ;;  %v7449_v46 = vld [vmem:[%s6919_s14 + $0x168] sm:$0xff] }
 0x358   : > { %v1196_v57 = vcvt.s32.f32 %v684_v29 }
 0x35b   : > { %v2900_v43 = vpop.f32.mrf.mxu2  ;;  %v3081_v50 = vpop.f32.mrf.mxu0 }
 0x35c   : > { %v3069_v20 = vpop.f32.mrf.mxu3  ;;  %v2901_v1 = vadd.f32 %v2900_v43, %v2732_v10  ;;  %v3250_v24 = vpop.f32.mrf.mxu1  ;;  %v3082_v28 = vadd.f32 %v3081_v50, %v7098_v6  ;;  %v686_v6 = vunpack.c.2.s8 %v7428_v37  ;;  %v694_v50 = vunpack.c.3.s8 %v7428_v37 }
 0x35d   : > { %v1636_v37 = vpack.c.bf16 %v1204_v13, %v1196_v57  ;;  %v709_v57 = vunpack.c.1.s8 %v7452_v32 }
 0x35e   : > { %v7436_v0 = vadd.f32 %v3069_v20, %v2901_v1  ;;  %3120 = vmatmul.bf16.gmra.mxu0 %v1627_v56  ;;  %v3251_v47 = vadd.f32 %v3250_v24, %v3082_v28  ;;  %v1198_v34 = vcvt.s32.f32 %v686_v6  ;;  %v1206_v5 = vcvt.s32.f32 %v694_v50 }
 0x35f   : > { %3289 = vmatmul.bf16.gmra.mxu1 %v1628_v38  ;;  %v1635_v56 = vpack.c.bf16 %v1203_v45, %v1195_v30  ;;  %v1637_v28 = vpack.c.bf16 %v1205_v49, %v1197_v19  ;;  %v700_v50 = vunpack.c.0.s8 %v7449_v46 }
 0x360   : > { %3458 = vmatmul.bf16.gmra.mxu2 %v1629_v14  ;;  %v1948_v14 = vld [vmem:[#allocation2 + $0xb0] sm:$0xff] }
 0x361   : > { %3627 = vmatmul.bf16.gmra.mxu3 %v1630_v62 }
 0x363   : > { %v3419_v21 = vpop.f32.mrf.mxu2  ;;  %v3083_v53 = vpop.f32.mrf.mxu0 }
 0x364   : > { %v3588_v22 = vpop.f32.mrf.mxu3  ;;  %v3420_v42 = vadd.f32 %v3419_v21, %v3251_v47  ;;  %v3252_v10 = vpop.f32.mrf.mxu1  ;;  %v3084_v24 = vadd.f32 %v3083_v53, %v7100_v25  ;;  %v1638_v47 = vpack.c.bf16 %v1206_v5, %v1198_v34 }
 0x366   : > { %v3589_v62 = vadd.f32 %v3588_v22, %v3420_v42  ;;  %v3253_v7 = vadd.f32 %v3252_v10, %v3084_v24  ;;  %v7455_v42 = vld [vmem:[%s6919_s14 + $0x178] sm:$0xff]  ;;  %v699_v10 = vunpack.c.0.s8 %v7446_v27 }
 0x367   : > { %v702_v13 = vunpack.c.0.s8 %v7455_v42  ;;  %v710_v19 = vunpack.c.1.s8 %v7455_v42 }
 0x368   : > { %v3748_v23 = vadd.f32 %v3589_v62, %v1948_v14  ;;  %v708_v14 = vunpack.c.1.s8 %v7449_v46  ;;  %v701_v62 = vunpack.c.0.s8 %v7452_v32  ;;  %v1211_v5 = vcvt.s32.f32 %v699_v10  ;;  %v1951_v10 = vld [vmem:[#allocation2 + $0x18] sm:$0xff] }
 0x36a   : > { %3812 = vst [vmem:[#allocation2 + $0xb0] sm:$0xff] %v3748_v23  ;;  %v1950_v23 = vld [vmem:[#allocation2 + $0xd8] sm:$0xff] }
 0x36b   : > { %v3421_v43 = vpop.f32.mrf.mxu2  ;;  %v3086_v25 = vpop.f32.mrf.mxu0 }
 0x36c   : > { %v3590_v20 = vpop.f32.mrf.mxu3  ;;  %v3422_v38 = vadd.f32 %v3421_v43, %v3253_v7  ;;  %v3255_v1 = vpop.f32.mrf.mxu1  ;;  %v3087_v22 = vadd.f32 %v3086_v25, %v7122_v44  ;;  %v707_v44 = vunpack.c.1.s8 %v7446_v27  ;;  %v1212_v43 = vcvt.s32.f32 %v700_v50 }
 0x36d   : > { %v1214_v25 = vcvt.s32.f32 %v702_v13  ;;  %v716_v13 = vunpack.c.2.s8 %v7449_v46 }
 0x36e   : > { %v3591_v21 = vadd.f32 %v3590_v20, %v3422_v38  ;;  %3125 = vmatmul.bf16.gmra.mxu0 %v1635_v56  ;;  %v3256_v53 = vadd.f32 %v3255_v1, %v3087_v22  ;;  %v1219_v7 = vcvt.s32.f32 %v707_v44  ;;  %v1220_v20 = vcvt.s32.f32 %v708_v14 }
 0x36f   : > { %3294 = vmatmul.bf16.gmra.mxu1 %v1636_v37  ;;  %v1213_v56 = vcvt.s32.f32 %v701_v62  ;;  %v1221_v38 = vcvt.s32.f32 %v709_v57  ;;  %v1222_v1 = vcvt.s32.f32 %v710_v19  ;;  %v723_v57 = vunpack.c.3.s8 %v7446_v27 }
 0x370   : > { %v3749_v29 = vadd.f32 %v3591_v21, %v1949_v11  ;;  %3463 = vmatmul.bf16.gmra.mxu2 %v1637_v28  ;;  %v1643_v21 = vpack.c.bf16 %v1219_v7, %v1211_v5  ;;  %v1644_v22 = vpack.c.bf16 %v1220_v20, %v1212_v43  ;;  %v724_v19 = vunpack.c.3.s8 %v7449_v46  ;;  %v1952_v20 = vld [vmem:[#allocation2 + $0x50] sm:$0xff] }
 0x371   : > { %3632 = vmatmul.bf16.gmra.mxu3 %v1638_v47  ;;  %v725_v5 = vunpack.c.3.s8 %v7452_v32  ;;  %v718_v7 = vunpack.c.2.s8 %v7455_v42  ;;  %v726_v43 = vunpack.c.3.s8 %v7455_v42 }
 0x372   : > { %3813 = vst [vmem:[#allocation2 + $0x1b0] sm:$0xff] %v3749_v29 }
 0x373   : > { %v3424_v52 = vpop.f32.mrf.mxu2  ;;  %v3088_v30 = vpop.f32.mrf.mxu0 }
 0x374   : > { %v3593_v6 = vpop.f32.mrf.mxu3  ;;  %v3425_v24 = vadd.f32 %v3424_v52, %v3256_v53  ;;  %v3257_v45 = vpop.f32.mrf.mxu1  ;;  %v3089_v34 = vadd.f32 %v3088_v30, %v7124_v63  ;;  %v1646_v63 = vpack.c.bf16 %v1222_v1, %v1214_v25  ;;  %v1228_v25 = vcvt.s32.f32 %v716_v13 }
 0x375   : > { %v1236_v1 = vcvt.s32.f32 %v724_v19 }
 0x376   : > { %v3594_v49 = vadd.f32 %v3593_v6, %v3425_v24  ;;  %v3258_v28 = vadd.f32 %v3257_v45, %v3089_v34  ;;  %v1645_v6 = vpack.c.bf16 %v1221_v38, %v1213_v56  ;;  %v715_v24 = vunpack.c.2.s8 %v7446_v27 }
 0x377   : > { %v1235_v38 = vcvt.s32.f32 %v723_v57  ;;  %v1652_v42 = vpack.c.bf16 %v1236_v1, %v1228_v25  ;;  %v7487_v57 = vld [vmem:[%s6919_s14 + $0x1b8] sm:$0xff] }
 0x378   : > { %v3750_v37 = vadd.f32 %v3594_v49, %v1950_v23  ;;  %v717_v23 = vunpack.c.2.s8 %v7452_v32  ;;  %v1227_v27 = vcvt.s32.f32 %v715_v24 }
 0x37a   : > { %3814 = vst [vmem:[#allocation2 + $0xd8] sm:$0xff] %v3750_v37  ;;  %v1229_v46 = vcvt.s32.f32 %v717_v23 }
 0x37b   : > { %v3426_v47 = vpop.f32.mrf.mxu2  ;;  %v3091_v53 = vpop.f32.mrf.mxu0 }
 0x37c   : > { %v3595_v11 = vpop.f32.mrf.mxu3  ;;  %v3427_v29 = vadd.f32 %v3426_v47, %v3258_v28  ;;  %v3260_v52 = vpop.f32.mrf.mxu1  ;;  %v3092_v50 = vadd.f32 %v3091_v53, %v7137_v18  ;;  %v1237_v47 = vcvt.s32.f32 %v725_v5  ;;  %v1651_v53 = vpack.c.bf16 %v1235_v38, %v1227_v27  ;;  %v1954_v38 = vld [vmem:[#allocation2 + $0x130] sm:$0xff] }
 0x37d   : > { %v742_v27 = vunpack.c.1.s8 %v7487_v57 }
 0x37e   : > { %v3596_v44 = vadd.f32 %v3595_v11, %v3427_v29  ;;  %3130 = vmatmul.bf16.gmra.mxu0 %v1643_v21  ;;  %v3261_v62 = vadd.f32 %v3260_v52, %v3092_v50  ;;  %v1230_v11 = vcvt.s32.f32 %v718_v7  ;;  %v1238_v21 = vcvt.s32.f32 %v726_v43 }
 0x37f   : > { %3299 = vmatmul.bf16.gmra.mxu1 %v1644_v22 }
 0x380   : > { %v3751_v14 = vadd.f32 %v3596_v44, %v1951_v10  ;;  %3468 = vmatmul.bf16.gmra.mxu2 %v1645_v6  ;;  %v1654_v10 = vpack.c.bf16 %v1238_v21, %v1230_v11  ;;  %v1953_v44 = vld [vmem:[#allocation2 + $0x168] sm:$0xff] }
 0x381   : > { %3637 = vmatmul.bf16.gmra.mxu3 %v1646_v63  ;;  %v1653_v63 = vpack.c.bf16 %v1237_v47, %v1229_v46 }
 0x382   : > { %3815 = vst [vmem:[#allocation2 + $0x18] sm:$0xff] %v3751_v14 }
 0x383   : > { %v3429_v30 = vpop.f32.mrf.mxu2  ;;  %v3093_v49 = vpop.f32.mrf.mxu0 }
 0x384   : > { %v3598_v45 = vpop.f32.mrf.mxu3  ;;  %v3430_v18 = vadd.f32 %v3429_v30, %v3261_v62  ;;  %v3262_v34 = vpop.f32.mrf.mxu1  ;;  %v3094_v37 = vadd.f32 %v3093_v49, %v7140_v39  ;;  %v7478_v62 = vld [vmem:[%s6919_s14 + $0x1a0] sm:$0xff]  ;;  %v7481_v30 = vld [vmem:[%s6919_s14 + $0x1a8] sm:$0xff] }
 0x385   : > { %v731_v19 = vunpack.c.0.s8 %v7478_v62  ;;  %v732_v49 = vunpack.c.0.s8 %v7481_v30 }
 0x386   : > { %v3599_v56 = vadd.f32 %v3598_v45, %v3430_v18  ;;  %v3263_v32 = vadd.f32 %v3262_v34, %v3094_v37  ;;  %v7484_v45 = vld [vmem:[%s6919_s14 + $0x1b0] sm:$0xff]  ;;  %v740_v34 = vunpack.c.1.s8 %v7481_v30  ;;  %v734_v37 = vunpack.c.0.s8 %v7487_v57 }
 0x387   : > { %v733_v5 = vunpack.c.0.s8 %v7484_v45  ;;  %v1243_v46 = vcvt.s32.f32 %v731_v19  ;;  %v1244_v47 = vcvt.s32.f32 %v732_v49 }
 0x388   : > { %v3752_v28 = vadd.f32 %v3599_v56, %v1952_v20  ;;  %v741_v56 = vunpack.c.1.s8 %v7484_v45  ;;  %v1252_v11 = vcvt.s32.f32 %v740_v34 }
 0x389   : > { %v1245_v21 = vcvt.s32.f32 %v733_v5  ;;  %v755_v5 = vunpack.c.3.s8 %v7478_v62 }
 0x38a   : > { %3816 = vst [vmem:[#allocation2 + $0x50] sm:$0xff] %v3752_v28 }
 0x38b   : > { %v3431_v22 = vpop.f32.mrf.mxu2  ;;  %v3096_v39 = vpop.f32.mrf.mxu0 }
 0x38c   : > { %v3600_v29 = vpop.f32.mrf.mxu3  ;;  %v3432_v52 = vadd.f32 %v3431_v22, %v3263_v32  ;;  %v3265_v6 = vpop.f32.mrf.mxu1  ;;  %v3097_v14 = vadd.f32 %v3096_v39, %v7146_v59  ;;  %v739_v59 = vunpack.c.1.s8 %v7478_v62  ;;  %v1253_v22 = vcvt.s32.f32 %v741_v56 }
 0x38e   : > { %v3601_v50 = vadd.f32 %v3600_v29, %v3432_v52  ;;  %3135 = vmatmul.bf16.gmra.mxu0 %v1651_v53  ;;  %v3266_v13 = vadd.f32 %v3265_v6, %v3097_v14  ;;  %v1251_v28 = vcvt.s32.f32 %v739_v59  ;;  %v1246_v29 = vcvt.s32.f32 %v734_v37 }
 0x38f   : > { %3304 = vmatmul.bf16.gmra.mxu1 %v1652_v42  ;;  %v1254_v53 = vcvt.s32.f32 %v742_v27  ;;  %v1661_v14 = vpack.c.bf16 %v1253_v22, %v1245_v21  ;;  %v747_v59 = vunpack.c.2.s8 %v7478_v62  ;;  %v757_v27 = vunpack.c.3.s8 %v7484_v45 }
 0x390   : > { %v3753_v24 = vadd.f32 %v3601_v50, %v1953_v44  ;;  %3473 = vmatmul.bf16.gmra.mxu2 %v1653_v63  ;;  %v1659_v6 = vpack.c.bf16 %v1251_v28, %v1243_v46  ;;  %v1660_v63 = vpack.c.bf16 %v1252_v11, %v1244_v47  ;;  %v1267_v47 = vcvt.s32.f32 %v755_v5 }
 0x391   : > { %3642 = vmatmul.bf16.gmra.mxu3 %v1654_v10  ;;  %v1259_v62 = vcvt.s32.f32 %v747_v59  ;;  %v1269_v22 = vcvt.s32.f32 %v757_v27 }
 0x392   : > { %3817 = vst [vmem:[#allocation2 + $0x168] sm:$0xff] %v3753_v24  ;;  %v1955_v24 = vld [vmem:[#allocation2 + $0x48] sm:$0xff] }
 0x393   : > { %v3434_v23 = vpop.f32.mrf.mxu2  ;;  %v3098_v43 = vpop.f32.mrf.mxu0 }
 0x394   : > { %v3603_v18 = vpop.f32.mrf.mxu3  ;;  %v3435_v7 = vadd.f32 %v3434_v23, %v3266_v13  ;;  %v3267_v20 = vpop.f32.mrf.mxu1  ;;  %v3099_v1 = vadd.f32 %v3098_v43, %v7148_v16  ;;  %v1662_v16 = vpack.c.bf16 %v1254_v53, %v1246_v29  ;;  %v756_v43 = vunpack.c.3.s8 %v7481_v30 }
 0x396   : > { %v3604_v25 = vadd.f32 %v3603_v18, %v3435_v7  ;;  %v3268_v42 = vadd.f32 %v3267_v20, %v3099_v1  ;;  %v748_v7 = vunpack.c.2.s8 %v7481_v30  ;;  %v749_v20 = vunpack.c.2.s8 %v7484_v45  ;;  %v1956_v1 = vld [vmem:[#allocation2 + $0x180] sm:$0xff] }
 0x397   : > { %v1268_v21 = vcvt.s32.f32 %v756_v43 }
 0x398   : > { %v3754_v32 = vadd.f32 %v3604_v25, %v1954_v38  ;;  %v750_v38 = vunpack.c.2.s8 %v7487_v57  ;;  %v758_v25 = vunpack.c.3.s8 %v7487_v57  ;;  %v1260_v11 = vcvt.s32.f32 %v748_v7 }
 0x399   : > { %v1261_v30 = vcvt.s32.f32 %v749_v20 }
 0x39a   : > { %3818 = vst [vmem:[#allocation2 + $0x130] sm:$0xff] %v3754_v32  ;;  %v1262_v29 = vcvt.s32.f32 %v750_v38  ;;  %v1270_v53 = vcvt.s32.f32 %v758_v25  ;;  %v1668_v57 = vpack.c.bf16 %v1268_v21, %v1260_v11 }
 0x39b   : > { %v3436_v52 = vpop.f32.mrf.mxu2  ;;  %v3101_v44 = vpop.f32.mrf.mxu0 }
 0x39c   : > { %v3605_v39 = vpop.f32.mrf.mxu3  ;;  %v3437_v10 = vadd.f32 %v3436_v52, %v3268_v42  ;;  %v3270_v50 = vpop.f32.mrf.mxu1  ;;  %v3102_v19 = vadd.f32 %v3101_v44, %v7150_v33  ;;  %v1670_v44 = vpack.c.bf16 %v1270_v53, %v1262_v29 }
 0x39e   : > { %v3606_v13 = vadd.f32 %v3605_v39, %v3437_v10  ;;  %3140 = vmatmul.bf16.gmra.mxu0 %v1659_v6  ;;  %v3271_v18 = vadd.f32 %v3270_v50, %v3102_v19  ;;  %v1667_v39 = vpack.c.bf16 %v1267_v47, %v1259_v62  ;;  %v1669_v10 = vpack.c.bf16 %v1269_v22, %v1261_v30  ;;  %v1957_v50 = vld [vmem:[#allocation2 + $0x110] sm:$0xff]  ;;  %v7513_v19 = vld [vmem:[%s6919_s14 + $0x1e8] sm:$0xff] }
 0x39f   : > { %3309 = vmatmul.bf16.gmra.mxu1 %v1660_v63  ;;  %v764_v7 = vunpack.c.0.s8 %v7513_v19  ;;  %v772_v43 = vunpack.c.1.s8 %v7513_v19 }
 0x3a0   : > { %v3755_v23 = vadd.f32 %v3606_v13, %v1955_v24  ;;  %3478 = vmatmul.bf16.gmra.mxu2 %v1661_v14  ;;  %v7510_v24 = vld [vmem:[%s6919_s14 + $0x1e0] sm:$0xff] }
 0x3a1   : > { %3647 = vmatmul.bf16.gmra.mxu3 %v1662_v16  ;;  %v1276_v11 = vcvt.s32.f32 %v764_v7  ;;  %v1284_v21 = vcvt.s32.f32 %v772_v43  ;;  %v788_v7 = vunpack.c.3.s8 %v7513_v19 }
 0x3a2   : > { %3819 = vst [vmem:[#allocation2 + $0x48] sm:$0xff] %v3755_v23  ;;  %v7516_v23 = vld [vmem:[%s6919_s14 + $0x1f0] sm:$0xff] }
 0x3a3   : > { %v3439_v49 = vpop.f32.mrf.mxu2  ;;  %v3103_v56 = vpop.f32.mrf.mxu0  ;;  %v765_v20 = vunpack.c.0.s8 %v7516_v23  ;;  %v773_v27 = vunpack.c.1.s8 %v7516_v23  ;;  %v781_v43 = vunpack.c.2.s8 %v7516_v23 }
 0x3a4   : > { %v3608_v34 = vpop.f32.mrf.mxu3  ;;  %v3440_v33 = vadd.f32 %v3439_v49, %v3271_v18  ;;  %v3272_v37 = vpop.f32.mrf.mxu1  ;;  %v3104_v28 = vadd.f32 %v3103_v56, %v7152_v54  ;;  %v7519_v18 = vld [vmem:[%s6919_s14 + $0x1f8] sm:$0xff]  ;;  %v763_v49 = vunpack.c.0.s8 %v7510_v24 }
 0x3a5   : > { %v766_v38 = vunpack.c.0.s8 %v7519_v18  ;;  %v774_v25 = vunpack.c.1.s8 %v7519_v18  ;;  %v1277_v30 = vcvt.s32.f32 %v765_v20  ;;  %v1285_v22 = vcvt.s32.f32 %v773_v27 }
 0x3a6   : > { %v3609_v46 = vadd.f32 %v3608_v34, %v3440_v33  ;;  %v3273_v45 = vadd.f32 %v3272_v37, %v3104_v28  ;;  %v1275_v62 = vcvt.s32.f32 %v763_v49  ;;  %v790_v27 = vunpack.c.3.s8 %v7519_v18 }
 0x3a7   : > { %v1278_v29 = vcvt.s32.f32 %v766_v38  ;;  %v1286_v53 = vcvt.s32.f32 %v774_v25  ;;  %v1960_v38 = vld [vmem:[#allocation2 + $0x120] sm:$0xff] }
 0x3a8   : > { %v3756_v32 = vadd.f32 %v3609_v46, %v1956_v1  ;;  %v1958_v1 = vld [vmem:[#allocation2 + $0x118] sm:$0xff] }
 0x3aa   : > { %3820 = vst [vmem:[#allocation2 + $0x180] sm:$0xff] %v3756_v32 }
 0x3ab   : > { %v3441_v42 = vpop.f32.mrf.mxu2  ;;  %v3106_v54 = vpop.f32.mrf.mxu0 }
 0x3ac   : > { %v3610_v52 = vpop.f32.mrf.mxu3  ;;  %v3442_v6 = vadd.f32 %v3441_v42, %v3273_v45  ;;  %v3275_v63 = vpop.f32.mrf.mxu1  ;;  %v3107_v16 = vadd.f32 %v3106_v54, %v7174_v12  ;;  %v771_v12 = vunpack.c.1.s8 %v7510_v24 }
 0x3ae   : > { %v3611_v14 = vadd.f32 %v3610_v52, %v3442_v6  ;;  %3145 = vmatmul.bf16.gmra.mxu0 %v1667_v39  ;;  %v3276_v59 = vadd.f32 %v3275_v63, %v3107_v16  ;;  %v1283_v47 = vcvt.s32.f32 %v771_v12  ;;  %v780_v12 = vunpack.c.2.s8 %v7513_v19 }
 0x3af   : > { %3314 = vmatmul.bf16.gmra.mxu1 %v1668_v57  ;;  %v1676_v57 = vpack.c.bf16 %v1284_v21, %v1276_v11  ;;  %v1293_v19 = vcvt.s32.f32 %v781_v43 }
 0x3b0   : > { %v3757_v13 = vadd.f32 %v3611_v14, %v1957_v50  ;;  %3483 = vmatmul.bf16.gmra.mxu2 %v1669_v10  ;;  %v1675_v39 = vpack.c.bf16 %v1283_v47, %v1275_v62  ;;  %v1677_v10 = vpack.c.bf16 %v1285_v22, %v1277_v30  ;;  %v1300_v62 = vcvt.s32.f32 %v788_v7 }
 0x3b1   : > { %3652 = vmatmul.bf16.gmra.mxu3 %v1670_v44  ;;  %v1959_v44 = vld [vmem:[#allocation2 + $0x98] sm:$0xff]  ;;  %v1302_v30 = vcvt.s32.f32 %v790_v27 }
 0x3b2   : > { %3821 = vst [vmem:[#allocation2 + $0x110] sm:$0xff] %v3757_v13 }
 0x3b3   : > { %v3444_v34 = vpop.f32.mrf.mxu2  ;;  %v3108_v56 = vpop.f32.mrf.mxu0 }
 0x3b4   : > { %v3613_v5 = vpop.f32.mrf.mxu3  ;;  %v3445_v33 = vadd.f32 %v3444_v34, %v3276_v59  ;;  %v3277_v37 = vpop.f32.mrf.mxu1  ;;  %v3109_v28 = vadd.f32 %v3108_v56, %v7176_v35  ;;  %v1678_v35 = vpack.c.bf16 %v1286_v53, %v1278_v29  ;;  %v779_v59 = vunpack.c.2.s8 %v7510_v24 }
 0x3b5   : > { %v789_v56 = vunpack.c.3.s8 %v7516_v23 }
 0x3b6   : > { %v3614_v46 = vadd.f32 %v3613_v5, %v3445_v33  ;;  %v3278_v45 = vadd.f32 %v3277_v37, %v3109_v28  ;;  %v787_v5 = vunpack.c.3.s8 %v7510_v24  ;;  %v782_v37 = vunpack.c.2.s8 %v7519_v18 }
 0x3b7   : > { %v1291_v24 = vcvt.s32.f32 %v779_v59  ;;  %v1292_v28 = vcvt.s32.f32 %v780_v12  ;;  %v1301_v11 = vcvt.s32.f32 %v789_v56 }
 0x3b8   : > { %v3758_v32 = vadd.f32 %v3614_v46, %v1958_v1  ;;  %v1299_v46 = vcvt.s32.f32 %v787_v5  ;;  %v1294_v21 = vcvt.s32.f32 %v782_v37 }
 0x3b9   : > { %v1684_v18 = vpack.c.bf16 %v1300_v62, %v1292_v28 }
 0x3ba   : > { %3822 = vst [vmem:[#allocation2 + $0x118] sm:$0xff] %v3758_v32  ;;  %v1683_v29 = vpack.c.bf16 %v1299_v46, %v1291_v24 }
 0x3bb   : > { %v3446_v42 = vpop.f32.mrf.mxu2  ;;  %v3111_v54 = vpop.f32.mrf.mxu0 }
 0x3bc   : > { %v3615_v52 = vpop.f32.mrf.mxu3  ;;  %v3447_v6 = vadd.f32 %v3446_v42, %v3278_v45  ;;  %v3280_v63 = vpop.f32.mrf.mxu1  ;;  %v3112_v14 = vadd.f32 %v3111_v54, %v7189_v61  ;;  %v1685_v42 = vpack.c.bf16 %v1301_v11, %v1293_v19  ;;  %v7542_v54 = vld [vmem:[%s6919_s14 + $0x220] sm:$0xff] }
 0x3be   : > { %v3616_v50 = vadd.f32 %v3615_v52, %v3447_v6  ;;  %3150 = vmatmul.bf16.gmra.mxu0 %v1675_v39  ;;  %v3281_v13 = vadd.f32 %v3280_v63, %v3112_v14  ;;  %v1686_v52 = vpack.c.bf16 %v1302_v30, %v1294_v21  ;;  %v1961_v39 = vld [vmem:[#allocation2 + $0x150] sm:$0xff]  ;;  %v795_v14 = vunpack.c.0.s8 %v7542_v54 }
 0x3bf   : > { %3319 = vmatmul.bf16.gmra.mxu1 %v1676_v57 }
 0x3c0   : > { %v3759_v16 = vadd.f32 %v3616_v50, %v1959_v44  ;;  %3488 = vmatmul.bf16.gmra.mxu2 %v1677_v10  ;;  %v7545_v10 = vld [vmem:[%s6919_s14 + $0x228] sm:$0xff]  ;;  %v7551_v44 = vld [vmem:[%s6919_s14 + $0x238] sm:$0xff]  ;;  %v1307_v27 = vcvt.s32.f32 %v795_v14 }
 0x3c1   : > { %3657 = vmatmul.bf16.gmra.mxu3 %v1678_v35  ;;  %v7548_v35 = vld [vmem:[%s6919_s14 + $0x230] sm:$0xff]  ;;  %v796_v59 = vunpack.c.0.s8 %v7545_v10  ;;  %v820_v14 = vunpack.c.3.s8 %v7545_v10 }
 0x3c2   : > { %3823 = vst [vmem:[#allocation2 + $0x98] sm:$0xff] %v3759_v16  ;;  %v805_v43 = vunpack.c.1.s8 %v7548_v35 }
 0x3c3   : > { %v3449_v49 = vpop.f32.mrf.mxu2  ;;  %v3113_v20 = vpop.f32.mrf.mxu0 }
 0x3c4   : > { %v3618_v34 = vpop.f32.mrf.mxu3  ;;  %v3450_v61 = vadd.f32 %v3449_v49, %v3281_v13  ;;  %v3282_v33 = vpop.f32.mrf.mxu1  ;;  %v3114_v1 = vadd.f32 %v3113_v20, %v7192_v17  ;;  %v804_v49 = vunpack.c.1.s8 %v7545_v10  ;;  %v806_v20 = vunpack.c.1.s8 %v7551_v44 }
 0x3c5   : > { %v1317_v28 = vcvt.s32.f32 %v805_v43 }
 0x3c6   : > { %v3619_v25 = vadd.f32 %v3618_v34, %v3450_v61  ;;  %v3283_v23 = vadd.f32 %v3282_v33, %v3114_v1  ;;  %v797_v34 = vunpack.c.0.s8 %v7548_v35  ;;  %v798_v61 = vunpack.c.0.s8 %v7551_v44  ;;  %v1962_v33 = vld [vmem:[#allocation2 + $0x108] sm:$0xff] }
 0x3c7   : > { %v1316_v1 = vcvt.s32.f32 %v804_v49  ;;  %v1318_v19 = vcvt.s32.f32 %v806_v20  ;;  %v814_v49 = vunpack.c.2.s8 %v7551_v44  ;;  %v1332_v20 = vcvt.s32.f32 %v820_v14  ;;  %v1966_v14 = vld [vmem:[#allocation2 + $0x138] sm:$0xff] }
 0x3c8   : > { %v3760_v47 = vadd.f32 %v3619_v25, %v1960_v38  ;;  %v1308_v25 = vcvt.s32.f32 %v796_v59  ;;  %v1309_v24 = vcvt.s32.f32 %v797_v34  ;;  %v1310_v62 = vcvt.s32.f32 %v798_v61 }
 0x3c9   : > { %v821_v59 = vunpack.c.3.s8 %v7548_v35  ;;  %v822_v34 = vunpack.c.3.s8 %v7551_v44 }
 0x3ca   : > { %3824 = vst [vmem:[#allocation2 + $0x120] sm:$0xff] %v3760_v47 }
 0x3cb   : > { %v3451_v32 = vpop.f32.mrf.mxu2  ;;  %v3116_v17 = vpop.f32.mrf.mxu0 }
 0x3cc   : > { %v3620_v22 = vpop.f32.mrf.mxu3  ;;  %v3452_v53 = vadd.f32 %v3451_v32, %v3283_v23  ;;  %v3285_v45 = vpop.f32.mrf.mxu1  ;;  %v3117_v6 = vadd.f32 %v3116_v17, %v7198_v40  ;;  %v803_v40 = vunpack.c.1.s8 %v7542_v54  ;;  %v1692_v23 = vpack.c.bf16 %v1316_v1, %v1308_v25 }
 0x3ce   : > { %v3621_v57 = vadd.f32 %v3620_v22, %v3452_v53  ;;  %3155 = vmatmul.bf16.gmra.mxu0 %v1683_v29  ;;  %v3286_v50 = vadd.f32 %v3285_v45, %v3117_v6  ;;  %v1315_v38 = vcvt.s32.f32 %v803_v40  ;;  %v1963_v53 = vld [vmem:[#allocation2 + $0x60] sm:$0xff] }
 0x3cf   : > { %3324 = vmatmul.bf16.gmra.mxu1 %v1684_v18  ;;  %v1693_v18 = vpack.c.bf16 %v1317_v28, %v1309_v24 }
 0x3d0   : > { %v3761_v63 = vadd.f32 %v3621_v57, %v1961_v39  ;;  %3493 = vmatmul.bf16.gmra.mxu2 %v1685_v42  ;;  %v1691_v30 = vpack.c.bf16 %v1315_v38, %v1307_v27  ;;  %v811_v39 = vunpack.c.2.s8 %v7542_v54  ;;  %v1334_v27 = vcvt.s32.f32 %v822_v34 }
 0x3d1   : > { %3662 = vmatmul.bf16.gmra.mxu3 %v1686_v52 }
 0x3d2   : > { %3825 = vst [vmem:[#allocation2 + $0x150] sm:$0xff] %v3761_v63  ;;  %v819_v63 = vunpack.c.3.s8 %v7542_v54  ;;  %v1323_v54 = vcvt.s32.f32 %v811_v39 }
 0x3d3   : > { %v3454_v16 = vpop.f32.mrf.mxu2  ;;  %v3118_v12 = vpop.f32.mrf.mxu0 }
 0x3d4   : > { %v3623_v13 = vpop.f32.mrf.mxu3  ;;  %v3455_v5 = vadd.f32 %v3454_v16, %v3286_v50  ;;  %v3287_v7 = vpop.f32.mrf.mxu1  ;;  %v3119_v37 = vadd.f32 %v3118_v12, %v7200_v3  ;;  %v1694_v3 = vpack.c.bf16 %v1318_v19, %v1310_v62  ;;  %v812_v50 = vunpack.c.2.s8 %v7545_v10  ;;  %v1965_v19 = vld [vmem:[#allocation2 + $0x188] sm:$0xff] }
 0x3d5   : > { %v813_v16 = vunpack.c.2.s8 %v7548_v35  ;;  %v1331_v43 = vcvt.s32.f32 %v819_v63 }
 0x3d6   : > { %v3624_v56 = vadd.f32 %v3623_v13, %v3455_v5  ;;  %v3288_v47 = vadd.f32 %v3287_v7, %v3119_v37  ;;  %v1964_v5 = vld [vmem:[#allocation2 + $0xe0] sm:$0xff]  ;;  %v1324_v61 = vcvt.s32.f32 %v812_v50  ;;  %v1326_v37 = vcvt.s32.f32 %v814_v49 }
 0x3d7   : > { %v1325_v10 = vcvt.s32.f32 %v813_v16  ;;  %v1699_v1 = vpack.c.bf16 %v1331_v43, %v1323_v54 }
 0x3d8   : > { %v3762_v46 = vadd.f32 %v3624_v56, %v1962_v33  ;;  %v1333_v56 = vcvt.s32.f32 %v821_v59  ;;  %v1700_v44 = vpack.c.bf16 %v1332_v20, %v1324_v61  ;;  %v1702_v62 = vpack.c.bf16 %v1334_v27, %v1326_v37 }
 0x3da   : > { %3826 = vst [vmem:[#allocation2 + $0x108] sm:$0xff] %v3762_v46  ;;  %v1701_v28 = vpack.c.bf16 %v1333_v56, %v1325_v10 }
 0x3db   : > { %v3456_v11 = vpop.f32.mrf.mxu2  ;;  %v3121_v22 = vpop.f32.mrf.mxu0 }
 0x3dc   : > { %v3625_v21 = vpop.f32.mrf.mxu3  ;;  %v3457_v32 = vadd.f32 %v3456_v11, %v3288_v47  ;;  %v3290_v29 = vpop.f32.mrf.mxu1  ;;  %v3122_v45 = vadd.f32 %v3121_v22, %v7202_v26  ;;  %v7583_v22 = vld [vmem:[%s6919_s14 + $0x278] sm:$0xff] }
 0x3dd   : > { %v830_v63 = vunpack.c.0.s8 %v7583_v22  ;;  %v838_v50 = vunpack.c.1.s8 %v7583_v22 }
 0x3de   : > { %v3626_v17 = vadd.f32 %v3625_v21, %v3457_v32  ;;  %3160 = vmatmul.bf16.gmra.mxu0 %v1691_v30  ;;  %v3291_v52 = vadd.f32 %v3290_v29, %v3122_v45  ;;  %v7574_v21 = vld [vmem:[%s6919_s14 + $0x260] sm:$0xff]  ;;  %v7580_v32 = vld [vmem:[%s6919_s14 + $0x270] sm:$0xff] }
 0x3df   : > { %3329 = vmatmul.bf16.gmra.mxu1 %v1692_v23  ;;  %v7577_v23 = vld [vmem:[%s6919_s14 + $0x268] sm:$0xff]  ;;  %v1350_v54 = vcvt.s32.f32 %v838_v50 }
 0x3e0   : > { %v3763_v42 = vadd.f32 %v3626_v17, %v1963_v53  ;;  %3498 = vmatmul.bf16.gmra.mxu2 %v1693_v18  ;;  %v827_v18 = vunpack.c.0.s8 %v7574_v21  ;;  %v828_v17 = vunpack.c.0.s8 %v7577_v23  ;;  %v836_v45 = vunpack.c.1.s8 %v7577_v23 }
 0x3e1   : > { %3667 = vmatmul.bf16.gmra.mxu3 %v1694_v3 }
 0x3e2   : > { %3827 = vst [vmem:[#allocation2 + $0x60] sm:$0xff] %v3763_v42  ;;  %v829_v42 = vunpack.c.0.s8 %v7580_v32  ;;  %v1340_v59 = vcvt.s32.f32 %v828_v17  ;;  %v1348_v49 = vcvt.s32.f32 %v836_v45 }
 0x3e3   : > { %v3459_v57 = vpop.f32.mrf.mxu2  ;;  %v3123_v13 = vpop.f32.mrf.mxu0 }
 0x3e4   : > { %v3628_v6 = vpop.f32.mrf.mxu3  ;;  %v3460_v26 = vadd.f32 %v3459_v57, %v3291_v52  ;;  %v3292_v40 = vpop.f32.mrf.mxu1  ;;  %v3124_v7 = vadd.f32 %v3123_v13, %v7204_v48  ;;  %v1339_v13 = vcvt.s32.f32 %v827_v18  ;;  %v1341_v34 = vcvt.s32.f32 %v829_v42 }
 0x3e5   : > { %v853_v18 = vunpack.c.3.s8 %v7580_v32 }
 0x3e6   : > { %v3629_v12 = vadd.f32 %v3628_v6, %v3460_v26  ;;  %v3293_v35 = vadd.f32 %v3292_v40, %v3124_v7  ;;  %v837_v6 = vunpack.c.1.s8 %v7580_v32  ;;  %v1342_v7 = vcvt.s32.f32 %v830_v63 }
 0x3e8   : > { %v3764_v33 = vadd.f32 %v3629_v12, %v1964_v5  ;;  %v1349_v12 = vcvt.s32.f32 %v837_v6  ;;  %v1365_v6 = vcvt.s32.f32 %v853_v18 }
 0x3ea   : > { %3828 = vst [vmem:[#allocation2 + $0xe0] sm:$0xff] %v3764_v33  ;;  %v1708_v33 = vpack.c.bf16 %v1348_v49, %v1340_v59 }
 0x3eb   : > { %v3461_v38 = vpop.f32.mrf.mxu2  ;;  %v3126_v48 = vpop.f32.mrf.mxu0 }
 0x3ec   : > { %v3630_v25 = vpop.f32.mrf.mxu3  ;;  %v3462_v24 = vadd.f32 %v3461_v38, %v3293_v35  ;;  %v3295_v46 = vpop.f32.mrf.mxu1  ;;  %v3127_v11 = vadd.f32 %v3126_v48, %v7226_v8  ;;  %v835_v8 = vunpack.c.1.s8 %v7574_v21  ;;  %v1709_v35 = vpack.c.bf16 %v1349_v12, %v1341_v34  ;;  %v1967_v38 = vld [vmem:[#allocation2 + $0x140] sm:$0xff]  ;;  %v1969_v34 = vld [vmem:[#allocation2 + $0x1a8] sm:$0xff] }
 0x3ed   : > { %v843_v48 = vunpack.c.2.s8 %v7574_v21 }
 0x3ee   : > { %v3631_v47 = vadd.f32 %v3630_v25, %v3462_v24  ;;  %3165 = vmatmul.bf16.gmra.mxu0 %v1699_v1  ;;  %v3296_v29 = vadd.f32 %v3295_v46, %v3127_v11  ;;  %v1347_v40 = vcvt.s32.f32 %v835_v8  ;;  %v845_v11 = vunpack.c.2.s8 %v7580_v32  ;;  %v1968_v8 = vld [vmem:[#allocation2 + $0x80] sm:$0xff] }
 0x3ef   : > { %3334 = vmatmul.bf16.gmra.mxu1 %v1700_v44 }
 0x3f0   : > { %v3765_v30 = vadd.f32 %v3631_v47, %v1965_v19  ;;  %3503 = vmatmul.bf16.gmra.mxu2 %v1701_v28  ;;  %v1707_v10 = vpack.c.bf16 %v1347_v40, %v1339_v13  ;;  %v844_v19 = vunpack.c.2.s8 %v7577_v23  ;;  %v852_v47 = vunpack.c.3.s8 %v7577_v23 }
 0x3f1   : > { %3672 = vmatmul.bf16.gmra.mxu3 %v1702_v62  ;;  %v851_v62 = vunpack.c.3.s8 %v7574_v21  ;;  %v1355_v21 = vcvt.s32.f32 %v843_v48  ;;  %v1357_v23 = vcvt.s32.f32 %v845_v11 }
 0x3f2   : > { %3829 = vst [vmem:[#allocation2 + $0x188] sm:$0xff] %v3765_v30 }
 0x3f3   : > { %v3464_v3 = vpop.f32.mrf.mxu2  ;;  %v3128_v39 = vpop.f32.mrf.mxu0  ;;  %v1363_v42 = vcvt.s32.f32 %v851_v62  ;;  %v1717_v59 = vpack.c.bf16 %v1365_v6, %v1357_v23  ;;  %v1971_v6 = vld [vmem:[#allocation2 + $0x28] sm:$0xff] }
 0x3f4   : > { %v3633_v53 = vpop.f32.mrf.mxu3  ;;  %v3465_v52 = vadd.f32 %v3464_v3, %v3296_v29  ;;  %v3297_v57 = vpop.f32.mrf.mxu1  ;;  %v3129_v26 = vadd.f32 %v3128_v39, %v7228_v36  ;;  %v1710_v36 = vpack.c.bf16 %v1350_v54, %v1342_v7  ;;  %v846_v3 = vunpack.c.2.s8 %v7583_v22  ;;  %v7606_v7 = vld [vmem:[%s6919_s14 + $0x2a0] sm:$0xff] }
 0x3f5   : > { %v1364_v39 = vcvt.s32.f32 %v852_v47 }
 0x3f6   : > { %v3634_v16 = vadd.f32 %v3633_v53, %v3465_v52  ;;  %v3298_v43 = vadd.f32 %v3297_v57, %v3129_v26  ;;  %v854_v53 = vunpack.c.3.s8 %v7583_v22  ;;  %v1356_v52 = vcvt.s32.f32 %v844_v19 }
 0x3f7   : > { %v1358_v63 = vcvt.s32.f32 %v846_v3  ;;  %v1715_v26 = vpack.c.bf16 %v1363_v42, %v1355_v21 }
 0x3f8   : > { %v3766_v5 = vadd.f32 %v3634_v16, %v1966_v14  ;;  %v1366_v50 = vcvt.s32.f32 %v854_v53  ;;  %v1716_v22 = vpack.c.bf16 %v1364_v39, %v1356_v52 }
 0x3fa   : > { %3830 = vst [vmem:[#allocation2 + $0x138] sm:$0xff] %v3766_v5  ;;  %v1718_v49 = vpack.c.bf16 %v1366_v50, %v1358_v63 }
 0x3fb   : > { %v3466_v61 = vpop.f32.mrf.mxu2  ;;  %v3131_v37 = vpop.f32.mrf.mxu0 }
 0x3fc   : > { %v3635_v20 = vpop.f32.mrf.mxu3  ;;  %v3467_v56 = vadd.f32 %v3466_v61, %v3298_v43  ;;  %v3300_v27 = vpop.f32.mrf.mxu1  ;;  %v3132_v1 = vadd.f32 %v3131_v37, %v7241_v2  ;;  %v7609_v43 = vld [vmem:[%s6919_s14 + $0x2a8] sm:$0xff]  ;;  %v7612_v61 = vld [vmem:[%s6919_s14 + $0x2b0] sm:$0xff] }
 0x3fe   : > { %v3636_v25 = vadd.f32 %v3635_v20, %v3467_v56  ;;  %3170 = vmatmul.bf16.gmra.mxu0 %v1707_v10  ;;  %v3301_v24 = vadd.f32 %v3300_v27, %v3132_v1  ;;  %v7615_v20 = vld [vmem:[%s6919_s14 + $0x2b8] sm:$0xff]  ;;  %v860_v27 = vunpack.c.0.s8 %v7609_v43 }
 0x3ff   : > { %3339 = vmatmul.bf16.gmra.mxu1 %v1708_v33  ;;  %v859_v33 = vunpack.c.0.s8 %v7606_v7  ;;  %v870_v48 = vunpack.c.1.s8 %v7615_v20 }
 0x400   : > { %v3767_v44 = vadd.f32 %v3636_v25, %v1967_v38  ;;  %3508 = vmatmul.bf16.gmra.mxu2 %v1709_v35  ;;  %v868_v35 = vunpack.c.1.s8 %v7609_v43  ;;  %v1372_v11 = vcvt.s32.f32 %v860_v27 }
 0x401   : > { %3677 = vmatmul.bf16.gmra.mxu3 %v1710_v36  ;;  %v861_v36 = vunpack.c.0.s8 %v7612_v61  ;;  %v1371_v19 = vcvt.s32.f32 %v859_v33  ;;  %v1382_v53 = vcvt.s32.f32 %v870_v48 }
 0x402   : > { %3831 = vst [vmem:[#allocation2 + $0x140] sm:$0xff] %v3767_v44  ;;  %v869_v44 = vunpack.c.1.s8 %v7612_v61 }
 0x403   : > { %v3469_v46 = vpop.f32.mrf.mxu2  ;;  %v3133_v30 = vpop.f32.mrf.mxu0 }
 0x404   : > { %v3638_v28 = vpop.f32.mrf.mxu3  ;;  %v3470_v2 = vadd.f32 %v3469_v46, %v3301_v24  ;;  %v3302_v29 = vpop.f32.mrf.mxu1  ;;  %v3134_v45 = vadd.f32 %v3133_v30, %v7244_v31  ;;  %v862_v24 = vunpack.c.0.s8 %v7615_v20  ;;  %v1970_v46 = vld [vmem:[#allocation2 + $0x1b8] sm:$0xff]  ;;  %v1373_v30 = vcvt.s32.f32 %v861_v36 }
 0x405   : > { %v1381_v18 = vcvt.s32.f32 %v869_v44 }
 0x406   : > { %v3639_v17 = vadd.f32 %v3638_v28, %v3470_v2  ;;  %v3303_v32 = vadd.f32 %v3302_v29, %v3134_v45  ;;  %v1380_v2 = vcvt.s32.f32 %v868_v35  ;;  %v1374_v3 = vcvt.s32.f32 %v862_v24 }
 0x408   : > { %v3768_v57 = vadd.f32 %v3639_v17, %v1968_v8  ;;  %v1724_v42 = vpack.c.bf16 %v1380_v2, %v1372_v11  ;;  %v7638_v2 = vld [vmem:[%s6919_s14 + $0x2e0] sm:$0xff] }
 0x40a   : > { %3832 = vst [vmem:[#allocation2 + $0x80] sm:$0xff] %v3768_v57  ;;  %v1725_v57 = vpack.c.bf16 %v1381_v18, %v1373_v30  ;;  %v7644_v18 = vld [vmem:[%s6919_s14 + $0x2f0] sm:$0xff] }
 0x40b   : > { %v3471_v14 = vpop.f32.mrf.mxu2  ;;  %v3136_v31 = vpop.f32.mrf.mxu0 }
 0x40c   : > { %v3640_v16 = vpop.f32.mrf.mxu3  ;;  %v3472_v13 = vadd.f32 %v3471_v14, %v3303_v32  ;;  %v3305_v40 = vpop.f32.mrf.mxu1  ;;  %v3137_v12 = vadd.f32 %v3136_v31, %v7250_v55  ;;  %v867_v55 = vunpack.c.1.s8 %v7606_v7  ;;  %v876_v31 = vunpack.c.2.s8 %v7609_v43 }
 0x40e   : > { %v3641_v5 = vadd.f32 %v3640_v16, %v3472_v13  ;;  %3175 = vmatmul.bf16.gmra.mxu0 %v1715_v26  ;;  %v3306_v10 = vadd.f32 %v3305_v40, %v3137_v12  ;;  %v1379_v47 = vcvt.s32.f32 %v867_v55  ;;  %v875_v16 = vunpack.c.2.s8 %v7606_v7 }
 0x40f   : > { %3344 = vmatmul.bf16.gmra.mxu1 %v1716_v22  ;;  %v883_v13 = vunpack.c.3.s8 %v7606_v7  ;;  %v884_v40 = vunpack.c.3.s8 %v7609_v43  ;;  %v878_v12 = vunpack.c.2.s8 %v7615_v20  ;;  %v1388_v55 = vcvt.s32.f32 %v876_v31 }
 0x410   : > { %v3769_v54 = vadd.f32 %v3641_v5, %v1969_v34  ;;  %3513 = vmatmul.bf16.gmra.mxu2 %v1717_v59  ;;  %v1723_v21 = vpack.c.bf16 %v1379_v47, %v1371_v19  ;;  %v877_v59 = vunpack.c.2.s8 %v7612_v61  ;;  %v885_v5 = vunpack.c.3.s8 %v7612_v61  ;;  %v1973_v19 = vld [vmem:[#allocation2 + $0xf8] sm:$0xff] }
 0x411   : > { %3682 = vmatmul.bf16.gmra.mxu3 %v1718_v49  ;;  %v1387_v7 = vcvt.s32.f32 %v875_v16  ;;  %v1396_v27 = vcvt.s32.f32 %v884_v40 }
 0x412   : > { %3833 = vst [vmem:[#allocation2 + $0x1a8] sm:$0xff] %v3769_v54  ;;  %v886_v54 = vunpack.c.3.s8 %v7615_v20  ;;  %v1389_v43 = vcvt.s32.f32 %v877_v59  ;;  %v1397_v36 = vcvt.s32.f32 %v885_v5 }
 0x413   : > { %v3474_v56 = vpop.f32.mrf.mxu2  ;;  %v3138_v25 = vpop.f32.mrf.mxu0  ;;  %v1732_v20 = vpack.c.bf16 %v1396_v27, %v1388_v55  ;;  %v1975_v55 = vld [vmem:[#allocation2 + $0x30] sm:$0xff] }
 0x414   : > { %v3643_v37 = vpop.f32.mrf.mxu3  ;;  %v3475_v38 = vadd.f32 %v3474_v56, %v3306_v10  ;;  %v3307_v1 = vpop.f32.mrf.mxu1  ;;  %v3139_v62 = vadd.f32 %v3138_v25, %v7252_v15  ;;  %v1726_v15 = vpack.c.bf16 %v1382_v53, %v1374_v3  ;;  %v1972_v10 = vld [vmem:[#allocation2 + $0x1e8] sm:$0xff]  ;;  %v1398_v25 = vcvt.s32.f32 %v886_v54  ;;  %v7647_v3 = vld [vmem:[%s6919_s14 + $0x2f8] sm:$0xff] }
 0x416   : > { %v3644_v28 = vadd.f32 %v3643_v37, %v3475_v38  ;;  %v3308_v8 = vadd.f32 %v3307_v1, %v3139_v62  ;;  %v1395_v37 = vcvt.s32.f32 %v883_v13  ;;  %v1390_v38 = vcvt.s32.f32 %v878_v12 }
 0x418   : > { %v3770_v29 = vadd.f32 %v3644_v28, %v1970_v46  ;;  %v1731_v24 = vpack.c.bf16 %v1395_v37, %v1387_v7  ;;  %v1733_v28 = vpack.c.bf16 %v1397_v36, %v1389_v43  ;;  %v1734_v62 = vpack.c.bf16 %v1398_v25, %v1390_v38 }
 0x419   : > { %v907_v38 = vunpack.c.2.s8 %v7638_v2 }
 0x41a   : > { %3834 = vst [vmem:[#allocation2 + $0x1b8] sm:$0xff] %v3770_v29  ;;  %v7641_v29 = vld [vmem:[%s6919_s14 + $0x2e8] sm:$0xff] }
 0x41b   : > { %v3476_v17 = vpop.f32.mrf.mxu2  ;;  %v3141_v39 = vpop.f32.mrf.mxu0 }
 0x41c   : > { %v3645_v45 = vpop.f32.mrf.mxu3  ;;  %v3477_v52 = vadd.f32 %v3476_v17, %v3308_v8  ;;  %v3310_v23 = vpop.f32.mrf.mxu1  ;;  %v3142_v50 = vadd.f32 %v3141_v39, %v7254_v51  ;;  %v891_v8 = vunpack.c.0.s8 %v7638_v2 }
 0x41e   : > { %v3646_v63 = vadd.f32 %v3645_v45, %v3477_v52  ;;  %3180 = vmatmul.bf16.gmra.mxu0 %v1723_v21  ;;  %v3311_v14 = vadd.f32 %v3310_v23, %v3142_v50  ;;  %v892_v21 = vunpack.c.0.s8 %v7641_v29  ;;  %v893_v52 = vunpack.c.0.s8 %v7644_v18  ;;  %v1974_v50 = vld [vmem:[#allocation2 + $0x160] sm:$0xff] }
 0x41f   : > { %3349 = vmatmul.bf16.gmra.mxu1 %v1724_v42  ;;  %v900_v42 = vunpack.c.1.s8 %v7641_v29  ;;  %v1403_v16 = vcvt.s32.f32 %v891_v8 }
 0x420   : > { %v3771_v32 = vadd.f32 %v3646_v63, %v1971_v6  ;;  %3518 = vmatmul.bf16.gmra.mxu2 %v1725_v57  ;;  %v894_v6 = vunpack.c.0.s8 %v7647_v3  ;;  %v902_v63 = vunpack.c.1.s8 %v7647_v3  ;;  %v1405_v31 = vcvt.s32.f32 %v893_v52 }
 0x421   : > { %3687 = vmatmul.bf16.gmra.mxu3 %v1726_v15  ;;  %v901_v15 = vunpack.c.1.s8 %v7644_v18  ;;  %v1412_v13 = vcvt.s32.f32 %v900_v42 }
 0x422   : > { %3835 = vst [vmem:[#allocation2 + $0x28] sm:$0xff] %v3771_v32 }
 0x423   : > { %v3479_v26 = vpop.f32.mrf.mxu2  ;;  %v3143_v49 = vpop.f32.mrf.mxu0  ;;  %v1413_v59 = vcvt.s32.f32 %v901_v15 }
 0x424   : > { %v3648_v22 = vpop.f32.mrf.mxu3  ;;  %v3480_v51 = vadd.f32 %v3479_v26, %v3311_v14  ;;  %v3312_v34 = vpop.f32.mrf.mxu1  ;;  %v3144_v56 = vadd.f32 %v3143_v49, %v7256_v9  ;;  %v1414_v49 = vcvt.s32.f32 %v902_v63 }
 0x425   : > { %v1741_v37 = vpack.c.bf16 %v1413_v59, %v1405_v31  ;;  %v7673_v31 = vld [vmem:[%s6919_s14 + $0x328] sm:$0xff]  ;;  %v7679_v59 = vld [vmem:[%s6919_s14 + $0x338] sm:$0xff] }
 0x426   : > { %v3649_v33 = vadd.f32 %v3648_v22, %v3480_v51  ;;  %v3313_v61 = vadd.f32 %v3312_v34, %v3144_v56  ;;  %v1404_v22 = vcvt.s32.f32 %v892_v21  ;;  %v1406_v51 = vcvt.s32.f32 %v894_v6 }
 0x428   : > { %v3772_v35 = vadd.f32 %v3649_v33, %v1972_v10  ;;  %v1740_v10 = vpack.c.bf16 %v1412_v13, %v1404_v22  ;;  %v7670_v22 = vld [vmem:[%s6919_s14 + $0x320] sm:$0xff] }
 0x42a   : > { %3836 = vst [vmem:[#allocation2 + $0x1e8] sm:$0xff] %v3772_v35 }
 0x42b   : > { %v3481_v1 = vpop.f32.mrf.mxu2  ;;  %v3146_v9 = vpop.f32.mrf.mxu0 }
 0x42c   : > { %v3650_v44 = vpop.f32.mrf.mxu3  ;;  %v3482_v48 = vadd.f32 %v3481_v1, %v3313_v61  ;;  %v3315_v46 = vpop.f32.mrf.mxu1  ;;  %v3147_v11 = vadd.f32 %v3146_v9, %v7278_v41  ;;  %v899_v41 = vunpack.c.1.s8 %v7638_v2  ;;  %v915_v1 = vunpack.c.3.s8 %v7638_v2 }
 0x42d   : > { %v1419_v2 = vcvt.s32.f32 %v907_v38 }
 0x42e   : > { %v3651_v47 = vadd.f32 %v3650_v44, %v3482_v48  ;;  %3185 = vmatmul.bf16.gmra.mxu0 %v1731_v24  ;;  %v3316_v53 = vadd.f32 %v3315_v46, %v3147_v11  ;;  %v1411_v26 = vcvt.s32.f32 %v899_v41  ;;  %v908_v44 = vunpack.c.2.s8 %v7641_v29  ;;  %v8100_v11 = vld [vmem:[#allocation30_spill] sm:$0xff] }
 0x42f   : > { %3354 = vmatmul.bf16.gmra.mxu1 %v1732_v20  ;;  %v916_v24 = vunpack.c.3.s8 %v7641_v29  ;;  %v909_v20 = vunpack.c.2.s8 %v7644_v18  ;;  %v917_v46 = vunpack.c.3.s8 %v7644_v18 }
 0x430   : > { %v3773_v30 = vadd.f32 %v3651_v47, %v1973_v19  ;;  %3523 = vmatmul.bf16.gmra.mxu2 %v1733_v28  ;;  %v1739_v54 = vpack.c.bf16 %v1411_v26, %v1403_v16  ;;  %v910_v28 = vunpack.c.2.s8 %v7647_v3  ;;  %v1976_v19 = vld [vmem:[#allocation2 + $0x1e0] sm:$0xff]  ;;  %v1420_v8 = vcvt.s32.f32 %v908_v44  ;;  %v8101_v16 = vld [vmem:[#allocation31_spill] sm:$0xff] }
 0x431   : > { %3692 = vmatmul.bf16.gmra.mxu3 %v1734_v62  ;;  %v918_v62 = vunpack.c.3.s8 %v7647_v3  ;;  %v1421_v29 = vcvt.s32.f32 %v909_v20  ;;  %v1429_v41 = vcvt.s32.f32 %v917_v46 }
 0x432   : > { %3837 = vst [vmem:[#allocation2 + $0xf8] sm:$0xff] %v3773_v30  ;;  %v1422_v21 = vcvt.s32.f32 %v910_v28 }
 0x433   : > { %v3484_v17 = vpop.f32.mrf.mxu2  ;;  %v3148_v23 = vpop.f32.mrf.mxu0  ;;  %v1430_v42 = vcvt.s32.f32 %v918_v62  ;;  %v1749_v63 = vpack.c.bf16 %v1429_v41, %v1421_v29 }
 0x434   : > { %v3653_v45 = vpop.f32.mrf.mxu3  ;;  %v3485_v39 = vadd.f32 %v3484_v17, %v3316_v53  ;;  %v3317_v57 = vpop.f32.mrf.mxu1  ;;  %v3149_v14 = vadd.f32 %v3148_v23, %v7280_v58  ;;  %v1742_v58 = vpack.c.bf16 %v1414_v49, %v1406_v51  ;;  %v1427_v53 = vcvt.s32.f32 %v915_v1 }
 0x435   : > { %v1428_v17 = vcvt.s32.f32 %v916_v24  ;;  %v923_v49 = vunpack.c.0.s8 %v7670_v22 }
 0x436   : > { %v3654_v32 = vadd.f32 %v3653_v45, %v3485_v39  ;;  %v3318_v34 = vadd.f32 %v3317_v57, %v3149_v14  ;;  %v1747_v23 = vpack.c.bf16 %v1427_v53, %v1419_v2 }
 0x437   : > { %v1748_v3 = vpack.c.bf16 %v1428_v17, %v1420_v8  ;;  %v1979_v17 = vld [vmem:[#allocation2 + $0x8] sm:$0xff] }
 0x438   : > { %v3774_v40 = vadd.f32 %v3654_v32, %v1974_v50  ;;  %v1750_v50 = vpack.c.bf16 %v1430_v42, %v1422_v21  ;;  %v1977_v32 = vld [vmem:[#allocation2] sm:$0xff] }
 0x43a   : > { %3838 = vst [vmem:[#allocation2 + $0x160] sm:$0xff] %v3774_v40  ;;  %v7676_v40 = vld [vmem:[%s6919_s14 + $0x330] sm:$0xff] }
 0x43b   : > { %v3486_v5 = vpop.f32.mrf.mxu2  ;;  %v3151_v56 = vpop.f32.mrf.mxu0 }
 0x43c   : > { %v3655_v12 = vpop.f32.mrf.mxu3  ;;  %v3487_v33 = vadd.f32 %v3486_v5, %v3318_v34  ;;  %v3320_v7 = vpop.f32.mrf.mxu1  ;;  %v3152_v43 = vadd.f32 %v3151_v56, %v7293_v60 }
 0x43e   : > { %v3656_v27 = vadd.f32 %v3655_v12, %v3487_v33  ;;  %3190 = vmatmul.bf16.gmra.mxu0 %v1739_v54  ;;  %v3321_v36 = vadd.f32 %v3320_v7, %v3152_v43  ;;  %v931_v12 = vunpack.c.1.s8 %v7670_v22  ;;  %v924_v54 = vunpack.c.0.s8 %v7673_v31  ;;  %v1978_v43 = vld [vmem:[#allocation2 + $0xf0] sm:$0xff] }
 0x43f   : > { %3359 = vmatmul.bf16.gmra.mxu1 %v1740_v10  ;;  %v932_v10 = vunpack.c.1.s8 %v7673_v31  ;;  %v925_v33 = vunpack.c.0.s8 %v7676_v40 }
 0x440   : > { %v3775_v35 = vadd.f32 %v3656_v27, %v1975_v55  ;;  %3528 = vmatmul.bf16.gmra.mxu2 %v1741_v37  ;;  %v926_v55 = vunpack.c.0.s8 %v7679_v59  ;;  %v934_v27 = vunpack.c.1.s8 %v7679_v59  ;;  %v1436_v1 = vcvt.s32.f32 %v924_v54 }
 0x441   : > { %3697 = vmatmul.bf16.gmra.mxu3 %v1742_v58  ;;  %v933_v58 = vunpack.c.1.s8 %v7676_v40  ;;  %v1444_v44 = vcvt.s32.f32 %v932_v10  ;;  %v1437_v24 = vcvt.s32.f32 %v925_v33 }
 0x442   : > { %3839 = vst [vmem:[#allocation2 + $0x30] sm:$0xff] %v3775_v35 }
 0x443   : > { %v3489_v25 = vpop.f32.mrf.mxu2  ;;  %v3153_v48 = vpop.f32.mrf.mxu0 }
 0x444   : > { %v3658_v61 = vpop.f32.mrf.mxu3  ;;  %v3490_v60 = vadd.f32 %v3489_v25, %v3321_v36  ;;  %v3322_v9 = vpop.f32.mrf.mxu1  ;;  %v3154_v30 = vadd.f32 %v3153_v48, %v8100_v11  ;;  %v8102_v36 = vld [vmem:[#allocation32_spill] sm:$0xff]  ;;  %v1435_v25 = vcvt.s32.f32 %v923_v49  ;;  %v1438_v48 = vcvt.s32.f32 %v926_v55 }
 0x446   : > { %v3659_v47 = vadd.f32 %v3658_v61, %v3490_v60  ;;  %v3323_v18 = vadd.f32 %v3322_v9, %v3154_v30  ;;  %v1443_v61 = vcvt.s32.f32 %v931_v12  ;;  %v1445_v60 = vcvt.s32.f32 %v933_v58 }
 0x447   : > { %v1446_v9 = vcvt.s32.f32 %v934_v27 }
 0x448   : > { %v3776_v45 = vadd.f32 %v3659_v47, %v1976_v19  ;;  %v1755_v19 = vpack.c.bf16 %v1443_v61, %v1435_v25  ;;  %v1756_v47 = vpack.c.bf16 %v1444_v44, %v1436_v1  ;;  %v1757_v53 = vpack.c.bf16 %v1445_v60, %v1437_v24  ;;  %v8105_v61 = vld [vmem:[#allocation35_spill] sm:$0xff]  ;;  %v7702_v44 = vld [vmem:[%s6919_s14 + $0x360] sm:$0xff] }
 0x449   : > { %v1758_v8 = vpack.c.bf16 %v1446_v9, %v1438_v48  ;;  %v7708_v60 = vld [vmem:[%s6919_s14 + $0x370] sm:$0xff]  ;;  %v7711_v48 = vld [vmem:[%s6919_s14 + $0x378] sm:$0xff] }
 0x44a   : > { %3840 = vst [vmem:[#allocation2 + $0x1e0] sm:$0xff] %v3776_v45  ;;  %v8103_v45 = vld [vmem:[#allocation33_spill] sm:$0xff] }
 0x44b   : > { %v3491_v52 = vpop.f32.mrf.mxu2  ;;  %v3156_v15 = vpop.f32.mrf.mxu0 }
 0x44c   : > { %v3660_v39 = vpop.f32.mrf.mxu3  ;;  %v3492_v57 = vadd.f32 %v3491_v52, %v3323_v18  ;;  %v3325_v6 = vpop.f32.mrf.mxu1  ;;  %v3157_v26 = vadd.f32 %v3156_v15, %v8101_v16  ;;  %v939_v18 = vunpack.c.2.s8 %v7670_v22  ;;  %v941_v15 = vunpack.c.2.s8 %v7676_v40 }
 0x44d   : > { %v950_v16 = vunpack.c.3.s8 %v7679_v59 }
 0x44e   : > { %v3661_v14 = vadd.f32 %v3660_v39, %v3492_v57  ;;  %3195 = vmatmul.bf16.gmra.mxu0 %v1747_v23  ;;  %v3326_v51 = vadd.f32 %v3325_v6, %v3157_v26  ;;  %v947_v23 = vunpack.c.3.s8 %v7670_v22  ;;  %v948_v57 = vunpack.c.3.s8 %v7673_v31  ;;  %v1980_v26 = vld [vmem:[#allocation2 + $0x148] sm:$0xff] }
 0x44f   : > { %3364 = vmatmul.bf16.gmra.mxu1 %v1748_v3  ;;  %v940_v3 = vunpack.c.2.s8 %v7673_v31  ;;  %v1451_v22 = vcvt.s32.f32 %v939_v18  ;;  %v1453_v31 = vcvt.s32.f32 %v941_v15 }
 0x450   : > { %v3777_v13 = vadd.f32 %v3661_v14, %v1977_v32  ;;  %3533 = vmatmul.bf16.gmra.mxu2 %v1749_v63  ;;  %v949_v32 = vunpack.c.3.s8 %v7676_v40  ;;  %v942_v14 = vunpack.c.2.s8 %v7679_v59  ;;  %v1460_v12 = vcvt.s32.f32 %v948_v57 }
 0x451   : > { %3702 = vmatmul.bf16.gmra.mxu3 %v1750_v50 }
 0x452   : > { %3841 = vst [vmem:[#allocation2] sm:$0xff] %v3777_v13  ;;  %v1461_v10 = vcvt.s32.f32 %v949_v32  ;;  %v1454_v33 = vcvt.s32.f32 %v942_v14 }
 0x453   : > { %v3494_v34 = vpop.f32.mrf.mxu2  ;;  %v3158_v7 = vpop.f32.mrf.mxu0 }
 0x454   : > { %v3663_v5 = vpop.f32.mrf.mxu3  ;;  %v3495_v56 = vadd.f32 %v3494_v34, %v3326_v51  ;;  %v3327_v37 = vpop.f32.mrf.mxu1  ;;  %v3159_v38 = vadd.f32 %v3158_v7, %v8102_v36  ;;  %v8104_v51 = vld [vmem:[#allocation34_spill] sm:$0xff]  ;;  %v1459_v34 = vcvt.s32.f32 %v947_v23 }
 0x456   : > { %v3664_v35 = vadd.f32 %v3663_v5, %v3495_v56  ;;  %v3328_v46 = vadd.f32 %v3327_v37, %v3159_v38  ;;  %v1452_v5 = vcvt.s32.f32 %v940_v3  ;;  %v1462_v56 = vcvt.s32.f32 %v950_v16  ;;  %v1981_v38 = vld [vmem:[#allocation2 + $0x1d0] sm:$0xff] }
 0x457   : > { %v1763_v58 = vpack.c.bf16 %v1459_v34, %v1451_v22 }
 0x458   : > { %v3778_v20 = vadd.f32 %v3664_v35, %v1978_v43  ;;  %v1764_v59 = vpack.c.bf16 %v1460_v12, %v1452_v5  ;;  %v1765_v35 = vpack.c.bf16 %v1461_v10, %v1453_v31  ;;  %v1766_v36 = vpack.c.bf16 %v1462_v56, %v1454_v33  ;;  %v1983_v12 = vld [vmem:[#allocation2 + $0xc8] sm:$0xff] }
 0x45a   : > { %3842 = vst [vmem:[#allocation2 + $0xf0] sm:$0xff] %v3778_v20  ;;  %v7705_v20 = vld [vmem:[%s6919_s14 + $0x368] sm:$0xff] }
 0x45b   : > { %v3496_v28 = vpop.f32.mrf.mxu2  ;;  %v3161_v30 = vpop.f32.mrf.mxu0 }
 0x45c   : > { %v3665_v62 = vpop.f32.mrf.mxu3  ;;  %v3497_v11 = vadd.f32 %v3496_v28, %v3328_v46  ;;  %v3330_v2 = vpop.f32.mrf.mxu1  ;;  %v3162_v41 = vadd.f32 %v3161_v30, %v8103_v45  ;;  %v955_v46 = vunpack.c.0.s8 %v7702_v44  ;;  %v957_v30 = vunpack.c.0.s8 %v7708_v60 }
 0x45d   : > { %v966_v45 = vunpack.c.1.s8 %v7711_v48 }
 0x45e   : > { %v3666_v29 = vadd.f32 %v3665_v62, %v3497_v11  ;;  %3200 = vmatmul.bf16.gmra.mxu0 %v1755_v19  ;;  %v3331_v42 = vadd.f32 %v3330_v2, %v3162_v41  ;;  %v963_v19 = vunpack.c.1.s8 %v7702_v44  ;;  %v964_v11 = vunpack.c.1.s8 %v7705_v20  ;;  %v1982_v41 = vld [vmem:[#allocation2 + $0x100] sm:$0xff] }
 0x45f   : > { %3369 = vmatmul.bf16.gmra.mxu1 %v1756_v47  ;;  %v956_v47 = vunpack.c.0.s8 %v7705_v20  ;;  %v1469_v57 = vcvt.s32.f32 %v957_v30 }
 0x460   : > { %v3779_v21 = vadd.f32 %v3666_v29, %v1979_v17  ;;  %3538 = vmatmul.bf16.gmra.mxu2 %v1757_v53  ;;  %v965_v17 = vunpack.c.1.s8 %v7708_v60  ;;  %v958_v29 = vunpack.c.0.s8 %v7711_v48  ;;  %v1476_v3 = vcvt.s32.f32 %v964_v11 }
 0x461   : > { %3707 = vmatmul.bf16.gmra.mxu3 %v1758_v8  ;;  %v1468_v23 = vcvt.s32.f32 %v956_v47 }
 0x462   : > { %3843 = vst [vmem:[#allocation2 + $0x8] sm:$0xff] %v3779_v21 }
 0x463   : > { %v3499_v52 = vpop.f32.mrf.mxu2  ;;  %v3163_v63 = vpop.f32.mrf.mxu0 }
 0x464   : > { %v3668_v39 = vpop.f32.mrf.mxu3  ;;  %v3500_v6 = vadd.f32 %v3499_v52, %v3331_v42  ;;  %v3332_v50 = vpop.f32.mrf.mxu1  ;;  %v3164_v49 = vadd.f32 %v3163_v63, %v8104_v51  ;;  %v8106_v42 = vld [vmem:[#allocation36_spill] sm:$0xff]  ;;  %v1467_v52 = vcvt.s32.f32 %v955_v46  ;;  %v1470_v63 = vcvt.s32.f32 %v958_v29 }
 0x466   : > { %v3669_v13 = vadd.f32 %v3668_v39, %v3500_v6  ;;  %v3333_v40 = vadd.f32 %v3332_v50, %v3164_v49  ;;  %v1475_v39 = vcvt.s32.f32 %v963_v19  ;;  %v1477_v6 = vcvt.s32.f32 %v965_v17 }
 0x467   : > { %v1478_v50 = vcvt.s32.f32 %v966_v45 }
 0x468   : > { %v3780_v54 = vadd.f32 %v3669_v13, %v1980_v26  ;;  %v1771_v26 = vpack.c.bf16 %v1475_v39, %v1467_v52  ;;  %v1772_v13 = vpack.c.bf16 %v1476_v3, %v1468_v23  ;;  %v1773_v34 = vpack.c.bf16 %v1477_v6, %v1469_v57  ;;  %v8109_v39 = vld [vmem:[#allocation39_spill] sm:$0xff]  ;;  %v7734_v3 = vld [vmem:[%s6919_s14 + $0x3a0] sm:$0xff] }
 0x469   : > { %v1774_v5 = vpack.c.bf16 %v1478_v50, %v1470_v63  ;;  %v7740_v6 = vld [vmem:[%s6919_s14 + $0x3b0] sm:$0xff]  ;;  %v7743_v63 = vld [vmem:[%s6919_s14 + $0x3b8] sm:$0xff] }
 0x46a   : > { %3844 = vst [vmem:[#allocation2 + $0x148] sm:$0xff] %v3780_v54  ;;  %v8107_v54 = vld [vmem:[#allocation37_spill] sm:$0xff] }
 0x46b   : > { %v3501_v7 = vpop.f32.mrf.mxu2  ;;  %v3166_v27 = vpop.f32.mrf.mxu0 }
 0x46c   : > { %v3670_v37 = vpop.f32.mrf.mxu3  ;;  %v3502_v55 = vadd.f32 %v3501_v7, %v3333_v40  ;;  %v3335_v43 = vpop.f32.mrf.mxu1  ;;  %v3167_v1 = vadd.f32 %v3166_v27, %v8105_v61  ;;  %v971_v40 = vunpack.c.2.s8 %v7702_v44  ;;  %v973_v27 = vunpack.c.2.s8 %v7708_v60 }
 0x46d   : > { %v982_v61 = vunpack.c.3.s8 %v7711_v48 }
 0x46e   : > { %v3671_v25 = vadd.f32 %v3670_v37, %v3502_v55  ;;  %3205 = vmatmul.bf16.gmra.mxu0 %v1763_v58  ;;  %v3336_v9 = vadd.f32 %v3335_v43, %v3167_v1  ;;  %v979_v58 = vunpack.c.3.s8 %v7702_v44  ;;  %v980_v55 = vunpack.c.3.s8 %v7705_v20  ;;  %v1984_v1 = vld [vmem:[#allocation2 + $0x40] sm:$0xff] }
 0x46f   : > { %3374 = vmatmul.bf16.gmra.mxu1 %v1764_v59  ;;  %v972_v59 = vunpack.c.2.s8 %v7705_v20  ;;  %v1483_v44 = vcvt.s32.f32 %v971_v40  ;;  %v1485_v20 = vcvt.s32.f32 %v973_v27 }
 0x470   : > { %v3781_v24 = vadd.f32 %v3671_v25, %v1981_v38  ;;  %3543 = vmatmul.bf16.gmra.mxu2 %v1765_v35  ;;  %v981_v38 = vunpack.c.3.s8 %v7708_v60  ;;  %v974_v25 = vunpack.c.2.s8 %v7711_v48  ;;  %v1492_v19 = vcvt.s32.f32 %v980_v55 }
 0x471   : > { %3712 = vmatmul.bf16.gmra.mxu3 %v1766_v36 }
 0x472   : > { %3845 = vst [vmem:[#allocation2 + $0x1d0] sm:$0xff] %v3781_v24  ;;  %v1493_v11 = vcvt.s32.f32 %v981_v38  ;;  %v1486_v30 = vcvt.s32.f32 %v974_v25 }
 0x473   : > { %v3504_v28 = vpop.f32.mrf.mxu2  ;;  %v3168_v53 = vpop.f32.mrf.mxu0 }
 0x474   : > { %v3673_v62 = vpop.f32.mrf.mxu3  ;;  %v3505_v2 = vadd.f32 %v3504_v28, %v3336_v9  ;;  %v3337_v8 = vpop.f32.mrf.mxu1  ;;  %v3169_v18 = vadd.f32 %v3168_v53, %v8106_v42  ;;  %v8108_v9 = vld [vmem:[#allocation38_spill] sm:$0xff]  ;;  %v1491_v28 = vcvt.s32.f32 %v979_v58 }
 0x476   : > { %v3674_v21 = vadd.f32 %v3673_v62, %v3505_v2  ;;  %v3338_v32 = vadd.f32 %v3337_v8, %v3169_v18  ;;  %v1484_v62 = vcvt.s32.f32 %v972_v59  ;;  %v1494_v2 = vcvt.s32.f32 %v982_v61  ;;  %v1985_v18 = vld [vmem:[#allocation2 + $0x1f8] sm:$0xff] }
 0x477   : > { %v1779_v17 = vpack.c.bf16 %v1491_v28, %v1483_v44 }
 0x478   : > { %v3782_v15 = vadd.f32 %v3674_v21, %v1982_v41  ;;  %v1780_v48 = vpack.c.bf16 %v1492_v19, %v1484_v62  ;;  %v1781_v21 = vpack.c.bf16 %v1493_v11, %v1485_v20  ;;  %v1782_v42 = vpack.c.bf16 %v1494_v2, %v1486_v30  ;;  %v1987_v19 = vld [vmem:[#allocation2 + $0x128] sm:$0xff] }
 0x47a   : > { %3846 = vst [vmem:[#allocation2 + $0x100] sm:$0xff] %v3782_v15  ;;  %v7737_v15 = vld [vmem:[%s6919_s14 + $0x3a8] sm:$0xff] }
 0x47b   : > { %v3506_v14 = vpop.f32.mrf.mxu2  ;;  %v3171_v49 = vpop.f32.mrf.mxu0 }
 0x47c   : > { %v3675_v16 = vpop.f32.mrf.mxu3  ;;  %v3507_v51 = vadd.f32 %v3506_v14, %v3338_v32  ;;  %v3340_v22 = vpop.f32.mrf.mxu1  ;;  %v3172_v10 = vadd.f32 %v3171_v49, %v8107_v54  ;;  %v987_v32 = vunpack.c.0.s8 %v7734_v3  ;;  %v989_v49 = vunpack.c.0.s8 %v7740_v6 }
 0x47d   : > { %v998_v54 = vunpack.c.1.s8 %v7743_v63 }
 0x47e   : > { %v3676_v31 = vadd.f32 %v3675_v16, %v3507_v51  ;;  %3210 = vmatmul.bf16.gmra.mxu0 %v1771_v26  ;;  %v3341_v56 = vadd.f32 %v3340_v22, %v3172_v10  ;;  %v995_v26 = vunpack.c.1.s8 %v7734_v3  ;;  %v996_v51 = vunpack.c.1.s8 %v7737_v15  ;;  %v1986_v10 = vld [vmem:[#allocation2 + $0x20] sm:$0xff] }
 0x47f   : > { %3379 = vmatmul.bf16.gmra.mxu1 %v1772_v13  ;;  %v988_v13 = vunpack.c.0.s8 %v7737_v15  ;;  %v1501_v55 = vcvt.s32.f32 %v989_v49 }
 0x480   : > { %v3783_v33 = vadd.f32 %v3676_v31, %v1983_v12  ;;  %3548 = vmatmul.bf16.gmra.mxu2 %v1773_v34  ;;  %v997_v12 = vunpack.c.1.s8 %v7740_v6  ;;  %v990_v31 = vunpack.c.0.s8 %v7743_v63  ;;  %v1508_v59 = vcvt.s32.f32 %v996_v51 }
 0x481   : > { %3717 = vmatmul.bf16.gmra.mxu3 %v1774_v5  ;;  %v1500_v58 = vcvt.s32.f32 %v988_v13 }
 0x482   : > { %3847 = vst [vmem:[#allocation2 + $0xc8] sm:$0xff] %v3783_v33 }
 0x483   : > { %v3509_v7 = vpop.f32.mrf.mxu2  ;;  %v3173_v35 = vpop.f32.mrf.mxu0 }
 0x484   : > { %v3678_v37 = vpop.f32.mrf.mxu3  ;;  %v3510_v43 = vadd.f32 %v3509_v7, %v3341_v56  ;;  %v3342_v36 = vpop.f32.mrf.mxu1  ;;  %v3174_v46 = vadd.f32 %v3173_v35, %v8108_v9  ;;  %v8110_v56 = vld [vmem:[#allocation40_spill] sm:$0xff]  ;;  %v1499_v7 = vcvt.s32.f32 %v987_v32  ;;  %v1502_v35 = vcvt.s32.f32 %v990_v31 }
 0x486   : > { %v3679_v24 = vadd.f32 %v3678_v37, %v3510_v43  ;;  %v3343_v60 = vadd.f32 %v3342_v36, %v3174_v46  ;;  %v1507_v37 = vcvt.s32.f32 %v995_v26  ;;  %v1509_v43 = vcvt.s32.f32 %v997_v12 }
 0x487   : > { %v1510_v36 = vcvt.s32.f32 %v998_v54 }
 0x488   : > { %v3784_v47 = vadd.f32 %v3679_v24, %v1984_v1  ;;  %v1787_v1 = vpack.c.bf16 %v1507_v37, %v1499_v7  ;;  %v1788_v24 = vpack.c.bf16 %v1508_v59, %v1500_v58  ;;  %v1789_v28 = vpack.c.bf16 %v1509_v43, %v1501_v55  ;;  %v8113_v37 = vld [vmem:[#allocation43_spill] sm:$0xff]  ;;  %v7766_v59 = vld [vmem:[%s6919_s14 + $0x3e0] sm:$0xff] }
 0x489   : > { %v1790_v62 = vpack.c.bf16 %v1510_v36, %v1502_v35  ;;  %v7772_v43 = vld [vmem:[%s6919_s14 + $0x3f0] sm:$0xff]  ;;  %v7775_v35 = vld [vmem:[%s6919_s14 + $0x3f8] sm:$0xff] }
 0x48a   : > { %3848 = vst [vmem:[#allocation2 + $0x40] sm:$0xff] %v3784_v47  ;;  %v8111_v47 = vld [vmem:[#allocation41_spill] sm:$0xff] }
 0x48b   : > { %v3511_v53 = vpop.f32.mrf.mxu2  ;;  %v3176_v45 = vpop.f32.mrf.mxu0 }
 0x48c   : > { %v3680_v8 = vpop.f32.mrf.mxu3  ;;  %v3512_v29 = vadd.f32 %v3511_v53, %v3343_v60  ;;  %v3345_v41 = vpop.f32.mrf.mxu1  ;;  %v3177_v23 = vadd.f32 %v3176_v45, %v8109_v39  ;;  %v1003_v60 = vunpack.c.2.s8 %v7734_v3  ;;  %v1005_v45 = vunpack.c.2.s8 %v7740_v6 }
 0x48d   : > { %v1014_v39 = vunpack.c.3.s8 %v7743_v63 }
 0x48e   : > { %v3681_v52 = vadd.f32 %v3680_v8, %v3512_v29  ;;  %3215 = vmatmul.bf16.gmra.mxu0 %v1779_v17  ;;  %v3346_v50 = vadd.f32 %v3345_v41, %v3177_v23  ;;  %v1011_v17 = vunpack.c.3.s8 %v7734_v3  ;;  %v1012_v29 = vunpack.c.3.s8 %v7737_v15  ;;  %v1988_v23 = vld [vmem:[#allocation2 + $0x1a0] sm:$0xff] }
 0x48f   : > { %3384 = vmatmul.bf16.gmra.mxu1 %v1780_v48  ;;  %v1004_v48 = vunpack.c.2.s8 %v7737_v15  ;;  %v1515_v3 = vcvt.s32.f32 %v1003_v60  ;;  %v1517_v15 = vcvt.s32.f32 %v1005_v45 }
 0x490   : > { %v3785_v57 = vadd.f32 %v3681_v52, %v1985_v18  ;;  %3553 = vmatmul.bf16.gmra.mxu2 %v1781_v21  ;;  %v1013_v18 = vunpack.c.3.s8 %v7740_v6  ;;  %v1006_v52 = vunpack.c.2.s8 %v7743_v63  ;;  %v1524_v26 = vcvt.s32.f32 %v1012_v29 }
 0x491   : > { %3722 = vmatmul.bf16.gmra.mxu3 %v1782_v42 }
 0x492   : > { %3849 = vst [vmem:[#allocation2 + $0x1f8] sm:$0xff] %v3785_v57  ;;  %v1525_v51 = vcvt.s32.f32 %v1013_v18  ;;  %v1518_v49 = vcvt.s32.f32 %v1006_v52 }
 0x493   : > { %v3514_v14 = vpop.f32.mrf.mxu2  ;;  %v3178_v34 = vpop.f32.mrf.mxu0 }
 0x494   : > { %v3683_v16 = vpop.f32.mrf.mxu3  ;;  %v3515_v22 = vadd.f32 %v3514_v14, %v3346_v50  ;;  %v3347_v5 = vpop.f32.mrf.mxu1  ;;  %v3179_v40 = vadd.f32 %v3178_v34, %v8110_v56  ;;  %v8112_v50 = vld [vmem:[#allocation42_spill] sm:$0xff]  ;;  %v1523_v14 = vcvt.s32.f32 %v1011_v17 }
 0x496   : > { %v3684_v33 = vadd.f32 %v3683_v16, %v3515_v22  ;;  %v3348_v38 = vadd.f32 %v3347_v5, %v3179_v40  ;;  %v1516_v16 = vcvt.s32.f32 %v1004_v48  ;;  %v1526_v22 = vcvt.s32.f32 %v1014_v39  ;;  %v1989_v40 = vld [vmem:[#allocation2 + $0x1f0] sm:$0xff] }
 0x497   : > { %v1795_v12 = vpack.c.bf16 %v1523_v14, %v1515_v3 }
 0x498   : > { %v3786_v27 = vadd.f32 %v3684_v33, %v1986_v10  ;;  %v1796_v63 = vpack.c.bf16 %v1524_v26, %v1516_v16  ;;  %v1797_v33 = vpack.c.bf16 %v1525_v51, %v1517_v15  ;;  %v1798_v56 = vpack.c.bf16 %v1526_v22, %v1518_v49  ;;  %v1991_v26 = vld [vmem:[#allocation2 + $0x78] sm:$0xff] }
 0x49a   : > { %3850 = vst [vmem:[#allocation2 + $0x20] sm:$0xff] %v3786_v27  ;;  %v7769_v27 = vld [vmem:[%s6919_s14 + $0x3e8] sm:$0xff] }
 0x49b   : > { %v3516_v25 = vpop.f32.mrf.mxu2  ;;  %v3181_v46 = vpop.f32.mrf.mxu0 }
 0x49c   : > { %v3685_v61 = vpop.f32.mrf.mxu3  ;;  %v3517_v9 = vadd.f32 %v3516_v25, %v3348_v38  ;;  %v3350_v44 = vpop.f32.mrf.mxu1  ;;  %v3182_v11 = vadd.f32 %v3181_v46, %v8111_v47  ;;  %v1019_v38 = vunpack.c.0.s8 %v7766_v59  ;;  %v1021_v46 = vunpack.c.0.s8 %v7772_v43 }
 0x49d   : > { %v1030_v47 = vunpack.c.1.s8 %v7775_v35 }
 0x49e   : > { %v3686_v20 = vadd.f32 %v3685_v61, %v3517_v9  ;;  %3220 = vmatmul.bf16.gmra.mxu0 %v1787_v1  ;;  %v3351_v2 = vadd.f32 %v3350_v44, %v3182_v11  ;;  %v1027_v1 = vunpack.c.1.s8 %v7766_v59  ;;  %v1028_v9 = vunpack.c.1.s8 %v7769_v27  ;;  %v1990_v11 = vld [vmem:[#allocation2 + $0xe8] sm:$0xff] }
 0x49f   : > { %3389 = vmatmul.bf16.gmra.mxu1 %v1788_v24  ;;  %v1020_v24 = vunpack.c.0.s8 %v7769_v27  ;;  %v1533_v29 = vcvt.s32.f32 %v1021_v46 }
 0x4a0   : > { %v3787_v30 = vadd.f32 %v3686_v20, %v1987_v19  ;;  %3558 = vmatmul.bf16.gmra.mxu2 %v1789_v28  ;;  %v1029_v19 = vunpack.c.1.s8 %v7772_v43  ;;  %v1022_v20 = vunpack.c.0.s8 %v7775_v35  ;;  %v1540_v48 = vcvt.s32.f32 %v1028_v9 }
 0x4a1   : > { %3727 = vmatmul.bf16.gmra.mxu3 %v1790_v62  ;;  %v1532_v17 = vcvt.s32.f32 %v1020_v24 }
 0x4a2   : > { %3851 = vst [vmem:[#allocation2 + $0x128] sm:$0xff] %v3787_v30 }
 0x4a3   : > { %v3519_v53 = vpop.f32.mrf.mxu2  ;;  %v3183_v21 = vpop.f32.mrf.mxu0 }
 0x4a4   : > { %v3688_v8 = vpop.f32.mrf.mxu3  ;;  %v3520_v41 = vadd.f32 %v3519_v53, %v3351_v2  ;;  %v3352_v42 = vpop.f32.mrf.mxu1  ;;  %v3184_v32 = vadd.f32 %v3183_v21, %v8112_v50  ;;  %v8114_v2 = vld [vmem:[#allocation44_spill] sm:$0xff]  ;;  %v1531_v53 = vcvt.s32.f32 %v1019_v38  ;;  %v1534_v21 = vcvt.s32.f32 %v1022_v20 }
 0x4a6   : > { %v3689_v57 = vadd.f32 %v3688_v8, %v3520_v41  ;;  %v3353_v6 = vadd.f32 %v3352_v42, %v3184_v32  ;;  %v1539_v8 = vcvt.s32.f32 %v1027_v1  ;;  %v1541_v41 = vcvt.s32.f32 %v1029_v19 }
 0x4a7   : > { %v1542_v42 = vcvt.s32.f32 %v1030_v47 }
 0x4a8   : > { %v3788_v13 = vadd.f32 %v3689_v57, %v1988_v23  ;;  %v1803_v23 = vpack.c.bf16 %v1539_v8, %v1531_v53  ;;  %v1804_v57 = vpack.c.bf16 %v1540_v48, %v1532_v17  ;;  %v1805_v14 = vpack.c.bf16 %v1541_v41, %v1533_v29  ;;  %v8117_v8 = vld [vmem:[#allocation47_spill] sm:$0xff] }
 0x4a9   : > { %v1806_v16 = vpack.c.bf16 %v1542_v42, %v1534_v21 }
 0x4aa   : > { %3852 = vst [vmem:[#allocation2 + $0x1a0] sm:$0xff] %v3788_v13  ;;  %v8115_v13 = vld [vmem:[#allocation45_spill] sm:$0xff] }
 0x4ab   : > { %v3521_v34 = vpop.f32.mrf.mxu2  ;;  %v3186_v54 = vpop.f32.mrf.mxu0 }
 0x4ac   : > { %v3690_v5 = vpop.f32.mrf.mxu3  ;;  %v3522_v31 = vadd.f32 %v3521_v34, %v3353_v6  ;;  %v3355_v10 = vpop.f32.mrf.mxu1  ;;  %v3187_v58 = vadd.f32 %v3186_v54, %v8113_v37  ;;  %v1035_v6 = vunpack.c.2.s8 %v7766_v59  ;;  %v1037_v54 = vunpack.c.2.s8 %v7772_v43 }
 0x4ad   : > { %v1046_v37 = vunpack.c.3.s8 %v7775_v35 }
 0x4ae   : > { %v3691_v7 = vadd.f32 %v3690_v5, %v3522_v31  ;;  %3225 = vmatmul.bf16.gmra.mxu0 %v1795_v12  ;;  %v3356_v36 = vadd.f32 %v3355_v10, %v3187_v58  ;;  %v1043_v12 = vunpack.c.3.s8 %v7766_v59  ;;  %v1044_v31 = vunpack.c.3.s8 %v7769_v27  ;;  %v1992_v58 = vld [vmem:[#allocation2 + $0x70] sm:$0xff] }
 0x4af   : > { %3394 = vmatmul.bf16.gmra.mxu1 %v1796_v63  ;;  %v1036_v63 = vunpack.c.2.s8 %v7769_v27  ;;  %v1547_v59 = vcvt.s32.f32 %v1035_v6  ;;  %v1549_v27 = vcvt.s32.f32 %v1037_v54 }
 0x4b0   : > { %v3789_v55 = vadd.f32 %v3691_v7, %v1989_v40  ;;  %3563 = vmatmul.bf16.gmra.mxu2 %v1797_v33  ;;  %v1045_v40 = vunpack.c.3.s8 %v7772_v43  ;;  %v1038_v7 = vunpack.c.2.s8 %v7775_v35  ;;  %v1556_v1 = vcvt.s32.f32 %v1044_v31 }
 0x4b1   : > { %3732 = vmatmul.bf16.gmra.mxu3 %v1798_v56 }
 0x4b2   : > { %3853 = vst [vmem:[#allocation2 + $0x1f0] sm:$0xff] %v3789_v55  ;;  %v1557_v9 = vcvt.s32.f32 %v1045_v40  ;;  %v1550_v46 = vcvt.s32.f32 %v1038_v7 }
 0x4b3   : > { %v3524_v25 = vpop.f32.mrf.mxu2  ;;  %v3188_v28 = vpop.f32.mrf.mxu0 }
 0x4b4   : > { %v3693_v61 = vpop.f32.mrf.mxu3  ;;  %v3525_v44 = vadd.f32 %v3524_v25, %v3356_v36  ;;  %v3357_v62 = vpop.f32.mrf.mxu1  ;;  %v3189_v60 = vadd.f32 %v3188_v28, %v8114_v2  ;;  %v8116_v36 = vld [vmem:[#allocation46_spill] sm:$0xff]  ;;  %v1555_v25 = vcvt.s32.f32 %v1043_v12 }
 0x4b6   : > { %v3694_v30 = vadd.f32 %v3693_v61, %v3525_v44  ;;  %v3358_v18 = vadd.f32 %v3357_v62, %v3189_v60  ;;  %v1548_v61 = vcvt.s32.f32 %v1036_v63  ;;  %v1558_v44 = vcvt.s32.f32 %v1046_v37  ;;  %v1993_v60 = vld [vmem:[#allocation2 + $0x90] sm:$0xff] }
 0x4b7   : > { %v1811_v19 = vpack.c.bf16 %v1555_v25, %v1547_v59  ;;  %v1997_v25 = vld [vmem:[#allocation2 + $0x88] sm:$0xff] }
 0x4b8   : > { %v3790_v45 = vadd.f32 %v3694_v30, %v1990_v11  ;;  %v1812_v20 = vpack.c.bf16 %v1556_v1, %v1548_v61  ;;  %v1813_v30 = vpack.c.bf16 %v1557_v9, %v1549_v27  ;;  %v1814_v2 = vpack.c.bf16 %v1558_v44, %v1550_v46  ;;  %v8121_v1 = vld [vmem:[#allocation51_spill] sm:$0xff] }
 0x4ba   : > { %3854 = vst [vmem:[#allocation2 + $0xe8] sm:$0xff] %v3790_v45 }
 0x4bb   : > { %v3526_v52 = vpop.f32.mrf.mxu2  ;;  %v3191_v32 = vpop.f32.mrf.mxu0 }
 0x4bc   : > { %v3695_v39 = vpop.f32.mrf.mxu3  ;;  %v3527_v50 = vadd.f32 %v3526_v52, %v3358_v18  ;;  %v3360_v3 = vpop.f32.mrf.mxu1  ;;  %v3192_v51 = vadd.f32 %v3191_v32, %v8115_v13  ;;  %v1994_v52 = vld [vmem:[#allocation2 + $0x1d8] sm:$0xff]  ;;  %v1995_v13 = vld [vmem:[#allocation2 + $0xd0] sm:$0xff] }
 0x4be   : > { %v3696_v15 = vadd.f32 %v3695_v39, %v3527_v50  ;;  %3230 = vmatmul.bf16.gmra.mxu0 %v1803_v23  ;;  %v3361_v22 = vadd.f32 %v3360_v3, %v3192_v51  ;;  %v8118_v23 = vld [vmem:[#allocation48_spill] sm:$0xff] }
 0x4bf   : > { %3399 = vmatmul.bf16.gmra.mxu1 %v1804_v57 }
 0x4c0   : > { %v3791_v49 = vadd.f32 %v3696_v15, %v1991_v26  ;;  %3568 = vmatmul.bf16.gmra.mxu2 %v1805_v14 }
 0x4c1   : > { %3737 = vmatmul.bf16.gmra.mxu3 %v1806_v16 }
 0x4c2   : > { %3855 = vst [vmem:[#allocation2 + $0x78] sm:$0xff] %v3791_v49  ;;  %v8119_v49 = vld [vmem:[#allocation49_spill] sm:$0xff] }
 0x4c3   : > { %v3529_v34 = vpop.f32.mrf.mxu2  ;;  %v3193_v33 = vpop.f32.mrf.mxu0 }
 0x4c4   : > { %v3698_v5 = vpop.f32.mrf.mxu3  ;;  %v3530_v10 = vadd.f32 %v3529_v34, %v3361_v22  ;;  %v3362_v56 = vpop.f32.mrf.mxu1  ;;  %v3194_v38 = vadd.f32 %v3193_v33, %v8116_v36 }
 0x4c6   : > { %v3699_v55 = vadd.f32 %v3698_v5, %v3530_v10  ;;  %v3363_v28 = vadd.f32 %v3362_v56, %v3194_v38  ;;  %v1996_v10 = vld [vmem:[#allocation2 + $0xb8] sm:$0xff]  ;;  %v8120_v56 = vld [vmem:[#allocation50_spill] sm:$0xff] }
 0x4c8   : > { %v3792_v24 = vadd.f32 %v3699_v55, %v1992_v58 }
 0x4ca   : > { %3856 = vst [vmem:[#allocation2 + $0x70] sm:$0xff] %v3792_v24 }
 0x4cb   : > { %v3531_v43 = vpop.f32.mrf.mxu2  ;;  %v3196_v47 = vpop.f32.mrf.mxu0 }
 0x4cc   : > { %v3700_v62 = vpop.f32.mrf.mxu3  ;;  %v3532_v35 = vadd.f32 %v3531_v43, %v3363_v28  ;;  %v3365_v11 = vpop.f32.mrf.mxu1  ;;  %v3197_v17 = vadd.f32 %v3196_v47, %v8117_v8 }
 0x4ce   : > { %v3701_v53 = vadd.f32 %v3700_v62, %v3532_v35  ;;  %3235 = vmatmul.bf16.gmra.mxu0 %v1811_v19  ;;  %v3366_v29 = vadd.f32 %v3365_v11, %v3197_v17  ;;  %v1998_v19 = vld [vmem:[#allocation2 + $0xa8] sm:$0xff]  ;;  %v8122_v35 = vld [vmem:[#allocation52_spill] sm:$0xff] }
 0x4cf   : > { %3404 = vmatmul.bf16.gmra.mxu1 %v1812_v20 }
 0x4d0   : > { %v3793_v48 = vadd.f32 %v3701_v53, %v1993_v60  ;;  %3573 = vmatmul.bf16.gmra.mxu2 %v1813_v30 }
 0x4d1   : > { %3742 = vmatmul.bf16.gmra.mxu3 %v1814_v2 }
 0x4d2   : > { %3857 = vst [vmem:[#allocation2 + $0x90] sm:$0xff] %v3793_v48  ;;  %v1999_v48 = vld [vmem:[#allocation2 + $0x1c8] sm:$0xff] }
 0x4d3   : > { %v3534_v45 = vpop.f32.mrf.mxu2  ;;  %v3198_v42 = vpop.f32.mrf.mxu0 }
 0x4d4   : > { %v3703_v41 = vpop.f32.mrf.mxu3  ;;  %v3535_v21 = vadd.f32 %v3534_v45, %v3366_v29  ;;  %v3367_v18 = vpop.f32.mrf.mxu1  ;;  %v3199_v57 = vadd.f32 %v3198_v42, %v8118_v23  ;;  %v8123_v45 = vld [vmem:[#allocation53_spill] sm:$0xff] }
 0x4d6   : > { %v3704_v39 = vadd.f32 %v3703_v41, %v3535_v21  ;;  %v3368_v32 = vadd.f32 %v3367_v18, %v3199_v57 }
 0x4d8   : > { %v3794_v50 = vadd.f32 %v3704_v39, %v1994_v52 }
 0x4da   : > { %3858 = vst [vmem:[#allocation2 + $0x1d8] sm:$0xff] %v3794_v50  ;;  %v2000_v50 = vld [vmem:[#allocation2 + $0x170] sm:$0xff] }
 0x4db   : > { %v3536_v3 = vpop.f32.mrf.mxu2  ;;  %v3201_v26 = vpop.f32.mrf.mxu0 }
 0x4dc   : > { %v3705_v14 = vpop.f32.mrf.mxu3  ;;  %v3537_v16 = vadd.f32 %v3536_v3, %v3368_v32  ;;  %v3370_v15 = vpop.f32.mrf.mxu1  ;;  %v3202_v22 = vadd.f32 %v3201_v26, %v8119_v49  ;;  %v8124_v3 = vld [vmem:[#allocation54_spill] sm:$0xff] }
 0x4de   : > { %v3706_v51 = vadd.f32 %v3705_v14, %v3537_v16  ;;  %v3371_v34 = vadd.f32 %v3370_v15, %v3202_v22 }
 0x4e0   : > { %v3795_v6 = vadd.f32 %v3706_v51, %v1995_v13 }
 0x4e2   : > { %3859 = vst [vmem:[#allocation2 + $0xd0] sm:$0xff] %v3795_v6  ;;  %v2001_v6 = vld [vmem:[#allocation2 + $0x178] sm:$0xff] }
 0x4e3   : > { %v3539_v5 = vpop.f32.mrf.mxu2  ;;  %v3203_v31 = vpop.f32.mrf.mxu0 }
 0x4e4   : > { %v3708_v12 = vpop.f32.mrf.mxu3  ;;  %v3540_v63 = vadd.f32 %v3539_v5, %v3371_v34  ;;  %v3372_v54 = vpop.f32.mrf.mxu1  ;;  %v3204_v40 = vadd.f32 %v3203_v31, %v8120_v56  ;;  %v8125_v5 = vld [vmem:[#allocation55_spill] sm:$0xff] }
 0x4e6   : > { %v3709_v33 = vadd.f32 %v3708_v12, %v3540_v63  ;;  %v3373_v37 = vadd.f32 %v3372_v54, %v3204_v40 }
 0x4e8   : > { %v3796_v7 = vadd.f32 %v3709_v33, %v1996_v10 }
 0x4ea   : > { %3860 = vst [vmem:[#allocation2 + $0xb8] sm:$0xff] %v3796_v7  ;;  %v2002_v7 = vld [vmem:[#allocation2 + $0x68] sm:$0xff] }
 0x4eb   : > { %v3541_v58 = vpop.f32.mrf.mxu2  ;;  %v3206_v38 = vpop.f32.mrf.mxu0 }
 0x4ec   : > { %v3710_v55 = vpop.f32.mrf.mxu3  ;;  %v3542_v36 = vadd.f32 %v3541_v58, %v3373_v37  ;;  %v3375_v59 = vpop.f32.mrf.mxu1  ;;  %v3207_v27 = vadd.f32 %v3206_v38, %v8121_v1  ;;  %v8126_v58 = vld [vmem:[#allocation56_spill] sm:$0xff] }
 0x4ee   : > { %v3711_v61 = vadd.f32 %v3710_v55, %v3542_v36  ;;  %v3376_v9 = vadd.f32 %v3375_v59, %v3207_v27 }
 0x4f0   : > { %v3797_v24 = vadd.f32 %v3711_v61, %v1997_v25 }
 0x4f2   : > { %3861 = vst [vmem:[#allocation2 + $0x88] sm:$0xff] %v3797_v24  ;;  %v2003_v24 = vld [vmem:[#allocation2 + $0x190] sm:$0xff] }
 0x4f3   : > { %v3544_v46 = vpop.f32.mrf.mxu2  ;;  %v3208_v43 = vpop.f32.mrf.mxu0 }
 0x4f4   : > { %v3713_v44 = vpop.f32.mrf.mxu3  ;;  %v3545_v28 = vadd.f32 %v3544_v46, %v3376_v9  ;;  %v3377_v62 = vpop.f32.mrf.mxu1  ;;  %v3209_v47 = vadd.f32 %v3208_v43, %v8122_v35  ;;  %v8127_v46 = vld [vmem:[#allocation57_spill] sm:$0xff] }
 0x4f6   : > { %v3714_v20 = vadd.f32 %v3713_v44, %v3545_v28  ;;  %v3378_v30 = vadd.f32 %v3377_v62, %v3209_v47 }
 0x4f8   : > { %v3798_v11 = vadd.f32 %v3714_v20, %v1998_v19 }
 0x4fa   : > { %3862 = vst [vmem:[#allocation2 + $0xa8] sm:$0xff] %v3798_v11  ;;  %v2004_v11 = vld [vmem:[#allocation2 + $0x198] sm:$0xff] }
 0x4fb   : > { %v3546_v2 = vpop.f32.mrf.mxu2  ;;  %v3211_v8 = vpop.f32.mrf.mxu0 }
 0x4fc   : > { %v3715_v60 = vpop.f32.mrf.mxu3  ;;  %v3547_v53 = vadd.f32 %v3546_v2, %v3378_v30  ;;  %v3380_v17 = vpop.f32.mrf.mxu1  ;;  %v3212_v41 = vadd.f32 %v3211_v8, %v8123_v45  ;;  %v8128_v2 = vld [vmem:[#allocation58_spill] sm:$0xff] }
 0x4fe   : > { %v3716_v29 = vadd.f32 %v3715_v60, %v3547_v53  ;;  %v3381_v42 = vadd.f32 %v3380_v17, %v3212_v41 }
 0x500   : > { %v3799_v21 = vadd.f32 %v3716_v29, %v1999_v48 }
 0x502   : > { %3863 = vst [vmem:[#allocation2 + $0x1c8] sm:$0xff] %v3799_v21  ;;  %v2005_v21 = vld [vmem:[#allocation2 + $0x38] sm:$0xff] }
 0x503   : > { %v3549_v18 = vpop.f32.mrf.mxu2  ;;  %v3213_v23 = vpop.f32.mrf.mxu0 }
 0x504   : > { %v3718_v52 = vpop.f32.mrf.mxu3  ;;  %v3550_v39 = vadd.f32 %v3549_v18, %v3381_v42  ;;  %v3382_v57 = vpop.f32.mrf.mxu1  ;;  %v3214_v14 = vadd.f32 %v3213_v23, %v8124_v3  ;;  %v8129_v18 = vld [vmem:[#allocation59_spill] sm:$0xff] }
 0x506   : > { %v3719_v32 = vadd.f32 %v3718_v52, %v3550_v39  ;;  %v3383_v26 = vadd.f32 %v3382_v57, %v3214_v14 }
 0x508   : > { %v3800_v16 = vadd.f32 %v3719_v32, %v2000_v50 }
 0x50a   : > { %3864 = vst [vmem:[#allocation2 + $0x170] sm:$0xff] %v3800_v16  ;;  %v2006_v16 = vld [vmem:[#allocation2 + $0xc0] sm:$0xff] }
 0x50b   : > { %v3551_v15 = vpop.f32.mrf.mxu2  ;;  %v3216_v49 = vpop.f32.mrf.mxu0 }
 0x50c   : > { %v3720_v13 = vpop.f32.mrf.mxu3  ;;  %v3552_v51 = vadd.f32 %v3551_v15, %v3383_v26  ;;  %v3385_v22 = vpop.f32.mrf.mxu1  ;;  %v3217_v12 = vadd.f32 %v3216_v49, %v8125_v5  ;;  %v8130_v15 = vld [vmem:[#allocation60_spill] sm:$0xff] }
 0x50e   : > { %v3721_v34 = vadd.f32 %v3720_v13, %v3552_v51  ;;  %v3386_v31 = vadd.f32 %v3385_v22, %v3217_v12 }
 0x510   : > { %v3801_v63 = vadd.f32 %v3721_v34, %v2001_v6 }
 0x512   : > { %3865 = vst [vmem:[#allocation2 + $0x178] sm:$0xff] %v3801_v63  ;;  %v2007_v63 = vld [vmem:[#allocation2 + $0x1c0] sm:$0xff] }
 0x513   : > { %v3554_v54 = vpop.f32.mrf.mxu2  ;;  %v3218_v56 = vpop.f32.mrf.mxu0 }
 0x514   : > { %v3723_v10 = vpop.f32.mrf.mxu3  ;;  %v3555_v33 = vadd.f32 %v3554_v54, %v3386_v31  ;;  %v3387_v40 = vpop.f32.mrf.mxu1  ;;  %v3219_v55 = vadd.f32 %v3218_v56, %v8126_v58  ;;  %v8131_v54 = vld [vmem:[#allocation61_spill] sm:$0xff] }
 0x516   : > { %v3724_v37 = vadd.f32 %v3723_v10, %v3555_v33  ;;  %v3388_v38 = vadd.f32 %v3387_v40, %v3219_v55  ;;  %v2008_v55 = vld [vmem:[#allocation2 + $0x158] sm:$0xff] }
 0x518   : > { %v3802_v36 = vadd.f32 %v3724_v37, %v2002_v7 }
 0x51a   : > { %3866 = vst [vmem:[#allocation2 + $0x68] sm:$0xff] %v3802_v36 }
 0x51b   : > { %v3556_v59 = vpop.f32.mrf.mxu2  ;;  %v3221_v1 = vpop.f32.mrf.mxu0 }
 0x51c   : > { %v3725_v25 = vpop.f32.mrf.mxu3  ;;  %v3557_v61 = vadd.f32 %v3556_v59, %v3388_v38  ;;  %v3390_v27 = vpop.f32.mrf.mxu1  ;;  %v3222_v44 = vadd.f32 %v3221_v1, %v8127_v46  ;;  %v8132_v59 = vld [vmem:[#allocation62_spill] sm:$0xff] }
 0x51e   : > { %v3726_v9 = vadd.f32 %v3725_v25, %v3557_v61  ;;  %v3391_v43 = vadd.f32 %v3390_v27, %v3222_v44  ;;  %v2009_v44 = vld [vmem:[#allocation2 + $0x10] sm:$0xff] }
 0x520   : > { %v3803_v28 = vadd.f32 %v3726_v9, %v2003_v24 }
 0x522   : > { %3867 = vst [vmem:[#allocation2 + $0x190] sm:$0xff] %v3803_v28 }
 0x523   : > { %v3559_v62 = vpop.f32.mrf.mxu2  ;;  %v3223_v35 = vpop.f32.mrf.mxu0 }
 0x524   : > { %v3728_v19 = vpop.f32.mrf.mxu3  ;;  %v3560_v20 = vadd.f32 %v3559_v62, %v3391_v43  ;;  %v3392_v47 = vpop.f32.mrf.mxu1  ;;  %v3224_v60 = vadd.f32 %v3223_v35, %v8128_v2  ;;  %v2010_v2 = vld [vmem:[#allocation2 + $0x58] sm:$0xff] }
 0x526   : > { %v3729_v30 = vadd.f32 %v3728_v19, %v3560_v20  ;;  %v3393_v8 = vadd.f32 %v3392_v47, %v3224_v60 }
 0x528   : > { %v3804_v53 = vadd.f32 %v3729_v30, %v2004_v11 }
 0x52a   : > { %3868 = vst [vmem:[#allocation2 + $0x198] sm:$0xff] %v3804_v53 }
 0x52b   : > { %v3561_v17 = vpop.f32.mrf.mxu2  ;;  %v3226_v45 = vpop.f32.mrf.mxu0 }
 0x52c   : > { %v3730_v48 = vpop.f32.mrf.mxu3  ;;  %v3562_v29 = vadd.f32 %v3561_v17, %v3393_v8  ;;  %v3395_v41 = vpop.f32.mrf.mxu1  ;;  %v3227_v52 = vadd.f32 %v3226_v45, %v8129_v18 }
 0x52e   : > { %v3731_v42 = vadd.f32 %v3730_v48, %v3562_v29  ;;  %v3396_v23 = vadd.f32 %v3395_v41, %v3227_v52  ;;  %v2011_v41 = vld [vmem:[#allocation2 + $0xa0] sm:$0xff] }
 0x530   : > { %v3805_v39 = vadd.f32 %v3731_v42, %v2005_v21 }
 0x532   : > { %3869 = vst [vmem:[#allocation2 + $0x38] sm:$0xff] %v3805_v39 }
 0x533   : > { %v3564_v57 = vpop.f32.mrf.mxu2  ;;  %v3228_v3 = vpop.f32.mrf.mxu0 }
 0x534   : > { %v3733_v50 = vpop.f32.mrf.mxu3  ;;  %v3565_v32 = vadd.f32 %v3564_v57, %v3396_v23  ;;  %v3397_v14 = vpop.f32.mrf.mxu1  ;;  %v3229_v13 = vadd.f32 %v3228_v3, %v8130_v15 }
 0x536   : > { %v3734_v26 = vadd.f32 %v3733_v50, %v3565_v32  ;;  %v3398_v49 = vadd.f32 %v3397_v14, %v3229_v13 }
 0x538   : > { %v3806_v51 = vadd.f32 %v3734_v26, %v2006_v16 }
 0x53a   : > { %3870 = vst [vmem:[#allocation2 + $0xc0] sm:$0xff] %v3806_v51 }
 0x53b   : > { %v3566_v22 = vpop.f32.mrf.mxu2  ;;  %v3231_v5 = vpop.f32.mrf.mxu0 }
 0x53c   : > { %v3735_v6 = vpop.f32.mrf.mxu3  ;;  %v3567_v34 = vadd.f32 %v3566_v22, %v3398_v49  ;;  %v3400_v12 = vpop.f32.mrf.mxu1  ;;  %v3232_v10 = vadd.f32 %v3231_v5, %v8131_v54 }
 0x53e   : > { %v3736_v31 = vadd.f32 %v3735_v6, %v3567_v34  ;;  %v3401_v56 = vadd.f32 %v3400_v12, %v3232_v10 }
 0x540   : > { %v3807_v33 = vadd.f32 %v3736_v31, %v2007_v63 }
 0x542   : > { %3871 = vst [vmem:[#allocation2 + $0x1c0] sm:$0xff] %v3807_v33 }
 0x543   : > { %v3569_v40 = vpop.f32.mrf.mxu2  ;;  %v3233_v58 = vpop.f32.mrf.mxu0 }
 0x544   : > { %v3738_v7 = vpop.f32.mrf.mxu3  ;;  %v3570_v37 = vadd.f32 %v3569_v40, %v3401_v56  ;;  %v3402_v36 = vpop.f32.mrf.mxu1  ;;  %v3234_v25 = vadd.f32 %v3233_v58, %v8132_v59 }
 0x546   : > { %v3739_v38 = vadd.f32 %v3738_v7, %v3570_v37  ;;  %v3403_v1 = vadd.f32 %v3402_v36, %v3234_v25 }
 0x548   : > { %v3808_v61 = vadd.f32 %v3739_v38, %v2008_v55 }
 0x54a   : > { %3872 = vst [vmem:[#allocation2 + $0x158] sm:$0xff] %v3808_v61 }
 0x54b   : > { %v3571_v27 = vpop.f32.mrf.mxu2  ;;  %v3236_v46 = vpop.f32.mrf.mxu0 }
 0x54c   : > { %v3740_v24 = vpop.f32.mrf.mxu3  ;;  %v3572_v9 = vadd.f32 %v3571_v27, %v3403_v1  ;;  %v3237_v43 = vadd.f32 %v3236_v46, %v7434_v4  ;;  %v3405_v62 = vpop.f32.mrf.mxu1 }
 0x54e   : > { %v3741_v28 = vadd.f32 %v3740_v24, %v3572_v9  ;;  %v3406_v20 = vadd.f32 %v3405_v62, %v3237_v43 }
 0x550   : > { %v3809_v19 = vadd.f32 %v3741_v28, %v2009_v44 }
 0x552   : > { %3873 = vst [vmem:[#allocation2 + $0x10] sm:$0xff] %v3809_v19 }
 0x553   : > { %v3574_v35 = vpop.f32.mrf.mxu2  ;;  %v3238_v30 = vpop.f32.mrf.mxu0 }
 0x554   : > { %v3743_v47 = vpop.f32.mrf.mxu3  ;;  %v3575_v11 = vadd.f32 %v3574_v35, %v3406_v20  ;;  %v3239_v53 = vadd.f32 %v3238_v30, %v7436_v0  ;;  %v3407_v17 = vpop.f32.mrf.mxu1 }
 0x556   : > { %v3744_v60 = vadd.f32 %v3743_v47, %v3575_v11  ;;  %v3408_v48 = vadd.f32 %v3407_v17, %v3239_v53 }
 0x558   : > { %v3810_v8 = vadd.f32 %v3744_v60, %v2010_v2 }
 0x55a   : > { %3874 = vst [vmem:[#allocation2 + $0x58] sm:$0xff] %v3810_v8 }
 0x55b   : > { %v3576_v29 = vpop.f32.mrf.mxu2 }
 0x55c   : > { %v3577_v45 = vadd.f32 %v3576_v29, %v3408_v48  ;;  %v3745_v4 = vpop.f32.mrf.mxu3 }
 0x55e   : > { %v3746_v21 = vadd.f32 %v3745_v4, %v3577_v45 }
 0x560   : > { %v3811_v42 = vadd.f32 %v3746_v21, %v2011_v41 }
 0x562   : > { %3875 = vst [vmem:[#allocation2 + $0xa0] sm:$0xff] %v3811_v42 }
 0x563 PF: > { %p5605_p11 = scmp.ne.s32.totalorder %s6681_s27, 1 }
 0x564   : > { %s5606_s25 = sshll.u32 (!%p5605_p11), %s6685_s28, 9 }
 0x565   : > { %3879 = sbr.rel (%p5605_p11) target bundleno = 1805 (0x70d), region = 64  ;;  %s3881_s19 = sshra.s32 (!%p5605_p11), %s5606_s25, 3 }
 0x566   : > { %s5607_s21 = sshll.u32 (!%p5605_p11), %s3881_s19, 2 }
 0x567   : > { %s7816_s27 = scalar_lea.vmem (!%p5605_p11), [#allocation9], %s5607_s21 }
 0x56a   : > { %v6069_v18 = vld [vmem:[#allocation11 + $0x38] sm:$0xff]  ;;  %v6068_v0 = vld [vmem:[#allocation11 + $0x30] sm:$0xff]  ;;  %v6067_v23 = vld [vmem:[#allocation11 + $0x28] sm:$0xff] }
 0x56b   : > { %v6077_v52 = vld [vmem:[#allocation11 + $0x78] sm:$0xff]  ;;  %4721 = vmatpush.bf16.msra.mxu0 %v6069_v18  ;;  %6270 = vmatpush.bf16.msra.mxu2 %v6069_v18  ;;  %v6076_v39 = vld [vmem:[#allocation11 + $0x70] sm:$0xff]  ;;  %v3981_v14 = vld [vmem:[#allocation2 + $0x148] sm:$0xff] }
 0x56c   : > { %4890 = vmatpush.bf16.msra.mxu1 %v6077_v52  ;;  %6278 = vmatpush.bf16.msra.mxu3 %v6077_v52  ;;  %v3949_v57 = vld [vmem:[#allocation2 + $0xb0] sm:$0xff]  ;;  %v3885_v26 = vld [vmem:[%s7816_s27] sm:$0xf]  ;;  %v6075_v15 = vld [vmem:[#allocation11 + $0x68] sm:$0xff]  ;;  %v4045_v13 = vpack.c.bf16 %v3981_v14, %v3981_v14 }
 0x56d   : > { %v3950_v50 = vld [vmem:[#allocation2 + $0x1b0] sm:$0xff]  ;;  %v4013_v32 = vpack.c.bf16 %v3949_v57, %v3949_v57  ;;  %4141 = vst [vmem:[#allocation3 + $0x4] sm:$0xf] %v3885_v26  ;;  %v3886_v49 = vld [vmem:[%s7816_s27 + $0x4] sm:$0xf]  ;;  %v3951_v22 = vld [vmem:[#allocation2 + $0xd8] sm:$0xff] }
 0x56e   : > { %v4014_v3 = vpack.c.bf16 %v3950_v50, %v3950_v50  ;;  %v3982_v16 = vld [vmem:[#allocation2 + $0x1d0] sm:$0xff]  ;;  %v3917_v6 = vld [vmem:[%s7816_s27 + $0x80] sm:$0xf]  ;;  %v3952_v34 = vld [vmem:[#allocation2 + $0x18] sm:$0xff]  ;;  %4109 = vst [vmem:[#allocation3 + $0x100] sm:$0xf] %v4045_v13  ;;  %v4015_v54 = vpack.c.bf16 %v3951_v22, %v3951_v22 }
 0x56f   : > { %4722 = vmatpush.bf16.msra.mxu0 %v6068_v0  ;;  %6271 = vmatpush.bf16.msra.mxu2 %v6068_v0  ;;  %v4046_v51 = vpack.c.bf16 %v3982_v16, %v3982_v16  ;;  %4077 = vst [vmem:[#allocation3] sm:$0xf] %v4013_v32  ;;  %v6066_v5 = vld [vmem:[#allocation11 + $0x20] sm:$0xff]  ;;  %v3984_v10 = vld [vmem:[#allocation2 + $0xc8] sm:$0xff]  ;;  %v4016_v33 = vpack.c.bf16 %v3952_v34, %v3952_v34  ;;  %v6065_v40 = vld [vmem:[#allocation11 + $0x18] sm:$0xff] }
 0x570   : > { %4891 = vmatpush.bf16.msra.mxu1 %v6076_v39  ;;  %6279 = vmatpush.bf16.msra.mxu3 %v6076_v39  ;;  %4078 = vst [vmem:[#allocation3 + $0x8] sm:$0xf] %v4014_v3  ;;  %v3918_v12 = vld [vmem:[%s7816_s27 + $0x84] sm:$0xf]  ;;  %v4048_v7 = vpack.c.bf16 %v3984_v10, %v3984_v10  ;;  %v6073_v37 = vld [vmem:[#allocation11 + $0x58] sm:$0xff]  ;;  %v6064_v55 = vld [vmem:[#allocation11 + $0x10] sm:$0xff] }
 0x571   : > { %v3983_v63 = vld [vmem:[#allocation2 + $0x100] sm:$0xff]  ;;  %4110 = vst [vmem:[#allocation3 + $0x108] sm:$0xf] %v4046_v51  ;;  %v3887_v58 = vld [vmem:[%s7816_s27 + $0x8] sm:$0xf]  ;;  %v3953_v59 = vld [vmem:[#allocation2 + $0x50] sm:$0xff] }
 0x572   : > { %v6074_v31 = vld [vmem:[#allocation11 + $0x60] sm:$0xff]  ;;  %4142 = vst [vmem:[#allocation3 + $0xc] sm:$0xf] %v3886_v49  ;;  %v4047_v56 = vpack.c.bf16 %v3983_v63, %v3983_v63  ;;  %v3888_v36 = vld [vmem:[%s7816_s27 + $0xc] sm:$0xf]  ;;  %v6072_v61 = vld [vmem:[#allocation11 + $0x50] sm:$0xff]  ;;  %v4017_v27 = vpack.c.bf16 %v3953_v59, %v3953_v59 }
 0x573   : > { %4723 = vmatpush.bf16.msra.mxu0 %v6067_v23  ;;  %6272 = vmatpush.bf16.msra.mxu2 %v6067_v23  ;;  %4173 = vst [vmem:[#allocation3 + $0x104] sm:$0xf] %v3917_v6  ;;  %v3919_v38 = vld [vmem:[%s7816_s27 + $0x88] sm:$0xf]  ;;  %v3920_v1 = vld [vmem:[%s7816_s27 + $0x8c] sm:$0xf] }
 0x574   : > { %4892 = vmatpush.bf16.msra.mxu1 %v6075_v15  ;;  %6280 = vmatpush.bf16.msra.mxu3 %v6075_v15  ;;  %4174 = vst [vmem:[#allocation3 + $0x10c] sm:$0xf] %v3918_v12  ;;  %v3954_v25 = vld [vmem:[#allocation2 + $0x168] sm:$0xff]  ;;  %v3985_v9 = vld [vmem:[#allocation2 + $0x40] sm:$0xff]  ;;  %v3986_v46 = vld [vmem:[#allocation2 + $0x1f8] sm:$0xff] }
 0x575   : > { %4079 = vst [vmem:[#allocation3 + $0x10] sm:$0xf] %v4015_v54  ;;  %v4018_v24 = vpack.c.bf16 %v3954_v25, %v3954_v25  ;;  %v6063_v44 = vld [vmem:[#allocation11 + $0x8] sm:$0xff]  ;;  %v4049_v28 = vpack.c.bf16 %v3985_v9, %v3985_v9  ;;  %v4050_v43 = vpack.c.bf16 %v3986_v46, %v3986_v46  ;;  %v6062_v19 = vld [vmem:[#allocation11] sm:$0xff]  ;;  %v3889_v30 = vld [vmem:[%s7816_s27 + $0x10] sm:$0xf] }
 0x576   : > { %4080 = vst [vmem:[#allocation3 + $0x18] sm:$0xf] %v4016_v33  ;;  %v6071_v62 = vld [vmem:[#allocation11 + $0x48] sm:$0xff]  ;;  %v5610_v20 = vld [vmem:[#allocation3] sm:$0xf]  ;;  %v3955_v18 = vld [vmem:[#allocation2 + $0x130] sm:$0xff] }
 0x577   : > { %4724 = vmatpush.bf16.msra.mxu0 %v6066_v5  ;;  %6273 = vmatpush.bf16.msra.mxu2 %v6066_v5  ;;  %4111 = vst [vmem:[#allocation3 + $0x110] sm:$0xf] %v4047_v56  ;;  %v5999_v35 = vld [vmem:[#allocation3 + $0x4] sm:$0xf0]  ;;  %v5738_v47 = vld [vmem:[#allocation3 + $0x100] sm:$0xf]  ;;  %v4019_v0 = vpack.c.bf16 %v3955_v18, %v3955_v18 }
 0x578   : > { %4893 = vmatpush.bf16.msra.mxu1 %v6074_v31  ;;  %6281 = vmatpush.bf16.msra.mxu3 %v6074_v31  ;;  %4112 = vst [vmem:[#allocation3 + $0x118] sm:$0xf] %v4048_v7  ;;  %v6031_v11 = vld [vmem:[#allocation3 + $0x104] sm:$0xf0]  ;;  %v6070_v2 = vld [vmem:[#allocation11 + $0x40] sm:$0xff]  ;;  %v5611_v41 = vor.u32 %v5999_v35, %v5610_v20  ;;  %v3958_v33 = vld [vmem:[#allocation2 + $0x110] sm:$0xff] }
 0x579   : > { %4143 = vst [vmem:[#allocation3 + $0x14] sm:$0xf] %v3887_v58  ;;  %v5998_v60 = vld [vmem:[#allocation3 + $0x4] sm:$0xf]  ;;  %v5612_v53 = vld [vmem:[#allocation3 + $0x8] sm:$0xf0]  ;;  %v5739_v4 = vor.u32 %v6031_v11, %v5738_v47 }
 0x57a   : > { %4144 = vst [vmem:[#allocation3 + $0x1c] sm:$0xf] %v3888_v36  ;;  %v3890_v8 = vld [vmem:[%s7816_s27 + $0x14] sm:$0xf]  ;;  %v6030_v17 = vld [vmem:[#allocation3 + $0x104] sm:$0xf]  ;;  %v5615_v21 = vor.u32 %v5998_v60, %v5612_v53 }
 0x57b   : > { %4725 = vmatpush.bf16.msra.mxu0 %v6065_v40  ;;  %6274 = vmatpush.bf16.msra.mxu2 %v6065_v40  ;;  %4175 = vst [vmem:[#allocation3 + $0x114] sm:$0xf] %v3919_v38  ;;  %v3921_v48 = vld [vmem:[%s7816_s27 + $0x90] sm:$0xf]  ;;  %v5740_v29 = vld [vmem:[#allocation3 + $0x108] sm:$0xf0]  ;;  %v4022_v40 = vpack.c.bf16 %v3958_v33, %v3958_v33 }
 0x57c   : > { %4894 = vmatpush.bf16.msra.mxu1 %v6073_v37  ;;  %6282 = vmatpush.bf16.msra.mxu3 %v6073_v37  ;;  %4176 = vst [vmem:[#allocation3 + $0x11c] sm:$0xf] %v3920_v1  ;;  %v3922_v45 = vld [vmem:[%s7816_s27 + $0x94] sm:$0xf]  ;;  %v5743_v42 = vor.u32 %v6030_v17, %v5740_v29  ;;  %v3956_v52 = vld [vmem:[#allocation2 + $0x48] sm:$0xff]  ;;  %v3987_v23 = vld [vmem:[#allocation2 + $0x20] sm:$0xff] }
 0x57d   : > { %4081 = vst [vmem:[#allocation3 + $0x20] sm:$0xf] %v4017_v27  ;;  %v4020_v39 = vpack.c.bf16 %v3956_v52, %v3956_v52  ;;  %v3988_v57 = vld [vmem:[#allocation2 + $0x128] sm:$0xff]  ;;  %v4051_v50 = vpack.c.bf16 %v3987_v23, %v3987_v23  ;;  %v3891_v3 = vld [vmem:[%s7816_s27 + $0x18] sm:$0xf]  ;;  %v3957_v10 = vld [vmem:[#allocation2 + $0x180] sm:$0xff] }
 0x57e   : > { %4082 = vst [vmem:[#allocation3 + $0x28] sm:$0xf] %v4018_v24  ;;  %v4052_v32 = vpack.c.bf16 %v3988_v57, %v3988_v57  ;;  %v5618_v14 = vld [vmem:[#allocation3 + $0x10] sm:$0xf]  ;;  %v6001_v16 = vld [vmem:[#allocation3 + $0x14] sm:$0xf0]  ;;  %v4021_v56 = vpack.c.bf16 %v3957_v10, %v3957_v10 }
 0x57f   : > { %4726 = vmatpush.bf16.msra.mxu0 %v6064_v55  ;;  %6275 = vmatpush.bf16.msra.mxu2 %v6064_v55  ;;  %4113 = vst [vmem:[#allocation3 + $0x120] sm:$0xf] %v4049_v28  ;;  %v5746_v26 = vld [vmem:[#allocation3 + $0x110] sm:$0xf]  ;;  %v6033_v15 = vld [vmem:[#allocation3 + $0x114] sm:$0xf0]  ;;  %v5619_v12 = vor.u32 %v6001_v16, %v5618_v14 }
 0x580   : > { %4895 = vmatpush.bf16.msra.mxu1 %v6072_v61  ;;  %6283 = vmatpush.bf16.msra.mxu3 %v6072_v61  ;;  %4114 = vst [vmem:[#allocation3 + $0x128] sm:$0xf] %v4050_v43  ;;  %v3892_v13 = vld [vmem:[%s7816_s27 + $0x1c] sm:$0xf]  ;;  %v6000_v51 = vld [vmem:[#allocation3 + $0x14] sm:$0xf]  ;;  %v5747_v63 = vor.u32 %v6033_v15, %v5746_v26 }
 0x581   : > { %4145 = vst [vmem:[#allocation3 + $0x24] sm:$0xf] %v3889_v30  ;;  %v3923_v49 = vld [vmem:[%s7816_s27 + $0x98] sm:$0xf]  ;;  %v5620_v22 = vld [vmem:[#allocation3 + $0x18] sm:$0xf0] }
 0x582   : > { %4146 = vst [vmem:[#allocation3 + $0x2c] sm:$0xf] %v3890_v8  ;;  %v3924_v6 = vld [vmem:[%s7816_s27 + $0x9c] sm:$0xf]  ;;  %v6032_v34 = vld [vmem:[#allocation3 + $0x114] sm:$0xf]  ;;  %v5623_v31 = vor.u32 %v6000_v51, %v5620_v22 }
 0x583   : > { %4727 = vmatpush.bf16.msra.mxu0 %v6063_v44  ;;  %6276 = vmatpush.bf16.msra.mxu2 %v6063_v44  ;;  %4177 = vst [vmem:[#allocation3 + $0x124] sm:$0xf] %v3921_v48  ;;  %v5748_v5 = vld [vmem:[#allocation3 + $0x118] sm:$0xf0]  ;;  %v3989_v7 = vld [vmem:[#allocation2 + $0x1a0] sm:$0xff]  ;;  %v3990_v37 = vld [vmem:[#allocation2 + $0x1f0] sm:$0xff] }
 0x584   : > { %4896 = vmatpush.bf16.msra.mxu1 %v6071_v62  ;;  %6284 = vmatpush.bf16.msra.mxu3 %v6071_v62  ;;  %4178 = vst [vmem:[#allocation3 + $0x12c] sm:$0xf] %v3922_v45  ;;  %v5751_v54 = vor.u32 %v6032_v34, %v5748_v5  ;;  %v4053_v58 = vpack.c.bf16 %v3989_v7, %v3989_v7  ;;  %v3893_v36 = vld [vmem:[%s7816_s27 + $0x20] sm:$0xf]  ;;  %v3894_v1 = vld [vmem:[%s7816_s27 + $0x24] sm:$0xf] }
 0x585   : > { %4083 = vst [vmem:[#allocation3 + $0x30] sm:$0xf] %v4019_v0  ;;  %v4054_v55 = vpack.c.bf16 %v3990_v37, %v3990_v37  ;;  %v5626_v38 = vld [vmem:[#allocation3 + $0x20] sm:$0xf]  ;;  %v6003_v59 = vld [vmem:[#allocation3 + $0x24] sm:$0xf0] }
 0x586   : > { %4084 = vst [vmem:[#allocation3 + $0x38] sm:$0xf] %v4020_v39  ;;  %v5754_v25 = vld [vmem:[#allocation3 + $0x120] sm:$0xf]  ;;  %v3926_v46 = vld [vmem:[%s7816_s27 + $0xa4] sm:$0xf]  ;;  %v5627_v43 = vor.u32 %v6003_v59, %v5626_v38 }
 0x587   : > { %4728 = vmatpush.bf16.msra.mxu0 %v6062_v19  ;;  %6277 = vmatpush.bf16.msra.mxu2 %v6062_v19  ;;  %4115 = vst [vmem:[#allocation3 + $0x130] sm:$0xf] %v4051_v50  ;;  %v6035_v61 = vld [vmem:[#allocation3 + $0x124] sm:$0xf0]  ;;  %v3925_v24 = vld [vmem:[%s7816_s27 + $0xa0] sm:$0xf] }
 0x588   : > { %4897 = vmatpush.bf16.msra.mxu1 %v6070_v2  ;;  %6285 = vmatpush.bf16.msra.mxu3 %v6070_v2  ;;  %4116 = vst [vmem:[#allocation3 + $0x138] sm:$0xf] %v4052_v32  ;;  %v6002_v27 = vld [vmem:[#allocation3 + $0x24] sm:$0xf]  ;;  %v5755_v62 = vor.u32 %v6035_v61, %v5754_v25  ;;  %v3959_v35 = vld [vmem:[#allocation2 + $0x118] sm:$0xff]  ;;  %v3991_v2 = vld [vmem:[#allocation2 + $0xe8] sm:$0xff] }
 0x589   : > { %4147 = vst [vmem:[#allocation3 + $0x34] sm:$0xf] %v3891_v3  ;;  %v5628_v9 = vld [vmem:[#allocation3 + $0x28] sm:$0xf0]  ;;  %v3960_v47 = vld [vmem:[#allocation2 + $0x98] sm:$0xff]  ;;  %v4023_v11 = vpack.c.bf16 %v3959_v35, %v3959_v35  ;;  %v4055_v53 = vpack.c.bf16 %v3991_v2, %v3991_v2  ;;  %v3961_v3 = vld [vmem:[#allocation2 + $0x120] sm:$0xff] }
 0x58a   : > { %4729 = vmatmul.bf16.vlgmr.msra.gmra.mxu0 %v5611_v41  ;;  %4809 = vmatmul.bf16.vlgmr.msra.gmra.mxu2 %v5739_v4  ;;  %4148 = vst [vmem:[#allocation3 + $0x3c] sm:$0xf] %v3892_v13  ;;  %v6034_v44 = vld [vmem:[#allocation3 + $0x124] sm:$0xf]  ;;  %v5631_v19 = vor.u32 %v6002_v27, %v5628_v9  ;;  %v4024_v30 = vpack.c.bf16 %v3960_v47, %v3960_v47  ;;  %v3992_v60 = vld [vmem:[#allocation2 + $0x78] sm:$0xff]  ;;  %v3962_v14 = vld [vmem:[#allocation2 + $0x150] sm:$0xff] }
 0x58b   : > { %4898 = vmatmul.bf16.vlgmr.msra.gmra.mxu1 %v5615_v21  ;;  %4978 = vmatmul.bf16.vlgmr.msra.gmra.mxu3 %v5743_v42  ;;  %4179 = vst [vmem:[#allocation3 + $0x134] sm:$0xf] %v3923_v49  ;;  %v5756_v28 = vld [vmem:[#allocation3 + $0x128] sm:$0xf0]  ;;  %v4056_v8 = vpack.c.bf16 %v3992_v60, %v3992_v60  ;;  %v3895_v17 = vld [vmem:[%s7816_s27 + $0x28] sm:$0xf]  ;;  %v4025_v16 = vpack.c.bf16 %v3961_v3, %v3961_v3 }
 0x58c   : > { %4180 = vst [vmem:[#allocation3 + $0x13c] sm:$0xf] %v3924_v6  ;;  %v5759_v20 = vor.u32 %v6034_v44, %v5756_v28  ;;  %v5634_v48 = vld [vmem:[#allocation3 + $0x30] sm:$0xf]  ;;  %v3896_v4 = vld [vmem:[%s7816_s27 + $0x2c] sm:$0xf]  ;;  %v4026_v26 = vpack.c.bf16 %v3962_v14, %v3962_v14 }
 0x58d   : > { %4085 = vst [vmem:[#allocation3 + $0x40] sm:$0xf] %v4021_v56  ;;  %v6005_v29 = vld [vmem:[#allocation3 + $0x34] sm:$0xf0]  ;;  %v3927_v42 = vld [vmem:[%s7816_s27 + $0xa8] sm:$0xf] }
 0x58e   : > { %4086 = vst [vmem:[#allocation3 + $0x48] sm:$0xf] %v4022_v40  ;;  %v5762_v45 = vld [vmem:[#allocation3 + $0x130] sm:$0xf]  ;;  %v3928_v52 = vld [vmem:[%s7816_s27 + $0xac] sm:$0xf]  ;;  %v5635_v23 = vor.u32 %v6005_v29, %v5634_v48 }
 0x58f   : > { %4117 = vst [vmem:[#allocation3 + $0x140] sm:$0xf] %v4053_v58  ;;  %v6037_v41 = vld [vmem:[#allocation3 + $0x134] sm:$0xf0]  ;;  %v3993_v15 = vld [vmem:[#allocation2 + $0x70] sm:$0xff]  ;;  %v3964_v38 = vld [vmem:[#allocation2 + $0x60] sm:$0xff] }
 0x590   : > { %4118 = vst [vmem:[#allocation3 + $0x148] sm:$0xf] %v4054_v55  ;;  %v6004_v21 = vld [vmem:[#allocation3 + $0x34] sm:$0xf]  ;;  %v5763_v57 = vor.u32 %v6037_v41, %v5762_v45  ;;  %v4057_v51 = vpack.c.bf16 %v3993_v15, %v3993_v15  ;;  %v3897_v22 = vld [vmem:[%s7816_s27 + $0x30] sm:$0xf]  ;;  %v4028_v25 = vpack.c.bf16 %v3964_v38, %v3964_v38 }
 0x591   : > { %4149 = vst [vmem:[#allocation3 + $0x44] sm:$0xf] %v3893_v36  ;;  %v5636_v18 = vld [vmem:[#allocation3 + $0x38] sm:$0xf0]  ;;  %v3994_v13 = vld [vmem:[#allocation2 + $0x90] sm:$0xff]  ;;  %v3963_v36 = vld [vmem:[#allocation2 + $0x108] sm:$0xff] }
 0x592   : > { %4150 = vst [vmem:[#allocation3 + $0x4c] sm:$0xf] %v3894_v1  ;;  %v6036_v0 = vld [vmem:[#allocation3 + $0x134] sm:$0xf]  ;;  %v5639_v50 = vor.u32 %v6004_v21, %v5636_v18  ;;  %v4058_v49 = vpack.c.bf16 %v3994_v13, %v3994_v13  ;;  %v4027_v59 = vpack.c.bf16 %v3963_v36, %v3963_v36  ;;  %v3995_v61 = vld [vmem:[#allocation2 + $0x1d8] sm:$0xff]  ;;  %v3966_v48 = vld [vmem:[#allocation2 + $0x188] sm:$0xff] }
 0x593   : > { %4181 = vst [vmem:[#allocation3 + $0x144] sm:$0xf] %v3925_v24  ;;  %v5764_v39 = vld [vmem:[#allocation3 + $0x138] sm:$0xf0]  ;;  %v3930_v33 = vld [vmem:[%s7816_s27 + $0xb4] sm:$0xf]  ;;  %v4059_v27 = vpack.c.bf16 %v3995_v61, %v3995_v61  ;;  %v4030_v41 = vpack.c.bf16 %v3966_v48, %v3966_v48 }
 0x594   : > { %4182 = vst [vmem:[#allocation3 + $0x14c] sm:$0xf] %v3926_v46  ;;  %v5767_v32 = vor.u32 %v6036_v0, %v5764_v39  ;;  %v5642_v6 = vld [vmem:[#allocation3 + $0x40] sm:$0xf]  ;;  %v3996_v1 = vld [vmem:[#allocation2 + $0xd0] sm:$0xff]  ;;  %v3997_v29 = vld [vmem:[#allocation2 + $0xb8] sm:$0xff] }
 0x595   : > { %4087 = vst [vmem:[#allocation3 + $0x50] sm:$0xf] %v4023_v11  ;;  %v6007_v34 = vld [vmem:[#allocation3 + $0x44] sm:$0xf0]  ;;  %v4060_v24 = vpack.c.bf16 %v3996_v1, %v3996_v1  ;;  %v3899_v9 = vld [vmem:[%s7816_s27 + $0x38] sm:$0xf]  ;;  %v4061_v21 = vpack.c.bf16 %v3997_v29, %v3997_v29 }
 0x596   : > { %4088 = vst [vmem:[#allocation3 + $0x58] sm:$0xf] %v4024_v30  ;;  %v5770_v5 = vld [vmem:[#allocation3 + $0x140] sm:$0xf]  ;;  %v5643_v7 = vor.u32 %v6007_v34, %v5642_v6  ;;  %v3932_v47 = vld [vmem:[%s7816_s27 + $0xbc] sm:$0xf] }
 0x597   : > { %4119 = vst [vmem:[#allocation3 + $0x150] sm:$0xf] %v4055_v53  ;;  %v3902_v3 = vld [vmem:[%s7816_s27 + $0x44] sm:$0xf]  ;;  %v3904_v36 = vld [vmem:[%s7816_s27 + $0x4c] sm:$0xf] }
 0x598   : > { %4120 = vst [vmem:[#allocation3 + $0x158] sm:$0xf] %v4056_v8  ;;  %v3968_v6 = vld [vmem:[#allocation2 + $0x140] sm:$0xff]  ;;  %v3937_v29 = vld [vmem:[%s7816_s27 + $0xd0] sm:$0xf] }
 0x599   : > { %4151 = vst [vmem:[#allocation3 + $0x54] sm:$0xf] %v3895_v17  ;;  %v5644_v10 = vld [vmem:[#allocation3 + $0x48] sm:$0xf0]  ;;  %v3965_v17 = vld [vmem:[#allocation2 + $0xe0] sm:$0xff] }
 0x59a   : > { %4734 = vmatmul.bf16.gmra.mxu0 %v5619_v12  ;;  %4814 = vmatmul.bf16.gmra.mxu2 %v5747_v63  ;;  %4152 = vst [vmem:[#allocation3 + $0x5c] sm:$0xf] %v3896_v4  ;;  %v6039_v12 = vld [vmem:[#allocation3 + $0x144] sm:$0xf0]  ;;  %v3898_v63 = vld [vmem:[%s7816_s27 + $0x34] sm:$0xf]  ;;  %v4029_v45 = vpack.c.bf16 %v3965_v17, %v3965_v17 }
 0x59b   : > { %4903 = vmatmul.bf16.gmra.mxu1 %v5623_v31  ;;  %4983 = vmatmul.bf16.gmra.mxu3 %v5751_v54  ;;  %4183 = vst [vmem:[#allocation3 + $0x154] sm:$0xf] %v3927_v42  ;;  %v6006_v31 = vld [vmem:[#allocation3 + $0x44] sm:$0xf]  ;;  %v3929_v54 = vld [vmem:[%s7816_s27 + $0xb0] sm:$0xf]  ;;  %v5771_v37 = vor.u32 %v6039_v12, %v5770_v5  ;;  %v4032_v5 = vpack.c.bf16 %v3968_v6, %v3968_v6 }
 0x59c   : > { %4184 = vst [vmem:[#allocation3 + $0x15c] sm:$0xf] %v3928_v52  ;;  %v6038_v56 = vld [vmem:[#allocation3 + $0x144] sm:$0xf]  ;;  %v5772_v40 = vld [vmem:[#allocation3 + $0x148] sm:$0xf0]  ;;  %v5647_v58 = vor.u32 %v6006_v31, %v5644_v10 }
 0x59d   : > { %4089 = vst [vmem:[#allocation3 + $0x60] sm:$0xf] %v4025_v16  ;;  %v5775_v55 = vor.u32 %v6038_v56, %v5772_v40  ;;  %v5650_v46 = vld [vmem:[#allocation3 + $0x50] sm:$0xf]  ;;  %v6009_v44 = vld [vmem:[#allocation3 + $0x54] sm:$0xf0] }
 0x59e   : > { %4090 = vst [vmem:[#allocation3 + $0x68] sm:$0xf] %v4026_v26  ;;  %v5778_v28 = vld [vmem:[#allocation3 + $0x150] sm:$0xf]  ;;  %v5651_v2 = vor.u32 %v6009_v44, %v5650_v46  ;;  %v3998_v4 = vld [vmem:[#allocation2 + $0x88] sm:$0xff] }
 0x59f   : > { %4121 = vst [vmem:[#allocation3 + $0x160] sm:$0xf] %v4057_v51  ;;  %v4062_v42 = vpack.c.bf16 %v3998_v4, %v3998_v4  ;;  %v3933_v16 = vld [vmem:[%s7816_s27 + $0xc0] sm:$0xf]  ;;  %v3934_v26 = vld [vmem:[%s7816_s27 + $0xc4] sm:$0xf] }
 0x5a0   : > { %4122 = vst [vmem:[#allocation3 + $0x168] sm:$0xf] %v4058_v49  ;;  %v3999_v12 = vld [vmem:[#allocation2 + $0xa8] sm:$0xff]  ;;  %v3906_v17 = vld [vmem:[%s7816_s27 + $0x54] sm:$0xf] }
 0x5a1   : > { %4153 = vst [vmem:[#allocation3 + $0x64] sm:$0xf] %v3897_v22  ;;  %v5652_v35 = vld [vmem:[#allocation3 + $0x58] sm:$0xf0]  ;;  %v4063_v31 = vpack.c.bf16 %v3999_v12, %v3999_v12  ;;  %v3970_v46 = vld [vmem:[#allocation2 + $0x1a8] sm:$0xff] }
 0x5a2   : > { %4154 = vst [vmem:[#allocation3 + $0x6c] sm:$0xf] %v3898_v63  ;;  %v6040_v11 = vld [vmem:[#allocation3 + $0x154] sm:$0xf]  ;;  %v3967_v22 = vld [vmem:[#allocation2 + $0x138] sm:$0xff]  ;;  %v4000_v63 = vld [vmem:[#allocation2 + $0x1c8] sm:$0xff] }
 0x5a3   : > { %4185 = vst [vmem:[#allocation3 + $0x164] sm:$0xf] %v3929_v54  ;;  %v5780_v30 = vld [vmem:[#allocation3 + $0x158] sm:$0xf0]  ;;  %v4031_v34 = vpack.c.bf16 %v3967_v22, %v3967_v22  ;;  %v4064_v54 = vpack.c.bf16 %v4000_v63, %v4000_v63 }
 0x5a4   : > { %4186 = vst [vmem:[#allocation3 + $0x16c] sm:$0xf] %v3930_v33  ;;  %v5783_v8 = vor.u32 %v6040_v11, %v5780_v30  ;;  %v5658_v18 = vld [vmem:[#allocation3 + $0x60] sm:$0xf] }
 0x5a5   : > { %4091 = vst [vmem:[#allocation3 + $0x70] sm:$0xf] %v4027_v59  ;;  %v6011_v52 = vld [vmem:[#allocation3 + $0x64] sm:$0xf0] }
 0x5a6   : > { %4092 = vst [vmem:[#allocation3 + $0x78] sm:$0xf] %v4028_v25  ;;  %v5786_v0 = vld [vmem:[#allocation3 + $0x160] sm:$0xf]  ;;  %v5659_v15 = vor.u32 %v6011_v52, %v5658_v18  ;;  %v3935_v59 = vld [vmem:[%s7816_s27 + $0xc8] sm:$0xf] }
 0x5a7   : > { %4123 = vst [vmem:[#allocation3 + $0x170] sm:$0xf] %v4059_v27  ;;  %v6043_v39 = vld [vmem:[#allocation3 + $0x164] sm:$0xf0]  ;;  %v3936_v25 = vld [vmem:[%s7816_s27 + $0xcc] sm:$0xf] }
 0x5a8   : > { %4124 = vst [vmem:[#allocation3 + $0x178] sm:$0xf] %v4060_v24  ;;  %v5787_v13 = vor.u32 %v6043_v39, %v5786_v0  ;;  %v7862_v0 = vld [vmem:[#allocation12] ss:$0 sm:$0xff] }
 0x5a9   : > { %4155 = vst [vmem:[#allocation3 + $0x74] sm:$0xf] %v3899_v9  ;;  %v3969_v9 = vld [vmem:[#allocation2 + $0x80] sm:$0xff] }
 0x5aa   : > { %4739 = vmatmul.bf16.gmra.mxu0 %v5627_v43  ;;  %4819 = vmatmul.bf16.gmra.mxu2 %v5755_v62  ;;  %v6041_v43 = vld [vmem:[#allocation3 + $0x154] sm:$0xf0]  ;;  %v3900_v62 = vld [vmem:[%s7816_s27 + $0x3c] sm:$0xf]  ;;  %4188 = vst [vmem:[#allocation3 + $0x17c] sm:$0xf] %v3932_v47  ;;  %v4033_v44 = vpack.c.bf16 %v3969_v9, %v3969_v9 }
 0x5ab   : > { %4908 = vmatmul.bf16.gmra.mxu1 %v5631_v19  ;;  %4988 = vmatmul.bf16.gmra.mxu3 %v5759_v20  ;;  %v6008_v19 = vld [vmem:[#allocation3 + $0x54] sm:$0xf]  ;;  %v3931_v20 = vld [vmem:[%s7816_s27 + $0xb8] sm:$0xf]  ;;  %4156 = vst [vmem:[#allocation3 + $0x7c] sm:$0xf] %v3900_v62  ;;  %v5779_v60 = vor.u32 %v6041_v43, %v5778_v28  ;;  %v4034_v28 = vpack.c.bf16 %v3970_v46, %v3970_v46 }
 0x5ac   : > { %4187 = vst [vmem:[#allocation3 + $0x174] sm:$0xf] %v3931_v20  ;;  %v5655_v53 = vor.u32 %v6008_v19, %v5652_v35  ;;  %v5788_v14 = vld [vmem:[#allocation3 + $0x168] sm:$0xf0]  ;;  %v5666_v10 = vld [vmem:[#allocation3 + $0x70] sm:$0xf] }
 0x5ad   : > { %4093 = vst [vmem:[#allocation3 + $0x80] sm:$0xf] %v4029_v45  ;;  %v6013_v33 = vld [vmem:[#allocation3 + $0x74] sm:$0xf0]  ;;  %v4001_v43 = vld [vmem:[#allocation2 + $0x170] sm:$0xff] }
 0x5ae   : > { %4094 = vst [vmem:[#allocation3 + $0x88] sm:$0xf] %v4030_v41  ;;  %v5794_v56 = vld [vmem:[#allocation3 + $0x170] sm:$0xf]  ;;  %v5667_v61 = vor.u32 %v6013_v33, %v5666_v10  ;;  %v4002_v62 = vld [vmem:[#allocation2 + $0x178] sm:$0xff]  ;;  %v4065_v19 = vpack.c.bf16 %v4001_v43, %v4001_v43 }
 0x5af   : > { %4125 = vst [vmem:[#allocation3 + $0x180] sm:$0xf] %v4061_v21  ;;  %v6045_v40 = vld [vmem:[#allocation3 + $0x174] sm:$0xf0]  ;;  %v4066_v20 = vpack.c.bf16 %v4002_v62, %v4002_v62  ;;  %v3938_v45 = vld [vmem:[%s7816_s27 + $0xd4] sm:$0xf] }
 0x5b0   : > { %4126 = vst [vmem:[#allocation3 + $0x188] sm:$0xf] %v4062_v42  ;;  %v5795_v1 = vor.u32 %v6045_v40, %v5794_v56  ;;  %v3907_v10 = vld [vmem:[%s7816_s27 + $0x58] sm:$0xf] }
 0x5b1   : > { %4158 = vst [vmem:[#allocation3 + $0x8c] sm:$0xf] %v3902_v3  ;;  %v5796_v38 = vld [vmem:[#allocation3 + $0x178] sm:$0xf0] }
 0x5b2   : > { %4189 = vst [vmem:[#allocation3 + $0x184] sm:$0xf] %v3933_v16 }
 0x5b3   : > { %4190 = vst [vmem:[#allocation3 + $0x18c] sm:$0xf] %v3934_v26  ;;  %v4003_v26 = vld [vmem:[#allocation2 + $0x68] sm:$0xff] }
 0x5b4   : > { %4095 = vst [vmem:[#allocation3 + $0x90] sm:$0xf] %v4031_v34  ;;  %v5674_v35 = vld [vmem:[#allocation3 + $0x80] sm:$0xf] }
 0x5b5   : > { %4096 = vst [vmem:[#allocation3 + $0x98] sm:$0xf] %v4032_v5  ;;  %v6015_v47 = vld [vmem:[#allocation3 + $0x84] sm:$0xf0] }
 0x5b6   : > { %4127 = vst [vmem:[#allocation3 + $0x190] sm:$0xf] %v4063_v31  ;;  %v5802_v11 = vld [vmem:[#allocation3 + $0x180] sm:$0xf]  ;;  %v5675_v41 = vor.u32 %v6015_v47, %v5674_v35  ;;  %v3973_v35 = vld [vmem:[#allocation2 + $0x1e8] sm:$0xff]  ;;  %v3974_v47 = vld [vmem:[#allocation2 + $0xf8] sm:$0xff] }
 0x5b7   : > { %4128 = vst [vmem:[#allocation3 + $0x198] sm:$0xf] %v4064_v54  ;;  %v6047_v30 = vld [vmem:[#allocation3 + $0x184] sm:$0xf0] }
 0x5b8   : > { %4160 = vst [vmem:[#allocation3 + $0x9c] sm:$0xf] %v3904_v36  ;;  %v5803_v4 = vor.u32 %v6047_v30, %v5802_v11  ;;  %v3939_v36 = vld [vmem:[%s7816_s27 + $0xd8] sm:$0xf]  ;;  %v4037_v30 = vpack.c.bf16 %v3973_v35, %v3973_v35 }
 0x5b9   : > { %4191 = vst [vmem:[#allocation3 + $0x194] sm:$0xf] %v3935_v59 }
 0x5ba   : > { %4744 = vmatmul.bf16.gmra.mxu0 %v5635_v23  ;;  %4824 = vmatmul.bf16.gmra.mxu2 %v5763_v57  ;;  %v6010_v23 = vld [vmem:[#allocation3 + $0x64] sm:$0xf]  ;;  %v5660_v57 = vld [vmem:[#allocation3 + $0x68] sm:$0xf0]  ;;  %4192 = vst [vmem:[#allocation3 + $0x19c] sm:$0xf] %v3936_v25 }
 0x5bb   : > { %4913 = vmatmul.bf16.gmra.mxu1 %v5639_v50  ;;  %4993 = vmatmul.bf16.gmra.mxu3 %v5767_v32  ;;  %v3901_v50 = vld [vmem:[%s7816_s27 + $0x40] sm:$0xf]  ;;  %v6042_v32 = vld [vmem:[#allocation3 + $0x164] sm:$0xf]  ;;  %v5663_v51 = vor.u32 %v6010_v23, %v5660_v57  ;;  %4097 = vst [vmem:[#allocation3 + $0xa0] sm:$0xf] %v4033_v44 }
 0x5bc   : > { %4157 = vst [vmem:[#allocation3 + $0x84] sm:$0xf] %v3901_v50  ;;  %v5791_v49 = vor.u32 %v6042_v32, %v5788_v14  ;;  %v5804_v48 = vld [vmem:[#allocation3 + $0x188] sm:$0xf0]  ;;  %v3971_v50 = vld [vmem:[#allocation2 + $0x1b8] sm:$0xff] }
 0x5bd   : > { %4098 = vst [vmem:[#allocation3 + $0xa8] sm:$0xf] %v4034_v28  ;;  %v3972_v32 = vld [vmem:[#allocation2 + $0x28] sm:$0xff]  ;;  %v4035_v14 = vpack.c.bf16 %v3971_v50, %v3971_v50  ;;  %v5682_v22 = vld [vmem:[#allocation3 + $0x90] sm:$0xf] }
 0x5be   : > { %4129 = vst [vmem:[#allocation3 + $0x1a0] sm:$0xf] %v4065_v19  ;;  %v4036_v16 = vpack.c.bf16 %v3972_v32, %v3972_v32  ;;  %v6017_v6 = vld [vmem:[#allocation3 + $0x94] sm:$0xf0]  ;;  %v5810_v34 = vld [vmem:[#allocation3 + $0x190] sm:$0xf] }
 0x5bf   : > { %4130 = vst [vmem:[#allocation3 + $0x1a8] sm:$0xf] %v4066_v20  ;;  %v6049_v5 = vld [vmem:[#allocation3 + $0x194] sm:$0xf0]  ;;  %v5684_v33 = vld [vmem:[#allocation3 + $0x98] sm:$0xf0]  ;;  %v5683_v25 = vor.u32 %v6017_v6, %v5682_v22 }
 0x5c0   : > { %4162 = vst [vmem:[#allocation3 + $0xac] sm:$0xf] %v3906_v17  ;;  %v6048_v56 = vld [vmem:[#allocation3 + $0x194] sm:$0xf]  ;;  %v3942_v22 = vld [vmem:[%s7816_s27 + $0xe4] sm:$0xf] }
 0x5c1   : > { %4193 = vst [vmem:[#allocation3 + $0x1a4] sm:$0xf] %v3937_v29 }
 0x5c2   : > { %4194 = vst [vmem:[#allocation3 + $0x1ac] sm:$0xf] %v3938_v45  ;;  %v5690_v45 = vld [vmem:[#allocation3 + $0xa0] sm:$0xf] }
 0x5c3   : > { %4099 = vst [vmem:[#allocation3 + $0xb0] sm:$0xf] %v4035_v14  ;;  %v3910_v14 = vld [vmem:[%s7816_s27 + $0x64] sm:$0xf] }
 0x5c4   : > { %4100 = vst [vmem:[#allocation3 + $0xb8] sm:$0xf] %v4036_v16 }
 0x5c5   : > { %4163 = vst [vmem:[#allocation3 + $0xb4] sm:$0xf] %v3907_v10 }
 0x5c6   : > { %4195 = vst [vmem:[#allocation3 + $0x1b4] sm:$0xf] %v3939_v36  ;;  %v4007_v36 = vld [vmem:[#allocation2 + $0xc0] sm:$0xff] }
 0x5c7   : > { %4101 = vst [vmem:[#allocation3 + $0xc0] sm:$0xf] %v4037_v30  ;;  %v3912_v30 = vld [vmem:[%s7816_s27 + $0x6c] sm:$0xf] }
 0x5c8   : > { %4166 = vst [vmem:[#allocation3 + $0xcc] sm:$0xf] %v3910_v14 }
 0x5c9   : > { %4198 = vst [vmem:[#allocation3 + $0x1cc] sm:$0xf] %v3942_v22 }
 0x5ca   : > { %4749 = vmatmul.bf16.gmra.mxu0 %v5643_v7  ;;  %4829 = vmatmul.bf16.gmra.mxu2 %v5771_v37  ;;  %v6012_v7 = vld [vmem:[#allocation3 + $0x74] sm:$0xf]  ;;  %v5668_v37 = vld [vmem:[#allocation3 + $0x78] sm:$0xf0]  ;;  %4168 = vst [vmem:[#allocation3 + $0xdc] sm:$0xf] %v3912_v30 }
 0x5cb   : > { %4918 = vmatmul.bf16.gmra.mxu1 %v5647_v58  ;;  %4998 = vmatmul.bf16.gmra.mxu3 %v5775_v55  ;;  %v3903_v58 = vld [vmem:[%s7816_s27 + $0x48] sm:$0xf]  ;;  %v6044_v55 = vld [vmem:[#allocation3 + $0x174] sm:$0xf]  ;;  %v5671_v27 = vor.u32 %v6012_v7, %v5668_v37  ;;  %v5812_v37 = vld [vmem:[#allocation3 + $0x198] sm:$0xf0] }
 0x5cc   : > { %4159 = vst [vmem:[#allocation3 + $0x94] sm:$0xf] %v3903_v58  ;;  %v5799_v24 = vor.u32 %v6044_v55, %v5796_v38  ;;  %v3908_v58 = vld [vmem:[%s7816_s27 + $0x5c] sm:$0xf]  ;;  %v5815_v9 = vor.u32 %v6048_v56, %v5812_v37 }
 0x5cd   : > { %4164 = vst [vmem:[#allocation3 + $0xbc] sm:$0xf] %v3908_v58 }
 0x5d3   : > { %v6016_v54 = vld [vmem:[#allocation3 + $0x94] sm:$0xf] }
 0x5da   : > { %4754 = vmatmul.bf16.gmra.mxu0 %v5651_v2  ;;  %4834 = vmatmul.bf16.gmra.mxu2 %v5779_v60  ;;  %v6014_v2 = vld [vmem:[#allocation3 + $0x84] sm:$0xf]  ;;  %v5676_v60 = vld [vmem:[#allocation3 + $0x88] sm:$0xf0] }
 0x5db   : > { %4923 = vmatmul.bf16.gmra.mxu1 %v5655_v53  ;;  %5003 = vmatmul.bf16.gmra.mxu3 %v5783_v8  ;;  %v3905_v53 = vld [vmem:[%s7816_s27 + $0x50] sm:$0xf]  ;;  %v6046_v8 = vld [vmem:[#allocation3 + $0x184] sm:$0xf]  ;;  %v5679_v42 = vor.u32 %v6014_v2, %v5676_v60  ;;  %v4038_v2 = vpack.c.bf16 %v3974_v47, %v3974_v47  ;;  %v4005_v60 = vld [vmem:[#allocation2 + $0x198] sm:$0xff] }
 0x5dc   : > { %4161 = vst [vmem:[#allocation3 + $0xa4] sm:$0xf] %v3905_v53  ;;  %v5807_v18 = vor.u32 %v6046_v8, %v5804_v48  ;;  %v4006_v53 = vld [vmem:[#allocation2 + $0x38] sm:$0xff]  ;;  %v4069_v48 = vpack.c.bf16 %v4005_v60, %v4005_v60  ;;  %v3943_v60 = vld [vmem:[%s7816_s27 + $0xe8] sm:$0xf] }
 0x5dd   : > { %v4070_v29 = vpack.c.bf16 %v4006_v53, %v4006_v53  ;;  %4102 = vst [vmem:[#allocation3 + $0xc8] sm:$0xf] %v4038_v2 }
 0x5de   : > { %4133 = vst [vmem:[#allocation3 + $0x1c0] sm:$0xf] %v4069_v48 }
 0x5df   : > { %4134 = vst [vmem:[#allocation3 + $0x1c8] sm:$0xf] %v4070_v29  ;;  %v3944_v29 = vld [vmem:[%s7816_s27 + $0xec] sm:$0xf] }
 0x5e0   : > { %4199 = vst [vmem:[#allocation3 + $0x1d4] sm:$0xf] %v3943_v60  ;;  %v4011_v60 = vld [vmem:[#allocation2 + $0x58] sm:$0xff] }
 0x5e1   : > { %4200 = vst [vmem:[#allocation3 + $0x1dc] sm:$0xf] %v3944_v29 }
 0x5ea   : > { %4759 = vmatmul.bf16.gmra.mxu0 %v5659_v15  ;;  %4839 = vmatmul.bf16.gmra.mxu2 %v5787_v13  ;;  %v4004_v15 = vld [vmem:[#allocation2 + $0x190] sm:$0xff] }
 0x5eb   : > { %4928 = vmatmul.bf16.gmra.mxu1 %v5663_v51  ;;  %5008 = vmatmul.bf16.gmra.mxu3 %v5791_v49  ;;  %v4067_v49 = vpack.c.bf16 %v4003_v26, %v4003_v26  ;;  %v4068_v12 = vpack.c.bf16 %v4004_v15, %v4004_v15  ;;  %v3941_v26 = vld [vmem:[%s7816_s27 + $0xe0] sm:$0xf] }
 0x5ec   : > { %4197 = vst [vmem:[#allocation3 + $0x1c4] sm:$0xf] %v3941_v26  ;;  %v4009_v26 = vld [vmem:[#allocation2 + $0x158] sm:$0xff] }
 0x5ed   : > { %4131 = vst [vmem:[#allocation3 + $0x1b0] sm:$0xf] %v4067_v49 }
 0x5ee   : > { %4132 = vst [vmem:[#allocation3 + $0x1b8] sm:$0xf] %v4068_v12 }
 0x5fa   : > { %4764 = vmatmul.bf16.gmra.mxu0 %v5667_v61  ;;  %4844 = vmatmul.bf16.gmra.mxu2 %v5795_v1  ;;  %v5811_v61 = vor.u32 %v6049_v5, %v5810_v34  ;;  %v3940_v1 = vld [vmem:[%s7816_s27 + $0xdc] sm:$0xf] }
 0x5fb   : > { %4933 = vmatmul.bf16.gmra.mxu1 %v5671_v27  ;;  %5013 = vmatmul.bf16.gmra.mxu3 %v5799_v24  ;;  %v5687_v24 = vor.u32 %v6016_v54, %v5684_v33  ;;  %4196 = vst [vmem:[#allocation3 + $0x1bc] sm:$0xf] %v3940_v1 }
 0x607   : > { %v4730_v21 = vpop.f32.mrf.mxu0 }
 0x608   : > { %v4899_v52 = vpop.f32.mrf.mxu1  ;;  %v4731_v23 = vadd.f32 %v7862_v0, %v4730_v21  ;;  %v6051_v21 = vld [vmem:[#allocation3 + $0x1a4] sm:$0xf0] }
 0x60a   : > { %4769 = vmatmul.bf16.gmra.mxu0 %v5675_v41  ;;  %4849 = vmatmul.bf16.gmra.mxu2 %v5803_v4  ;;  %v4900_v63 = vadd.f32 %v4899_v52, %v4731_v23  ;;  %v6019_v41 = vld [vmem:[#allocation3 + $0xa4] sm:$0xf0]  ;;  %v5818_v4 = vld [vmem:[#allocation3 + $0x1a0] sm:$0xf]  ;;  %v6018_v52 = vld [vmem:[#allocation3 + $0xa4] sm:$0xf] }
 0x60b   : > { %4938 = vmatmul.bf16.gmra.mxu1 %v5679_v42  ;;  %5018 = vmatmul.bf16.gmra.mxu3 %v5807_v18  ;;  %v5692_v23 = vld [vmem:[#allocation3 + $0xa8] sm:$0xf0]  ;;  %v5819_v49 = vor.u32 %v6051_v21, %v5818_v4 }
 0x60c   : > { %v5695_v34 = vor.u32 %v6018_v52, %v5692_v23 }
 0x60d   : > { %v4810_v39 = vpop.f32.mrf.mxu2 }
 0x60e   : > { %v4979_v57 = vpop.f32.mrf.mxu3  ;;  %v4811_v40 = vadd.f32 %v7862_v0, %v4810_v39  ;;  %v3909_v39 = vld [vmem:[%s7816_s27 + $0x60] sm:$0xf] }
 0x60f   : > { %v4732_v3 = vpop.f32.mrf.mxu0  ;;  %4165 = vst [vmem:[#allocation3 + $0xc4] sm:$0xf] %v3909_v39 }
 0x610   : > { %v4733_v13 = vadd.f32 %v7862_v0, %v4732_v3  ;;  %v4901_v51 = vpop.f32.mrf.mxu1  ;;  %v4980_v46 = vadd.f32 %v4979_v57, %v4811_v40  ;;  %v6050_v57 = vld [vmem:[#allocation3 + $0x1a4] sm:$0xf]  ;;  %v5820_v3 = vld [vmem:[#allocation3 + $0x1a8] sm:$0xf0] }
 0x611   : > { %v5823_v5 = vor.u32 %v6050_v57, %v5820_v3  ;;  %v3975_v40 = vld [vmem:[#allocation2 + $0x160] sm:$0xff] }
 0x612   : > { %v4902_v31 = vadd.f32 %v4901_v51, %v4733_v13  ;;  %v5691_v51 = vor.u32 %v6019_v41, %v5690_v45  ;;  %v4039_v58 = vpack.c.bf16 %v3975_v40, %v3975_v40 }
 0x614   : > { %v6082_v7 = vpack.c.bf16 %v4902_v31, %v4900_v63  ;;  %4103 = vst [vmem:[#allocation3 + $0xd0] sm:$0xf] %v4039_v58  ;;  %v3914_v58 = vld [vmem:[%s7816_s27 + $0x74] sm:$0xf] }
 0x615   : > { %v4812_v55 = vpop.f32.mrf.mxu2  ;;  %4170 = vst [vmem:[#allocation3 + $0xec] sm:$0xf] %v3914_v58 }
 0x616   : > { %6083 = vst [vmem:[%s6936_s16] sm:$0xff] %v6082_v7   ;;  %v4813_v38 = vadd.f32 %v7862_v0, %v4812_v55  ;;  %v4981_v59 = vpop.f32.mrf.mxu3  ;;  %v3976_v7 = vld [vmem:[#allocation2 + $0x30] sm:$0xff] }
 0x617   : > { %v4735_v27 = vpop.f32.mrf.mxu0  ;;  %v4040_v55 = vpack.c.bf16 %v3976_v7, %v3976_v7 }
 0x618   : > { %v4982_v44 = vadd.f32 %v4981_v59, %v4813_v38  ;;  %v4904_v28 = vpop.f32.mrf.mxu1  ;;  %v4736_v19 = vadd.f32 %v7862_v0, %v4735_v27  ;;  %v4008_v38 = vld [vmem:[#allocation2 + $0x1c0] sm:$0xff]  ;;  %v5698_v27 = vld [vmem:[#allocation3 + $0xb0] sm:$0xf] }
 0x619   : > { %v4072_v1 = vpack.c.bf16 %v4008_v38, %v4008_v38  ;;  %4104 = vst [vmem:[#allocation3 + $0xd8] sm:$0xf] %v4040_v55 }
 0x61a   : > { %v6162_v43 = vpack.c.bf16 %v4982_v44, %v4980_v46  ;;  %4774 = vmatmul.bf16.gmra.mxu0 %v5683_v25  ;;  %4854 = vmatmul.bf16.gmra.mxu2 %v5811_v61  ;;  %v4905_v42 = vadd.f32 %v4904_v28, %v4736_v19  ;;  %v4071_v61 = vpack.c.bf16 %v4007_v36, %v4007_v36  ;;  %v6053_v46 = vld [vmem:[#allocation3 + $0x1b4] sm:$0xf0]  ;;  %v5700_v19 = vld [vmem:[#allocation3 + $0xb8] sm:$0xf0]  ;;  %v3945_v36 = vld [vmem:[%s7816_s27 + $0xf0] sm:$0xf] }
 0x61b   : > { %4943 = vmatmul.bf16.gmra.mxu1 %v5687_v24  ;;  %5023 = vmatmul.bf16.gmra.mxu3 %v5815_v9  ;;  %v6021_v24 = vld [vmem:[#allocation3 + $0xb4] sm:$0xf0]  ;;  %v5826_v9 = vld [vmem:[#allocation3 + $0x1b0] sm:$0xf]  ;;  %4136 = vst [vmem:[#allocation3 + $0x1d8] sm:$0xf] %v4072_v1 }
 0x61c   : > { %6254 = vst [vmem:[%s6936_s16 + $0x80] sm:$0xff] %v6162_v43   ;;  %v6020_v43 = vld [vmem:[#allocation3 + $0xb4] sm:$0xf]  ;;  %v5827_v48 = vor.u32 %v6053_v46, %v5826_v9 }
 0x61d   : > { %v4815_v62 = vpop.f32.mrf.mxu2  ;;  %4135 = vst [vmem:[#allocation3 + $0x1d0] sm:$0xf] %v4071_v61  ;;  %v5703_v41 = vor.u32 %v6020_v43, %v5700_v19  ;;  %v3946_v1 = vld [vmem:[%s7816_s27 + $0xf4] sm:$0xf] }
 0x61e   : > { %v4984_v20 = vpop.f32.mrf.mxu3  ;;  %v4816_v50 = vadd.f32 %v7862_v0, %v4815_v62  ;;  %v3911_v62 = vld [vmem:[%s7816_s27 + $0x68] sm:$0xf]  ;;  %4201 = vst [vmem:[#allocation3 + $0x1e4] sm:$0xf] %v3945_v36 }
 0x61f   : > { %v4737_v11 = vpop.f32.mrf.mxu0  ;;  %4167 = vst [vmem:[#allocation3 + $0xd4] sm:$0xf] %v3911_v62 }
 0x620   : > { %v4738_v8 = vadd.f32 %v7862_v0, %v4737_v11  ;;  %v4906_v17 = vpop.f32.mrf.mxu1  ;;  %v4985_v12 = vadd.f32 %v4984_v20, %v4816_v50  ;;  %v6052_v20 = vld [vmem:[#allocation3 + $0x1b4] sm:$0xf]  ;;  %v5828_v11 = vld [vmem:[#allocation3 + $0x1b8] sm:$0xf0]  ;;  %v3977_v50 = vld [vmem:[#allocation2 + $0x1e0] sm:$0xff] }
 0x621   : > { %v5831_v4 = vor.u32 %v6052_v20, %v5828_v11  ;;  %v4041_v14 = vpack.c.bf16 %v3977_v50, %v3977_v50  ;;  %4202 = vst [vmem:[#allocation3 + $0x1ec] sm:$0xf] %v3946_v1 }
 0x622   : > { %v4907_v18 = vadd.f32 %v4906_v17, %v4738_v8  ;;  %v5699_v17 = vor.u32 %v6021_v24, %v5698_v27 }
 0x623   : > { %4105 = vst [vmem:[#allocation3 + $0xe0] sm:$0xf] %v4041_v14  ;;  %v3916_v14 = vld [vmem:[%s7816_s27 + $0x7c] sm:$0xf] }
 0x624   : > { %v6087_v32 = vpack.c.bf16 %v4907_v18, %v4905_v42  ;;  %4172 = vst [vmem:[#allocation3 + $0xfc] sm:$0xf] %v3916_v14 }
 0x625   : > { %v4817_v16 = vpop.f32.mrf.mxu2 }
 0x626   : > { %6239 = vst [vmem:[%s6936_s16 + $0x8] sm:$0xff] %v6087_v32   ;;  %v4818_v15 = vadd.f32 %v7862_v0, %v4817_v16  ;;  %v4986_v13 = vpop.f32.mrf.mxu3  ;;  %v3978_v32 = vld [vmem:[#allocation2] sm:$0xff] }
 0x627   : > { %v4740_v6 = vpop.f32.mrf.mxu0  ;;  %v4042_v16 = vpack.c.bf16 %v3978_v32, %v3978_v32 }
 0x628   : > { %v4987_v63 = vadd.f32 %v4986_v13, %v4818_v15  ;;  %v4909_v31 = vpop.f32.mrf.mxu1  ;;  %v4741_v33 = vadd.f32 %v7862_v0, %v4740_v6  ;;  %v4010_v15 = vld [vmem:[#allocation2 + $0x10] sm:$0xff]  ;;  %v5706_v6 = vld [vmem:[#allocation3 + $0xc0] sm:$0xf] }
 0x629   : > { %v4074_v22 = vpack.c.bf16 %v4010_v15, %v4010_v15  ;;  %4106 = vst [vmem:[#allocation3 + $0xe8] sm:$0xf] %v4042_v16 }
 0x62a   : > { %v6167_v54 = vpack.c.bf16 %v4987_v63, %v4985_v12  ;;  %4779 = vmatmul.bf16.gmra.mxu0 %v5691_v51  ;;  %4859 = vmatmul.bf16.gmra.mxu2 %v5819_v49  ;;  %v4910_v44 = vadd.f32 %v4909_v31, %v4741_v33  ;;  %v4073_v49 = vpack.c.bf16 %v4009_v26, %v4009_v26  ;;  %v6055_v12 = vld [vmem:[#allocation3 + $0x1c4] sm:$0xf0]  ;;  %v5708_v33 = vld [vmem:[#allocation3 + $0xc8] sm:$0xf0]  ;;  %v3947_v26 = vld [vmem:[%s7816_s27 + $0xf8] sm:$0xf] }
 0x62b   : > { %4948 = vmatmul.bf16.gmra.mxu1 %v5695_v34  ;;  %5028 = vmatmul.bf16.gmra.mxu3 %v5823_v5  ;;  %v6023_v34 = vld [vmem:[#allocation3 + $0xc4] sm:$0xf0]  ;;  %v5834_v5 = vld [vmem:[#allocation3 + $0x1c0] sm:$0xf]  ;;  %4138 = vst [vmem:[#allocation3 + $0x1e8] sm:$0xf] %v4074_v22 }
 0x62c   : > { %6255 = vst [vmem:[%s6936_s16 + $0x88] sm:$0xff] %v6167_v54   ;;  %v6022_v54 = vld [vmem:[#allocation3 + $0xc4] sm:$0xf]  ;;  %v5835_v61 = vor.u32 %v6055_v12, %v5834_v5  ;;  %v3948_v22 = vld [vmem:[%s7816_s27 + $0xfc] sm:$0xf] }
 0x62d   : > { %v4820_v10 = vpop.f32.mrf.mxu2  ;;  %4137 = vst [vmem:[#allocation3 + $0x1e0] sm:$0xf] %v4073_v49  ;;  %v5711_v24 = vor.u32 %v6022_v54, %v5708_v33  ;;  %v5722_v36 = vld [vmem:[#allocation3 + $0xe0] sm:$0xf] }
 0x62e   : > { %v4989_v56 = vpop.f32.mrf.mxu3  ;;  %v4821_v35 = vadd.f32 %v7862_v0, %v4820_v10  ;;  %v3913_v10 = vld [vmem:[%s7816_s27 + $0x70] sm:$0xf]  ;;  %4203 = vst [vmem:[#allocation3 + $0x1f4] sm:$0xf] %v3947_v26 }
 0x62f   : > { %v4742_v37 = vpop.f32.mrf.mxu0  ;;  %4169 = vst [vmem:[#allocation3 + $0xe4] sm:$0xf] %v3913_v10 }
 0x630   : > { %v4743_v59 = vadd.f32 %v7862_v0, %v4742_v37  ;;  %v4911_v25 = vpop.f32.mrf.mxu1  ;;  %v4990_v21 = vadd.f32 %v4989_v56, %v4821_v35  ;;  %v6054_v56 = vld [vmem:[#allocation3 + $0x1c4] sm:$0xf]  ;;  %v5836_v37 = vld [vmem:[#allocation3 + $0x1c8] sm:$0xf0]  ;;  %v3979_v35 = vld [vmem:[#allocation2 + $0xf0] sm:$0xff] }
 0x631   : > { %v5839_v9 = vor.u32 %v6054_v56, %v5836_v37  ;;  %v4043_v30 = vpack.c.bf16 %v3979_v35, %v3979_v35  ;;  %4204 = vst [vmem:[#allocation3 + $0x1fc] sm:$0xf] %v3948_v22 }
 0x632   : > { %v4912_v28 = vadd.f32 %v4911_v25, %v4743_v59  ;;  %v5707_v25 = vor.u32 %v6023_v34, %v5706_v6 }
 0x633   : > { %4107 = vst [vmem:[#allocation3 + $0xf0] sm:$0xf] %v4043_v30 }
 0x634   : > { %v6092_v47 = vpack.c.bf16 %v4912_v28, %v4910_v44 }
 0x635   : > { %v4822_v2 = vpop.f32.mrf.mxu2 }
 0x636   : > { %6240 = vst [vmem:[%s6936_s16 + $0x10] sm:$0xff] %v6092_v47   ;;  %v4823_v53 = vadd.f32 %v7862_v0, %v4822_v2  ;;  %v4991_v8 = vpop.f32.mrf.mxu3  ;;  %v3980_v47 = vld [vmem:[#allocation2 + $0x8] sm:$0xff] }
 0x637   : > { %v4745_v45 = vpop.f32.mrf.mxu0  ;;  %v4044_v2 = vpack.c.bf16 %v3980_v47, %v3980_v47 }
 0x638   : > { %v4992_v42 = vadd.f32 %v4991_v8, %v4823_v53  ;;  %v4914_v18 = vpop.f32.mrf.mxu1  ;;  %v4746_v23 = vadd.f32 %v7862_v0, %v4745_v45  ;;  %v4012_v53 = vld [vmem:[#allocation2 + $0xa0] sm:$0xff]  ;;  %v5714_v45 = vld [vmem:[#allocation3 + $0xd0] sm:$0xf] }
 0x639   : > { %v4076_v29 = vpack.c.bf16 %v4012_v53, %v4012_v53  ;;  %4108 = vst [vmem:[#allocation3 + $0xf8] sm:$0xf] %v4044_v2 }
 0x63a   : > { %v6172_v52 = vpack.c.bf16 %v4992_v42, %v4990_v21  ;;  %4784 = vmatmul.bf16.gmra.mxu0 %v5699_v17  ;;  %4864 = vmatmul.bf16.gmra.mxu2 %v5827_v48  ;;  %v4915_v63 = vadd.f32 %v4914_v18, %v4746_v23  ;;  %v4075_v48 = vpack.c.bf16 %v4011_v60, %v4011_v60  ;;  %v6057_v21 = vld [vmem:[#allocation3 + $0x1d4] sm:$0xf0]  ;;  %v5716_v23 = vld [vmem:[#allocation3 + $0xd8] sm:$0xf0] }
 0x63b   : > { %4953 = vmatmul.bf16.gmra.mxu1 %v5703_v41  ;;  %5033 = vmatmul.bf16.gmra.mxu3 %v5831_v4  ;;  %v6025_v41 = vld [vmem:[#allocation3 + $0xd4] sm:$0xf0]  ;;  %v5842_v4 = vld [vmem:[#allocation3 + $0x1d0] sm:$0xf]  ;;  %4140 = vst [vmem:[#allocation3 + $0x1f8] sm:$0xf] %v4076_v29 }
 0x63c   : > { %6256 = vst [vmem:[%s6936_s16 + $0x90] sm:$0xff] %v6172_v52   ;;  %v6024_v52 = vld [vmem:[#allocation3 + $0xd4] sm:$0xf]  ;;  %v5843_v49 = vor.u32 %v6057_v21, %v5842_v4  ;;  %v5730_v21 = vld [vmem:[#allocation3 + $0xf0] sm:$0xf] }
 0x63d   : > { %v4825_v39 = vpop.f32.mrf.mxu2  ;;  %4139 = vst [vmem:[#allocation3 + $0x1f0] sm:$0xf] %v4075_v48  ;;  %v5719_v34 = vor.u32 %v6024_v52, %v5716_v23 }
 0x63e   : > { %v4994_v57 = vpop.f32.mrf.mxu3  ;;  %v4826_v40 = vadd.f32 %v7862_v0, %v4825_v39  ;;  %v3915_v39 = vld [vmem:[%s7816_s27 + $0x78] sm:$0xf] }
 0x63f   : > { %v4747_v3 = vpop.f32.mrf.mxu0  ;;  %4171 = vst [vmem:[#allocation3 + $0xf4] sm:$0xf] %v3915_v39 }
 0x640   : > { %v4748_v13 = vadd.f32 %v7862_v0, %v4747_v3  ;;  %v4916_v51 = vpop.f32.mrf.mxu1  ;;  %v4995_v46 = vadd.f32 %v4994_v57, %v4826_v40  ;;  %v6056_v57 = vld [vmem:[#allocation3 + $0x1d4] sm:$0xf]  ;;  %v5844_v3 = vld [vmem:[#allocation3 + $0x1d8] sm:$0xf0] }
 0x641   : > { %v5847_v5 = vor.u32 %v6056_v57, %v5844_v3  ;;  %v5860_v3 = vld [vmem:[#allocation3 + $0x1f8] sm:$0xf0] }
 0x642   : > { %v4917_v31 = vadd.f32 %v4916_v51, %v4748_v13  ;;  %v5715_v51 = vor.u32 %v6025_v41, %v5714_v45  ;;  %v6061_v52 = vld [vmem:[#allocation3 + $0x1f4] sm:$0xf0] }
 0x644   : > { %v6097_v7 = vpack.c.bf16 %v4917_v31, %v4915_v63 }
 0x645   : > { %v4827_v55 = vpop.f32.mrf.mxu2 }
 0x646   : > { %6241 = vst [vmem:[%s6936_s16 + $0x18] sm:$0xff] %v6097_v7   ;;  %v4828_v38 = vadd.f32 %v7862_v0, %v4827_v55  ;;  %v4996_v59 = vpop.f32.mrf.mxu3  ;;  %v6028_v39 = vld [vmem:[#allocation3 + $0xf4] sm:$0xf] }
 0x647   : > { %v4750_v27 = vpop.f32.mrf.mxu0 }
 0x648   : > { %v4997_v44 = vadd.f32 %v4996_v59, %v4828_v38  ;;  %v4919_v28 = vpop.f32.mrf.mxu1  ;;  %v4751_v19 = vadd.f32 %v7862_v0, %v4750_v27  ;;  %v6027_v38 = vld [vmem:[#allocation3 + $0xe4] sm:$0xf0]  ;;  %v5850_v59 = vld [vmem:[#allocation3 + $0x1e0] sm:$0xf] }
 0x64a   : > { %v6177_v43 = vpack.c.bf16 %v4997_v44, %v4995_v46  ;;  %4789 = vmatmul.bf16.gmra.mxu0 %v5707_v25  ;;  %4869 = vmatmul.bf16.gmra.mxu2 %v5835_v61  ;;  %v4920_v42 = vadd.f32 %v4919_v28, %v4751_v19  ;;  %v6059_v25 = vld [vmem:[#allocation3 + $0x1e4] sm:$0xf0]  ;;  %v6026_v61 = vld [vmem:[#allocation3 + $0xe4] sm:$0xf]  ;;  %v5852_v46 = vld [vmem:[#allocation3 + $0x1e8] sm:$0xf0] }
 0x64b   : > { %4958 = vmatmul.bf16.gmra.mxu1 %v5711_v24  ;;  %5038 = vmatmul.bf16.gmra.mxu3 %v5839_v9  ;;  %v5724_v24 = vld [vmem:[#allocation3 + $0xe8] sm:$0xf0]  ;;  %v6058_v9 = vld [vmem:[#allocation3 + $0x1e4] sm:$0xf]  ;;  %v5851_v19 = vor.u32 %v6059_v25, %v5850_v59 }
 0x64c   : > { %6257 = vst [vmem:[%s6936_s16 + $0x98] sm:$0xff] %v6177_v43   ;;  %v5727_v35 = vor.u32 %v6026_v61, %v5724_v24  ;;  %v5855_v47 = vor.u32 %v6058_v9, %v5852_v46 }
 0x64d   : > { %v4830_v62 = vpop.f32.mrf.mxu2 }
 0x64e   : > { %v4999_v20 = vpop.f32.mrf.mxu3  ;;  %v4831_v50 = vadd.f32 %v7862_v0, %v4830_v62  ;;  %v5723_v62 = vor.u32 %v6027_v38, %v5722_v36 }
 0x64f   : > { %v4752_v11 = vpop.f32.mrf.mxu0 }
 0x650   : > { %v4753_v8 = vadd.f32 %v7862_v0, %v4752_v11  ;;  %v4921_v17 = vpop.f32.mrf.mxu1  ;;  %v5000_v12 = vadd.f32 %v4999_v20, %v4831_v50  ;;  %v5732_v50 = vld [vmem:[#allocation3 + $0xf8] sm:$0xf0] }
 0x652   : > { %v4922_v18 = vadd.f32 %v4921_v17, %v4753_v8 }
 0x654   : > { %v6102_v32 = vpack.c.bf16 %v4922_v18, %v4920_v42  ;;  %v6029_v42 = vld [vmem:[#allocation3 + $0xf4] sm:$0xf0]  ;;  %v5858_v18 = vld [vmem:[#allocation3 + $0x1f0] sm:$0xf] }
 0x655   : > { %v4832_v16 = vpop.f32.mrf.mxu2 }
 0x656   : > { %6242 = vst [vmem:[%s6936_s16 + $0x20] sm:$0xff] %v6102_v32   ;;  %v4833_v15 = vadd.f32 %v7862_v0, %v4832_v16  ;;  %v5001_v13 = vpop.f32.mrf.mxu3  ;;  %v6060_v32 = vld [vmem:[#allocation3 + $0x1f4] sm:$0xf] }
 0x657   : > { %v4755_v6 = vpop.f32.mrf.mxu0  ;;  %v5863_v22 = vor.u32 %v6060_v32, %v5860_v3 }
 0x658   : > { %v5002_v63 = vadd.f32 %v5001_v13, %v4833_v15  ;;  %v4924_v31 = vpop.f32.mrf.mxu1  ;;  %v4756_v33 = vadd.f32 %v7862_v0, %v4755_v6  ;;  %v5731_v15 = vor.u32 %v6029_v42, %v5730_v21  ;;  %v5859_v13 = vor.u32 %v6061_v52, %v5858_v18 }
 0x65a   : > { %v6182_v54 = vpack.c.bf16 %v5002_v63, %v5000_v12  ;;  %4794 = vmatmul.bf16.gmra.mxu0 %v5715_v51  ;;  %4874 = vmatmul.bf16.gmra.mxu2 %v5843_v49  ;;  %v4925_v58 = vadd.f32 %v4924_v31, %v4756_v33  ;;  %v5735_v49 = vor.u32 %v6028_v39, %v5732_v50 }
 0x65b   : > { %4963 = vmatmul.bf16.gmra.mxu1 %v5719_v34  ;;  %5043 = vmatmul.bf16.gmra.mxu3 %v5847_v5 }
 0x65c   : > { %6258 = vst [vmem:[%s6936_s16 + $0xa0] sm:$0xff] %v6182_v54  }
 0x65d   : > { %v4835_v10 = vpop.f32.mrf.mxu2 }
 0x65e   : > { %v5004_v56 = vpop.f32.mrf.mxu3  ;;  %v4836_v1 = vadd.f32 %v7862_v0, %v4835_v10 }
 0x65f   : > { %v4757_v40 = vpop.f32.mrf.mxu0 }
 0x660   : > { %v4758_v7 = vadd.f32 %v7862_v0, %v4757_v40  ;;  %v4926_v37 = vpop.f32.mrf.mxu1  ;;  %v5005_v11 = vadd.f32 %v5004_v56, %v4836_v1 }
 0x662   : > { %v4927_v55 = vadd.f32 %v4926_v37, %v4758_v7 }
 0x664   : > { %v6107_v27 = vpack.c.bf16 %v4927_v55, %v4925_v58 }
 0x665   : > { %v4837_v44 = vpop.f32.mrf.mxu2 }
 0x666   : > { %6243 = vst [vmem:[%s6936_s16 + $0x28] sm:$0xff] %v6107_v27   ;;  %v4838_v28 = vadd.f32 %v7862_v0, %v4837_v44  ;;  %v5006_v43 = vpop.f32.mrf.mxu3 }
 0x667   : > { %v4760_v20 = vpop.f32.mrf.mxu0 }
 0x668   : > { %v5007_v30 = vadd.f32 %v5006_v43, %v4838_v28  ;;  %v4929_v2 = vpop.f32.mrf.mxu1  ;;  %v4761_v8 = vadd.f32 %v7862_v0, %v4760_v20 }
 0x66a   : > { %v6187_v60 = vpack.c.bf16 %v5007_v30, %v5005_v11  ;;  %4799 = vmatmul.bf16.gmra.mxu0 %v5723_v62  ;;  %4879 = vmatmul.bf16.gmra.mxu2 %v5851_v19  ;;  %v4930_v41 = vadd.f32 %v4929_v2, %v4761_v8 }
 0x66b   : > { %4968 = vmatmul.bf16.gmra.mxu1 %v5727_v35  ;;  %5048 = vmatmul.bf16.gmra.mxu3 %v5855_v47 }
 0x66c   : > { %6259 = vst [vmem:[%s6936_s16 + $0xa8] sm:$0xff] %v6187_v60  }
 0x66d   : > { %v4840_v53 = vpop.f32.mrf.mxu2 }
 0x66e   : > { %v5009_v17 = vpop.f32.mrf.mxu3  ;;  %v4841_v23 = vadd.f32 %v7862_v0, %v4840_v53 }
 0x66f   : > { %v4762_v48 = vpop.f32.mrf.mxu0 }
 0x670   : > { %v4763_v29 = vadd.f32 %v7862_v0, %v4762_v48  ;;  %v4931_v45 = vpop.f32.mrf.mxu1  ;;  %v5010_v6 = vadd.f32 %v5009_v17, %v4841_v23 }
 0x672   : > { %v4932_v4 = vadd.f32 %v4931_v45, %v4763_v29 }
 0x674   : > { %v6112_v57 = vpack.c.bf16 %v4932_v4, %v4930_v41 }
 0x675   : > { %v4842_v14 = vpop.f32.mrf.mxu2 }
 0x676   : > { %6244 = vst [vmem:[%s6936_s16 + $0x30] sm:$0xff] %v6112_v57   ;;  %v4843_v16 = vadd.f32 %v7862_v0, %v4842_v14  ;;  %v5011_v26 = vpop.f32.mrf.mxu3 }
 0x677   : > { %v4765_v51 = vpop.f32.mrf.mxu0 }
 0x678   : > { %v5012_v34 = vadd.f32 %v5011_v26, %v4843_v16  ;;  %v4934_v5 = vpop.f32.mrf.mxu1  ;;  %v4766_v31 = vadd.f32 %v7862_v0, %v4765_v51 }
 0x67a   : > { %v6192_v12 = vpack.c.bf16 %v5012_v34, %v5010_v6  ;;  %4804 = vmatmul.bf16.gmra.mxu0 %v5731_v15  ;;  %4884 = vmatmul.bf16.gmra.mxu2 %v5859_v13  ;;  %v4935_v40 = vadd.f32 %v4934_v5, %v4766_v31 }
 0x67b   : > { %4973 = vmatmul.bf16.gmra.mxu1 %v5735_v49  ;;  %5053 = vmatmul.bf16.gmra.mxu3 %v5863_v22 }
 0x67c   : > { %6260 = vst [vmem:[%s6936_s16 + $0xb0] sm:$0xff] %v6192_v12  }
 0x67d   : > { %v4845_v63 = vpop.f32.mrf.mxu2 }
 0x67e   : > { %v5014_v54 = vpop.f32.mrf.mxu3  ;;  %v4846_v37 = vadd.f32 %v7862_v0, %v4845_v63 }
 0x67f   : > { %v4767_v10 = vpop.f32.mrf.mxu0 }
 0x680   : > { %v4768_v33 = vadd.f32 %v7862_v0, %v4767_v10  ;;  %v4936_v56 = vpop.f32.mrf.mxu1  ;;  %v5015_v25 = vadd.f32 %v5014_v54, %v4846_v37 }
 0x682   : > { %v4937_v7 = vadd.f32 %v4936_v56, %v4768_v33 }
 0x684   : > { %v6117_v58 = vpack.c.bf16 %v4937_v7, %v4935_v40 }
 0x685   : > { %v4847_v55 = vpop.f32.mrf.mxu2 }
 0x686   : > { %6245 = vst [vmem:[%s6936_s16 + $0x38] sm:$0xff] %v6117_v58   ;;  %v4848_v36 = vadd.f32 %v7862_v0, %v4847_v55  ;;  %v5016_v38 = vpop.f32.mrf.mxu3 }
 0x687   : > { %v4770_v59 = vpop.f32.mrf.mxu0 }
 0x688   : > { %v5017_v61 = vadd.f32 %v5016_v38, %v4848_v36  ;;  %v4939_v1 = vpop.f32.mrf.mxu1  ;;  %v4771_v9 = vadd.f32 %v7862_v0, %v4770_v59 }
 0x68a   : > { %v6197_v27 = vpack.c.bf16 %v5017_v61, %v5015_v25  ;;  %v4940_v62 = vadd.f32 %v4939_v1, %v4771_v9 }
 0x68c   : > { %6261 = vst [vmem:[%s6936_s16 + $0xb8] sm:$0xff] %v6197_v27  }
 0x68d   : > { %v4850_v24 = vpop.f32.mrf.mxu2 }
 0x68e   : > { %v5019_v46 = vpop.f32.mrf.mxu3  ;;  %v4851_v20 = vadd.f32 %v7862_v0, %v4850_v24 }
 0x68f   : > { %v4772_v44 = vpop.f32.mrf.mxu0 }
 0x690   : > { %v4773_v28 = vadd.f32 %v7862_v0, %v4772_v44  ;;  %v4941_v43 = vpop.f32.mrf.mxu1  ;;  %v5020_v60 = vadd.f32 %v5019_v46, %v4851_v20 }
 0x692   : > { %v4942_v19 = vadd.f32 %v4941_v43, %v4773_v28 }
 0x694   : > { %v6122_v35 = vpack.c.bf16 %v4942_v19, %v4940_v62 }
 0x695   : > { %v4852_v47 = vpop.f32.mrf.mxu2 }
 0x696   : > { %6246 = vst [vmem:[%s6936_s16 + $0x40] sm:$0xff] %v6122_v35   ;;  %v4853_v11 = vadd.f32 %v7862_v0, %v4852_v47  ;;  %v5021_v30 = vpop.f32.mrf.mxu3 }
 0x697   : > { %v4775_v2 = vpop.f32.mrf.mxu0 }
 0x698   : > { %v5022_v53 = vadd.f32 %v5021_v30, %v4853_v11  ;;  %v4944_v8 = vpop.f32.mrf.mxu1  ;;  %v4776_v29 = vadd.f32 %v7862_v0, %v4775_v2 }
 0x69a   : > { %v6202_v17 = vpack.c.bf16 %v5022_v53, %v5020_v60  ;;  %v4945_v42 = vadd.f32 %v4944_v8, %v4776_v29 }
 0x69c   : > { %6262 = vst [vmem:[%s6936_s16 + $0xc0] sm:$0xff] %v6202_v17  }
 0x69d   : > { %v4855_v48 = vpop.f32.mrf.mxu2 }
 0x69e   : > { %v5024_v45 = vpop.f32.mrf.mxu3  ;;  %v4856_v52 = vadd.f32 %v7862_v0, %v4855_v48 }
 0x69f   : > { %v4777_v41 = vpop.f32.mrf.mxu0 }
 0x6a0   : > { %v4778_v4 = vadd.f32 %v7862_v0, %v4777_v41  ;;  %v4946_v21 = vpop.f32.mrf.mxu1  ;;  %v5025_v3 = vadd.f32 %v5024_v45, %v4856_v52 }
 0x6a2   : > { %v4947_v18 = vadd.f32 %v4946_v21, %v4778_v4 }
 0x6a4   : > { %v6127_v39 = vpack.c.bf16 %v4947_v18, %v4945_v42 }
 0x6a5   : > { %v4857_v23 = vpop.f32.mrf.mxu2 }
 0x6a6   : > { %6247 = vst [vmem:[%s6936_s16 + $0x48] sm:$0xff] %v6127_v39   ;;  %v4858_v57 = vadd.f32 %v7862_v0, %v4857_v23  ;;  %v5026_v50 = vpop.f32.mrf.mxu3 }
 0x6a7   : > { %v4780_v32 = vpop.f32.mrf.mxu0 }
 0x6a8   : > { %v5027_v14 = vadd.f32 %v5026_v50, %v4858_v57  ;;  %v4949_v16 = vpop.f32.mrf.mxu1  ;;  %v4781_v13 = vadd.f32 %v7862_v0, %v4780_v32 }
 0x6aa   : > { %v6207_v26 = vpack.c.bf16 %v5027_v14, %v5025_v3  ;;  %v4950_v34 = vadd.f32 %v4949_v16, %v4781_v13 }
 0x6ac   : > { %6263 = vst [vmem:[%s6936_s16 + $0xc8] sm:$0xff] %v6207_v26  }
 0x6ad   : > { %v4860_v15 = vpop.f32.mrf.mxu2 }
 0x6ae   : > { %v5029_v51 = vpop.f32.mrf.mxu3  ;;  %v4861_v12 = vadd.f32 %v7862_v0, %v4860_v15 }
 0x6af   : > { %v4782_v49 = vpop.f32.mrf.mxu0 }
 0x6b0   : > { %v4783_v22 = vadd.f32 %v7862_v0, %v4782_v49  ;;  %v4951_v6 = vpop.f32.mrf.mxu1  ;;  %v5030_v56 = vadd.f32 %v5029_v51, %v4861_v12 }
 0x6b2   : > { %v4952_v5 = vadd.f32 %v4951_v6, %v4783_v22 }
 0x6b4   : > { %v6132_v63 = vpack.c.bf16 %v4952_v5, %v4950_v34 }
 0x6b5   : > { %v4862_v31 = vpop.f32.mrf.mxu2 }
 0x6b6   : > { %6248 = vst [vmem:[%s6936_s16 + $0x50] sm:$0xff] %v6132_v63   ;;  %v4863_v54 = vadd.f32 %v7862_v0, %v4862_v31  ;;  %v5031_v10 = vpop.f32.mrf.mxu3 }
 0x6b7   : > { %v4785_v33 = vpop.f32.mrf.mxu0 }
 0x6b8   : > { %v5032_v40 = vadd.f32 %v5031_v10, %v4863_v54  ;;  %v4954_v7 = vpop.f32.mrf.mxu1  ;;  %v4786_v55 = vadd.f32 %v7862_v0, %v4785_v33 }
 0x6ba   : > { %v6212_v37 = vpack.c.bf16 %v5032_v40, %v5030_v56  ;;  %v4955_v61 = vadd.f32 %v4954_v7, %v4786_v55 }
 0x6bc   : > { %6264 = vst [vmem:[%s6936_s16 + $0xd0] sm:$0xff] %v6212_v37  }
 0x6bd   : > { %v4865_v58 = vpop.f32.mrf.mxu2 }
 0x6be   : > { %v5034_v36 = vpop.f32.mrf.mxu3  ;;  %v4866_v27 = vadd.f32 %v7862_v0, %v4865_v58 }
 0x6bf   : > { %v4787_v38 = vpop.f32.mrf.mxu0 }
 0x6c0   : > { %v4788_v59 = vadd.f32 %v7862_v0, %v4787_v38  ;;  %v4956_v25 = vpop.f32.mrf.mxu1  ;;  %v5035_v43 = vadd.f32 %v5034_v36, %v4866_v27 }
 0x6c2   : > { %v4957_v1 = vadd.f32 %v4956_v25, %v4788_v59 }
 0x6c4   : > { %v6137_v24 = vpack.c.bf16 %v4957_v1, %v4955_v61 }
 0x6c5   : > { %v4867_v9 = vpop.f32.mrf.mxu2 }
 0x6c6   : > { %6249 = vst [vmem:[%s6936_s16 + $0x58] sm:$0xff] %v6137_v24   ;;  %v4868_v46 = vadd.f32 %v7862_v0, %v4867_v9  ;;  %v5036_v44 = vpop.f32.mrf.mxu3  ;;  %v6432_v9 = vld [vmem:[#allocation12] ss:$0 sm:$0xff] }
 0x6c7   : > { %v4790_v28 = vpop.f32.mrf.mxu0 }
 0x6c8   : > { %v5037_v62 = vadd.f32 %v5036_v44, %v4868_v46  ;;  %v4959_v19 = vpop.f32.mrf.mxu1  ;;  %v4791_v47 = vadd.f32 %v7862_v0, %v4790_v28 }
 0x6ca   : > { %v6217_v20 = vpack.c.bf16 %v5037_v62, %v5035_v43  ;;  %v4960_v53 = vadd.f32 %v4959_v19, %v4791_v47 }
 0x6cc   : > { %6265 = vst [vmem:[%s6936_s16 + $0xd8] sm:$0xff] %v6217_v20  }
 0x6cd   : > { %v4870_v35 = vpop.f32.mrf.mxu2 }
 0x6ce   : > { %v5039_v11 = vpop.f32.mrf.mxu3  ;;  %v4871_v17 = vadd.f32 %v7862_v0, %v4870_v35 }
 0x6cf   : > { %v4792_v30 = vpop.f32.mrf.mxu0 }
 0x6d0   : > { %v4793_v2 = vadd.f32 %v7862_v0, %v4792_v30  ;;  %v4961_v60 = vpop.f32.mrf.mxu1  ;;  %v5040_v21 = vadd.f32 %v5039_v11, %v4871_v17 }
 0x6d2   : > { %v4962_v8 = vadd.f32 %v4961_v60, %v4793_v2 }
 0x6d4   : > { %v6142_v48 = vpack.c.bf16 %v4962_v8, %v4960_v53 }
 0x6d5   : > { %v4872_v29 = vpop.f32.mrf.mxu2 }
 0x6d6   : > { %6250 = vst [vmem:[%s6936_s16 + $0x60] sm:$0xff] %v6142_v48   ;;  %v4873_v45 = vadd.f32 %v7862_v0, %v4872_v29  ;;  %v5041_v41 = vpop.f32.mrf.mxu3 }
 0x6d7   : > { %v4795_v4 = vpop.f32.mrf.mxu0 }
 0x6d8   : > { %v5042_v42 = vadd.f32 %v5041_v41, %v4873_v45  ;;  %v4964_v18 = vpop.f32.mrf.mxu1  ;;  %v4796_v23 = vadd.f32 %v7862_v0, %v4795_v4 }
 0x6da   : > { %v6222_v52 = vpack.c.bf16 %v5042_v42, %v5040_v21  ;;  %v4965_v14 = vadd.f32 %v4964_v18, %v4796_v23 }
 0x6dc   : > { %6266 = vst [vmem:[%s6936_s16 + $0xe0] sm:$0xff] %v6222_v52  }
 0x6dd   : > { %v4875_v39 = vpop.f32.mrf.mxu2 }
 0x6de   : > { %v5044_v57 = vpop.f32.mrf.mxu3  ;;  %v4876_v26 = vadd.f32 %v7862_v0, %v4875_v39 }
 0x6df   : > { %v4797_v50 = vpop.f32.mrf.mxu0 }
 0x6e0   : > { %v4798_v32 = vadd.f32 %v7862_v0, %v4797_v50  ;;  %v4966_v3 = vpop.f32.mrf.mxu1  ;;  %v5045_v6 = vadd.f32 %v5044_v57, %v4876_v26 }
 0x6e2   : > { %v4967_v16 = vadd.f32 %v4966_v3, %v4798_v32 }
 0x6e4   : > { %v6147_v15 = vpack.c.bf16 %v4967_v16, %v4965_v14 }
 0x6e5   : > { %v4877_v13 = vpop.f32.mrf.mxu2 }
 0x6e6   : > { %6251 = vst [vmem:[%s6936_s16 + $0x68] sm:$0xff] %v6147_v15   ;;  %v4878_v51 = vadd.f32 %v7862_v0, %v4877_v13  ;;  %v5046_v49 = vpop.f32.mrf.mxu3 }
 0x6e7   : > { %v4800_v22 = vpop.f32.mrf.mxu0 }
 0x6e8   : > { %v5047_v34 = vadd.f32 %v5046_v49, %v4878_v51  ;;  %v4969_v5 = vpop.f32.mrf.mxu1  ;;  %v4801_v31 = vadd.f32 %v7862_v0, %v4800_v22 }
 0x6ea   : > { %v6227_v12 = vpack.c.bf16 %v5047_v34, %v5045_v6  ;;  %v4970_v40 = vadd.f32 %v4969_v5, %v4801_v31 }
 0x6ec   : > { %6267 = vst [vmem:[%s6936_s16 + $0xe8] sm:$0xff] %v6227_v12  }
 0x6ed   : > { %v4880_v63 = vpop.f32.mrf.mxu2 }
 0x6ee   : > { %v5049_v54 = vpop.f32.mrf.mxu3  ;;  %v4881_v37 = vadd.f32 %v7862_v0, %v4880_v63 }
 0x6ef   : > { %v4802_v10 = vpop.f32.mrf.mxu0 }
 0x6f0   : > { %v4803_v33 = vadd.f32 %v7862_v0, %v4802_v10  ;;  %v4971_v56 = vpop.f32.mrf.mxu1  ;;  %v5050_v25 = vadd.f32 %v5049_v54, %v4881_v37 }
 0x6f2   : > { %v4972_v7 = vadd.f32 %v4971_v56, %v4803_v33 }
 0x6f4   : > { %v6152_v58 = vpack.c.bf16 %v4972_v7, %v4970_v40 }
 0x6f5   : > { %v4882_v55 = vpop.f32.mrf.mxu2 }
 0x6f6   : > { %6252 = vst [vmem:[%s6936_s16 + $0x70] sm:$0xff] %v6152_v58   ;;  %v4883_v36 = vadd.f32 %v7862_v0, %v4882_v55  ;;  %v5051_v38 = vpop.f32.mrf.mxu3 }
 0x6f7   : > { %v4805_v59 = vpop.f32.mrf.mxu0 }
 0x6f8   : > { %v5052_v61 = vadd.f32 %v5051_v38, %v4883_v36  ;;  %v4974_v1 = vpop.f32.mrf.mxu1  ;;  %v4806_v46 = vadd.f32 %v6432_v9, %v4805_v59 }
 0x6fa   : > { %v6232_v27 = vpack.c.bf16 %v5052_v61, %v5050_v25  ;;  %v4975_v19 = vadd.f32 %v4974_v1, %v4806_v46 }
 0x6fc   : > { %6268 = vst [vmem:[%s6936_s16 + $0xf0] sm:$0xff] %v6232_v27  }
 0x6fd   : > { %v4885_v24 = vpop.f32.mrf.mxu2 }
 0x6fe   : > { %v5054_v44 = vpop.f32.mrf.mxu3  ;;  %v4886_v35 = vadd.f32 %v6432_v9, %v4885_v24 }
 0x6ff   : > { %v4807_v28 = vpop.f32.mrf.mxu0 }
 0x700   : > { %v4808_v43 = vadd.f32 %v6432_v9, %v4807_v28  ;;  %v4976_v62 = vpop.f32.mrf.mxu1  ;;  %v5055_v2 = vadd.f32 %v5054_v44, %v4886_v35 }
 0x702   : > { %v4977_v20 = vadd.f32 %v4976_v62, %v4808_v43 }
 0x704   : > { %v6157_v0 = vpack.c.bf16 %v4977_v20, %v4975_v19 }
 0x705   : > { %v4887_v47 = vpop.f32.mrf.mxu2 }
 0x706   : > { %6253 = vst [vmem:[%s6936_s16 + $0x78] sm:$0xff] %v6157_v0   ;;  %v4888_v11 = vadd.f32 %v6432_v9, %v4887_v47  ;;  %v5056_v30 = vpop.f32.mrf.mxu3 }
 0x708   : > { %v5057_v60 = vadd.f32 %v5056_v30, %v4888_v11 }
 0x70a   : > { %v6237_v53 = vpack.c.bf16 %v5057_v60, %v5055_v2 }
 0x70c   : > { %6269 = vst [vmem:[%s6936_s16 + $0xf8] sm:$0xff] %v6237_v53  }
 0x70d PF: > { %s6078_s8 = sshll.u32 %s6685_s28, 8  ;;  %s5200_s14 = sshll.u32 %s6936_s16, 4  ;;  %s5201_s14 = int_to_ptr.vmem [resolvable:$true] %s5200_s14 }
 0x70e   : > { %s5199_s2 = scalar_lea.hbm %s8035_s5, %s6078_s8  ;;  %s5188_s9 = scalar_lea.sflag [#allocation8], %s313_s24 }
 0x70f   : > { %s5202_s26 = sshll.u32 %s5199_s2, 4  ;;  %s6585_s28 = scalar_lea.hbm %s8035_s5, 1024  ;;  %s5203_s26 = int_to_ptr.hbm [resolvable:$true] %s5202_s26 }
 0x710   : > { %s6579_s10 = sshra.s32 %s5203_s26, 4  ;;  %s6580_s10 = int_to_ptr.hbm [resolvable:$true] %s6579_s10 }
 0x711   : > { %s6581_s18 = scalar_lea.hbm %s6580_s10, 256  ;;  %p6586_p4 = scmp.lt.s32.totalorder %s6580_s10, %s8035_s5 }
 0x712   : > { %p6582_p12 = scmp.ne.s32.totalorder %s6580_s10, %s6581_s18  ;;  %p6587_p5 = scmp.lt.s32.totalorder %s6585_s28, %s6581_s18 }
 0x714   : > { %p6583_p0 = pnand %p6582_p12, %p6813_p7  ;;  %p6588_p6 = por %p6587_p5, %p6586_p4 }
 0x716   : > { %p6584_p2 = pneg %p6583_p0 }
 0x718   : > { %p6589_p8 = pnand %p6588_p6, %p6584_p2 }
 0x71a   : > { %6592 = shalt.err (!%p6589_p8)
}
 0x71b   : > { %s6708_s24 = smov 64   ;;  %s6709_s16 = smov 4  }
 0x71c   : > { %6302 = dma.vmem_to_hbm [thread:$0]  (%p6813_p7), %s5201_s14, 4096, %s5203_s26, %s5188_s9, %s6708_s24, %s6708_s24, %s6709_s16  }
 0x71d PF: > { %p6331_p10 = scmp.ge.s32.totalorder %s6697_s6, 2  ;;  %s5217_s29 = sand.u32 1, %s6657_s22  }
 0x71e   : > { %s5218_s13 = scalar_lea.sflag [#allocation8], %s5217_s29 }
 0x71f   : > { %p6321_p13 = pnand %p6331_p10, %p6818_p9 }
 0x721   : > { %p6322_p3 = pneg %p6321_p13 }
 0x723   : > { %6652 = dma.done.wait (%p6322_p3), %s5218_s13, 4096  }
 0x724   : > { %6654 = vsyncadd (%p6322_p3), %s5218_s13, 4294963200  ;;  %s31_s6 = sadd.s32 1, %s6697_s6   ;;  %s8134_s25 = sld [smem:[#allocation22_spill]] }
 0x725   : > { %p28_p1 = scmp.ge.s32.totalorder %s31_s6, 10   ;;  %s8135_s24 = sld [smem:[#allocation28_spill]] }
 0x726   : > { %s8136_s11 = sld [smem:[#allocation23_spill]]  ;;  %s8141_s22 = smov %s6661_s23 }
 0x727   : > { %s8137_s26 = sld [smem:[#allocation29_spill]]  ;;  %s8145_s28 = smov %s6693_s30 }
 0x728   : > { %s8138_s27 = sld [smem:[#allocation24_spill]] }
 0x729   : > { %s8139_s29 = sld [smem:[#allocation26_spill]] }
 0x72a   : > { %s8140_s19 = sld [smem:[#allocation27_spill]]  ;;  %s8142_s23 = smov %s8134_s25 }
 0x72b   : > { %s8143_s25 = smov %s6673_s0 }
 0x72c   : > { %s8144_s0 = smov %s8136_s11  ;;  %30 = sbr.rel (!%p28_p1) target bundleno = 19 (0x13), region = 107 }
 0x730   : > { %s8146_s30 = smov %s8140_s19 }
 0x731   :  { %5224 = vsyncpa [#allocation7], 1 }
 0x732   :  { %5226 = vsyncpa [#allocation7 + $0x1], 1 }
 0x733   :  { %5227 = vsyncpa [#allocation10], 1 }
 0x734   :  { %5228 = vsyncpa [#allocation13], 1 }
 0x735   :  { %5229 = vsyncpa [#allocation8], 1 }
 0x736   :  { %5231 = vsyncpa [#allocation8 + $0x1], 1 }

</bundles_post_ra>
